<compile_context>
chip_gen: v7x
topology: tpu7x:2x2x1
jax: 0.10.0
libtpu: 0.0.40
codegen_flags: <defaults>
</compile_context>

<pallas_src>
import numpy as np
import jax
import jax.numpy as jnp
from jax.experimental import pallas as pl
from jax.experimental.pallas import tpu as pltpu

_VMEM_LIMIT = 32 * 1024 * 1024  # conservative; fits v5e/v6e/v7x scoped VMEM


def _interp_matrix(n_in: int, n_out: int) -> np.ndarray:
    """Row interpolation matrix for bilinear upsampling, align_corners=True."""
    A = np.zeros((n_out, n_in), dtype=np.float32)
    if n_in == 1:
        A[:, 0] = 1.0
        return A
    scale = (n_in - 1) / (n_out - 1)
    for i in range(n_out):
        src = i * scale
        i0 = min(int(np.floor(src)), n_in - 2)
        f = src - i0
        A[i, i0] += 1.0 - f
        A[i, i0 + 1] += f
    return A


# ---------------------------------------------------------------------------
# Kernel 1: small dense matmul (used twice for the separable bilinear x2
# upsample). Lane dim of the RHS carries W*N*C (rows pass) / Ho*N*C (cols
# pass), so the MXU lanes are well used even with few channels.
# ---------------------------------------------------------------------------
def _matmul_kernel(a_ref, b_ref, o_ref):
    o_ref[...] = jnp.dot(a_ref[...], b_ref[...],
                         preferred_element_type=jnp.float32).astype(o_ref.dtype)


def _pallas_matmul(a, b):
    M, K = a.shape
    _, L = b.shape
    return pl.pallas_call(
        _matmul_kernel,
        out_shape=jax.ShapeDtypeStruct((M, L), jnp.float32),
        grid_spec=pltpu.PrefetchScalarGridSpec(
            num_scalar_prefetch=0,
            grid=(1,),
            in_specs=[
                pl.BlockSpec((M, K), lambda i: (0, 0)),
                pl.BlockSpec((K, L), lambda i: (0, 0)),
            ],
            out_specs=pl.BlockSpec((M, L), lambda i: (0, 0)),
        ),
        compiler_params=pltpu.CompilerParams(
            dimension_semantics=("arbitrary",),
            vmem_limit_bytes=_VMEM_LIMIT),
    )(a, b)


def bilinear_upsample_x2(x):
    """x: (N, H, W, C) -> (N, 2H, 2W, C), bilinear, align_corners=True.

    Separable: out[n,i,j,c] = sum_h Ah[i,h] * sum_w Aw[j,w] * x[n,h,w,c].
    KB-scale interpolation matrices instead of an O((H*W)^2) Kronecker matrix.
    """
    N, H, W, C = x.shape
    Ho, Wo = 2 * H, 2 * W
    Ah = jnp.asarray(_interp_matrix(H, Ho))   # (Ho, H)
    Aw = jnp.asarray(_interp_matrix(W, Wo))   # (Wo, W)

    # Rows pass: contract H, lanes = W*N*C.
    xr = jnp.transpose(x, (1, 2, 0, 3)).reshape(H, W * N * C)
    t = _pallas_matmul(Ah, xr)                               # (Ho, W*N*C)

    # Cols pass: contract W, lanes = Ho*N*C.
    tr = jnp.transpose(t.reshape(Ho, W, N * C), (1, 0, 2)).reshape(W, Ho * N * C)
    u = _pallas_matmul(Aw, tr)                               # (Wo, Ho*N*C)

    out = jnp.transpose(u.reshape(Wo, Ho, N, C), (2, 1, 0, 3))  # (N, Ho, Wo, C)
    return out.astype(x.dtype)


# ---------------------------------------------------------------------------
# Kernel 2: 3x3 conv (padding=1, no bias) via im2col built once into a VMEM
# scratch + ONE MXU matmul with contracting dim 9*Cin. Also emits per-image
# sum / sum-of-squares partials for the (global, training-mode) BatchNorm.
# ---------------------------------------------------------------------------
def _conv_im2col_kernel(xpad_ref, w_ref, conv_ref, sum_ref, sq_ref, patches_ref):
    # xpad_ref: (1, H+2, W+2, Cin)   w_ref: (9*Cin, Cout)
    # conv_ref: (1, H*W, Cout) f32   sum_ref/sq_ref: (1, 1, Cout) f32
    # patches_ref (scratch): (H*W, 9*Cin) f32
    _, Hp, Wp, Cin = xpad_ref.shape
    H, W = Hp - 2, Wp - 2
    xp = xpad_ref[0]                                   # (Hp, Wp, Cin)

    # Build the im2col buffer once (9 static-slice stores into VMEM scratch).
    for dy in range(3):
        for dx in range(3):
            col = (dy * 3 + dx) * Cin
            patches_ref[:, col:col + Cin] = (
                xp[dy:dy + H, dx:dx + W, :].reshape(H * W, Cin))

    # Single large contraction on the MXU: (H*W, 9*Cin) @ (9*Cin, Cout).
    acc = jnp.dot(patches_ref[...], w_ref[...],
                  preferred_element_type=jnp.float32)   # (H*W, Cout)

    conv_ref[0] = acc
    sum_ref[0] = jnp.sum(acc, axis=0, keepdims=True)
    sq_ref[0] = jnp.sum(acc * acc, axis=0, keepdims=True)


# ---------------------------------------------------------------------------
# Kernel 3: elementwise BatchNorm (precomputed per-channel scale/shift) + ReLU.
# ---------------------------------------------------------------------------
def _bn_relu_kernel(conv_ref, scale_ref, shift_ref, out_ref):
    # conv_ref/out_ref: (1, H*W, Cout)   scale/shift: (1, 1, Cout)
    y = conv_ref[...] * scale_ref[...] + shift_ref[...]
    out_ref[...] = jnp.maximum(y, 0.0).astype(out_ref.dtype)


def conv_bn_relu(x, w, gamma, beta, eps=1e-5):
    """x: (N, H, W, Cin) NHWC. Conv3x3(pad=1, no bias) + BN(batch stats) + ReLU."""
    N, H, W, Cin = x.shape
    Cout = w.shape[3]
    HW = H * W

    xpad = jnp.pad(x, ((0, 0), (1, 1), (1, 1), (0, 0)))
    w_flat = w.reshape(9 * Cin, Cout)   # (dy, dx, cin) row-major -> matches im2col

    conv, s, sq = pl.pallas_call(
        _conv_im2col_kernel,
        out_shape=(
            jax.ShapeDtypeStruct((N, HW, Cout), jnp.float32),
            jax.ShapeDtypeStruct((N, 1, Cout), jnp.float32),
            jax.ShapeDtypeStruct((N, 1, Cout), jnp.float32),
        ),
        grid_spec=pltpu.PrefetchScalarGridSpec(
            num_scalar_prefetch=0,
            grid=(N,),
            in_specs=[
                pl.BlockSpec((1, H + 2, W + 2, Cin), lambda n: (n, 0, 0, 0)),
                pl.BlockSpec((9 * Cin, Cout), lambda n: (0, 0)),
            ],
            out_specs=(
                pl.BlockSpec((1, HW, Cout), lambda n: (n, 0, 0)),
                pl.BlockSpec((1, 1, Cout), lambda n: (n, 0, 0)),
                pl.BlockSpec((1, 1, Cout), lambda n: (n, 0, 0)),
            ),
            scratch_shapes=[pltpu.VMEM((HW, 9 * Cin), jnp.float32)],
        ),
        compiler_params=pltpu.CompilerParams(
            dimension_semantics=("parallel",),
            vmem_limit_bytes=_VMEM_LIMIT),
    )(xpad, w_flat)

    # Global (N, H, W) batch statistics (PyTorch training-mode BN): tiny glue
    # reduction of the per-image partials, then fold gamma/beta into a single
    # per-channel scale/shift.
    count = float(N * HW)
    total = jnp.sum(s, axis=(0, 1))          # (Cout,)
    total_sq = jnp.sum(sq, axis=(0, 1))      # (Cout,)
    mean = total / count
    var = total_sq / count - mean * mean     # biased variance (training mode)
    inv = jax.lax.rsqrt(var + eps)
    scale = (gamma * inv).reshape(1, 1, Cout)
    shift = (beta - mean * gamma * inv).reshape(1, 1, Cout)

    y = pl.pallas_call(
        _bn_relu_kernel,
        out_shape=jax.ShapeDtypeStruct((N, HW, Cout), jnp.float32),
        grid_spec=pltpu.PrefetchScalarGridSpec(
            num_scalar_prefetch=0,
            grid=(N,),
            in_specs=[
                pl.BlockSpec((1, HW, Cout), lambda n: (n, 0, 0)),
                pl.BlockSpec((1, 1, Cout), lambda n: (0, 0, 0)),
                pl.BlockSpec((1, 1, Cout), lambda n: (0, 0, 0)),
            ],
            out_specs=pl.BlockSpec((1, HW, Cout), lambda n: (n, 0, 0)),
        ),
        compiler_params=pltpu.CompilerParams(
            dimension_semantics=("parallel",),
            vmem_limit_bytes=_VMEM_LIMIT),
    )(conv, scale, shift)

    return y.reshape(N, H, W, Cout).astype(x.dtype)


# ---------------------------------------------------------------------------
# Parameter init (deterministic, shapes per UpScale.__init__ with bilinear=True)
# ---------------------------------------------------------------------------
def init_upscale_params(key, in_channels, out_channels):
    mid = in_channels // 2
    k1, k2 = jax.random.split(key)
    return dict(
        w1=jax.random.normal(k1, (3, 3, in_channels, mid), jnp.float32) * 0.1,
        gamma1=jnp.ones((mid,), jnp.float32),
        beta1=jnp.zeros((mid,), jnp.float32),
        w2=jax.random.normal(k2, (3, 3, mid, out_channels), jnp.float32) * 0.1,
        gamma2=jnp.ones((out_channels,), jnp.float32),
        beta2=jnp.zeros((out_channels,), jnp.float32),
    )


@jax.jit
def upscale_forward(params, x1_nchw, x2_nchw):
    # NCHW -> NHWC (glue)
    x1 = jnp.transpose(x1_nchw, (0, 2, 3, 1))
    x2 = jnp.transpose(x2_nchw, (0, 2, 3, 1))
    # x1 = self.up(x1)  (bilinear x2, align_corners=True) -- Pallas (separable)
    x1u = bilinear_upsample_x2(x1)
    # F.pad(x1, [diffX//2, diffX-diffX//2, diffY//2, diffY-diffY//2]) (glue)
    diffY = x2.shape[1] - x1u.shape[1]
    diffX = x2.shape[2] - x1u.shape[2]
    x1u = jnp.pad(x1u, ((0, 0),
                        (diffY // 2, diffY - diffY // 2),
                        (diffX // 2, diffX - diffX // 2),
                        (0, 0)))
    # torch.cat([x2, x1], dim=1) == channel-last concat (glue)
    x = jnp.concatenate([x2, x1u], axis=-1)
    # ConvBlock: (conv3x3 -> BN -> ReLU) x 2 -- Pallas kernels
    h = conv_bn_relu(x, params["w1"], params["gamma1"], params["beta1"])
    y = conv_bn_relu(h, params["w2"], params["gamma2"], params["beta2"])
    # NHWC -> NCHW (glue)
    return jnp.transpose(y, (0, 3, 1, 2))


if __name__ == "__main__":
    in_channels, out_channels = 16, 16
    N, C1, H1, W1 = 2, 8, 8, 8                      # x1: deep features (upsampled)
    C2, H2, W2 = in_channels - C1, 2 * H1, 2 * W1   # x2: skip connection

    key = jax.random.PRNGKey(0)
    kx1, kx2, kp = jax.random.split(key, 3)
    x1 = jax.random.normal(kx1, (N, C1, H1, W1), jnp.float32)
    x2 = jax.random.normal(kx2, (N, C2, H2, W2), jnp.float32)
    params = init_upscale_params(kp, in_channels, out_channels)

    out = upscale_forward(params, x1, x2)
    out = jax.block_until_ready(out)

    assert out.shape == (N, out_channels, H2, W2), out.shape
    assert bool(jnp.all(jnp.isfinite(out)))
    print("KERNEL_OK")
</pallas_src>

<mosaic_0001>
module attributes {stable_mosaic.version = 11 : i64} {
  func.func @_matmul_kernel(%arg0: i32, %arg1: memref<16x8xf32, #tpu.memory_space<vmem>>, %arg2: memref<8x128xf32, #tpu.memory_space<vmem>>, %arg3: memref<16x128xf32, #tpu.memory_space<vmem>>) attributes {dimension_semantics = [#tpu.dimension_semantics<arbitrary>], iteration_bounds = array<i64: 1>, scalar_prefetch = 0 : i64, scratch_operands = 0 : i64, tpu.core_type = #tpu.core_type<tc>, window_params = [{pipeline_mode = #tpu.pipeline_mode<synchronous>, transform_indices = @transform_0, window_bounds = array<i64: 16, 8>}, {pipeline_mode = #tpu.pipeline_mode<synchronous>, transform_indices = @transform_1, window_bounds = array<i64: 8, 128>}, {pipeline_mode = #tpu.pipeline_mode<synchronous>, transform_indices = @transform_2, window_bounds = array<i64: 16, 128>}]} {
    %c0 = arith.constant 0 : index
    %c0_0 = arith.constant 0 : index
    %0 = vector.load %arg1[%c0, %c0_0] : memref<16x8xf32, #tpu.memory_space<vmem>>, vector<16x8xf32>
    %c0_1 = arith.constant 0 : index
    %c0_2 = arith.constant 0 : index
    %1 = vector.load %arg2[%c0_1, %c0_2] : memref<8x128xf32, #tpu.memory_space<vmem>>, vector<8x128xf32>
    %cst = arith.constant dense<0.000000e+00> : vector<16x128xf32>
    %2 = tpu.matmul %0, %1, %cst {dimension_numbers = #tpu.dot_dimension_numbers<[1], [0], [0], [1], [0, 0, 1, 1], [], []>} : vector<16x8xf32>, vector<8x128xf32>, vector<16x128xf32> -> vector<16x128xf32>
    %c0_3 = arith.constant 0 : index
    %c0_4 = arith.constant 0 : index
    %3 = vector.load %arg3[%c0_3, %c0_4] : memref<16x128xf32, #tpu.memory_space<vmem>>, vector<16x128xf32>
    tpu.vector_store %arg3[%c0_3, %c0_4], %2 {strides = array<i32>} : memref<16x128xf32, #tpu.memory_space<vmem>>, vector<16x128xf32>,
    return
  }
  func.func @transform_0(%arg0: i32) -> (i32, i32) {
    %c0_i32 = arith.constant 0 : i32
    %c0_i32_0 = arith.constant 0 : i32
    %c0_i32_1 = arith.constant 0 : i32
    return %c0_i32, %c0_i32_0 : i32, i32
  }
  func.func @transform_1(%arg0: i32) -> (i32, i32) {
    %c0_i32 = arith.constant 0 : i32
    %c0_i32_0 = arith.constant 0 : i32
    %c0_i32_1 = arith.constant 0 : i32
    return %c0_i32, %c0_i32_0 : i32, i32
  }
  func.func @transform_2(%arg0: i32) -> (i32, i32) {
    %c0_i32 = arith.constant 0 : i32
    %c0_i32_0 = arith.constant 0 : i32
    %c0_i32_1 = arith.constant 0 : i32
    return %c0_i32, %c0_i32_0 : i32, i32
  }
}

module attributes {stable_mosaic.version = 11 : i64} {
  func.func @_matmul_kernel(%arg0: i32, %arg1: memref<16x8xf32, #tpu.memory_space<vmem>>, %arg2: memref<8x256xf32, #tpu.memory_space<vmem>>, %arg3: memref<16x256xf32, #tpu.memory_space<vmem>>) attributes {dimension_semantics = [#tpu.dimension_semantics<arbitrary>], iteration_bounds = array<i64: 1>, scalar_prefetch = 0 : i64, scratch_operands = 0 : i64, tpu.core_type = #tpu.core_type<tc>, window_params = [{pipeline_mode = #tpu.pipeline_mode<synchronous>, transform_indices = @transform_0, window_bounds = array<i64: 16, 8>}, {pipeline_mode = #tpu.pipeline_mode<synchronous>, transform_indices = @transform_1, window_bounds = array<i64: 8, 256>}, {pipeline_mode = #tpu.pipeline_mode<synchronous>, transform_indices = @transform_2, window_bounds = array<i64: 16, 256>}]} {
    %c0 = arith.constant 0 : index
    %c0_0 = arith.constant 0 : index
    %0 = vector.load %arg1[%c0, %c0_0] : memref<16x8xf32, #tpu.memory_space<vmem>>, vector<16x8xf32>
    %c0_1 = arith.constant 0 : index
    %c0_2 = arith.constant 0 : index
    %1 = vector.load %arg2[%c0_1, %c0_2] : memref<8x256xf32, #tpu.memory_space<vmem>>, vector<8x256xf32>
    %cst = arith.constant dense<0.000000e+00> : vector<16x256xf32>
    %2 = tpu.matmul %0, %1, %cst {dimension_numbers = #tpu.dot_dimension_numbers<[1], [0], [0], [1], [0, 0, 1, 1], [], []>} : vector<16x8xf32>, vector<8x256xf32>, vector<16x256xf32> -> vector<16x256xf32>
    %c0_3 = arith.constant 0 : index
    %c0_4 = arith.constant 0 : index
    %3 = vector.load %arg3[%c0_3, %c0_4] : memref<16x256xf32, #tpu.memory_space<vmem>>, vector<16x256xf32>
    tpu.vector_store %arg3[%c0_3, %c0_4], %2 {strides = array<i32>} : memref<16x256xf32, #tpu.memory_space<vmem>>, vector<16x256xf32>,
    return
  }
  func.func @transform_0(%arg0: i32) -> (i32, i32) {
    %c0_i32 = arith.constant 0 : i32
    %c0_i32_0 = arith.constant 0 : i32
    %c0_i32_1 = arith.constant 0 : i32
    return %c0_i32, %c0_i32_0 : i32, i32
  }
  func.func @transform_1(%arg0: i32) -> (i32, i32) {
    %c0_i32 = arith.constant 0 : i32
    %c0_i32_0 = arith.constant 0 : i32
    %c0_i32_1 = arith.constant 0 : i32
    return %c0_i32, %c0_i32_0 : i32, i32
  }
  func.func @transform_2(%arg0: i32) -> (i32, i32) {
    %c0_i32 = arith.constant 0 : i32
    %c0_i32_0 = arith.constant 0 : i32
    %c0_i32_1 = arith.constant 0 : i32
    return %c0_i32, %c0_i32_0 : i32, i32
  }
}

module attributes {stable_mosaic.version = 11 : i64} {
  func.func @_bn_relu_kernel(%arg0: i32, %arg1: memref<1x256x8xf32, #tpu.memory_space<vmem>>, %arg2: memref<1x1x8xf32, #tpu.memory_space<vmem>>, %arg3: memref<1x1x8xf32, #tpu.memory_space<vmem>>, %arg4: memref<1x256x8xf32, #tpu.memory_space<vmem>>) attributes {dimension_semantics = [#tpu.dimension_semantics<parallel>], iteration_bounds = array<i64: 2>, scalar_prefetch = 0 : i64, scratch_operands = 0 : i64, tpu.core_type = #tpu.core_type<tc>, window_params = [{transform_indices = @transform_0, window_bounds = array<i64: 1, 256, 8>}, {pipeline_mode = #tpu.pipeline_mode<synchronous>, transform_indices = @transform_1, window_bounds = array<i64: 1, 1, 8>}, {pipeline_mode = #tpu.pipeline_mode<synchronous>, transform_indices = @transform_2, window_bounds = array<i64: 1, 1, 8>}, {transform_indices = @transform_3, window_bounds = array<i64: 1, 256, 8>}]} {
    %c0 = arith.constant 0 : index
    %c0_0 = arith.constant 0 : index
    %c0_1 = arith.constant 0 : index
    %0 = vector.load %arg1[%c0, %c0_0, %c0_1] : memref<1x256x8xf32, #tpu.memory_space<vmem>>, vector<1x256x8xf32>
    %c0_2 = arith.constant 0 : index
    %c0_3 = arith.constant 0 : index
    %c0_4 = arith.constant 0 : index
    %1 = vector.load %arg2[%c0_2, %c0_3, %c0_4] : memref<1x1x8xf32, #tpu.memory_space<vmem>>, vector<1x1x8xf32>
    %2 = vector.broadcast %1 : vector<1x1x8xf32> to vector<1x256x8xf32>
    %3 = arith.mulf %0, %2 : vector<1x256x8xf32>
    %c0_5 = arith.constant 0 : index
    %c0_6 = arith.constant 0 : index
    %c0_7 = arith.constant 0 : index
    %4 = vector.load %arg3[%c0_5, %c0_6, %c0_7] : memref<1x1x8xf32, #tpu.memory_space<vmem>>, vector<1x1x8xf32>
    %5 = vector.broadcast %4 : vector<1x1x8xf32> to vector<1x256x8xf32>
    %6 = arith.addf %3, %5 : vector<1x256x8xf32>
    %cst = arith.constant 0.000000e+00 : f32
    %7 = vector.broadcast %cst : f32 to vector<1x256x8xf32>
    %8 = arith.maximumf %6, %7 : vector<1x256x8xf32>
    %c0_8 = arith.constant 0 : index
    %c0_9 = arith.constant 0 : index
    %c0_10 = arith.constant 0 : index
    %9 = vector.load %arg4[%c0_8, %c0_9, %c0_10] : memref<1x256x8xf32, #tpu.memory_space<vmem>>, vector<1x256x8xf32>
    tpu.vector_store %arg4[%c0_8, %c0_9, %c0_10], %8 {strides = array<i32>} : memref<1x256x8xf32, #tpu.memory_space<vmem>>, vector<1x256x8xf32>,
    return
  }
  func.func @transform_0(%arg0: i32) -> (i32, i32, i32) {
    %c0_i32 = arith.constant 0 : i32
    %c0_i32_0 = arith.constant 0 : i32
    %c0_i32_1 = arith.constant 0 : i32
    return %arg0, %c0_i32, %c0_i32_0 : i32, i32, i32
  }
  func.func @transform_1(%arg0: i32) -> (i32, i32, i32) {
    %c0_i32 = arith.constant 0 : i32
    %c0_i32_0 = arith.constant 0 : i32
    %c0_i32_1 = arith.constant 0 : i32
    %c0_i32_2 = arith.constant 0 : i32
    return %c0_i32, %c0_i32_0, %c0_i32_1 : i32, i32, i32
  }
  func.func @transform_2(%arg0: i32) -> (i32, i32, i32) {
    %c0_i32 = arith.constant 0 : i32
    %c0_i32_0 = arith.constant 0 : i32
    %c0_i32_1 = arith.constant 0 : i32
    %c0_i32_2 = arith.constant 0 : i32
    return %c0_i32, %c0_i32_0, %c0_i32_1 : i32, i32, i32
  }
  func.func @transform_3(%arg0: i32) -> (i32, i32, i32) {
    %c0_i32 = arith.constant 0 : i32
    %c0_i32_0 = arith.constant 0 : i32
    %c0_i32_1 = arith.constant 0 : i32
    return %arg0, %c0_i32, %c0_i32_0 : i32, i32, i32
  }
}

module attributes {stable_mosaic.version = 11 : i64} {
  func.func @_conv_im2col_kernel(%arg0: i32, %arg1: memref<1x18x18x16xf32, #tpu.memory_space<vmem>>, %arg2: memref<144x8xf32, #tpu.memory_space<vmem>>, %arg3: memref<1x256x8xf32, #tpu.memory_space<vmem>>, %arg4: memref<1x1x8xf32, #tpu.memory_space<vmem>>, %arg5: memref<1x1x8xf32, #tpu.memory_space<vmem>>, %arg6: memref<256x144xf32, #tpu.memory_space<vmem>>) attributes {dimension_semantics = [#tpu.dimension_semantics<parallel>], iteration_bounds = array<i64: 2>, scalar_prefetch = 0 : i64, scratch_operands = 1 : i64, tpu.core_type = #tpu.core_type<tc>, window_params = [{transform_indices = @transform_0, window_bounds = array<i64: 1, 18, 18, 16>}, {pipeline_mode = #tpu.pipeline_mode<synchronous>, transform_indices = @transform_1, window_bounds = array<i64: 144, 8>}, {transform_indices = @transform_2, window_bounds = array<i64: 1, 256, 8>}, {transform_indices = @transform_3, window_bounds = array<i64: 1, 1, 8>}, {transform_indices = @transform_4, window_bounds = array<i64: 1, 1, 8>}]} {
    %c0 = arith.constant 0 : index
    %c0_0 = arith.constant 0 : index
    %c0_1 = arith.constant 0 : index
    %c0_2 = arith.constant 0 : index
    %0 = vector.load %arg1[%c0, %c0_0, %c0_1, %c0_2] : memref<1x18x18x16xf32, #tpu.memory_space<vmem>>, vector<1x18x18x16xf32>
    %1 = vector.shape_cast %0 : vector<1x18x18x16xf32> to vector<18x18x16xf32>
    %2 = vector.extract_strided_slice %1 {offsets = [0, 0, 0], sizes = [16, 16, 16], strides = [1, 1, 1]} : vector<18x18x16xf32> to vector<16x16x16xf32>
    %3 = vector.shape_cast %2 : vector<16x16x16xf32> to vector<256x16xf32>
    %c0_3 = arith.constant 0 : index
    %c0_4 = arith.constant 0 : index
    %4 = vector.load %arg6[%c0_3, %c0_4] : memref<256x144xf32, #tpu.memory_space<vmem>>, vector<256x16xf32>
    tpu.vector_store %arg6[%c0_3, %c0_4], %3 {strides = array<i32>} : memref<256x144xf32, #tpu.memory_space<vmem>>, vector<256x16xf32>,
    %5 = vector.extract_strided_slice %1 {offsets = [0, 1, 0], sizes = [16, 16, 16], strides = [1, 1, 1]} : vector<18x18x16xf32> to vector<16x16x16xf32>
    %6 = vector.shape_cast %5 : vector<16x16x16xf32> to vector<256x16xf32>
    %c0_5 = arith.constant 0 : index
    %c16 = arith.constant 16 : index
    %7 = vector.load %arg6[%c0_5, %c16] : memref<256x144xf32, #tpu.memory_space<vmem>>, vector<256x16xf32>
    tpu.vector_store %arg6[%c0_5, %c16], %6 {strides = array<i32>} : memref<256x144xf32, #tpu.memory_space<vmem>>, vector<256x16xf32>,
    %8 = vector.extract_strided_slice %1 {offsets = [0, 2, 0], sizes = [16, 16, 16], strides = [1, 1, 1]} : vector<18x18x16xf32> to vector<16x16x16xf32>
    %9 = vector.shape_cast %8 : vector<16x16x16xf32> to vector<256x16xf32>
    %c0_6 = arith.constant 0 : index
    %c32 = arith.constant 32 : index
    %10 = vector.load %arg6[%c0_6, %c32] : memref<256x144xf32, #tpu.memory_space<vmem>>, vector<256x16xf32>
    tpu.vector_store %arg6[%c0_6, %c32], %9 {strides = array<i32>} : memref<256x144xf32, #tpu.memory_space<vmem>>, vector<256x16xf32>,
    %11 = vector.extract_strided_slice %1 {offsets = [1, 0, 0], sizes = [16, 16, 16], strides = [1, 1, 1]} : vector<18x18x16xf32> to vector<16x16x16xf32>
    %12 = vector.shape_cast %11 : vector<16x16x16xf32> to vector<256x16xf32>
    %c0_7 = arith.constant 0 : index
    %c48 = arith.constant 48 : index
    %13 = vector.load %arg6[%c0_7, %c48] : memref<256x144xf32, #tpu.memory_space<vmem>>, vector<256x16xf32>
    tpu.vector_store %arg6[%c0_7, %c48], %12 {strides = array<i32>} : memref<256x144xf32, #tpu.memory_space<vmem>>, vector<256x16xf32>,
    %14 = vector.extract_strided_slice %1 {offsets = [1, 1, 0], sizes = [16, 16, 16], strides = [1, 1, 1]} : vector<18x18x16xf32> to vector<16x16x16xf32>
    %15 = vector.shape_cast %14 : vector<16x16x16xf32> to vector<256x16xf32>
    %c0_8 = arith.constant 0 : index
    %c64 = arith.constant 64 : index
    %16 = vector.load %arg6[%c0_8, %c64] : memref<256x144xf32, #tpu.memory_space<vmem>>, vector<256x16xf32>
    tpu.vector_store %arg6[%c0_8, %c64], %15 {strides = array<i32>} : memref<256x144xf32, #tpu.memory_space<vmem>>, vector<256x16xf32>,
    %17 = vector.extract_strided_slice %1 {offsets = [1, 2, 0], sizes = [16, 16, 16], strides = [1, 1, 1]} : vector<18x18x16xf32> to vector<16x16x16xf32>
    %18 = vector.shape_cast %17 : vector<16x16x16xf32> to vector<256x16xf32>
    %c0_9 = arith.constant 0 : index
    %c80 = arith.constant 80 : index
    %19 = vector.load %arg6[%c0_9, %c80] : memref<256x144xf32, #tpu.memory_space<vmem>>, vector<256x16xf32>
    tpu.vector_store %arg6[%c0_9, %c80], %18 {strides = array<i32>} : memref<256x144xf32, #tpu.memory_space<vmem>>, vector<256x16xf32>,
    %20 = vector.extract_strided_slice %1 {offsets = [2, 0, 0], sizes = [16, 16, 16], strides = [1, 1, 1]} : vector<18x18x16xf32> to vector<16x16x16xf32>
    %21 = vector.shape_cast %20 : vector<16x16x16xf32> to vector<256x16xf32>
    %c0_10 = arith.constant 0 : index
    %c96 = arith.constant 96 : index
    %22 = vector.load %arg6[%c0_10, %c96] : memref<256x144xf32, #tpu.memory_space<vmem>>, vector<256x16xf32>
    tpu.vector_store %arg6[%c0_10, %c96], %21 {strides = array<i32>} : memref<256x144xf32, #tpu.memory_space<vmem>>, vector<256x16xf32>,
    %23 = vector.extract_strided_slice %1 {offsets = [2, 1, 0], sizes = [16, 16, 16], strides = [1, 1, 1]} : vector<18x18x16xf32> to vector<16x16x16xf32>
    %24 = vector.shape_cast %23 : vector<16x16x16xf32> to vector<256x16xf32>
    %c0_11 = arith.constant 0 : index
    %c112 = arith.constant 112 : index
    %25 = vector.load %arg6[%c0_11, %c112] : memref<256x144xf32, #tpu.memory_space<vmem>>, vector<256x16xf32>
    tpu.vector_store %arg6[%c0_11, %c112], %24 {strides = array<i32>} : memref<256x144xf32, #tpu.memory_space<vmem>>, vector<256x16xf32>,
    %26 = vector.extract_strided_slice %1 {offsets = [2, 2, 0], sizes = [16, 16, 16], strides = [1, 1, 1]} : vector<18x18x16xf32> to vector<16x16x16xf32>
    %27 = vector.shape_cast %26 : vector<16x16x16xf32> to vector<256x16xf32>
    %c0_12 = arith.constant 0 : index
    %c128 = arith.constant 128 : index
    %28 = vector.load %arg6[%c0_12, %c128] : memref<256x144xf32, #tpu.memory_space<vmem>>, vector<256x16xf32>
    tpu.vector_store %arg6[%c0_12, %c128], %27 {strides = array<i32>} : memref<256x144xf32, #tpu.memory_space<vmem>>, vector<256x16xf32>,
    %c0_13 = arith.constant 0 : index
    %c0_14 = arith.constant 0 : index
    %29 = vector.load %arg6[%c0_13, %c0_14] : memref<256x144xf32, #tpu.memory_space<vmem>>, vector<256x144xf32>
    %c0_15 = arith.constant 0 : index
    %c0_16 = arith.constant 0 : index
    %30 = vector.load %arg2[%c0_15, %c0_16] : memref<144x8xf32, #tpu.memory_space<vmem>>, vector<144x8xf32>
    %cst = arith.constant dense<0.000000e+00> : vector<256x8xf32>
    %31 = tpu.matmul %29, %30, %cst {dimension_numbers = #tpu.dot_dimension_numbers<[1], [0], [0], [1], [0, 0, 1, 1], [], []>} : vector<256x144xf32>, vector<144x8xf32>, vector<256x8xf32> -> vector<256x8xf32>
    %c0_17 = arith.constant 0 : index
    %c0_18 = arith.constant 0 : index
    %c0_19 = arith.constant 0 : index
    %32 = vector.load %arg3[%c0_17, %c0_18, %c0_19] : memref<1x256x8xf32, #tpu.memory_space<vmem>>, vector<1x256x8xf32>
    %33 = vector.shape_cast %32 : vector<1x256x8xf32> to vector<256x8xf32>
    %34 = vector.shape_cast %31 : vector<256x8xf32> to vector<1x256x8xf32>
    tpu.vector_store %arg3[%c0_17, %c0_18, %c0_19], %34 {strides = array<i32>} : memref<1x256x8xf32, #tpu.memory_space<vmem>>, vector<1x256x8xf32>,
    %cst_20 = arith.constant dense<0.000000e+00> : vector<8xf32>
    %35 = vector.multi_reduction <add>, %31, %cst_20 [0] : vector<256x8xf32> to vector<8xf32>
    %36 = vector.shape_cast %35 : vector<8xf32> to vector<1x8xf32>
    %c0_21 = arith.constant 0 : index
    %c0_22 = arith.constant 0 : index
    %c0_23 = arith.constant 0 : index
    %37 = vector.load %arg4[%c0_21, %c0_22, %c0_23] : memref<1x1x8xf32, #tpu.memory_space<vmem>>, vector<1x1x8xf32>
    %38 = vector.shape_cast %37 : vector<1x1x8xf32> to vector<1x8xf32>
    %39 = vector.shape_cast %36 : vector<1x8xf32> to vector<1x1x8xf32>
    tpu.vector_store %arg4[%c0_21, %c0_22, %c0_23], %39 {strides = array<i32>} : memref<1x1x8xf32, #tpu.memory_space<vmem>>, vector<1x1x8xf32>,
    %40 = arith.mulf %31, %31 : vector<256x8xf32>
    %cst_24 = arith.constant dense<0.000000e+00> : vector<8xf32>
    %41 = vector.multi_reduction <add>, %40, %cst_24 [0] : vector<256x8xf32> to vector<8xf32>
    %42 = vector.shape_cast %41 : vector<8xf32> to vector<1x8xf32>
    %c0_25 = arith.constant 0 : index
    %c0_26 = arith.constant 0 : index
    %c0_27 = arith.constant 0 : index
    %43 = vector.load %arg5[%c0_25, %c0_26, %c0_27] : memref<1x1x8xf32, #tpu.memory_space<vmem>>, vector<1x1x8xf32>
    %44 = vector.shape_cast %43 : vector<1x1x8xf32> to vector<1x8xf32>
    %45 = vector.shape_cast %42 : vector<1x8xf32> to vector<1x1x8xf32>
    tpu.vector_store %arg5[%c0_25, %c0_26, %c0_27], %45 {strides = array<i32>} : memref<1x1x8xf32, #tpu.memory_space<vmem>>, vector<1x1x8xf32>,
    return
  }
  func.func @transform_0(%arg0: i32) -> (i32, i32, i32, i32) {
    %c0_i32 = arith.constant 0 : i32
    %c0_i32_0 = arith.constant 0 : i32
    %c0_i32_1 = arith.constant 0 : i32
    %c0_i32_2 = arith.constant 0 : i32
    return %arg0, %c0_i32, %c0_i32_0, %c0_i32_1 : i32, i32, i32, i32
  }
  func.func @transform_1(%arg0: i32) -> (i32, i32) {
    %c0_i32 = arith.constant 0 : i32
    %c0_i32_0 = arith.constant 0 : i32
    %c0_i32_1 = arith.constant 0 : i32
    return %c0_i32, %c0_i32_0 : i32, i32
  }
  func.func @transform_2(%arg0: i32) -> (i32, i32, i32) {
    %c0_i32 = arith.constant 0 : i32
    %c0_i32_0 = arith.constant 0 : i32
    %c0_i32_1 = arith.constant 0 : i32
    return %arg0, %c0_i32, %c0_i32_0 : i32, i32, i32
  }
  func.func @transform_3(%arg0: i32) -> (i32, i32, i32) {
    %c0_i32 = arith.constant 0 : i32
    %c0_i32_0 = arith.constant 0 : i32
    %c0_i32_1 = arith.constant 0 : i32
    return %arg0, %c0_i32, %c0_i32_0 : i32, i32, i32
  }
  func.func @transform_4(%arg0: i32) -> (i32, i32, i32) {
    %c0_i32 = arith.constant 0 : i32
    %c0_i32_0 = arith.constant 0 : i32
    %c0_i32_1 = arith.constant 0 : i32
    return %arg0, %c0_i32, %c0_i32_0 : i32, i32, i32
  }
}

module attributes {stable_mosaic.version = 11 : i64} {
  func.func @_conv_im2col_kernel(%arg0: i32, %arg1: memref<1x18x18x8xf32, #tpu.memory_space<vmem>>, %arg2: memref<72x16xf32, #tpu.memory_space<vmem>>, %arg3: memref<1x256x16xf32, #tpu.memory_space<vmem>>, %arg4: memref<1x1x16xf32, #tpu.memory_space<vmem>>, %arg5: memref<1x1x16xf32, #tpu.memory_space<vmem>>, %arg6: memref<256x72xf32, #tpu.memory_space<vmem>>) attributes {dimension_semantics = [#tpu.dimension_semantics<parallel>], iteration_bounds = array<i64: 2>, scalar_prefetch = 0 : i64, scratch_operands = 1 : i64, tpu.core_type = #tpu.core_type<tc>, window_params = [{transform_indices = @transform_0, window_bounds = array<i64: 1, 18, 18, 8>}, {pipeline_mode = #tpu.pipeline_mode<synchronous>, transform_indices = @transform_1, window_bounds = array<i64: 72, 16>}, {transform_indices = @transform_2, window_bounds = array<i64: 1, 256, 16>}, {transform_indices = @transform_3, window_bounds = array<i64: 1, 1, 16>}, {transform_indices = @transform_4, window_bounds = array<i64: 1, 1, 16>}]} {
    %c0 = arith.constant 0 : index
    %c0_0 = arith.constant 0 : index
    %c0_1 = arith.constant 0 : index
    %c0_2 = arith.constant 0 : index
    %0 = vector.load %arg1[%c0, %c0_0, %c0_1, %c0_2] : memref<1x18x18x8xf32, #tpu.memory_space<vmem>>, vector<1x18x18x8xf32>
    %1 = vector.shape_cast %0 : vector<1x18x18x8xf32> to vector<18x18x8xf32>
    %2 = vector.extract_strided_slice %1 {offsets = [0, 0, 0], sizes = [16, 16, 8], strides = [1, 1, 1]} : vector<18x18x8xf32> to vector<16x16x8xf32>
    %3 = vector.shape_cast %2 : vector<16x16x8xf32> to vector<256x8xf32>
    %c0_3 = arith.constant 0 : index
    %c0_4 = arith.constant 0 : index
    %4 = vector.load %arg6[%c0_3, %c0_4] : memref<256x72xf32, #tpu.memory_space<vmem>>, vector<256x8xf32>
    tpu.vector_store %arg6[%c0_3, %c0_4], %3 {strides = array<i32>} : memref<256x72xf32, #tpu.memory_space<vmem>>, vector<256x8xf32>,
    %5 = vector.extract_strided_slice %1 {offsets = [0, 1, 0], sizes = [16, 16, 8], strides = [1, 1, 1]} : vector<18x18x8xf32> to vector<16x16x8xf32>
    %6 = vector.shape_cast %5 : vector<16x16x8xf32> to vector<256x8xf32>
    %c0_5 = arith.constant 0 : index
    %c8 = arith.constant 8 : index
    %7 = vector.load %arg6[%c0_5, %c8] : memref<256x72xf32, #tpu.memory_space<vmem>>, vector<256x8xf32>
    tpu.vector_store %arg6[%c0_5, %c8], %6 {strides = array<i32>} : memref<256x72xf32, #tpu.memory_space<vmem>>, vector<256x8xf32>,
    %8 = vector.extract_strided_slice %1 {offsets = [0, 2, 0], sizes = [16, 16, 8], strides = [1, 1, 1]} : vector<18x18x8xf32> to vector<16x16x8xf32>
    %9 = vector.shape_cast %8 : vector<16x16x8xf32> to vector<256x8xf32>
    %c0_6 = arith.constant 0 : index
    %c16 = arith.constant 16 : index
    %10 = vector.load %arg6[%c0_6, %c16] : memref<256x72xf32, #tpu.memory_space<vmem>>, vector<256x8xf32>
    tpu.vector_store %arg6[%c0_6, %c16], %9 {strides = array<i32>} : memref<256x72xf32, #tpu.memory_space<vmem>>, vector<256x8xf32>,
    %11 = vector.extract_strided_slice %1 {offsets = [1, 0, 0], sizes = [16, 16, 8], strides = [1, 1, 1]} : vector<18x18x8xf32> to vector<16x16x8xf32>
    %12 = vector.shape_cast %11 : vector<16x16x8xf32> to vector<256x8xf32>
    %c0_7 = arith.constant 0 : index
    %c24 = arith.constant 24 : index
    %13 = vector.load %arg6[%c0_7, %c24] : memref<256x72xf32, #tpu.memory_space<vmem>>, vector<256x8xf32>
    tpu.vector_store %arg6[%c0_7, %c24], %12 {strides = array<i32>} : memref<256x72xf32, #tpu.memory_space<vmem>>, vector<256x8xf32>,
    %14 = vector.extract_strided_slice %1 {offsets = [1, 1, 0], sizes = [16, 16, 8], strides = [1, 1, 1]} : vector<18x18x8xf32> to vector<16x16x8xf32>
    %15 = vector.shape_cast %14 : vector<16x16x8xf32> to vector<256x8xf32>
    %c0_8 = arith.constant 0 : index
    %c32 = arith.constant 32 : index
    %16 = vector.load %arg6[%c0_8, %c32] : memref<256x72xf32, #tpu.memory_space<vmem>>, vector<256x8xf32>
    tpu.vector_store %arg6[%c0_8, %c32], %15 {strides = array<i32>} : memref<256x72xf32, #tpu.memory_space<vmem>>, vector<256x8xf32>,
    %17 = vector.extract_strided_slice %1 {offsets = [1, 2, 0], sizes = [16, 16, 8], strides = [1, 1, 1]} : vector<18x18x8xf32> to vector<16x16x8xf32>
    %18 = vector.shape_cast %17 : vector<16x16x8xf32> to vector<256x8xf32>
    %c0_9 = arith.constant 0 : index
    %c40 = arith.constant 40 : index
    %19 = vector.load %arg6[%c0_9, %c40] : memref<256x72xf32, #tpu.memory_space<vmem>>, vector<256x8xf32>
    tpu.vector_store %arg6[%c0_9, %c40], %18 {strides = array<i32>} : memref<256x72xf32, #tpu.memory_space<vmem>>, vector<256x8xf32>,
    %20 = vector.extract_strided_slice %1 {offsets = [2, 0, 0], sizes = [16, 16, 8], strides = [1, 1, 1]} : vector<18x18x8xf32> to vector<16x16x8xf32>
    %21 = vector.shape_cast %20 : vector<16x16x8xf32> to vector<256x8xf32>
    %c0_10 = arith.constant 0 : index
    %c48 = arith.constant 48 : index
    %22 = vector.load %arg6[%c0_10, %c48] : memref<256x72xf32, #tpu.memory_space<vmem>>, vector<256x8xf32>
    tpu.vector_store %arg6[%c0_10, %c48], %21 {strides = array<i32>} : memref<256x72xf32, #tpu.memory_space<vmem>>, vector<256x8xf32>,
    %23 = vector.extract_strided_slice %1 {offsets = [2, 1, 0], sizes = [16, 16, 8], strides = [1, 1, 1]} : vector<18x18x8xf32> to vector<16x16x8xf32>
    %24 = vector.shape_cast %23 : vector<16x16x8xf32> to vector<256x8xf32>
    %c0_11 = arith.constant 0 : index
    %c56 = arith.constant 56 : index
    %25 = vector.load %arg6[%c0_11, %c56] : memref<256x72xf32, #tpu.memory_space<vmem>>, vector<256x8xf32>
    tpu.vector_store %arg6[%c0_11, %c56], %24 {strides = array<i32>} : memref<256x72xf32, #tpu.memory_space<vmem>>, vector<256x8xf32>,
    %26 = vector.extract_strided_slice %1 {offsets = [2, 2, 0], sizes = [16, 16, 8], strides = [1, 1, 1]} : vector<18x18x8xf32> to vector<16x16x8xf32>
    %27 = vector.shape_cast %26 : vector<16x16x8xf32> to vector<256x8xf32>
    %c0_12 = arith.constant 0 : index
    %c64 = arith.constant 64 : index
    %28 = vector.load %arg6[%c0_12, %c64] : memref<256x72xf32, #tpu.memory_space<vmem>>, vector<256x8xf32>
    tpu.vector_store %arg6[%c0_12, %c64], %27 {strides = array<i32>} : memref<256x72xf32, #tpu.memory_space<vmem>>, vector<256x8xf32>,
    %c0_13 = arith.constant 0 : index
    %c0_14 = arith.constant 0 : index
    %29 = vector.load %arg6[%c0_13, %c0_14] : memref<256x72xf32, #tpu.memory_space<vmem>>, vector<256x72xf32>
    %c0_15 = arith.constant 0 : index
    %c0_16 = arith.constant 0 : index
    %30 = vector.load %arg2[%c0_15, %c0_16] : memref<72x16xf32, #tpu.memory_space<vmem>>, vector<72x16xf32>
    %cst = arith.constant dense<0.000000e+00> : vector<256x16xf32>
    %31 = tpu.matmul %29, %30, %cst {dimension_numbers = #tpu.dot_dimension_numbers<[1], [0], [0], [1], [0, 0, 1, 1], [], []>} : vector<256x72xf32>, vector<72x16xf32>, vector<256x16xf32> -> vector<256x16xf32>
    %c0_17 = arith.constant 0 : index
    %c0_18 = arith.constant 0 : index
    %c0_19 = arith.constant 0 : index
    %32 = vector.load %arg3[%c0_17, %c0_18, %c0_19] : memref<1x256x16xf32, #tpu.memory_space<vmem>>, vector<1x256x16xf32>
    %33 = vector.shape_cast %32 : vector<1x256x16xf32> to vector<256x16xf32>
    %34 = vector.shape_cast %31 : vector<256x16xf32> to vector<1x256x16xf32>
    tpu.vector_store %arg3[%c0_17, %c0_18, %c0_19], %34 {strides = array<i32>} : memref<1x256x16xf32, #tpu.memory_space<vmem>>, vector<1x256x16xf32>,
    %cst_20 = arith.constant dense<0.000000e+00> : vector<16xf32>
    %35 = vector.multi_reduction <add>, %31, %cst_20 [0] : vector<256x16xf32> to vector<16xf32>
    %36 = vector.shape_cast %35 : vector<16xf32> to vector<1x16xf32>
    %c0_21 = arith.constant 0 : index
    %c0_22 = arith.constant 0 : index
    %c0_23 = arith.constant 0 : index
    %37 = vector.load %arg4[%c0_21, %c0_22, %c0_23] : memref<1x1x16xf32, #tpu.memory_space<vmem>>, vector<1x1x16xf32>
    %38 = vector.shape_cast %37 : vector<1x1x16xf32> to vector<1x16xf32>
    %39 = vector.shape_cast %36 : vector<1x16xf32> to vector<1x1x16xf32>
    tpu.vector_store %arg4[%c0_21, %c0_22, %c0_23], %39 {strides = array<i32>} : memref<1x1x16xf32, #tpu.memory_space<vmem>>, vector<1x1x16xf32>,
    %40 = arith.mulf %31, %31 : vector<256x16xf32>
    %cst_24 = arith.constant dense<0.000000e+00> : vector<16xf32>
    %41 = vector.multi_reduction <add>, %40, %cst_24 [0] : vector<256x16xf32> to vector<16xf32>
    %42 = vector.shape_cast %41 : vector<16xf32> to vector<1x16xf32>
    %c0_25 = arith.constant 0 : index
    %c0_26 = arith.constant 0 : index
    %c0_27 = arith.constant 0 : index
    %43 = vector.load %arg5[%c0_25, %c0_26, %c0_27] : memref<1x1x16xf32, #tpu.memory_space<vmem>>, vector<1x1x16xf32>
    %44 = vector.shape_cast %43 : vector<1x1x16xf32> to vector<1x16xf32>
    %45 = vector.shape_cast %42 : vector<1x16xf32> to vector<1x1x16xf32>
    tpu.vector_store %arg5[%c0_25, %c0_26, %c0_27], %45 {strides = array<i32>} : memref<1x1x16xf32, #tpu.memory_space<vmem>>, vector<1x1x16xf32>,
    return
  }
  func.func @transform_0(%arg0: i32) -> (i32, i32, i32, i32) {
    %c0_i32 = arith.constant 0 : i32
    %c0_i32_0 = arith.constant 0 : i32
    %c0_i32_1 = arith.constant 0 : i32
    %c0_i32_2 = arith.constant 0 : i32
    return %arg0, %c0_i32, %c0_i32_0, %c0_i32_1 : i32, i32, i32, i32
  }
  func.func @transform_1(%arg0: i32) -> (i32, i32) {
    %c0_i32 = arith.constant 0 : i32
    %c0_i32_0 = arith.constant 0 : i32
    %c0_i32_1 = arith.constant 0 : i32
    return %c0_i32, %c0_i32_0 : i32, i32
  }
  func.func @transform_2(%arg0: i32) -> (i32, i32, i32) {
    %c0_i32 = arith.constant 0 : i32
    %c0_i32_0 = arith.constant 0 : i32
    %c0_i32_1 = arith.constant 0 : i32
    return %arg0, %c0_i32, %c0_i32_0 : i32, i32, i32
  }
  func.func @transform_3(%arg0: i32) -> (i32, i32, i32) {
    %c0_i32 = arith.constant 0 : i32
    %c0_i32_0 = arith.constant 0 : i32
    %c0_i32_1 = arith.constant 0 : i32
    return %arg0, %c0_i32, %c0_i32_0 : i32, i32, i32
  }
  func.func @transform_4(%arg0: i32) -> (i32, i32, i32) {
    %c0_i32 = arith.constant 0 : i32
    %c0_i32_0 = arith.constant 0 : i32
    %c0_i32_1 = arith.constant 0 : i32
    return %arg0, %c0_i32, %c0_i32_0 : i32, i32, i32
  }
}

module attributes {stable_mosaic.version = 11 : i64} {
  func.func @_bn_relu_kernel(%arg0: i32, %arg1: memref<1x256x16xf32, #tpu.memory_space<vmem>>, %arg2: memref<1x1x16xf32, #tpu.memory_space<vmem>>, %arg3: memref<1x1x16xf32, #tpu.memory_space<vmem>>, %arg4: memref<1x256x16xf32, #tpu.memory_space<vmem>>) attributes {dimension_semantics = [#tpu.dimension_semantics<parallel>], iteration_bounds = array<i64: 2>, scalar_prefetch = 0 : i64, scratch_operands = 0 : i64, tpu.core_type = #tpu.core_type<tc>, window_params = [{transform_indices = @transform_0, window_bounds = array<i64: 1, 256, 16>}, {pipeline_mode = #tpu.pipeline_mode<synchronous>, transform_indices = @transform_1, window_bounds = array<i64: 1, 1, 16>}, {pipeline_mode = #tpu.pipeline_mode<synchronous>, transform_indices = @transform_2, window_bounds = array<i64: 1, 1, 16>}, {transform_indices = @transform_3, window_bounds = array<i64: 1, 256, 16>}]} {
    %c0 = arith.constant 0 : index
    %c0_0 = arith.constant 0 : index
    %c0_1 = arith.constant 0 : index
    %0 = vector.load %arg1[%c0, %c0_0, %c0_1] : memref<1x256x16xf32, #tpu.memory_space<vmem>>, vector<1x256x16xf32>
    %c0_2 = arith.constant 0 : index
    %c0_3 = arith.constant 0 : index
    %c0_4 = arith.constant 0 : index
    %1 = vector.load %arg2[%c0_2, %c0_3, %c0_4] : memref<1x1x16xf32, #tpu.memory_space<vmem>>, vector<1x1x16xf32>
    %2 = vector.broadcast %1 : vector<1x1x16xf32> to vector<1x256x16xf32>
    %3 = arith.mulf %0, %2 : vector<1x256x16xf32>
    %c0_5 = arith.constant 0 : index
    %c0_6 = arith.constant 0 : index
    %c0_7 = arith.constant 0 : index
    %4 = vector.load %arg3[%c0_5, %c0_6, %c0_7] : memref<1x1x16xf32, #tpu.memory_space<vmem>>, vector<1x1x16xf32>
    %5 = vector.broadcast %4 : vector<1x1x16xf32> to vector<1x256x16xf32>
    %6 = arith.addf %3, %5 : vector<1x256x16xf32>
    %cst = arith.constant 0.000000e+00 : f32
    %7 = vector.broadcast %cst : f32 to vector<1x256x16xf32>
    %8 = arith.maximumf %6, %7 : vector<1x256x16xf32>
    %c0_8 = arith.constant 0 : index
    %c0_9 = arith.constant 0 : index
    %c0_10 = arith.constant 0 : index
    %9 = vector.load %arg4[%c0_8, %c0_9, %c0_10] : memref<1x256x16xf32, #tpu.memory_space<vmem>>, vector<1x256x16xf32>
    tpu.vector_store %arg4[%c0_8, %c0_9, %c0_10], %8 {strides = array<i32>} : memref<1x256x16xf32, #tpu.memory_space<vmem>>, vector<1x256x16xf32>,
    return
  }
  func.func @transform_0(%arg0: i32) -> (i32, i32, i32) {
    %c0_i32 = arith.constant 0 : i32
    %c0_i32_0 = arith.constant 0 : i32
    %c0_i32_1 = arith.constant 0 : i32
    return %arg0, %c0_i32, %c0_i32_0 : i32, i32, i32
  }
  func.func @transform_1(%arg0: i32) -> (i32, i32, i32) {
    %c0_i32 = arith.constant 0 : i32
    %c0_i32_0 = arith.constant 0 : i32
    %c0_i32_1 = arith.constant 0 : i32
    %c0_i32_2 = arith.constant 0 : i32
    return %c0_i32, %c0_i32_0, %c0_i32_1 : i32, i32, i32
  }
  func.func @transform_2(%arg0: i32) -> (i32, i32, i32) {
    %c0_i32 = arith.constant 0 : i32
    %c0_i32_0 = arith.constant 0 : i32
    %c0_i32_1 = arith.constant 0 : i32
    %c0_i32_2 = arith.constant 0 : i32
    return %c0_i32, %c0_i32_0, %c0_i32_1 : i32, i32, i32
  }
  func.func @transform_3(%arg0: i32) -> (i32, i32, i32) {
    %c0_i32 = arith.constant 0 : i32
    %c0_i32_0 = arith.constant 0 : i32
    %c0_i32_1 = arith.constant 0 : i32
    return %arg0, %c0_i32, %c0_i32_0 : i32, i32, i32
  }
}

</mosaic_0001>

<bundles_post_ra>
// kernel: upscale_forward.7
= control target key start
LH: loop header
LB: loop body
LE: loop exit
PB: predicated region body
PF: predicated region fallthrough
CT: control target
= control target key end

     0   :  { %v112_v2 = vmov 0.0   ;;  %vm15_vm0 = vcmask 64512   ;;  %s152_s1 = inlined_call_operand.vmem [shape: f32[8,256], index: 1, kind: input, shape index: {}]   ;;  %s153_s0 = inlined_call_operand.vmem [shape: f32[16,8], index: 0, kind: input, shape index: {}]   ;;  %s154_s2 = inlined_call_operand.vmem [shape: f32[16,256], index: 2, kind: output, shape index: {}]  }
   0x1   :  { %v14_v0 = vld [vmem:[%s152_s1 + $0x8] sm:$0xff]  ;;  %v13_v1 = vld [vmem:[%s152_s1] sm:$0xff]  ;;  %86 = vmatprep.mubr.f32.mxu0 %v112_v2  ;;  %92 = vmatprep.mubr.f32.mxu1 %v112_v2 }
   0x2   :  { %v11_v3 = vld [vmem:[%s153_s0] sm:$0xff]  ;;  %22 = vmatprep.subr.mxu0 %v14_v0  ;;  %109 = vmatprep.subr.mxu1 %v14_v0  ;;  %v12_v4 = vld [vmem:[%s153_s0 + $0x8] sm:$0xff] }
   0x3   :  { %23 = vmatpush1.msra.mxu0 %v13_v1  ;;  %110 = vmatpush1.msra.mxu1 %v13_v1 }
   0x4   :  { %107 = vmatmul.mubr.msk.f32.vlgmr.msra.gmra.mrb[0].mxu0 %vm15_vm0, %v11_v3  ;;  %108 = vmatmul.mubr.msk.f32.vlgmr.msra.gmra.mrb[0].mxu1 %vm15_vm0, %v12_v4 }
  0xd7   :  { %v88_v5 = vpop.f32.mrb[0].mxu0  ;;  %v94_v6 = vpop.f32.mrb[0].mxu1 }
  0xd8   :  { %99 = vst [vmem:[%s154_s2] sm:$0xff] %v88_v5  ;;  %101 = vst [vmem:[%s154_s2 + $0x10] sm:$0xff] %v94_v6  ;;  %v90_v7 = vpop.f32.mrb[1].mxu0  ;;  %v96_v8 = vpop.f32.mrb[1].mxu1 }
  0xd9   :  { %100 = vst [vmem:[%s154_s2 + $0x8] sm:$0xff] %v90_v7  ;;  %102 = vst [vmem:[%s154_s2 + $0x18] sm:$0xff] %v96_v8 }

// kernel: upscale_forward.6
= control target key start
LH: loop header
LB: loop body
LE: loop exit
PB: predicated region body
PF: predicated region fallthrough
CT: control target
= control target key end

     0   :  { %vm14_vm0 = vcmask 64512   ;;  %s142_s1 = inlined_call_operand.vmem [shape: f32[8,128], index: 1, kind: input, shape index: {}]   ;;  %s143_s0 = inlined_call_operand.vmem [shape: f32[16,8], index: 0, kind: input, shape index: {}]   ;;  %s144_s2 = inlined_call_operand.vmem [shape: f32[16,128], index: 2, kind: output, shape index: {}]  }
   0x1   :  { %v13_v0 = vld [vmem:[%s142_s1] sm:$0xff]  ;;  %v12_v2 = vld [vmem:[%s143_s0 + $0x8] sm:$0xff] }
   0x2   :  { %v11_v1 = vld [vmem:[%s143_s0] sm:$0xff]  ;;  %107 = vmatprep.subr.mxu0 %v13_v0 }
   0x3   :  { %109 = vmatprep.mubr.msk.f32.mxu0 %vm14_vm0, %v11_v1  ;;  %108 = vmatpush3.msra.mxu0 %v13_v0 }
   0x4   :  { %110 = vmatmul.mubr.msk.f32.vlgmr.msra.gmra.mrb[0].mxu0 %vm14_vm0, %v12_v2 }
  0xd7   :  { %v111_v3 = vpop.f32.mrb[0].mxu0 }
  0xd8   :  { %97 = vst [vmem:[%s144_s2 + $0x8] sm:$0xff] %v111_v3  ;;  %v87_v4 = vpop.f32.mrb[1].mxu0 }
  0xd9   :  { %96 = vst [vmem:[%s144_s2] sm:$0xff] %v87_v4 }

// kernel: upscale_forward.9
= control target key start
LH: loop header
LB: loop body
LE: loop exit
PB: predicated region body
PF: predicated region fallthrough
CT: control target
= control target key end

     0   :  { %s452_s12 = smov 0   ;;  %s643_s0 = inlined_call_operand.vmem [shape: f32[2,256,8], index: 0, kind: input, shape index: {}]   ;;  %s644_s1 = inlined_call_operand.vmem [shape: f32[1,1,8], index: 1, kind: input, shape index: {}]   ;;  %s645_s2 = inlined_call_operand.vmem [shape: f32[1,1,8], index: 2, kind: input, shape index: {}]   ;;  %s646_s3 = inlined_call_operand.vmem [shape: f32[2,256,8], index: 3, kind: output, shape index: {}]  }
   0x1 LB: > { %s401_s13 = sadd.s32 4294967295, %s430_s12   ;;  %p405_p0 = scmp.ge.s32.totalorder %s430_s12, 1  ;;  %s430_s12 = sphi %s452_s12, %s13_s12  }
   0x2   : > { %p137_p1 = scmp.lt.s32.totalorder %s430_s12, 3 }
   0x4   : > { %p138_p2 = pnand %p405_p0, %p137_p1 }
   0x5   : > { %p161_p3 = scmp.lt.s32.totalorder (!%p138_p2), %s401_s13, 1  ;;  %v463_v0 = vld [vmem:[%s644_s1] ss:$0 sm:$0xff] (!%p138_p2)  ;;  %vm313_vm0 = vcmask (!%p138_p2), 64512  }
   0x6   : > { %141 = sbr.rel (%p138_p2) target bundleno = 46 (0x2e), region = 32  ;;  %v473_v1 = vld [vmem:[%s645_s2] ss:$0 sm:$0xff] (!%p138_p2) }
   0xd   : > { %s648_s13 = smov (!%p161_p3, %s401_s13), 1 }
   0xe   : > { %s414_s14 = sshll.u32 %s648_s13, 8 }
   0xf   : > { %s468_s19 = scalar_lea.vmem %s643_s0, %s414_s14  ;;  %s496_s24 = scalar_lea.vmem %s646_s3, %s414_s14 }
  0x10   : > { %v171_v2 = vld [vmem:[%s468_s19] sm:$0xff]  ;;  %v172_v3 = vld [vmem:[%s468_s19 + $0x8] sm:$0xff]  ;;  %v173_v4 = vld [vmem:[%s468_s19 + $0x10] sm:$0xff] }
  0x11   : > { %v210_v5 = vmul.f32 %v463_v0, %v171_v2  ;;  %v211_v6 = vmul.f32 %v463_v0, %v172_v3  ;;  %v212_v7 = vmul.f32 %v463_v0, %v173_v4  ;;  %v174_v8 = vld [vmem:[%s468_s19 + $0x18] sm:$0xff]  ;;  %v175_v9 = vld [vmem:[%s468_s19 + $0x20] sm:$0xff]  ;;  %v176_v10 = vld [vmem:[%s468_s19 + $0x28] sm:$0xff] }
  0x12   : > { %v213_v11 = vmul.f32 %v463_v0, %v174_v8  ;;  %v214_v12 = vmul.f32 %v463_v0, %v175_v9  ;;  %v215_v13 = vmul.f32 %v463_v0, %v176_v10  ;;  %v177_v14 = vld [vmem:[%s468_s19 + $0x30] sm:$0xff]  ;;  %v178_v15 = vld [vmem:[%s468_s19 + $0x38] sm:$0xff]  ;;  %v179_v24 = vld [vmem:[%s468_s19 + $0x40] sm:$0xff] }
  0x13   : > { %v249_v16 = vadd.f32 %v473_v1, %v210_v5  ;;  %v250_v17 = vadd.f32 %v473_v1, %v211_v6  ;;  %v251_v18 = vadd.f32 %v473_v1, %v212_v7  ;;  %v216_v19 = vmul.f32 %v463_v0, %v177_v14  ;;  %v180_v25 = vld [vmem:[%s468_s19 + $0x48] sm:$0xff]  ;;  %v181_v26 = vld [vmem:[%s468_s19 + $0x50] sm:$0xff]  ;;  %v182_v31 = vld [vmem:[%s468_s19 + $0x58] sm:$0xff] }
  0x14   : > { %v252_v20 = vadd.f32 %v473_v1, %v213_v11  ;;  %v253_v21 = vadd.f32 %v473_v1, %v214_v12  ;;  %v254_v22 = vadd.f32 %v473_v1, %v215_v13  ;;  %v217_v23 = vmul.f32 %v463_v0, %v178_v15  ;;  %v183_v32 = vld [vmem:[%s468_s19 + $0x60] sm:$0xff]  ;;  %v184_v33 = vld [vmem:[%s468_s19 + $0x68] sm:$0xff]  ;;  %v185_v38 = vld [vmem:[%s468_s19 + $0x70] sm:$0xff] }
  0x15   : > { %v281_v27 = vmax.f32 %v249_v16, 0.0  ;;  %v282_v28 = vmax.f32 %v250_v17, 0.0  ;;  %v283_v29 = vmax.f32 %v251_v18, 0.0  ;;  %v255_v30 = vadd.f32 %v473_v1, %v216_v19  ;;  %v186_v43 = vld [vmem:[%s468_s19 + $0x78] sm:$0xff]  ;;  %v187_v56 = vld [vmem:[%s468_s19 + $0x80] sm:$0xff]  ;;  %v188_v57 = vld [vmem:[%s468_s19 + $0x88] sm:$0xff] }
  0x16   : > { %v284_v34 = vmax.f32 %v252_v20, 0.0  ;;  %v285_v35 = vmax.f32 %v253_v21, 0.0  ;;  %v286_v36 = vmax.f32 %v254_v22, 0.0  ;;  %v256_v37 = vadd.f32 %v473_v1, %v217_v23  ;;  %v189_v58 = vld [vmem:[%s468_s19 + $0x90] sm:$0xff]  ;;  %v190_v63 = vld [vmem:[%s468_s19 + $0x98] sm:$0xff]  ;;  %v191_v2 = vld [vmem:[%s468_s19 + $0xa0] sm:$0xff] }
  0x17   : > { %314 = vst.msk [vmem:[%s496_s24] sm:$0xff] %vm313_vm0, %v281_v27  ;;  %315 = vst.msk [vmem:[%s496_s24 + $0x8] sm:$0xff] %vm313_vm0, %v282_v28  ;;  %v287_v39 = vmax.f32 %v255_v30, 0.0  ;;  %v218_v40 = vmul.f32 %v463_v0, %v179_v24  ;;  %v219_v41 = vmul.f32 %v463_v0, %v180_v25  ;;  %v220_v42 = vmul.f32 %v463_v0, %v181_v26  ;;  %v192_v3 = vld [vmem:[%s468_s19 + $0xa8] sm:$0xff]  ;;  %v193_v8 = vld [vmem:[%s468_s19 + $0xb0] sm:$0xff] }
  0x18   : > { %316 = vst.msk [vmem:[%s496_s24 + $0x10] sm:$0xff] %vm313_vm0, %v283_v29  ;;  %317 = vst.msk [vmem:[%s496_s24 + $0x18] sm:$0xff] %vm313_vm0, %v284_v34  ;;  %v288_v44 = vmax.f32 %v256_v37, 0.0  ;;  %v221_v45 = vmul.f32 %v463_v0, %v182_v31  ;;  %v222_v46 = vmul.f32 %v463_v0, %v183_v32  ;;  %v223_v47 = vmul.f32 %v463_v0, %v184_v33  ;;  %v194_v13 = vld [vmem:[%s468_s19 + $0xb8] sm:$0xff]  ;;  %v195_v26 = vld [vmem:[%s468_s19 + $0xc0] sm:$0xff] }
  0x19   : > { %318 = vst.msk [vmem:[%s496_s24 + $0x20] sm:$0xff] %vm313_vm0, %v285_v35  ;;  %319 = vst.msk [vmem:[%s496_s24 + $0x28] sm:$0xff] %vm313_vm0, %v286_v36  ;;  %v257_v48 = vadd.f32 %v473_v1, %v218_v40  ;;  %v258_v49 = vadd.f32 %v473_v1, %v219_v41  ;;  %v259_v50 = vadd.f32 %v473_v1, %v220_v42  ;;  %v196_v27 = vld [vmem:[%s468_s19 + $0xc8] sm:$0xff]  ;;  %v197_v28 = vld [vmem:[%s468_s19 + $0xd0] sm:$0xff] }
  0x1a   : > { %320 = vst.msk [vmem:[%s496_s24 + $0x30] sm:$0xff] %vm313_vm0, %v287_v39  ;;  %v224_v51 = vmul.f32 %v463_v0, %v185_v38  ;;  %321 = vst.msk [vmem:[%s496_s24 + $0x38] sm:$0xff] %vm313_vm0, %v288_v44  ;;  %v260_v52 = vadd.f32 %v473_v1, %v221_v45  ;;  %v261_v53 = vadd.f32 %v473_v1, %v222_v46  ;;  %v198_v33 = vld [vmem:[%s468_s19 + $0xd8] sm:$0xff]  ;;  %v199_v34 = vld [vmem:[%s468_s19 + $0xe0] sm:$0xff] }
  0x1b   : > { %v262_v54 = vadd.f32 %v473_v1, %v223_v47  ;;  %v225_v55 = vmul.f32 %v463_v0, %v186_v43  ;;  %v289_v59 = vmax.f32 %v257_v48, 0.0  ;;  %v290_v60 = vmax.f32 %v258_v49, 0.0  ;;  %v200_v35 = vld [vmem:[%s468_s19 + $0xe8] sm:$0xff]  ;;  %v201_v40 = vld [vmem:[%s468_s19 + $0xf0] sm:$0xff]  ;;  %v202_v45 = vld [vmem:[%s468_s19 + $0xf8] sm:$0xff] }
  0x1c   : > { %v291_v61 = vmax.f32 %v259_v50, 0.0  ;;  %v263_v62 = vadd.f32 %v473_v1, %v224_v51  ;;  %v292_v4 = vmax.f32 %v260_v52, 0.0  ;;  %v293_v5 = vmax.f32 %v261_v53, 0.0 }
  0x1d   : > { %v294_v6 = vmax.f32 %v262_v54, 0.0  ;;  %v264_v7 = vadd.f32 %v473_v1, %v225_v55  ;;  %322 = vst.msk [vmem:[%s496_s24 + $0x40] sm:$0xff] %vm313_vm0, %v289_v59  ;;  %323 = vst.msk [vmem:[%s496_s24 + $0x48] sm:$0xff] %vm313_vm0, %v290_v60  ;;  %v226_v10 = vmul.f32 %v463_v0, %v187_v56  ;;  %v227_v11 = vmul.f32 %v463_v0, %v188_v57 }
  0x1e   : > { %324 = vst.msk [vmem:[%s496_s24 + $0x50] sm:$0xff] %vm313_vm0, %v291_v61  ;;  %v295_v9 = vmax.f32 %v263_v62, 0.0  ;;  %v228_v12 = vmul.f32 %v463_v0, %v189_v58  ;;  %325 = vst.msk [vmem:[%s496_s24 + $0x58] sm:$0xff] %vm313_vm0, %v292_v4  ;;  %v229_v15 = vmul.f32 %v463_v0, %v190_v63  ;;  %v230_v16 = vmul.f32 %v463_v0, %v191_v2 }
  0x1f   : > { %326 = vst.msk [vmem:[%s496_s24 + $0x60] sm:$0xff] %vm313_vm0, %v293_v5  ;;  %327 = vst.msk [vmem:[%s496_s24 + $0x68] sm:$0xff] %vm313_vm0, %v294_v6  ;;  %v296_v14 = vmax.f32 %v264_v7, 0.0  ;;  %v231_v17 = vmul.f32 %v463_v0, %v192_v3  ;;  %v265_v18 = vadd.f32 %v473_v1, %v226_v10  ;;  %v266_v19 = vadd.f32 %v473_v1, %v227_v11 }
  0x20   : > { %328 = vst.msk [vmem:[%s496_s24 + $0x70] sm:$0xff] %vm313_vm0, %v295_v9  ;;  %v267_v20 = vadd.f32 %v473_v1, %v228_v12  ;;  %v232_v21 = vmul.f32 %v463_v0, %v193_v8  ;;  %v268_v22 = vadd.f32 %v473_v1, %v229_v15  ;;  %v269_v23 = vadd.f32 %v473_v1, %v230_v16 }
  0x21   : > { %329 = vst.msk [vmem:[%s496_s24 + $0x78] sm:$0xff] %vm313_vm0, %v296_v14  ;;  %v270_v24 = vadd.f32 %v473_v1, %v231_v17  ;;  %v233_v25 = vmul.f32 %v463_v0, %v194_v13  ;;  %v297_v29 = vmax.f32 %v265_v18, 0.0  ;;  %v298_v30 = vmax.f32 %v266_v19, 0.0 }
  0x22   : > { %v299_v31 = vmax.f32 %v267_v20, 0.0  ;;  %v271_v32 = vadd.f32 %v473_v1, %v232_v21  ;;  %v300_v36 = vmax.f32 %v268_v22, 0.0  ;;  %v301_v37 = vmax.f32 %v269_v23, 0.0 }
  0x23   : > { %v302_v38 = vmax.f32 %v270_v24, 0.0  ;;  %v272_v39 = vadd.f32 %v473_v1, %v233_v25  ;;  %330 = vst.msk [vmem:[%s496_s24 + $0x80] sm:$0xff] %vm313_vm0, %v297_v29  ;;  %331 = vst.msk [vmem:[%s496_s24 + $0x88] sm:$0xff] %vm313_vm0, %v298_v30  ;;  %v234_v42 = vmul.f32 %v463_v0, %v195_v26  ;;  %v235_v43 = vmul.f32 %v463_v0, %v196_v27 }
  0x24   : > { %332 = vst.msk [vmem:[%s496_s24 + $0x90] sm:$0xff] %vm313_vm0, %v299_v31  ;;  %v303_v41 = vmax.f32 %v271_v32, 0.0  ;;  %v236_v44 = vmul.f32 %v463_v0, %v197_v28  ;;  %333 = vst.msk [vmem:[%s496_s24 + $0x98] sm:$0xff] %vm313_vm0, %v300_v36  ;;  %v237_v47 = vmul.f32 %v463_v0, %v198_v33  ;;  %v238_v48 = vmul.f32 %v463_v0, %v199_v34 }
  0x25   : > { %334 = vst.msk [vmem:[%s496_s24 + $0xa0] sm:$0xff] %vm313_vm0, %v301_v37  ;;  %335 = vst.msk [vmem:[%s496_s24 + $0xa8] sm:$0xff] %vm313_vm0, %v302_v38  ;;  %v304_v46 = vmax.f32 %v272_v39, 0.0  ;;  %v239_v49 = vmul.f32 %v463_v0, %v200_v35  ;;  %v273_v50 = vadd.f32 %v473_v1, %v234_v42  ;;  %v274_v51 = vadd.f32 %v473_v1, %v235_v43 }
  0x26   : > { %336 = vst.msk [vmem:[%s496_s24 + $0xb0] sm:$0xff] %vm313_vm0, %v303_v41  ;;  %v275_v52 = vadd.f32 %v473_v1, %v236_v44  ;;  %v240_v53 = vmul.f32 %v463_v0, %v201_v40  ;;  %v276_v54 = vadd.f32 %v473_v1, %v237_v47  ;;  %v277_v55 = vadd.f32 %v473_v1, %v238_v48 }
  0x27   : > { %337 = vst.msk [vmem:[%s496_s24 + $0xb8] sm:$0xff] %vm313_vm0, %v304_v46  ;;  %v278_v56 = vadd.f32 %v473_v1, %v239_v49  ;;  %v241_v57 = vmul.f32 %v463_v0, %v202_v45  ;;  %v305_v58 = vmax.f32 %v273_v50, 0.0  ;;  %v306_v59 = vmax.f32 %v274_v51, 0.0 }
  0x28   : > { %v307_v60 = vmax.f32 %v275_v52, 0.0  ;;  %v279_v61 = vadd.f32 %v473_v1, %v240_v53  ;;  %v308_v62 = vmax.f32 %v276_v54, 0.0  ;;  %v309_v63 = vmax.f32 %v277_v55, 0.0 }
  0x29   : > { %v310_v2 = vmax.f32 %v278_v56, 0.0  ;;  %v280_v3 = vadd.f32 %v473_v1, %v241_v57  ;;  %338 = vst.msk [vmem:[%s496_s24 + $0xc0] sm:$0xff] %vm313_vm0, %v305_v58  ;;  %339 = vst.msk [vmem:[%s496_s24 + $0xc8] sm:$0xff] %vm313_vm0, %v306_v59 }
  0x2a   : > { %340 = vst.msk [vmem:[%s496_s24 + $0xd0] sm:$0xff] %vm313_vm0, %v307_v60  ;;  %v311_v4 = vmax.f32 %v279_v61, 0.0  ;;  %341 = vst.msk [vmem:[%s496_s24 + $0xd8] sm:$0xff] %vm313_vm0, %v308_v62 }
  0x2b   : > { %342 = vst.msk [vmem:[%s496_s24 + $0xe0] sm:$0xff] %vm313_vm0, %v309_v63  ;;  %343 = vst.msk [vmem:[%s496_s24 + $0xe8] sm:$0xff] %vm313_vm0, %v310_v2  ;;  %v312_v0 = vmax.f32 %v280_v3, 0.0 }
  0x2c   : > { %344 = vst.msk [vmem:[%s496_s24 + $0xf0] sm:$0xff] %vm313_vm0, %v311_v4 }
  0x2d   : > { %345 = vst.msk [vmem:[%s496_s24 + $0xf8] sm:$0xff] %vm313_vm0, %v312_v0 }
  0x2e PF: > { %s13_s12 = sadd.s32 1, %s430_s12  }
  0x2f   : > { %p10_p4 = scmp.ge.s32.totalorder %s13_s12, 4  }
  0x31   :  { %12 = sbr.rel (!%p10_p4) target bundleno = 1 (0x1), region = 62 }

// kernel: upscale_forward.11
= control target key start
LH: loop header
LB: loop body
LE: loop exit
PB: predicated region body
PF: predicated region fallthrough
CT: control target
= control target key end

     0   :  { %s452_s12 = smov 0   ;;  %s643_s0 = inlined_call_operand.vmem [shape: f32[2,256,16], index: 0, kind: input, shape index: {}]   ;;  %s644_s1 = inlined_call_operand.vmem [shape: f32[1,1,16], index: 1, kind: input, shape index: {}]   ;;  %s645_s2 = inlined_call_operand.vmem [shape: f32[1,1,16], index: 2, kind: input, shape index: {}]   ;;  %s646_s3 = inlined_call_operand.vmem [shape: f32[2,256,16], index: 3, kind: output, shape index: {}]  }
   0x1 LB: > { %s401_s13 = sadd.s32 4294967295, %s430_s12   ;;  %p405_p0 = scmp.ge.s32.totalorder %s430_s12, 1  ;;  %s430_s12 = sphi %s452_s12, %s13_s12  }
   0x2   : > { %p137_p1 = scmp.lt.s32.totalorder %s430_s12, 3 }
   0x4   : > { %p138_p2 = pnand %p405_p0, %p137_p1 }
   0x5   : > { %p161_p3 = scmp.lt.s32.totalorder (!%p138_p2), %s401_s13, 1  ;;  %v463_v0 = vld [vmem:[%s644_s1] ss:$0 sm:$0xff] (!%p138_p2)  ;;  %vm313_vm0 = vcmask (!%p138_p2), 130048  }
   0x6   : > { %141 = sbr.rel (%p138_p2) target bundleno = 46 (0x2e), region = 32  ;;  %v473_v1 = vld [vmem:[%s645_s2] ss:$0 sm:$0xff] (!%p138_p2) }
   0xd   : > { %s648_s13 = smov (!%p161_p3, %s401_s13), 1 }
   0xe   : > { %s414_s14 = sshll.u32 %s648_s13, 8 }
   0xf   : > { %s468_s19 = scalar_lea.vmem %s643_s0, %s414_s14  ;;  %s496_s24 = scalar_lea.vmem %s646_s3, %s414_s14 }
  0x10   : > { %v171_v2 = vld [vmem:[%s468_s19] sm:$0xff]  ;;  %v172_v3 = vld [vmem:[%s468_s19 + $0x8] sm:$0xff]  ;;  %v173_v4 = vld [vmem:[%s468_s19 + $0x10] sm:$0xff] }
  0x11   : > { %v210_v5 = vmul.f32 %v463_v0, %v171_v2  ;;  %v211_v6 = vmul.f32 %v463_v0, %v172_v3  ;;  %v212_v7 = vmul.f32 %v463_v0, %v173_v4  ;;  %v174_v8 = vld [vmem:[%s468_s19 + $0x18] sm:$0xff]  ;;  %v175_v9 = vld [vmem:[%s468_s19 + $0x20] sm:$0xff]  ;;  %v176_v10 = vld [vmem:[%s468_s19 + $0x28] sm:$0xff] }
  0x12   : > { %v213_v11 = vmul.f32 %v463_v0, %v174_v8  ;;  %v214_v12 = vmul.f32 %v463_v0, %v175_v9  ;;  %v215_v13 = vmul.f32 %v463_v0, %v176_v10  ;;  %v177_v14 = vld [vmem:[%s468_s19 + $0x30] sm:$0xff]  ;;  %v178_v15 = vld [vmem:[%s468_s19 + $0x38] sm:$0xff]  ;;  %v179_v24 = vld [vmem:[%s468_s19 + $0x40] sm:$0xff] }
  0x13   : > { %v249_v16 = vadd.f32 %v473_v1, %v210_v5  ;;  %v250_v17 = vadd.f32 %v473_v1, %v211_v6  ;;  %v251_v18 = vadd.f32 %v473_v1, %v212_v7  ;;  %v216_v19 = vmul.f32 %v463_v0, %v177_v14  ;;  %v180_v25 = vld [vmem:[%s468_s19 + $0x48] sm:$0xff]  ;;  %v181_v26 = vld [vmem:[%s468_s19 + $0x50] sm:$0xff]  ;;  %v182_v31 = vld [vmem:[%s468_s19 + $0x58] sm:$0xff] }
  0x14   : > { %v252_v20 = vadd.f32 %v473_v1, %v213_v11  ;;  %v253_v21 = vadd.f32 %v473_v1, %v214_v12  ;;  %v254_v22 = vadd.f32 %v473_v1, %v215_v13  ;;  %v217_v23 = vmul.f32 %v463_v0, %v178_v15  ;;  %v183_v32 = vld [vmem:[%s468_s19 + $0x60] sm:$0xff]  ;;  %v184_v33 = vld [vmem:[%s468_s19 + $0x68] sm:$0xff]  ;;  %v185_v38 = vld [vmem:[%s468_s19 + $0x70] sm:$0xff] }
  0x15   : > { %v281_v27 = vmax.f32 %v249_v16, 0.0  ;;  %v282_v28 = vmax.f32 %v250_v17, 0.0  ;;  %v283_v29 = vmax.f32 %v251_v18, 0.0  ;;  %v255_v30 = vadd.f32 %v473_v1, %v216_v19  ;;  %v186_v43 = vld [vmem:[%s468_s19 + $0x78] sm:$0xff]  ;;  %v187_v56 = vld [vmem:[%s468_s19 + $0x80] sm:$0xff]  ;;  %v188_v57 = vld [vmem:[%s468_s19 + $0x88] sm:$0xff] }
  0x16   : > { %v284_v34 = vmax.f32 %v252_v20, 0.0  ;;  %v285_v35 = vmax.f32 %v253_v21, 0.0  ;;  %v286_v36 = vmax.f32 %v254_v22, 0.0  ;;  %v256_v37 = vadd.f32 %v473_v1, %v217_v23  ;;  %v189_v58 = vld [vmem:[%s468_s19 + $0x90] sm:$0xff]  ;;  %v190_v63 = vld [vmem:[%s468_s19 + $0x98] sm:$0xff]  ;;  %v191_v2 = vld [vmem:[%s468_s19 + $0xa0] sm:$0xff] }
  0x17   : > { %314 = vst.msk [vmem:[%s496_s24] sm:$0xff] %vm313_vm0, %v281_v27  ;;  %315 = vst.msk [vmem:[%s496_s24 + $0x8] sm:$0xff] %vm313_vm0, %v282_v28  ;;  %v287_v39 = vmax.f32 %v255_v30, 0.0  ;;  %v218_v40 = vmul.f32 %v463_v0, %v179_v24  ;;  %v219_v41 = vmul.f32 %v463_v0, %v180_v25  ;;  %v220_v42 = vmul.f32 %v463_v0, %v181_v26  ;;  %v192_v3 = vld [vmem:[%s468_s19 + $0xa8] sm:$0xff]  ;;  %v193_v8 = vld [vmem:[%s468_s19 + $0xb0] sm:$0xff] }
  0x18   : > { %316 = vst.msk [vmem:[%s496_s24 + $0x10] sm:$0xff] %vm313_vm0, %v283_v29  ;;  %317 = vst.msk [vmem:[%s496_s24 + $0x18] sm:$0xff] %vm313_vm0, %v284_v34  ;;  %v288_v44 = vmax.f32 %v256_v37, 0.0  ;;  %v221_v45 = vmul.f32 %v463_v0, %v182_v31  ;;  %v222_v46 = vmul.f32 %v463_v0, %v183_v32  ;;  %v223_v47 = vmul.f32 %v463_v0, %v184_v33  ;;  %v194_v13 = vld [vmem:[%s468_s19 + $0xb8] sm:$0xff]  ;;  %v195_v26 = vld [vmem:[%s468_s19 + $0xc0] sm:$0xff] }
  0x19   : > { %318 = vst.msk [vmem:[%s496_s24 + $0x20] sm:$0xff] %vm313_vm0, %v285_v35  ;;  %319 = vst.msk [vmem:[%s496_s24 + $0x28] sm:$0xff] %vm313_vm0, %v286_v36  ;;  %v257_v48 = vadd.f32 %v473_v1, %v218_v40  ;;  %v258_v49 = vadd.f32 %v473_v1, %v219_v41  ;;  %v259_v50 = vadd.f32 %v473_v1, %v220_v42  ;;  %v196_v27 = vld [vmem:[%s468_s19 + $0xc8] sm:$0xff]  ;;  %v197_v28 = vld [vmem:[%s468_s19 + $0xd0] sm:$0xff] }
  0x1a   : > { %320 = vst.msk [vmem:[%s496_s24 + $0x30] sm:$0xff] %vm313_vm0, %v287_v39  ;;  %v224_v51 = vmul.f32 %v463_v0, %v185_v38  ;;  %321 = vst.msk [vmem:[%s496_s24 + $0x38] sm:$0xff] %vm313_vm0, %v288_v44  ;;  %v260_v52 = vadd.f32 %v473_v1, %v221_v45  ;;  %v261_v53 = vadd.f32 %v473_v1, %v222_v46  ;;  %v198_v33 = vld [vmem:[%s468_s19 + $0xd8] sm:$0xff]  ;;  %v199_v34 = vld [vmem:[%s468_s19 + $0xe0] sm:$0xff] }
  0x1b   : > { %v262_v54 = vadd.f32 %v473_v1, %v223_v47  ;;  %v225_v55 = vmul.f32 %v463_v0, %v186_v43  ;;  %v289_v59 = vmax.f32 %v257_v48, 0.0  ;;  %v290_v60 = vmax.f32 %v258_v49, 0.0  ;;  %v200_v35 = vld [vmem:[%s468_s19 + $0xe8] sm:$0xff]  ;;  %v201_v40 = vld [vmem:[%s468_s19 + $0xf0] sm:$0xff]  ;;  %v202_v45 = vld [vmem:[%s468_s19 + $0xf8] sm:$0xff] }
  0x1c   : > { %v291_v61 = vmax.f32 %v259_v50, 0.0  ;;  %v263_v62 = vadd.f32 %v473_v1, %v224_v51  ;;  %v292_v4 = vmax.f32 %v260_v52, 0.0  ;;  %v293_v5 = vmax.f32 %v261_v53, 0.0 }
  0x1d   : > { %v294_v6 = vmax.f32 %v262_v54, 0.0  ;;  %v264_v7 = vadd.f32 %v473_v1, %v225_v55  ;;  %322 = vst.msk [vmem:[%s496_s24 + $0x40] sm:$0xff] %vm313_vm0, %v289_v59  ;;  %323 = vst.msk [vmem:[%s496_s24 + $0x48] sm:$0xff] %vm313_vm0, %v290_v60  ;;  %v226_v10 = vmul.f32 %v463_v0, %v187_v56  ;;  %v227_v11 = vmul.f32 %v463_v0, %v188_v57 }
  0x1e   : > { %324 = vst.msk [vmem:[%s496_s24 + $0x50] sm:$0xff] %vm313_vm0, %v291_v61  ;;  %v295_v9 = vmax.f32 %v263_v62, 0.0  ;;  %v228_v12 = vmul.f32 %v463_v0, %v189_v58  ;;  %325 = vst.msk [vmem:[%s496_s24 + $0x58] sm:$0xff] %vm313_vm0, %v292_v4  ;;  %v229_v15 = vmul.f32 %v463_v0, %v190_v63  ;;  %v230_v16 = vmul.f32 %v463_v0, %v191_v2 }
  0x1f   : > { %326 = vst.msk [vmem:[%s496_s24 + $0x60] sm:$0xff] %vm313_vm0, %v293_v5  ;;  %327 = vst.msk [vmem:[%s496_s24 + $0x68] sm:$0xff] %vm313_vm0, %v294_v6  ;;  %v296_v14 = vmax.f32 %v264_v7, 0.0  ;;  %v231_v17 = vmul.f32 %v463_v0, %v192_v3  ;;  %v265_v18 = vadd.f32 %v473_v1, %v226_v10  ;;  %v266_v19 = vadd.f32 %v473_v1, %v227_v11 }
  0x20   : > { %328 = vst.msk [vmem:[%s496_s24 + $0x70] sm:$0xff] %vm313_vm0, %v295_v9  ;;  %v267_v20 = vadd.f32 %v473_v1, %v228_v12  ;;  %v232_v21 = vmul.f32 %v463_v0, %v193_v8  ;;  %v268_v22 = vadd.f32 %v473_v1, %v229_v15  ;;  %v269_v23 = vadd.f32 %v473_v1, %v230_v16 }
  0x21   : > { %329 = vst.msk [vmem:[%s496_s24 + $0x78] sm:$0xff] %vm313_vm0, %v296_v14  ;;  %v270_v24 = vadd.f32 %v473_v1, %v231_v17  ;;  %v233_v25 = vmul.f32 %v463_v0, %v194_v13  ;;  %v297_v29 = vmax.f32 %v265_v18, 0.0  ;;  %v298_v30 = vmax.f32 %v266_v19, 0.0 }
  0x22   : > { %v299_v31 = vmax.f32 %v267_v20, 0.0  ;;  %v271_v32 = vadd.f32 %v473_v1, %v232_v21  ;;  %v300_v36 = vmax.f32 %v268_v22, 0.0  ;;  %v301_v37 = vmax.f32 %v269_v23, 0.0 }
  0x23   : > { %v302_v38 = vmax.f32 %v270_v24, 0.0  ;;  %v272_v39 = vadd.f32 %v473_v1, %v233_v25  ;;  %330 = vst.msk [vmem:[%s496_s24 + $0x80] sm:$0xff] %vm313_vm0, %v297_v29  ;;  %331 = vst.msk [vmem:[%s496_s24 + $0x88] sm:$0xff] %vm313_vm0, %v298_v30  ;;  %v234_v42 = vmul.f32 %v463_v0, %v195_v26  ;;  %v235_v43 = vmul.f32 %v463_v0, %v196_v27 }
  0x24   : > { %332 = vst.msk [vmem:[%s496_s24 + $0x90] sm:$0xff] %vm313_vm0, %v299_v31  ;;  %v303_v41 = vmax.f32 %v271_v32, 0.0  ;;  %v236_v44 = vmul.f32 %v463_v0, %v197_v28  ;;  %333 = vst.msk [vmem:[%s496_s24 + $0x98] sm:$0xff] %vm313_vm0, %v300_v36  ;;  %v237_v47 = vmul.f32 %v463_v0, %v198_v33  ;;  %v238_v48 = vmul.f32 %v463_v0, %v199_v34 }
  0x25   : > { %334 = vst.msk [vmem:[%s496_s24 + $0xa0] sm:$0xff] %vm313_vm0, %v301_v37  ;;  %335 = vst.msk [vmem:[%s496_s24 + $0xa8] sm:$0xff] %vm313_vm0, %v302_v38  ;;  %v304_v46 = vmax.f32 %v272_v39, 0.0  ;;  %v239_v49 = vmul.f32 %v463_v0, %v200_v35  ;;  %v273_v50 = vadd.f32 %v473_v1, %v234_v42  ;;  %v274_v51 = vadd.f32 %v473_v1, %v235_v43 }
  0x26   : > { %336 = vst.msk [vmem:[%s496_s24 + $0xb0] sm:$0xff] %vm313_vm0, %v303_v41  ;;  %v275_v52 = vadd.f32 %v473_v1, %v236_v44  ;;  %v240_v53 = vmul.f32 %v463_v0, %v201_v40  ;;  %v276_v54 = vadd.f32 %v473_v1, %v237_v47  ;;  %v277_v55 = vadd.f32 %v473_v1, %v238_v48 }
  0x27   : > { %337 = vst.msk [vmem:[%s496_s24 + $0xb8] sm:$0xff] %vm313_vm0, %v304_v46  ;;  %v278_v56 = vadd.f32 %v473_v1, %v239_v49  ;;  %v241_v57 = vmul.f32 %v463_v0, %v202_v45  ;;  %v305_v58 = vmax.f32 %v273_v50, 0.0  ;;  %v306_v59 = vmax.f32 %v274_v51, 0.0 }
  0x28   : > { %v307_v60 = vmax.f32 %v275_v52, 0.0  ;;  %v279_v61 = vadd.f32 %v473_v1, %v240_v53  ;;  %v308_v62 = vmax.f32 %v276_v54, 0.0  ;;  %v309_v63 = vmax.f32 %v277_v55, 0.0 }
  0x29   : > { %v310_v2 = vmax.f32 %v278_v56, 0.0  ;;  %v280_v3 = vadd.f32 %v473_v1, %v241_v57  ;;  %338 = vst.msk [vmem:[%s496_s24 + $0xc0] sm:$0xff] %vm313_vm0, %v305_v58  ;;  %339 = vst.msk [vmem:[%s496_s24 + $0xc8] sm:$0xff] %vm313_vm0, %v306_v59 }
  0x2a   : > { %340 = vst.msk [vmem:[%s496_s24 + $0xd0] sm:$0xff] %vm313_vm0, %v307_v60  ;;  %v311_v4 = vmax.f32 %v279_v61, 0.0  ;;  %341 = vst.msk [vmem:[%s496_s24 + $0xd8] sm:$0xff] %vm313_vm0, %v308_v62 }
  0x2b   : > { %342 = vst.msk [vmem:[%s496_s24 + $0xe0] sm:$0xff] %vm313_vm0, %v309_v63  ;;  %343 = vst.msk [vmem:[%s496_s24 + $0xe8] sm:$0xff] %vm313_vm0, %v310_v2  ;;  %v312_v0 = vmax.f32 %v280_v3, 0.0 }
  0x2c   : > { %344 = vst.msk [vmem:[%s496_s24 + $0xf0] sm:$0xff] %vm313_vm0, %v311_v4 }
  0x2d   : > { %345 = vst.msk [vmem:[%s496_s24 + $0xf8] sm:$0xff] %vm313_vm0, %v312_v0 }
  0x2e PF: > { %s13_s12 = sadd.s32 1, %s430_s12  }
  0x2f   : > { %p10_p4 = scmp.ge.s32.totalorder %s13_s12, 4  }
  0x31   :  { %12 = sbr.rel (!%p10_p4) target bundleno = 1 (0x1), region = 62 }

// kernel: upscale_forward.8
= control target key start
LH: loop header
LB: loop body
LE: loop exit
PB: predicated region body
PF: predicated region fallthrough
CT: control target
= control target key end

     0   :  { %s2365_s15 = smov 0   ;;  %s3913_s0 = inlined_call_operand.vmem [shape: f32[2,18,18,16], index: 0, kind: input, shape index: {}]   ;;  %s3914_s1 = inlined_call_operand.vmem [shape: f32[144,8], index: 1, kind: input, shape index: {}]   ;;  %s3915_s2 = inlined_call_operand.vmem [shape: f32[2,256,8], index: 2, kind: output, shape index: {0}]   ;;  %s3916_s3 = inlined_call_operand.vmem [shape: f32[2,1,8], index: 3, kind: output, shape index: {1}]   ;;  %s3917_s4 = inlined_call_operand.vmem [shape: f32[2,1,8], index: 4, kind: output, shape index: {2}]  }
   0x1 LB: > { %s2219_s16 = sadd.s32 4294967295, %s2330_s15   ;;  %p2223_p0 = scmp.ge.s32.totalorder %s2330_s15, 1  ;;  %s2330_s15 = sphi %s2365_s15, %s15_s15  }
   0x2   : > { %p167_p1 = scmp.lt.s32.totalorder %s2330_s15, 3 }
   0x4   : > { %p168_p2 = pnand %p2223_p0, %p167_p1 }
   0x6   : > { %171 = sbr.rel (%p168_p2) target bundleno = 822 (0x336), region = 28 }
   0xd   : > { %p199_p3 = scmp.lt.s32.totalorder %s2219_s16, 1  ;;  %vm269_vm0 = vcmask 130048   ;;  %vm350_vm1 = vcmask 1046528   ;;  %s2332_s21 = smov 16   ;;  %vm560_vm2 = vcmask 1045504   ;;  %vm527_vm3 = vcmask 261248  }
   0xe   : > { %s2334_s6 = smov 48   ;;  %s2335_s7 = smov 32   ;;  %vm737_vm4 = vcmask 392448   ;;  %vm868_vm5 = vcmask 523648   ;;  %vm1003_vm6 = vcmask 654848   ;;  %vm1137_vm7 = vcmask 786048  }
   0xf   : > { %s4010_s16 = smov (!%p199_p3, %s2219_s16), 1  ;;  %s2336_s12 = smov 80   ;;  %vm1268_vm8 = vcmask 917248   ;;  %vm1403_vm9 = vcmask 1048448   ;;  %vm1908_vm10 = vcmask 64512   ;;  %vm2010_vm11 = vcmask 57344  }
  0x10   : > { %s2307_s17 = smul.u32 432, %s4010_s16  ;;  %s2337_s13 = smov 64  }
  0x11   : > { %s2338_s14 = smov 96   ;;  %s211_s24 = scalar_lea.vmem %s3916_s3, %s4010_s16 }
  0x12   : > { %s2379_s20 = scalar_lea.vmem %s3913_s0, %s2307_s17  ;;  %s2339_s17 = smov 112  }
  0x13   : > { %v2382_v0 = vld [vmem:[%s2379_s20 + $0x18] sm:$0xff]  ;;  %v2385_v1 = vld [vmem:[%s2379_s20 + $0x20] sm:$0xff]  ;;  %v2393_v5 = vld [vmem:[%s2379_s20 + $0x8] sm:$0xff]  ;;  %s214_s27 = scalar_lea.vmem %s3917_s4, %s4010_s16 }
  0x14   : > { %v2388_v2 = vld [vmem:[%s2379_s20] sm:$0xff]  ;;  %v356_v3 = vrot.slane %v2382_v0, 1  ;;  %v357_v4 = vrot.slane %v2385_v1, 1  ;;  %v2397_v7 = vld [vmem:[%s2379_s20 + $0x28] sm:$0x3]  ;;  %272 = vst.msk [vmem:[#allocation2 + $0x20] sm:$0xff] %vm269_vm0, %v2382_v0 }
  0x15   : > { %v351_v6 = vrot.slane %v2388_v2, 1  ;;  %270 = vst.msk [vmem:[#allocation2] sm:$0xff] %vm269_vm0, %v2388_v2  ;;  %273 = vst.msk [vmem:[#allocation2 + $0x30] sm:$0xff] %vm269_vm0, %v2385_v1  ;;  %v352_v8 = vrot.slane %v2393_v5, 1  ;;  %v359_v9 = vrot.slane %v2397_v7, 1  ;;  %v2411_v11 = vld [vmem:[%s2379_s20 + $0x38] sm:$0xff] }
  0x16   : > { %v2408_v10 = vld [vmem:[%s2379_s20 + $0x10] sm:$0x3]  ;;  %271 = vst.msk [vmem:[#allocation2 + $0x10] sm:$0xff] %vm269_vm0, %v2393_v5  ;;  %v2419_v13 = vsel %vm350_vm1, %v356_v3, %v357_v4  ;;  %v2423_v15 = vld [vmem:[%s2379_s20 + $0x40] sm:$0x3]  ;;  %275 = vst.msk [vmem:[#allocation2 + $0x50] sm:$0xff] %vm269_vm0, %v2411_v11 }
  0x17   : > { %v2414_v12 = vld [vmem:[%s2379_s20 + $0x30] sm:$0xff]  ;;  %v354_v14 = vrot.slane %v2408_v10, 1  ;;  %435 = vrot.lane.b32.xlu1 %v2419_v13, %s2332_s21  ;;  %v353_v17 = vsel %vm350_vm1, %v351_v6, %v352_v8  ;;  %v2436_v18 = vld [vmem:[%s2379_s20 + $0x48] sm:$0xff]  ;;  %v2445_v20 = vsel %vm350_vm1, %v357_v4, %v359_v9  ;;  %v362_v21 = vrot.slane %v2411_v11, 1  ;;  %v2450_v23 = vld [vmem:[%s2379_s20 + $0x60] sm:$0xff] }
  0x18   : > { %v2426_v16 = vld [vmem:[%s2379_s20 + $0x50] sm:$0xff]  ;;  %274 = vst.msk [vmem:[#allocation2 + $0x40] sm:$0xff] %vm269_vm0, %v2414_v12  ;;  %v2439_v19 = vld [vmem:[%s2379_s20 + $0x68] sm:$0xff]  ;;  %431 = vrot.lane.b32.xlu0 %v353_v17, %s2332_s21  ;;  %v364_v22 = vrot.slane %v2423_v15, 1  ;;  %v2453_v24 = vld [vmem:[%s2379_s20 + $0x80] sm:$0xff]  ;;  %v361_v26 = vrot.slane %v2414_v12, 1 }
  0x19   : > { %277 = vst.msk [vmem:[#allocation2 + $0x70] sm:$0xff] %vm269_vm0, %v2426_v16  ;;  %276 = vst.msk [vmem:[#allocation2 + $0x60] sm:$0xff] %vm269_vm0, %v2436_v18  ;;  %v355_v25 = vsel %vm350_vm1, %v352_v8, %v354_v14  ;;  %v2462_v27 = vld [vmem:[%s2379_s20 + $0x58] sm:$0x3]  ;;  %v2475_v30 = vld [vmem:[%s2379_s20 + $0x90] sm:$0xff]  ;;  %v367_v34 = vrot.slane %v2426_v16, 1 }
  0x1a   : > { %279 = vst.msk [vmem:[#allocation2 + $0x90] sm:$0xff] %vm269_vm0, %v2439_v19  ;;  %v2465_v28 = vld [vmem:[%s2379_s20 + $0x78] sm:$0xff]  ;;  %278 = vst.msk [vmem:[#allocation2 + $0x80] sm:$0xff] %vm269_vm0, %v2450_v23  ;;  %v2482_v31 = vld [vmem:[%s2379_s20 + $0xb0] sm:$0xff]  ;;  %v2493_v33 = vsel %vm350_vm1, %v362_v21, %v364_v22  ;;  %v369_v35 = vrot.slane %v2462_v27, 1  ;;  %v2508_v38 = vsel %vm350_vm1, %v361_v26, %v362_v21  ;;  %v366_v39 = vrot.slane %v2436_v18, 1 }
  0x1b   : > { %281 = vst.msk [vmem:[#allocation2 + $0xb0] sm:$0xff] %vm269_vm0, %v2453_v24  ;;  %v2472_v29 = vld [vmem:[%s2379_s20 + $0x98] sm:$0xff]  ;;  %280 = vst.msk [vmem:[#allocation2 + $0xa0] sm:$0xff] %vm269_vm0, %v2465_v28  ;;  %437 = vrot.lane.b32.xlu1 %v2445_v20, %s2332_s21  ;;  %v2485_v32 = vld [vmem:[%s2379_s20 + $0xa8] sm:$0xff]  ;;  %v372_v48 = vrot.slane %v2439_v19, 1  ;;  %v371_v54 = vrot.slane %v2450_v23, 1 }
  0x1c   : > { %282 = vst.msk [vmem:[#allocation2 + $0xc0] sm:$0xff] %vm269_vm0, %v2475_v30  ;;  %283 = vst.msk [vmem:[#allocation2 + $0xd0] sm:$0xff] %vm269_vm0, %v2472_v29  ;;  %433 = vrot.lane.b32.xlu0 %v355_v25, %s2332_s21  ;;  %v2498_v36 = vld [vmem:[%s2379_s20 + $0x70] sm:$0x3]  ;;  %v2501_v37 = vld [vmem:[%s2379_s20 + $0xc8] sm:$0xff]  ;;  %v2549_v47 = vsel %vm350_vm1, %v367_v34, %v369_v35  ;;  %v2567_v53 = vsel %vm350_vm1, %v366_v39, %v367_v34  ;;  %v377_v57 = vrot.slane %v2453_v24, 1 }
  0x1d   : > { %3963 = vst [vmem:[#allocation3_spill] sm:$0xff] %v2501_v37  ;;  %284 = vst.msk [vmem:[#allocation2 + $0xe0] sm:$0xff] %vm269_vm0, %v2485_v32  ;;  %v2512_v40 = vld [vmem:[%s2379_s20 + $0xc0] sm:$0xff]  ;;  %v2518_v42 = vld [vmem:[%s2379_s20 + $0xd8] sm:$0xff]  ;;  %v374_v49 = vrot.slane %v2498_v36, 1  ;;  %v2594_v60 = vsel %vm350_vm1, %v371_v54, %v372_v48  ;;  %v376_v61 = vrot.slane %v2465_v28, 1 }
  0x1e   : > { %285 = vst.msk [vmem:[#allocation2 + $0xf0] sm:$0xff] %vm269_vm0, %v2482_v31  ;;  %3964 = vst [vmem:[#allocation4_spill] sm:$0xff] %v2512_v40  ;;  %v2515_v41 = vld [vmem:[%s2379_s20 + $0xe0] sm:$0xff]  ;;  %v2523_v43 = vld [vmem:[%s2379_s20 + $0xf8] sm:$0xff]  ;;  %v382_v3 = vrot.slane %v2472_v29, 1  ;;  %v571_v4 = vrot.slane %v2414_v12, 2 }
  0x1f   : > { %3965 = vst [vmem:[#allocation5_spill] sm:$0xff] %v2518_v42  ;;  %287 = vst.msk [vmem:[#allocation2 + $0x110] sm:$0xff] %vm269_vm0, %v2501_v37  ;;  %v2526_v44 = vld [vmem:[%s2379_s20 + $0xf0] sm:$0xff]  ;;  %441 = vrot.lane.b32.xlu1 %v2493_v33, %s2332_s21  ;;  %v2540_v46 = vld [vmem:[%s2379_s20 + $0x108] sm:$0xff]  ;;  %v2591_v59 = vsel %vm350_vm1, %v372_v48, %v374_v49  ;;  %v381_v8 = vrot.slane %v2475_v30, 1  ;;  %v572_v9 = vrot.slane %v2411_v11, 2  ;;  %v2614_v17 = vsel %vm350_vm1, %v376_v61, %v377_v57 }
  0x20   : > { %286 = vst.msk [vmem:[#allocation2 + $0x100] sm:$0xff] %vm269_vm0, %v2512_v40  ;;  %288 = vst.msk [vmem:[#allocation2 + $0x120] sm:$0xff] %vm269_vm0, %v2518_v42  ;;  %v2537_v45 = vld [vmem:[%s2379_s20 + $0x110] sm:$0xff]  ;;  %439 = vrot.lane.b32.xlu0 %v2508_v38, %s2332_s21  ;;  %v2554_v50 = vld [vmem:[%s2379_s20 + $0x88] sm:$0x3]  ;;  %v574_v14 = vrot.slane %v2423_v15, 2 }
  0x21   : > { %289 = vst.msk [vmem:[#allocation2 + $0x130] sm:$0xff] %vm269_vm0, %v2515_v41  ;;  %290 = vst.msk [vmem:[#allocation2 + $0x140] sm:$0xff] %vm269_vm0, %v2526_v44  ;;  %v2557_v51 = vld [vmem:[%s2379_s20 + $0x128] sm:$0xff]  ;;  %v2560_v52 = vld [vmem:[%s2379_s20 + $0x120] sm:$0xff]  ;;  %v379_v58 = vrot.slane %v2554_v50, 1  ;;  %v387_v22 = vrot.slane %v2482_v31, 1  ;;  %v2623_v34 = vsel %vm560_vm2, %v571_v4, %v572_v9 }
  0x22   : > { %291 = vst.msk [vmem:[#allocation2 + $0x150] sm:$0xff] %vm269_vm0, %v2523_v43  ;;  %292 = vst.msk [vmem:[#allocation2 + $0x160] sm:$0xff] %vm269_vm0, %v2540_v46  ;;  %v2571_v55 = vld [vmem:[%s2379_s20 + $0x140] sm:$0xff]  ;;  %v2578_v56 = vld [vmem:[%s2379_s20 + $0x138] sm:$0xff]  ;;  %v576_v25 = vrot.slane %v2436_v18, 2  ;;  %v577_v26 = vrot.slane %v2426_v16, 2  ;;  %v2626_v35 = vsel %vm560_vm2, %v572_v9, %v574_v14 }
  0x23   : > { %293 = vst.msk [vmem:[#allocation2 + $0x170] sm:$0xff] %vm269_vm0, %v2537_v45  ;;  %294 = vst.msk [vmem:[#allocation2 + $0x180] sm:$0xff] %vm269_vm0, %v2560_v52  ;;  %445 = vrot.lane.b32.xlu1 %v2549_v47, %s2332_s21  ;;  %v2598_v62 = vld [vmem:[%s2379_s20 + $0xa0] sm:$0x3]  ;;  %v2603_v63 = vsel %vm350_vm1, %v377_v57, %v379_v58  ;;  %v2617_v21 = vld [vmem:[%s2379_s20 + $0xb8] sm:$0x3] }
  0x24   : > { %295 = vst.msk [vmem:[#allocation2 + $0x190] sm:$0xff] %vm269_vm0, %v2557_v51  ;;  %297 = vst.msk [vmem:[#allocation2 + $0x1b0] sm:$0xff] %vm269_vm0, %v2571_v55  ;;  %443 = vrot.lane.b32.xlu0 %v2567_v53, %s2332_s21  ;;  %v384_v6 = vrot.slane %v2598_v62, 1  ;;  %v579_v39 = vrot.slane %v2462_v27, 2  ;;  %v581_v15 = vrot.slane %v2450_v23, 2  ;;  %v2637_v48 = vsel %vm560_vm2, %v576_v25, %v577_v26 }
  0x25   : > { %296 = vst.msk [vmem:[#allocation2 + $0x1a0] sm:$0xff] %vm269_vm0, %v2578_v56  ;;  %3966 = vst [vmem:[#allocation6_spill] sm:$0xff] %v2603_v63  ;;  %v582_v49 = vrot.slane %v2439_v19, 2  ;;  %v584_v54 = vrot.slane %v2498_v36, 2  ;;  %v601_v27 = vrot.slane %v2512_v40, 2  ;;  %v389_v58 = vrot.slane %v2617_v21, 1 }
  0x26   : > { %3967 = vst [vmem:[#allocation7_spill] sm:$0xff] %v2617_v21  ;;  %1473 = vst.msk [vmem:[#allocation2 + $0x8] sm:$0xff] %vm269_vm0, %v2623_v34  ;;  %v2645_v57 = vsel %vm350_vm1, %v382_v3, %v384_v6  ;;  %v2651_v61 = vsel %vm560_vm2, %v577_v26, %v579_v39  ;;  %v3918_v4 = vrot.slane %v2501_v37, 2  ;;  %v2655_v36 = vsel %vm350_vm1, %v381_v8, %v382_v3  ;;  %v2659_v14 = vld [vmem:[%s2379_s20 + $0xd0] sm:$0x3] }
  0x27   : > { %449 = vrot.lane.b32.xlu1 %v2591_v59, %s2332_s21  ;;  %1474 = vst.msk [vmem:[#allocation2 + $0x18] sm:$0xff] %vm269_vm0, %v2626_v35  ;;  %3968 = vst [vmem:[#allocation8_spill] sm:$0xff] %v2645_v57  ;;  %v386_v9 = vrot.slane %v2485_v32, 1  ;;  %v2664_v6 = vsel %vm560_vm2, %v581_v15, %v582_v49  ;;  %v2667_v25 = vsel %vm560_vm2, %v582_v49, %v584_v54  ;;  %v392_v26 = vrot.slane %v2501_v37, 1  ;;  %v2694_v54 = vld [vmem:[%s2379_s20 + $0xe8] sm:$0x3] }
  0x28   : > { %447 = vrot.lane.b32.xlu0 %v2594_v60, %s2332_s21  ;;  %1475 = vst.msk [vmem:[#allocation2 + $0x28] sm:$0xff] %vm269_vm0, %v2637_v48  ;;  %3969 = vst [vmem:[#allocation9_spill] sm:$0xff] %v2655_v36  ;;  %v2676_v3 = vsel %vm560_vm2, %v601_v27, %v3918_v4  ;;  %v2685_v8 = vsel %vm350_vm1, %v387_v22, %v389_v58  ;;  %v394_v39 = vrot.slane %v2659_v14, 1  ;;  %v391_v49 = vrot.slane %v2512_v40, 1  ;;  %v1569_v27 = vld [vmem:[%s3914_s1] sm:$0xff]  ;;  %v1570_v58 = vld [vmem:[%s3914_s1 + $0x8] sm:$0xff] }
  0x29   : > { %1476 = vst.msk [vmem:[#allocation2 + $0x38] sm:$0xff] %vm269_vm0, %v2651_v61  ;;  %3970 = vst [vmem:[#allocation10_spill] sm:$0xff] %v2667_v25  ;;  %v2690_v15 = vsel %vm350_vm1, %v386_v9, %v387_v22  ;;  %v2263_v4 = vpack.c.bf16 %v1570_v58, %v1569_v27  ;;  %v397_v9 = vrot.slane %v2515_v41, 1  ;;  %v399_v40 = vrot.slane %v2694_v54, 1  ;;  %v2717_v58 = vld [vmem:[%s2379_s20 + $0x100] sm:$0x3] }
  0x2a   : > { %1477 = vst.msk [vmem:[#allocation2 + $0x48] sm:$0xff] %vm269_vm0, %v2664_v6  ;;  %1478 = vst.msk [vmem:[#allocation2 + $0x58] sm:$0xff] %vm269_vm0, %v2667_v25  ;;  %v2708_v22 = vsel %vm350_vm1, %v392_v26, %v394_v39  ;;  %v2714_v27 = vsel %vm350_vm1, %v391_v49, %v392_v26  ;;  %v1571_v39 = vld [vmem:[%s3914_s1 + $0x10] sm:$0xff]  ;;  %v402_v26 = vrot.slane %v2523_v43, 1  ;;  %v404_v21 = vrot.slane %v2717_v58, 1 }
  0x2b   : > { %453 = vrot.lane.b32.xlu1 %v2603_v63, %s2332_s21  ;;  %3971 = vst [vmem:[#allocation11_spill] sm:$0xff] %v2676_v3  ;;  %1485 = vst.msk [vmem:[#allocation2 + $0xc8] sm:$0xff] %vm269_vm0, %v2676_v3  ;;  %v2734_v49 = vsel %vm350_vm1, %v397_v9, %v399_v40  ;;  %v1574_v40 = vld [vmem:[%s3914_s1 + $0x28] sm:$0xff]  ;;  %v3979_v25 = vmov 0.0|0.0  }
  0x2c   : > { %451 = vrot.lane.b32.xlu0 %v2614_v17, %s2332_s21  ;;  %3972 = vst [vmem:[#allocation12_spill] sm:$0xff] %v2685_v8  ;;  %3973 = vst [vmem:[#allocation13_spill] sm:$0xff] %v2690_v15 }
  0x2d   : > { %3974 = vst [vmem:[#allocation14_spill] sm:$0xff] %v2708_v22  ;;  %3975 = vst [vmem:[#allocation15_spill] sm:$0xff] %v2714_v27 }
  0x2e   : > { %3976 = vst [vmem:[#allocation16_spill] sm:$0xff] %v2734_v49 }
  0x2f   : > { %457 = vrot.lane.b32.xlu1 %v2645_v57, %s2332_s21  ;;  %v3938_v57 = vmov 0.0|0.0  }
  0x30   : > { %455 = vrot.lane.b32.xlu0 %v2655_v36, %s2332_s21  ;;  %2262 = vmatprep.subr.bf16.mxu0 %v3938_v57  ;;  %v396_v36 = vrot.slane %v2518_v42, 1 }
  0x31   : > { %2264 = vmatpush1.bf16.msra.mxu0 %v2263_v4  ;;  %2289 = vmatprep.subr.bf16.mxu1 %v3938_v57 }
  0x32   : > { %2265 = vmatprep.subr.bf16.mxu0 %v3938_v57  ;;  %2298 = vmatpush1.bf16.msra.mxu1 %v2263_v4  ;;  %v2737_v63 = vsel %vm350_vm1, %v396_v36, %v397_v9  ;;  %v401_v4 = vrot.slane %v2526_v44, 1  ;;  %v606_v36 = vrot.slane %v2518_v42, 2  ;;  %v3945_v9 = vrot.slane %v2515_v41, 2 }
  0x33   : > { %461 = vrot.lane.b32.xlu1 %v2685_v8, %s2332_s21  ;;  %v1572_v8 = vld [vmem:[%s3914_s1 + $0x18] sm:$0xff]  ;;  %2290 = vmatprep.subr.bf16.mxu1 %v3938_v57 }
  0x34   : > { %459 = vrot.lane.b32.xlu0 %v2690_v15, %s2332_s21  ;;  %v2266_v15 = vpack.c.bf16 %v1572_v8, %v1571_v39  ;;  %v2742_v8 = vld [vmem:[%s2379_s20 + $0x118] sm:$0x3]  ;;  %v1573_v39 = vld [vmem:[%s3914_s1 + $0x20] sm:$0xff] }
  0x35   : > { %v2269_v3 = vpack.c.bf16 %v1574_v40, %v1573_v39  ;;  %v407_v39 = vrot.slane %v2537_v45, 1  ;;  %v409_v40 = vrot.slane %v2742_v8, 1 }
  0x36   : > { %2267 = vmatpush1.bf16.msra.mxu0 %v2266_v15  ;;  %2299 = vmatpush1.bf16.msra.mxu1 %v2266_v15  ;;  %v2771_v15 = vsel %vm350_vm1, %v402_v26, %v404_v21  ;;  %v1575_v21 = vld [vmem:[%s3914_s1 + $0x30] sm:$0xff] }
  0x37   : > { %465 = vrot.lane.b32.xlu1 %v2708_v22, %s2332_s21  ;;  %2268 = vmatprep.subr.bf16.mxu0 %v3938_v57  ;;  %v586_v22 = vrot.slane %v2465_v28, 2  ;;  %v2760_v57 = vsel %vm560_vm2, %v606_v36, %v3945_v9  ;;  %3980 = vst [vmem:[#allocation19_spill] sm:$0xff] %v2771_v15  ;;  %v406_v36 = vrot.slane %v2540_v46, 1  ;;  %v1576_v9 = vld [vmem:[%s3914_s1 + $0x38] sm:$0xff] }
  0x38   : > { %463 = vrot.lane.b32.xlu0 %v2714_v27, %s2332_s21  ;;  %v3944_v27 = vrot.slane %v2453_v24, 2  ;;  %3977 = vst [vmem:[#allocation17_spill] sm:$0xff] %v2760_v57  ;;  %2291 = vmatprep.subr.bf16.mxu1 %v3979_v25  ;;  %1487 = vst.msk [vmem:[#allocation2 + $0xe8] sm:$0xff] %vm269_vm0, %v2760_v57  ;;  %v2805_v57 = vsel %vm350_vm1, %v407_v39, %v409_v40  ;;  %v1577_v40 = vld [vmem:[%s3914_s1 + $0x40] sm:$0xff] }
  0x39   : > { %3983 = vst [vmem:[#allocation21_spill] sm:$0xff] %v2805_v57 }
  0x3a   : > { %v2765_v42 = vsel %vm560_vm2, %v586_v22, %v3944_v27  ;;  %2270 = vmatpush1.bf16.msra.mxu0 %v2269_v3  ;;  %v2780_v22 = vsel %vm350_vm1, %v401_v4, %v402_v26  ;;  %v2784_v27 = vld [vmem:[%s2379_s20 + $0x130] sm:$0x3]  ;;  %2300 = vmatpush1.bf16.msra.mxu1 %v2269_v3  ;;  %v3982_v26 = vrot.slane %v2501_v37, 2 }
  0x3b   : > { %469 = vrot.lane.b32.xlu1 %v2734_v49, %s2332_s21  ;;  %3978 = vst [vmem:[#allocation18_spill] sm:$0xff] %v2765_v42  ;;  %1479 = vst.msk [vmem:[#allocation2 + $0x68] sm:$0xff] %vm269_vm0, %v2765_v42  ;;  %2271 = vmatprep.subr.bf16.mxu0 %v3979_v25  ;;  %v604_v49 = vrot.slane %v2659_v14, 2  ;;  %v2272_v42 = vpack.c.bf16 %v1576_v9, %v1575_v21  ;;  %v412_v14 = vrot.slane %v2557_v51, 1  ;;  %v414_v3 = vrot.slane %v2784_v27, 1 }
  0x3c   : > { %467 = vrot.lane.b32.xlu0 %v2737_v63, %s2332_s21  ;;  %3981 = vst [vmem:[#allocation20_spill] sm:$0xff] %v2784_v27  ;;  %2292 = vmatprep.subr.bf16.mxu1 %v3979_v25  ;;  %v2812_v9 = vsel %vm350_vm1, %v406_v36, %v407_v39  ;;  %v2816_v21 = vld [vmem:[%s2379_s20 + $0x148] sm:$0x3]  ;;  %v417_v36 = vrot.slane %v2571_v55, 1 }
  0x3d   : > { %v2799_v4 = vsel %vm560_vm2, %v3982_v26, %v604_v49  ;;  %v411_v49 = vrot.slane %v2560_v52, 1  ;;  %v1578_v26 = vld [vmem:[%s3914_s1 + $0x48] sm:$0xff]  ;;  %v2831_v39 = vsel %vm350_vm1, %v412_v14, %v414_v3  ;;  %v1580_v3 = vld [vmem:[%s3914_s1 + $0x58] sm:$0xff] }
  0x3e   : > { %2273 = vmatpush1.bf16.msra.mxu0 %v2272_v42  ;;  %1486 = vst.msk [vmem:[#allocation2 + $0xd8] sm:$0xff] %vm269_vm0, %v2799_v4  ;;  %v2275_v37 = vpack.c.bf16 %v1578_v26, %v1577_v40  ;;  %2301 = vmatpush1.bf16.msra.mxu1 %v2272_v42  ;;  %v416_v42 = vrot.slane %v2578_v56, 1  ;;  %v1579_v40 = vld [vmem:[%s3914_s1 + $0x50] sm:$0xff] }
  0x3f   : > { %473 = vrot.lane.b32.xlu1 %v2771_v15, %s2332_s21  ;;  %2274 = vmatprep.subr.bf16.mxu0 %v3979_v25  ;;  %v419_v15 = vrot.slane %v2816_v21, 1  ;;  %v2836_v27 = vsel %vm350_vm1, %v411_v49, %v412_v14  ;;  %v2278_v26 = vpack.c.bf16 %v1580_v3, %v1579_v40  ;;  %v562_v40 = vrot.slane %v2393_v5, 2  ;;  %v1582_v3 = vld [vmem:[%s3914_s1 + $0x68] sm:$0xff] }
  0x40   : > { %471 = vrot.lane.b32.xlu0 %v2780_v22, %s2332_s21  ;;  %2293 = vmatprep.subr.bf16.mxu1 %v3979_v25  ;;  %v2855_v49 = vsel %vm350_vm1, %v416_v42, %v417_v36  ;;  %v567_v5 = vrot.slane %v2385_v1, 2  ;;  %v1583_v42 = vld [vmem:[%s3914_s1 + $0x70] sm:$0xff] }
  0x41   : > { %v2852_v14 = vsel %vm350_vm1, %v417_v36, %v419_v15  ;;  %3985 = vst [vmem:[#allocation23_spill] sm:$0xff] %v2855_v49 }
  0x42   : > { %2276 = vmatpush1.bf16.msra.mxu0 %v2275_v37  ;;  %2302 = vmatpush1.bf16.msra.mxu1 %v2275_v37  ;;  %3984 = vst [vmem:[#allocation22_spill] sm:$0xff] %v2852_v14  ;;  %v1581_v37 = vld [vmem:[%s3914_s1 + $0x60] sm:$0xff] }
  0x43   : > { %477 = vrot.lane.b32.xlu1 %v2805_v57, %s2332_s21  ;;  %2277 = vmatprep.subr.bf16.mxu0 %v3979_v25  ;;  %v561_v57 = vrot.slane %v2388_v2, 2  ;;  %v2281_v15 = vpack.c.bf16 %v1582_v3, %v1581_v37  ;;  %v566_v2 = vrot.slane %v2382_v0, 2  ;;  %v564_v3 = vrot.slane %v2408_v10, 2 }
  0x44   : > { %475 = vrot.lane.b32.xlu0 %v2812_v9, %s2332_s21  ;;  %2294 = vmatprep.subr.bf16.mxu1 %v3979_v25  ;;  %v3986_v10 = vrot.slane %v2515_v41, 2 }
  0x45   : > { %v563_v36 = vsel %vm560_vm2, %v561_v57, %v562_v40  ;;  %v568_v57 = vsel %vm560_vm2, %v566_v2, %v567_v5 }
  0x46   : > { %2279 = vmatpush1.bf16.msra.mxu0 %v2278_v26  ;;  %2303 = vmatpush1.bf16.msra.mxu1 %v2278_v26  ;;  %v1584_v26 = vld [vmem:[%s3914_s1 + $0x78] sm:$0xff] }
  0x47   : > { %481 = vrot.lane.b32.xlu1 %v2831_v39, %s2332_s21  ;;  %2280 = vmatprep.subr.bf16.mxu0 %v3979_v25  ;;  %v2284_v37 = vpack.c.bf16 %v1584_v26, %v1583_v42  ;;  %v609_v42 = vrot.slane %v2694_v54, 2  ;;  %v589_v26 = vrot.slane %v2554_v50, 2  ;;  %v1506_v50 = vld [vmem:[#allocation2 + $0x8] sm:$0xff]  ;;  %v565_v54 = vsel %vm560_vm2, %v562_v40, %v564_v3 }
  0x48   : > { %479 = vrot.lane.b32.xlu0 %v2836_v27, %s2332_s21  ;;  %2295 = vmatprep.subr.bf16.mxu1 %v3979_v25  ;;  %v592_v40 = vrot.slane %v2472_v29, 2  ;;  %v617_v3 = vrot.slane %v2537_v45, 2 }
  0x49   : > { %v2900_v2 = vsel %vm560_vm2, %v3986_v10, %v609_v42  ;;  %2227 = vmatprep.mubr.msk.f32.mxu0 %vm269_vm0, %v1506_v50 }
  0x4a   : > { %2282 = vmatpush1.bf16.msra.mxu0 %v2281_v15  ;;  %2304 = vmatpush1.bf16.msra.mxu1 %v2281_v15  ;;  %v1585_v15 = vld [vmem:[%s3914_s1 + $0x80] sm:$0xff]  ;;  %1488 = vst.msk [vmem:[#allocation2 + $0xf8] sm:$0xff] %vm269_vm0, %v2900_v2 }
  0x4b   : > { %485 = vrot.lane.b32.xlu1 %v2852_v14, %s2332_s21  ;;  %2283 = vmatprep.subr.bf16.mxu0 %v3979_v25  ;;  %v3987_v14 = vrot.slane %v2453_v24, 2 }
  0x4c   : > { %483 = vrot.lane.b32.xlu0 %v2855_v49, %s2332_s21  ;;  %2296 = vmatprep.subr.bf16.mxu1 %v3979_v25 }
  0x4d   : > { %v2905_v49 = vsel %vm560_vm2, %v3987_v14, %v589_v26  ;;  %v591_v14 = vrot.slane %v2475_v30, 2 }
  0x4e   : > { %2285 = vmatpush1.bf16.msra.mxu0 %v2284_v37  ;;  %2305 = vmatpush1.bf16.msra.mxu1 %v2284_v37  ;;  %1480 = vst.msk [vmem:[#allocation2 + $0x78] sm:$0xff] %vm269_vm0, %v2905_v49 }
  0x4f   : > { %772 = vrot.lane.b32.xlu1 %v2382_v0, %s2334_s6  ;;  %2286 = vmatprep.subr.bf16.mxu0 %v3979_v25  ;;  %v1586_v0 = vld [vmem:[%s3914_s1 + $0x88] sm:$0xff] }
  0x50   : > { %641 = vrot.lane.b32.xlu0 %v563_v36, %s2335_s7  ;;  %v2287_v36 = vpack.c.bf16 %v1586_v0, %v1585_v15  ;;  %2297 = vmatprep.subr.bf16.mxu1 %v3979_v25  ;;  %v596_v15 = vrot.slane %v2485_v32, 2 }
  0x52   : > { %2288 = vmatpush1.bf16.msra.mxu0 %v2287_v36  ;;  %2306 = vmatpush1.bf16.msra.mxu1 %v2287_v36 }
  0x53   : > { %1041 = vrot.lane.b32.xlu1 %v568_v57, %s2336_s12 }
  0x54   : > { %907 = vrot.lane.b32.xlu0 %v2419_v13, %s2337_s13  ;;  %v569_v13 = vrot.slane %v2397_v7, 2  ;;  %v612_v7 = vrot.slane %v2523_v43, 2 }
  0x56   : > { %v570_v25 = vsel %vm560_vm2, %v567_v5, %v569_v13  ;;  %v2945_v5 = vsel %vm560_vm2, %v591_v14, %v592_v40  ;;  %v619_v14 = vrot.slane %v2742_v8, 2 }
  0x57   : > { %1172 = vrot.lane.b32.xlu1 %v2414_v12, %s2338_s14  ;;  %1481 = vst.msk [vmem:[#allocation2 + $0x88] sm:$0xff] %vm269_vm0, %v2945_v5 }
  0x58   : > { %643 = vrot.lane.b32.xlu0 %v565_v54, %s2335_s7 }
  0x5b   : > { %1307 = vrot.lane.b32.xlu1 %v2508_v38, %s2339_s17 }
  0x5c   : > { %774 = vrot.lane.b32.xlu0 %v2385_v1, %s2334_s6  ;;  %v611_v1 = vrot.slane %v2526_v44, 2 }
  0x5f   : > { %1043 = vrot.lane.b32.xlu1 %v570_v25, %s2336_s12 }
  0x60   : > { %909 = vrot.lane.b32.xlu0 %v2445_v20, %s2337_s13  ;;  %v2942_v20 = vsel %vm560_vm2, %v611_v1, %v612_v7 }
  0x61   : > { %1489 = vst.msk [vmem:[#allocation2 + $0x108] sm:$0xff] %vm269_vm0, %v2942_v20 }
  0x63   : > { %1174 = vrot.lane.b32.xlu1 %v2411_v11, %s2338_s14 }
  0x64   : > { %645 = vrot.lane.b32.xlu0 %v568_v57, %s2335_s7  ;;  %v616_v57 = vrot.slane %v2540_v46, 2 }
  0x66   : > { %v3025_v42 = vsel %vm560_vm2, %v616_v57, %v617_v3 }
  0x67   : > { %1309 = vrot.lane.b32.xlu1 %v2493_v33, %s2339_s17  ;;  %1491 = vst.msk [vmem:[#allocation2 + $0x128] sm:$0xff] %vm269_vm0, %v3025_v42 }
  0x68   : > { %776 = vrot.lane.b32.xlu0 %v2414_v12, %s2334_s6  ;;  %v594_v12 = vrot.slane %v2598_v62, 2 }
  0x6b   : > { %1045 = vrot.lane.b32.xlu1 %v2623_v34, %s2336_s12 }
  0x6c   : > { %911 = vrot.lane.b32.xlu0 %v2508_v38, %s2337_s13  ;;  %v2980_v38 = vsel %vm560_vm2, %v592_v40, %v594_v12  ;;  %v3990_v40 = vld [vmem:[#allocation7_spill] sm:$0xff]  ;;  %v3991_v12 = vld [vmem:[#allocation6_spill] sm:$0xff] }
  0x6d   : > { %1482 = vst.msk [vmem:[#allocation2 + $0x98] sm:$0xff] %vm269_vm0, %v2980_v38 }
  0x6f   : > { %1176 = vrot.lane.b32.xlu1 %v2436_v18, %s2338_s14 }
  0x70   : > { %647 = vrot.lane.b32.xlu0 %v570_v25, %s2335_s7 }
  0x73   : > { %1311 = vrot.lane.b32.xlu1 %v2567_v53, %s2339_s17 }
  0x74   : > { %778 = vrot.lane.b32.xlu0 %v2411_v11, %s2334_s6  ;;  %v614_v11 = vrot.slane %v2717_v58, 2 }
  0x77   : > { %1047 = vrot.lane.b32.xlu1 %v2626_v35, %s2336_s12 }
  0x78   : > { %913 = vrot.lane.b32.xlu0 %v2493_v33, %s2337_s13  ;;  %v2977_v33 = vsel %vm560_vm2, %v612_v7, %v614_v11  ;;  %v599_v11 = vrot.slane %v3990_v40, 2 }
  0x79   : > { %1490 = vst.msk [vmem:[#allocation2 + $0x118] sm:$0xff] %vm269_vm0, %v2977_v33 }
  0x7b   : > { %1178 = vrot.lane.b32.xlu1 %v2426_v16, %s2338_s14 }
  0x7c   : > { %649 = vrot.lane.b32.xlu0 %v2623_v34, %s2335_s7 }
  0x7f   : > { %1313 = vrot.lane.b32.xlu1 %v2549_v47, %s2339_s17 }
  0x80   : > { %780 = vrot.lane.b32.xlu0 %v2436_v18, %s2334_s6 }
  0x83   : > { %1049 = vrot.lane.b32.xlu1 %v2637_v48, %s2336_s12 }
  0x84   : > { %915 = vrot.lane.b32.xlu0 %v2567_v53, %s2337_s13 }
  0x87   : > { %1180 = vrot.lane.b32.xlu1 %v2450_v23, %s2338_s14 }
  0x88   : > { %651 = vrot.lane.b32.xlu0 %v2626_v35, %s2335_s7 }
  0x89   : > { %v436_v18 = vpop.permute.xlu1 %435 }
  0x8a   : > { %530 = vst.msk [vmem:[#allocation2 + $0x20] sm:$0xff] %vm527_vm3, %v436_v18  ;;  %v432_v62 = vpop.permute.xlu0 %431  ;;  %v3073_v18 = vsel %vm560_vm2, %v617_v3, %v619_v14  ;;  %v1538_v3 = vld [vmem:[#allocation2 + $0x108] sm:$0xff] }
  0x8b   : > { %528 = vst.msk [vmem:[#allocation2] sm:$0xff] %vm527_vm3, %v432_v62  ;;  %1315 = vrot.lane.b32.xlu1 %v2594_v60, %s2339_s17  ;;  %v3992_v62 = vld [vmem:[#allocation5_spill] sm:$0xff]  ;;  %2243 = vmatprep.mubr.msk.f32.mxu1 %vm269_vm0, %v1538_v3 }
  0x8c   : > { %782 = vrot.lane.b32.xlu0 %v2426_v16, %s2334_s6  ;;  %1492 = vst.msk [vmem:[#allocation2 + $0x138] sm:$0xff] %vm269_vm0, %v3073_v18 }
  0x8d   : > { %v438_v53 = vpop.permute.xlu1 %437 }
  0x8e   : > { %531 = vst.msk [vmem:[#allocation2 + $0x30] sm:$0xff] %vm527_vm3, %v438_v53  ;;  %v434_v34 = vpop.permute.xlu0 %433 }
  0x8f   : > { %529 = vst.msk [vmem:[#allocation2 + $0x10] sm:$0xff] %vm527_vm3, %v434_v34  ;;  %1051 = vrot.lane.b32.xlu1 %v2651_v61, %s2336_s12 }
  0x90   : > { %917 = vrot.lane.b32.xlu0 %v2549_v47, %s2337_s13 }
  0x91   : > { %v442_v35 = vpop.permute.xlu1 %441 }
  0x92   : > { %533 = vst.msk [vmem:[#allocation2 + $0x50] sm:$0xff] %vm527_vm3, %v442_v35  ;;  %v440_v58 = vpop.permute.xlu0 %439 }
  0x93   : > { %532 = vst.msk [vmem:[#allocation2 + $0x40] sm:$0xff] %vm527_vm3, %v440_v58  ;;  %1182 = vrot.lane.b32.xlu1 %v2439_v19, %s2338_s14  ;;  %v3993_v58 = vld [vmem:[#allocation17_spill] sm:$0xff] }
  0x94   : > { %653 = vrot.lane.b32.xlu0 %v2637_v48, %s2335_s7  ;;  %v597_v48 = vrot.slane %v2482_v31, 2 }
  0x95   : > { %v446_v16 = vpop.permute.xlu1 %445 }
  0x96   : > { %535 = vst.msk [vmem:[#allocation2 + $0x70] sm:$0xff] %vm527_vm3, %v446_v16  ;;  %v444_v37 = vpop.permute.xlu0 %443  ;;  %v3994_v16 = vld [vmem:[#allocation18_spill] sm:$0xff] }
  0x97   : > { %534 = vst.msk [vmem:[#allocation2 + $0x60] sm:$0xff] %vm527_vm3, %v444_v37  ;;  %1317 = vrot.lane.b32.xlu1 %v2591_v59, %s2339_s17 }
  0x98   : > { %784 = vrot.lane.b32.xlu0 %v2450_v23, %s2334_s6  ;;  %v3028_v23 = vsel %vm560_vm2, %v596_v15, %v597_v48 }
  0x99   : > { %v450_v47 = vpop.permute.xlu1 %449  ;;  %1483 = vst.msk [vmem:[#allocation2 + $0xa8] sm:$0xff] %vm269_vm0, %v3028_v23 }
  0x9a   : > { %537 = vst.msk [vmem:[#allocation2 + $0x90] sm:$0xff] %vm527_vm3, %v450_v47  ;;  %v448_v0 = vpop.permute.xlu0 %447 }
  0x9b   : > { %536 = vst.msk [vmem:[#allocation2 + $0x80] sm:$0xff] %vm527_vm3, %v448_v0  ;;  %1053 = vrot.lane.b32.xlu1 %v2664_v6, %s2336_s12 }
  0x9c   : > { %919 = vrot.lane.b32.xlu0 %v2594_v60, %s2337_s13 }
  0x9d   : > { %v454_v26 = vpop.permute.xlu1 %453 }
  0x9e   : > { %539 = vst.msk [vmem:[#allocation2 + $0xb0] sm:$0xff] %vm527_vm3, %v454_v26  ;;  %v452_v36 = vpop.permute.xlu0 %451  ;;  %v621_v26 = vrot.slane %v2560_v52, 2 }
  0x9f   : > { %538 = vst.msk [vmem:[#allocation2 + $0xa0] sm:$0xff] %vm527_vm3, %v452_v36  ;;  %1184 = vrot.lane.b32.xlu1 %v2465_v28, %s2338_s14  ;;  %v622_v36 = vrot.slane %v2557_v51, 2 }
  0xa0   : > { %655 = vrot.lane.b32.xlu0 %v2651_v61, %s2335_s7  ;;  %v3988_v61 = vld [vmem:[#allocation10_spill] sm:$0xff] }
  0xa1   : > { %v458_v10 = vpop.permute.xlu1 %457 }
  0xa2   : > { %541 = vst.msk [vmem:[#allocation2 + $0xd0] sm:$0xff] %vm527_vm3, %v458_v10  ;;  %v456_v60 = vpop.permute.xlu0 %455 }
  0xa3   : > { %540 = vst.msk [vmem:[#allocation2 + $0xc0] sm:$0xff] %vm527_vm3, %v456_v60  ;;  %1319 = vrot.lane.b32.xlu1 %v2614_v17, %s2339_s17  ;;  %v3122_v60 = vsel %vm560_vm2, %v621_v26, %v622_v36 }
  0xa4   : > { %786 = vrot.lane.b32.xlu0 %v2439_v19, %s2334_s6  ;;  %v3989_v19 = vld [vmem:[#allocation11_spill] sm:$0xff]  ;;  %1493 = vst.msk [vmem:[#allocation2 + $0x148] sm:$0xff] %vm269_vm0, %v3122_v60 }
  0xa5   : > { %v462_v50 = vpop.permute.xlu1 %461 }
  0xa6   : > { %543 = vst.msk [vmem:[#allocation2 + $0xf0] sm:$0xff] %vm527_vm3, %v462_v50  ;;  %v460_v54 = vpop.permute.xlu0 %459 }
  0xa7   : > { %542 = vst.msk [vmem:[#allocation2 + $0xe0] sm:$0xff] %vm527_vm3, %v460_v54  ;;  %1055 = vrot.lane.b32.xlu1 %v3988_v61, %s2336_s12 }
  0xa8   : > { %921 = vrot.lane.b32.xlu0 %v2591_v59, %s2337_s13 }
  0xa9   : > { %v466_v13 = vpop.permute.xlu1 %465 }
  0xaa   : > { %545 = vst.msk [vmem:[#allocation2 + $0x110] sm:$0xff] %vm527_vm3, %v466_v13  ;;  %v464_v25 = vpop.permute.xlu0 %463 }
  0xab   : > { %544 = vst.msk [vmem:[#allocation2 + $0x100] sm:$0xff] %vm527_vm3, %v464_v25  ;;  %673 = vrot.lane.b32.xlu1 %v3989_v19, %s2335_s7 }
  0xac   : > { %657 = vrot.lane.b32.xlu0 %v2664_v6, %s2335_s7 }
  0xad   : > { %v470_v1 = vpop.permute.xlu1 %469 }
  0xae   : > { %547 = vst.msk [vmem:[#allocation2 + $0x130] sm:$0xff] %vm527_vm3, %v470_v1  ;;  %v468_v7 = vpop.permute.xlu0 %467  ;;  %v1508_v1 = vld [vmem:[#allocation2 + $0x18] sm:$0xff] }
  0xaf   : > { %546 = vst.msk [vmem:[#allocation2 + $0x120] sm:$0xff] %vm527_vm3, %v468_v7  ;;  %788 = vrot.lane.b32.xlu1 %v2465_v28, %s2334_s6  ;;  %v3076_v28 = vsel %vm560_vm2, %v597_v48, %v599_v11 }
  0xb0   : > { %1186 = vrot.lane.b32.xlu0 %v2453_v24, %s2338_s14  ;;  %1484 = vst.msk [vmem:[#allocation2 + $0xb8] sm:$0xff] %vm269_vm0, %v3076_v28 }
  0xb1   : > { %v474_v59 = vpop.permute.xlu1 %473 }
  0xb2   : > { %549 = vst.msk [vmem:[#allocation2 + $0x150] sm:$0xff] %vm527_vm3, %v474_v59  ;;  %v472_v6 = vpop.permute.xlu0 %471 }
  0xb3   : > { %548 = vst.msk [vmem:[#allocation2 + $0x140] sm:$0xff] %vm527_vm3, %v472_v6  ;;  %1321 = vrot.lane.b32.xlu1 %v3991_v12, %s2339_s17 }
  0xb4   : > { %804 = vrot.lane.b32.xlu0 %v3992_v62, %s2334_s6 }
  0xb5   : > { %v478_v8 = vpop.permute.xlu1 %477 }
  0xb6   : > { %551 = vst.msk [vmem:[#allocation2 + $0x170] sm:$0xff] %vm527_vm3, %v478_v8  ;;  %v476_v53 = vpop.permute.xlu0 %475  ;;  %v1510_v8 = vld [vmem:[#allocation2 + $0x28] sm:$0xff] }
  0xb7   : > { %550 = vst.msk [vmem:[#allocation2 + $0x160] sm:$0xff] %vm527_vm3, %v476_v53  ;;  %939 = vrot.lane.b32.xlu1 %v2737_v63, %s2337_s13 }
  0xb8   : > { %923 = vrot.lane.b32.xlu0 %v2614_v17, %s2337_s13 }
  0xb9   : > { %v482_v34 = vpop.permute.xlu1 %481 }
  0xba   : > { %553 = vst.msk [vmem:[#allocation2 + $0x190] sm:$0xff] %vm527_vm3, %v482_v34  ;;  %v480_v35 = vpop.permute.xlu0 %479 }
  0xbb   : > { %552 = vst.msk [vmem:[#allocation2 + $0x180] sm:$0xff] %vm527_vm3, %v480_v35  ;;  %1073 = vrot.lane.b32.xlu1 %v3993_v58, %s2336_s12  ;;  %v3997_v35 = vld [vmem:[#allocation20_spill] sm:$0xff] }
  0xbc   : > { %1057 = vrot.lane.b32.xlu0 %v3994_v16, %s2336_s12 }
  0xbd   : > { %v486_v37 = vpop.permute.xlu1 %485 }
  0xbe   : > { %555 = vst.msk [vmem:[#allocation2 + $0x1b0] sm:$0xff] %vm527_vm3, %v486_v37  ;;  %v484_v47 = vpop.permute.xlu0 %483  ;;  %v3998_v37 = vld [vmem:[#allocation19_spill] sm:$0xff] }
  0xbf   : > { %554 = vst.msk [vmem:[#allocation2 + $0x1a0] sm:$0xff] %vm527_vm3, %v484_v47  ;;  %675 = vrot.lane.b32.xlu1 %v2799_v4, %s2335_s7 }
  0xc0   : > { %659 = vrot.lane.b32.xlu0 %v3988_v61, %s2335_s7  ;;  %v3996_v61 = vld [vmem:[#allocation16_spill] sm:$0xff] }
  0xc1   : > { %v773_v17 = vpop.permute.xlu1 %772 }
  0xc2   : > { %v642_v57 = vpop.permute.xlu0 %641 }
  0xc3   : > { %738 = vst.msk [vmem:[#allocation2] sm:$0xff] %vm737_vm4, %v642_v57  ;;  %1204 = vrot.lane.b32.xlu1 %v2526_v44, %s2338_s14 }
  0xc4   : > { %1188 = vrot.lane.b32.xlu0 %v2475_v30, %s2338_s14  ;;  %869 = vst.msk [vmem:[#allocation2] sm:$0xff] %vm868_vm5, %v773_v17 }
  0xc5   : > { %v1042_v15 = vpop.permute.xlu1 %1041 }
  0xc6   : > { %v908_v48 = vpop.permute.xlu0 %907 }
  0xc7   : > { %1004 = vst.msk [vmem:[#allocation2] sm:$0xff] %vm1003_vm6, %v908_v48  ;;  %806 = vrot.lane.b32.xlu1 %v2515_v41, %s2334_s6 }
  0xc8   : > { %790 = vrot.lane.b32.xlu0 %v2453_v24, %s2334_s6  ;;  %1138 = vst.msk [vmem:[#allocation2] sm:$0xff] %vm1137_vm7, %v1042_v15  ;;  %v3995_v24 = vld [vmem:[#allocation9_spill] sm:$0xff]  ;;  %v1512_v15 = vld [vmem:[#allocation2 + $0x38] sm:$0xff] }
  0xc9   : > { %v1173_v0 = vpop.permute.xlu1 %1172 }
  0xca   : > { %1269 = vst.msk [vmem:[#allocation2] sm:$0xff] %vm1268_vm8, %v1173_v0  ;;  %v644_v10 = vpop.permute.xlu0 %643 }
  0xcb   : > { %739 = vst.msk [vmem:[#allocation2 + $0x10] sm:$0xff] %vm737_vm4, %v644_v10  ;;  %1339 = vrot.lane.b32.xlu1 %v2780_v22, %s2339_s17  ;;  %v627_v10 = vrot.slane %v2571_v55, 2 }
  0xcc   : > { %1323 = vrot.lane.b32.xlu0 %v3995_v24, %s2339_s17 }
  0xcd   : > { %v1308_v50 = vpop.permute.xlu1 %1307 }
  0xce   : > { %1404 = vst.msk [vmem:[#allocation2] sm:$0xff] %vm1403_vm9, %v1308_v50  ;;  %v775_v54 = vpop.permute.xlu0 %774 }
  0xcf   : > { %870 = vst.msk [vmem:[#allocation2 + $0x10] sm:$0xff] %vm868_vm5, %v775_v54  ;;  %941 = vrot.lane.b32.xlu1 %v3996_v61, %s2337_s13  ;;  %v3208_v54 = vld [vmem:[%s2379_s20 + $0x150] sm:$0xff] }
  0xd0   : > { %925 = vrot.lane.b32.xlu0 %v3991_v12, %s2337_s13  ;;  %298 = vst.msk [vmem:[#allocation2 + $0x1c0] sm:$0xff] %vm269_vm0, %v3208_v54 }
  0xd1   : > { %v1044_v13 = vpop.permute.xlu1 %1043 }
  0xd2   : > { %v910_v25 = vpop.permute.xlu0 %909 }
  0xd3   : > { %1005 = vst.msk [vmem:[#allocation2 + $0x10] sm:$0xff] %vm1003_vm6, %v910_v25  ;;  %1075 = vrot.lane.b32.xlu1 %v2900_v2, %s2336_s12  ;;  %v3216_v25 = vld [vmem:[%s2379_s20 + $0x158] sm:$0xff] }
  0xd4   : > { %1139 = vst.msk [vmem:[#allocation2 + $0x10] sm:$0xff] %vm1137_vm7, %v1044_v13  ;;  %1059 = vrot.lane.b32.xlu0 %v2905_v49, %s2336_s12  ;;  %v1514_v13 = vld [vmem:[#allocation2 + $0x48] sm:$0xff] }
  0xd5   : > { %v1175_v7 = vpop.permute.xlu1 %1174  ;;  %v1505_v59 = vld [vmem:[#allocation2] sm:$0xff]  ;;  %299 = vst.msk [vmem:[#allocation2 + $0x1d0] sm:$0xff] %vm269_vm0, %v3216_v25 }
  0xd6   : > { %1270 = vst.msk [vmem:[#allocation2 + $0x10] sm:$0xff] %vm1268_vm8, %v1175_v7  ;;  %v646_v14 = vpop.permute.xlu0 %645  ;;  %1748 = vmatmul.mubr.f32.vlgmr.msra.gmra.mrb[0].mxu0 %v1505_v59 }
  0xd7   : > { %740 = vst.msk [vmem:[#allocation2 + $0x20] sm:$0xff] %vm737_vm4, %v646_v14  ;;  %677 = vrot.lane.b32.xlu1 %v3993_v58, %s2335_s7  ;;  %2228 = vmatprep.mubr.msk.f32.mxu0 %vm269_vm0, %v1508_v1  ;;  %v624_v58 = vrot.slane %v3997_v35, 2  ;;  %v629_v14 = vrot.slane %v2816_v21, 2  ;;  %v1516_v21 = vld [vmem:[#allocation2 + $0x58] sm:$0xff] }
  0xd8   : > { %661 = vrot.lane.b32.xlu0 %v3994_v16, %s2335_s7 }
  0xd9   : > { %v1310_v40 = vpop.permute.xlu1 %1309 }
  0xda   : > { %1405 = vst.msk [vmem:[#allocation2 + $0x10] sm:$0xff] %vm1403_vm9, %v1310_v40  ;;  %v777_v11 = vpop.permute.xlu0 %776 }
  0xdb   : > { %871 = vst.msk [vmem:[#allocation2 + $0x20] sm:$0xff] %vm868_vm5, %v777_v11  ;;  %1206 = vrot.lane.b32.xlu1 %v2523_v43, %s2338_s14  ;;  %v3233_v11 = vsel %vm560_vm2, %v627_v10, %v629_v14 }
  0xdc   : > { %1190 = vrot.lane.b32.xlu0 %v2472_v29, %s2338_s14  ;;  %1496 = vst.msk [vmem:[#allocation2 + $0x178] sm:$0xff] %vm269_vm0, %v3233_v11 }
  0xdd   : > { %v1046_v6 = vpop.permute.xlu1 %1045 }
  0xde   : > { %v912_v12 = vpop.permute.xlu0 %911 }
  0xdf   : > { %1006 = vst.msk [vmem:[#allocation2 + $0x20] sm:$0xff] %vm1003_vm6, %v912_v12  ;;  %808 = vrot.lane.b32.xlu1 %v2526_v44, %s2334_s6  ;;  %v3166_v44 = vsel %vm560_vm2, %v622_v36, %v624_v58  ;;  %v626_v36 = vrot.slane %v2578_v56, 2  ;;  %v631_v58 = vrot.slane %v3208_v54, 2 }
  0xe0   : > { %1140 = vst.msk [vmem:[#allocation2 + $0x20] sm:$0xff] %vm1137_vm7, %v1046_v6  ;;  %792 = vrot.lane.b32.xlu0 %v2475_v30, %s2334_s6  ;;  %v3999_v30 = vld [vmem:[#allocation8_spill] sm:$0xff] }
  0xe1   : > { %v1177_v53 = vpop.permute.xlu1 %1176  ;;  %v1507_v34 = vld [vmem:[#allocation2 + $0x10] sm:$0xff]  ;;  %1494 = vst.msk [vmem:[#allocation2 + $0x158] sm:$0xff] %vm269_vm0, %v3166_v44 }
  0xe2   : > { %1271 = vst.msk [vmem:[#allocation2 + $0x20] sm:$0xff] %vm1268_vm8, %v1177_v53  ;;  %v648_v16 = vpop.permute.xlu0 %647  ;;  %1753 = vmatmul.mubr.f32.gmra.mrb[2].mxu0 %v1507_v34 }
  0xe3   : > { %741 = vst.msk [vmem:[#allocation2 + $0x30] sm:$0xff] %vm737_vm4, %v648_v16  ;;  %1341 = vrot.lane.b32.xlu1 %v3998_v37, %s2339_s17  ;;  %2229 = vmatprep.mubr.msk.f32.mxu0 %vm269_vm0, %v1510_v8  ;;  %v632_v16 = vrot.slane %v3216_v25, 2 }
  0xe4   : > { %1325 = vrot.lane.b32.xlu0 %v3999_v30, %s2339_s17 }
  0xe5   : > { %v1312_v47 = vpop.permute.xlu1 %1311 }
  0xe6   : > { %1406 = vst.msk [vmem:[#allocation2 + $0x20] sm:$0xff] %vm1403_vm9, %v1312_v47  ;;  %v779_v17 = vpop.permute.xlu0 %778  ;;  %v3269_v47 = vld [vmem:[%s2379_s20 + $0x168] sm:$0xff] }
  0xe7   : > { %872 = vst.msk [vmem:[#allocation2 + $0x30] sm:$0xff] %vm868_vm5, %v779_v17  ;;  %943 = vrot.lane.b32.xlu1 %v2780_v22, %s2337_s13  ;;  %v1518_v17 = vld [vmem:[#allocation2 + $0x68] sm:$0xff] }
  0xe8   : > { %927 = vrot.lane.b32.xlu0 %v3995_v24, %s2337_s13  ;;  %300 = vst.msk [vmem:[#allocation2 + $0x1e0] sm:$0xff] %vm269_vm0, %v3269_v47 }
  0xe9   : > { %v1048_v57 = vpop.permute.xlu1 %1047 }
  0xea   : > { %v914_v3 = vpop.permute.xlu0 %913 }
  0xeb   : > { %1007 = vst.msk [vmem:[#allocation2 + $0x30] sm:$0xff] %vm1003_vm6, %v914_v3  ;;  %1077 = vrot.lane.b32.xlu1 %v2942_v20, %s2336_s12 }
  0xec   : > { %1141 = vst.msk [vmem:[#allocation2 + $0x30] sm:$0xff] %vm1137_vm7, %v1048_v57  ;;  %1061 = vrot.lane.b32.xlu0 %v2945_v5, %s2336_s12  ;;  %v3277_v57 = vld [vmem:[%s2379_s20 + $0x170] sm:$0xff] }
  0xed   : > { %v1179_v48 = vpop.permute.xlu1 %1178  ;;  %v1509_v0 = vld [vmem:[#allocation2 + $0x20] sm:$0xff]  ;;  %301 = vst.msk [vmem:[#allocation2 + $0x1f0] sm:$0xff] %vm269_vm0, %v3277_v57  ;;  %v637_v14 = vrot.slane %v3277_v57, 2 }
  0xee   : > { %1272 = vst.msk [vmem:[#allocation2 + $0x30] sm:$0xff] %vm1268_vm8, %v1179_v48  ;;  %v650_v22 = vpop.permute.xlu0 %649  ;;  %1758 = vmatmul.mubr.f32.gmra.mrb[4].mxu0 %v1509_v0  ;;  %v4002_v48 = vld [vmem:[#allocation12_spill] sm:$0xff] }
  0xef   : > { %742 = vst.msk [vmem:[#allocation2 + $0x40] sm:$0xff] %vm737_vm4, %v650_v22  ;;  %679 = vrot.lane.b32.xlu1 %v2900_v2, %s2335_s7  ;;  %2230 = vmatprep.mubr.msk.f32.mxu0 %vm269_vm0, %v1512_v15  ;;  %v3198_v2 = vsel %vm560_vm2, %v626_v36, %v627_v10 }
  0xf0   : > { %663 = vrot.lane.b32.xlu0 %v2905_v49, %s2335_s7  ;;  %1495 = vst.msk [vmem:[#allocation2 + $0x168] sm:$0xff] %vm269_vm0, %v3198_v2 }
  0xf1   : > { %v1314_v26 = vpop.permute.xlu1 %1313 }
  0xf2   : > { %1407 = vst.msk [vmem:[#allocation2 + $0x30] sm:$0xff] %vm1403_vm9, %v1314_v26  ;;  %v781_v24 = vpop.permute.xlu0 %780  ;;  %v3295_v26 = vld [vmem:[%s2379_s20 + $0x160] sm:$0x3] }
  0xf3   : > { %873 = vst.msk [vmem:[#allocation2 + $0x40] sm:$0xff] %vm868_vm5, %v781_v24  ;;  %1208 = vrot.lane.b32.xlu1 %v2540_v46, %s2338_s14  ;;  %v634_v10 = vrot.slane %v3295_v26, 2 }
  0xf4   : > { %1192 = vrot.lane.b32.xlu0 %v2485_v32, %s2338_s14 }
  0xf5   : > { %v1050_v49 = vpop.permute.xlu1 %1049 }
  0xf6   : > { %v916_v50 = vpop.permute.xlu0 %915 }
  0xf7   : > { %1008 = vst.msk [vmem:[#allocation2 + $0x40] sm:$0xff] %vm1003_vm6, %v916_v50  ;;  %810 = vrot.lane.b32.xlu1 %v2523_v43, %s2334_s6 }
  0xf8   : > { %1142 = vst.msk [vmem:[#allocation2 + $0x40] sm:$0xff] %vm1137_vm7, %v1050_v49  ;;  %794 = vrot.lane.b32.xlu0 %v2472_v29, %s2334_s6  ;;  %v4000_v29 = vld [vmem:[#allocation13_spill] sm:$0xff]  ;;  %v3302_v49 = vsel %vm560_vm2, %v632_v16, %v634_v10  ;;  %v4006_v10 = vld [vmem:[#allocation14_spill] sm:$0xff] }
  0xf9   : > { %v1181_v1 = vpop.permute.xlu1 %1180  ;;  %v1511_v7 = vld [vmem:[#allocation2 + $0x30] sm:$0xff]  ;;  %1498 = vst.msk [vmem:[#allocation2 + $0x198] sm:$0xff] %vm269_vm0, %v3302_v49 }
  0xfa   : > { %1273 = vst.msk [vmem:[#allocation2 + $0x40] sm:$0xff] %vm1268_vm8, %v1181_v1  ;;  %v652_v43 = vpop.permute.xlu0 %651  ;;  %1763 = vmatmul.mubr.f32.gmra.mrb[6].mxu0 %v1511_v7 }
  0xfb   : > { %743 = vst.msk [vmem:[#allocation2 + $0x50] sm:$0xff] %vm737_vm4, %v652_v43  ;;  %1343 = vrot.lane.b32.xlu1 %v2812_v9, %s2339_s17  ;;  %2231 = vmatprep.mubr.msk.f32.mxu0 %vm269_vm0, %v1514_v13 }
  0xfc   : > { %1327 = vrot.lane.b32.xlu0 %v4000_v29, %s2339_s17 }
  0xfd   : > { %v1316_v59 = vpop.permute.xlu1 %1315 }
  0xfe   : > { %1408 = vst.msk [vmem:[#allocation2 + $0x40] sm:$0xff] %vm1403_vm9, %v1316_v59  ;;  %v783_v40 = vpop.permute.xlu0 %782 }
  0xff   : > { %874 = vst.msk [vmem:[#allocation2 + $0x50] sm:$0xff] %vm868_vm5, %v783_v40  ;;  %945 = vrot.lane.b32.xlu1 %v3998_v37, %s2337_s13 }
 0x100   : > { %929 = vrot.lane.b32.xlu0 %v3999_v30, %s2337_s13 }
 0x101   : > { %v1052_v6 = vpop.permute.xlu1 %1051 }
 0x102   : > { %v918_v12 = vpop.permute.xlu0 %917 }
 0x103   : > { %1009 = vst.msk [vmem:[#allocation2 + $0x50] sm:$0xff] %vm1003_vm6, %v918_v12  ;;  %1079 = vrot.lane.b32.xlu1 %v2977_v33, %s2336_s12 }
 0x104   : > { %1143 = vst.msk [vmem:[#allocation2 + $0x50] sm:$0xff] %vm1137_vm7, %v1052_v6  ;;  %1063 = vrot.lane.b32.xlu0 %v2980_v38, %s2336_s12 }
 0x105   : > { %v1183_v8 = vpop.permute.xlu1 %1182  ;;  %v1513_v53 = vld [vmem:[#allocation2 + $0x40] sm:$0xff] }
 0x106   : > { %1274 = vst.msk [vmem:[#allocation2 + $0x50] sm:$0xff] %vm1268_vm8, %v1183_v8  ;;  %v654_v34 = vpop.permute.xlu0 %653  ;;  %1768 = vmatmul.mubr.f32.gmra.mrb[8].mxu0 %v1513_v53 }
 0x107   : > { %744 = vst.msk [vmem:[#allocation2 + $0x60] sm:$0xff] %vm737_vm4, %v654_v34  ;;  %681 = vrot.lane.b32.xlu1 %v2942_v20, %s2335_s7  ;;  %2232 = vmatprep.mubr.msk.f32.mxu0 %vm269_vm0, %v1516_v21  ;;  %v3259_v20 = vsel %vm560_vm2, %v631_v58, %v632_v16  ;;  %v1522_v21 = vld [vmem:[#allocation2 + $0x88] sm:$0xff]  ;;  %v3355_v58 = vld [vmem:[%s2379_s20 + $0x178] sm:$0x3] }
 0x108   : > { %665 = vrot.lane.b32.xlu0 %v2945_v5, %s2335_s7  ;;  %1497 = vst.msk [vmem:[#allocation2 + $0x188] sm:$0xff] %vm269_vm0, %v3259_v20 }
 0x109   : > { %v1318_v35 = vpop.permute.xlu1 %1317 }
 0x10a   : > { %1409 = vst.msk [vmem:[#allocation2 + $0x50] sm:$0xff] %vm1403_vm9, %v1318_v35  ;;  %v785_v37 = vpop.permute.xlu0 %784 }
 0x10b   : > { %875 = vst.msk [vmem:[#allocation2 + $0x60] sm:$0xff] %vm868_vm5, %v785_v37  ;;  %1210 = vrot.lane.b32.xlu1 %v2537_v45, %s2338_s14  ;;  %v639_v37 = vrot.slane %v3355_v58, 2 }
 0x10c   : > { %1194 = vrot.lane.b32.xlu0 %v2482_v31, %s2338_s14 }
 0x10d   : > { %v1054_v5 = vpop.permute.xlu1 %1053 }
 0x10e   : > { %v920_v30 = vpop.permute.xlu0 %919 }
 0x10f   : > { %1010 = vst.msk [vmem:[#allocation2 + $0x60] sm:$0xff] %vm1003_vm6, %v920_v30  ;;  %812 = vrot.lane.b32.xlu1 %v2540_v46, %s2334_s6  ;;  %v3363_v30 = vsel %vm560_vm2, %v637_v14, %v639_v37  ;;  %v4007_v37 = vld [vmem:[#allocation23_spill] sm:$0xff] }
 0x110   : > { %1144 = vst.msk [vmem:[#allocation2 + $0x60] sm:$0xff] %vm1137_vm7, %v1054_v5  ;;  %796 = vrot.lane.b32.xlu0 %v2485_v32, %s2334_s6  ;;  %v4001_v32 = vld [vmem:[#allocation21_spill] sm:$0xff] }
 0x111   : > { %v1185_v3 = vpop.permute.xlu1 %1184  ;;  %v1515_v15 = vld [vmem:[#allocation2 + $0x50] sm:$0xff]  ;;  %1500 = vst.msk [vmem:[#allocation2 + $0x1b8] sm:$0xff] %vm269_vm0, %v3363_v30 }
 0x112   : > { %1275 = vst.msk [vmem:[#allocation2 + $0x60] sm:$0xff] %vm1268_vm8, %v1185_v3  ;;  %v656_v46 = vpop.permute.xlu0 %655  ;;  %1773 = vmatmul.mubr.f32.gmra.mrb[10].mxu0 %v1515_v15 }
 0x113   : > { %745 = vst.msk [vmem:[#allocation2 + $0x70] sm:$0xff] %vm737_vm4, %v656_v46  ;;  %1345 = vrot.lane.b32.xlu1 %v4001_v32, %s2339_s17  ;;  %2233 = vmatprep.mubr.msk.f32.mxu0 %vm269_vm0, %v1518_v17  ;;  %v3377_v46 = vld [vmem:[%s2379_s20 + $0x180] sm:$0xff] }
 0x114   : > { %1329 = vrot.lane.b32.xlu0 %v4002_v48, %s2339_s17 }
 0x115   : > { %v1320_v0 = vpop.permute.xlu1 %1319 }
 0x116   : > { %1410 = vst.msk [vmem:[#allocation2 + $0x60] sm:$0xff] %vm1403_vm9, %v1320_v0  ;;  %v787_v22 = vpop.permute.xlu0 %786 }
 0x117   : > { %876 = vst.msk [vmem:[#allocation2 + $0x70] sm:$0xff] %vm868_vm5, %v787_v22  ;;  %947 = vrot.lane.b32.xlu1 %v2812_v9, %s2337_s13  ;;  %v1520_v9 = vld [vmem:[#allocation2 + $0x78] sm:$0xff] }
 0x118   : > { %931 = vrot.lane.b32.xlu0 %v4000_v29, %s2337_s13  ;;  %v4003_v29 = vld [vmem:[#allocation4_spill] sm:$0xff] }
 0x119   : > { %v1056_v36 = vpop.permute.xlu1 %1055 }
 0x11a   : > { %v922_v24 = vpop.permute.xlu0 %921 }
 0x11b   : > { %1011 = vst.msk [vmem:[#allocation2 + $0x70] sm:$0xff] %vm1003_vm6, %v922_v24  ;;  %1081 = vrot.lane.b32.xlu1 %v3025_v42, %s2336_s12 }
 0x11c   : > { %1145 = vst.msk [vmem:[#allocation2 + $0x70] sm:$0xff] %vm1137_vm7, %v1056_v36  ;;  %1065 = vrot.lane.b32.xlu0 %v3028_v23, %s2336_s12 }
 0x11d   : > { %v674_v50 = vpop.permute.xlu1 %673  ;;  %v1517_v13 = vld [vmem:[#allocation2 + $0x60] sm:$0xff] }
 0x11e   : > { %754 = vst.msk [vmem:[#allocation2 + $0x100] sm:$0xff] %vm737_vm4, %v674_v50  ;;  %v658_v1 = vpop.permute.xlu0 %657  ;;  %1778 = vmatmul.mubr.f32.gmra.mrb[12].mxu0 %v1517_v13  ;;  %v1540_v50 = vld [vmem:[#allocation2 + $0x118] sm:$0xff] }
 0x11f   : > { %746 = vst.msk [vmem:[#allocation2 + $0x80] sm:$0xff] %vm737_vm4, %v658_v1  ;;  %683 = vrot.lane.b32.xlu1 %v2977_v33, %s2335_s7  ;;  %2234 = vmatprep.mubr.msk.f32.mxu0 %vm269_vm0, %v1520_v9  ;;  %v636_v33 = vrot.slane %v3269_v47, 2 }
 0x120   : > { %667 = vrot.lane.b32.xlu0 %v2980_v38, %s2335_s7 }
 0x121   : > { %v789_v7 = vpop.permute.xlu1 %788  ;;  %v3329_v40 = vsel %vm560_vm2, %v636_v33, %v637_v14 }
 0x122   : > { %877 = vst.msk [vmem:[#allocation2 + $0x80] sm:$0xff] %vm868_vm5, %v789_v7  ;;  %v1187_v43 = vpop.permute.xlu0 %1186  ;;  %v1524_v7 = vld [vmem:[#allocation2 + $0x98] sm:$0xff] }
 0x123   : > { %1276 = vst.msk [vmem:[#allocation2 + $0x70] sm:$0xff] %vm1268_vm8, %v1187_v43  ;;  %1212 = vrot.lane.b32.xlu1 %v2560_v52, %s2338_s14  ;;  %v3405_v43 = vld [vmem:[%s2379_s20 + $0x198] sm:$0xff] }
 0x124   : > { %1196 = vrot.lane.b32.xlu0 %v4003_v29, %s2338_s14  ;;  %1499 = vst.msk [vmem:[#allocation2 + $0x1a8] sm:$0xff] %vm269_vm0, %v3329_v40 }
 0x125   : > { %v1322_v59 = vpop.permute.xlu1 %1321 }
 0x126   : > { %1411 = vst.msk [vmem:[#allocation2 + $0x70] sm:$0xff] %vm1403_vm9, %v1322_v59  ;;  %v805_v38 = vpop.permute.xlu0 %804  ;;  %v1436_v59 = vrot.slane %v3405_v43, 2 }
 0x127   : > { %885 = vst.msk [vmem:[#allocation2 + $0x100] sm:$0xff] %vm868_vm5, %v805_v38  ;;  %814 = vrot.lane.b32.xlu1 %v2537_v45, %s2334_s6  ;;  %v4004_v45 = vld [vmem:[#allocation15_spill] sm:$0xff] }
 0x128   : > { %798 = vrot.lane.b32.xlu0 %v2482_v31, %s2334_s6 }
 0x129   : > { %v940_v6 = vpop.permute.xlu1 %939 }
 0x12a   : > { %1020 = vst.msk [vmem:[#allocation2 + $0x100] sm:$0xff] %vm1003_vm6, %v940_v6  ;;  %v924_v12 = vpop.permute.xlu0 %923 }
 0x12b   : > { %1012 = vst.msk [vmem:[#allocation2 + $0x80] sm:$0xff] %vm1003_vm6, %v924_v12  ;;  %1347 = vrot.lane.b32.xlu1 %v2836_v27, %s2339_s17  ;;  %v3425_v12 = vld [vmem:[%s2379_s20 + $0x190] sm:$0x3] }
 0x12c   : > { %1331 = vrot.lane.b32.xlu0 %v4004_v45, %s2339_s17 }
 0x12d   : > { %v1074_v8 = vpop.permute.xlu1 %1073  ;;  %v1519_v53 = vld [vmem:[#allocation2 + $0x70] sm:$0xff] }
 0x12e   : > { %1154 = vst.msk [vmem:[#allocation2 + $0x100] sm:$0xff] %vm1137_vm7, %v1074_v8  ;;  %v1058_v31 = vpop.permute.xlu0 %1057  ;;  %1783 = vmatmul.mubr.f32.gmra.mrb[14].mxu0 %v1519_v53 }
 0x12f   : > { %1146 = vst.msk [vmem:[#allocation2 + $0x80] sm:$0xff] %vm1137_vm7, %v1058_v31  ;;  %949 = vrot.lane.b32.xlu1 %v4001_v32, %s2337_s13  ;;  %2235 = vmatprep.mubr.msk.f32.mxu0 %vm269_vm0, %v1522_v21  ;;  %v1036_v32 = vrot.slane %v3377_v46, 2  ;;  %v1039_v21 = vrot.slane %v3425_v12, 2  ;;  %v3444_v31 = vld [vmem:[%s2379_s20 + $0x1a8] sm:$0x3] }
 0x130   : > { %933 = vrot.lane.b32.xlu0 %v4002_v48, %s2337_s13  ;;  %v3386_v48 = vld [vmem:[%s2379_s20 + $0x188] sm:$0xff] }
 0x131   : > { %v676_v34 = vpop.permute.xlu1 %675  ;;  %v1037_v22 = vrot.slane %v3386_v48, 2 }
 0x132   : > { %755 = vst.msk [vmem:[#allocation2 + $0x110] sm:$0xff] %vm737_vm4, %v676_v34  ;;  %v660_v35 = vpop.permute.xlu0 %659 }
 0x133   : > { %747 = vst.msk [vmem:[#allocation2 + $0x90] sm:$0xff] %vm737_vm4, %v660_v35  ;;  %1083 = vrot.lane.b32.xlu1 %v3073_v18, %s2336_s12  ;;  %v3435_v8 = vsel %vm560_vm2, %v1037_v22, %v1039_v21 }
 0x134   : > { %1067 = vrot.lane.b32.xlu0 %v3076_v28, %s2336_s12  ;;  %1502 = vst.msk [vmem:[#allocation2 + $0x1d8] sm:$0xff] %vm269_vm0, %v3435_v8 }
 0x135   : > { %v1205_v16 = vpop.permute.xlu1 %1204 }
 0x136   : > { %1285 = vst.msk [vmem:[#allocation2 + $0x100] sm:$0xff] %vm1268_vm8, %v1205_v16  ;;  %v1189_v5 = vpop.permute.xlu0 %1188 }
 0x137   : > { %1277 = vst.msk [vmem:[#allocation2 + $0x80] sm:$0xff] %vm1268_vm8, %v1189_v5  ;;  %685 = vrot.lane.b32.xlu1 %v3025_v42, %s2335_s7  ;;  %v4005_v42 = vld [vmem:[#allocation3_spill] sm:$0xff] }
 0x138   : > { %669 = vrot.lane.b32.xlu0 %v3028_v23, %s2335_s7 }
 0x139   : > { %v807_v17 = vpop.permute.xlu1 %806 }
 0x13a   : > { %886 = vst.msk [vmem:[#allocation2 + $0x110] sm:$0xff] %vm868_vm5, %v807_v17  ;;  %v791_v3 = vpop.permute.xlu0 %790 }
 0x13b   : > { %878 = vst.msk [vmem:[#allocation2 + $0x90] sm:$0xff] %vm868_vm5, %v791_v3  ;;  %1214 = vrot.lane.b32.xlu1 %v2557_v51, %s2338_s14 }
 0x13c   : > { %1198 = vrot.lane.b32.xlu0 %v4005_v42, %s2338_s14 }
 0x13d   : > { %v1340_v15 = vpop.permute.xlu1 %1339 }
 0x13e   : > { %1420 = vst.msk [vmem:[#allocation2 + $0x100] sm:$0xff] %vm1403_vm9, %v1340_v15  ;;  %v1324_v23 = vpop.permute.xlu0 %1323 }
 0x13f   : > { %1412 = vst.msk [vmem:[#allocation2 + $0x80] sm:$0xff] %vm1403_vm9, %v1324_v23  ;;  %816 = vrot.lane.b32.xlu1 %v2560_v52, %s2334_s6  ;;  %v3394_v52 = vsel %vm560_vm2, %v1036_v32, %v1037_v22 }
 0x140   : > { %800 = vrot.lane.b32.xlu0 %v4003_v29, %s2334_s6  ;;  %1501 = vst.msk [vmem:[#allocation2 + $0x1c8] sm:$0xff] %vm269_vm0, %v3394_v52  ;;  %v3408_v29 = vld [vmem:[%s2379_s20 + $0x1a0] sm:$0xff]  ;;  %s2261_s20 = sshll.u32 %s4010_s16, 8 }
 0x141   : > { %v942_v0 = vpop.permute.xlu1 %941  ;;  %v1437_v33 = vrot.slane %v3408_v29, 2  ;;  %s3598_s22 = scalar_lea.vmem %s3915_s2, %s2261_s20 }
 0x142   : > { %1021 = vst.msk [vmem:[#allocation2 + $0x110] sm:$0xff] %vm1003_vm6, %v942_v0  ;;  %v926_v36 = vpop.permute.xlu0 %925 }
 0x143   : > { %1013 = vst.msk [vmem:[#allocation2 + $0x90] sm:$0xff] %vm1003_vm6, %v926_v36  ;;  %1349 = vrot.lane.b32.xlu1 %v2831_v39, %s2339_s17  ;;  %v1438_v38 = vsel %vm560_vm2, %v1436_v59, %v1437_v33 }
 0x144   : > { %1333 = vrot.lane.b32.xlu0 %v4006_v10, %s2339_s17  ;;  %1503 = vst.msk [vmem:[#allocation2 + $0x1e8] sm:$0xff] %vm269_vm0, %v1438_v38  ;;  %v424_v38 = vrot.slane %v3295_v26, 1 }
 0x145   : > { %v1076_v24 = vpop.permute.xlu1 %1075  ;;  %v1537_v9 = vld [vmem:[#allocation2 + $0x100] sm:$0xff] }
 0x146   : > { %1155 = vst.msk [vmem:[#allocation2 + $0x110] sm:$0xff] %vm1137_vm7, %v1076_v24  ;;  %v1060_v13 = vpop.permute.xlu0 %1059  ;;  %v1521_v1 = vld [vmem:[#allocation2 + $0x80] sm:$0xff]  ;;  %1828 = vmatmul.mubr.f32.vlgmr.msra.gmra.mrb[0].mxu1 %v1537_v9  ;;  %v422_v24 = vrot.slane %v3216_v25, 1 }
 0x147   : > { %1147 = vst.msk [vmem:[#allocation2 + $0x90] sm:$0xff] %vm1137_vm7, %v1060_v13  ;;  %1788 = vmatmul.mubr.f32.gmra.mrb[16].mxu0 %v1521_v1  ;;  %951 = vrot.lane.b32.xlu1 %v2836_v27, %s2337_s13  ;;  %v1544_v13 = vld [vmem:[#allocation2 + $0x138] sm:$0xff] }
 0x148   : > { %935 = vrot.lane.b32.xlu0 %v4004_v45, %s2337_s13  ;;  %2244 = vmatprep.mubr.msk.f32.mxu1 %vm269_vm0, %v1540_v50 }
 0x149   : > { %v678_v14 = vpop.permute.xlu1 %677  ;;  %2236 = vmatprep.mubr.msk.f32.mxu0 %vm269_vm0, %v1524_v7  ;;  %v1528_v7 = vld [vmem:[#allocation2 + $0xb8] sm:$0xff] }
 0x14a   : > { %756 = vst.msk [vmem:[#allocation2 + $0x120] sm:$0xff] %vm737_vm4, %v678_v14  ;;  %v662_v27 = vpop.permute.xlu0 %661 }
 0x14b   : > { %748 = vst.msk [vmem:[#allocation2 + $0xa0] sm:$0xff] %vm737_vm4, %v662_v27  ;;  %1085 = vrot.lane.b32.xlu1 %v3122_v60, %s2336_s12 }
 0x14c   : > { %1069 = vrot.lane.b32.xlu0 %v3989_v19, %s2336_s12 }
 0x14d   : > { %v1207_v6 = vpop.permute.xlu1 %1206 }
 0x14e   : > { %1286 = vst.msk [vmem:[#allocation2 + $0x110] sm:$0xff] %vm1268_vm8, %v1207_v6  ;;  %v1191_v45 = vpop.permute.xlu0 %1190 }
 0x14f   : > { %1278 = vst.msk [vmem:[#allocation2 + $0x90] sm:$0xff] %vm1268_vm8, %v1191_v45  ;;  %687 = vrot.lane.b32.xlu1 %v3073_v18, %s2335_s7  ;;  %v1439_v18 = vrot.slane %v3444_v31, 2 }
 0x150   : > { %671 = vrot.lane.b32.xlu0 %v3076_v28, %s2335_s7 }
 0x151   : > { %v809_v19 = vpop.permute.xlu1 %808  ;;  %v1440_v35 = vsel %vm560_vm2, %v1437_v33, %v1439_v18  ;;  %v427_v18 = vrot.slane %v3277_v57, 1 }
 0x152   : > { %887 = vst.msk [vmem:[#allocation2 + $0x120] sm:$0xff] %vm868_vm5, %v809_v19  ;;  %v793_v53 = vpop.permute.xlu0 %792 }
 0x153   : > { %879 = vst.msk [vmem:[#allocation2 + $0xa0] sm:$0xff] %vm868_vm5, %v793_v53  ;;  %1216 = vrot.lane.b32.xlu1 %v2578_v56, %s2338_s14 }
 0x154   : > { %1200 = vrot.lane.b32.xlu0 %v3992_v62, %s2338_s14  ;;  %1504 = vst.msk [vmem:[#allocation2 + $0x1f8] sm:$0xff] %vm269_vm0, %v1440_v35  ;;  %v1546_v35 = vld [vmem:[#allocation2 + $0x148] sm:$0xff] }
 0x155   : > { %v1342_v28 = vpop.permute.xlu1 %1341 }
 0x156   : > { %1421 = vst.msk [vmem:[#allocation2 + $0x110] sm:$0xff] %vm1403_vm9, %v1342_v28  ;;  %v1326_v34 = vpop.permute.xlu0 %1325 }
 0x157   : > { %1413 = vst.msk [vmem:[#allocation2 + $0x90] sm:$0xff] %vm1403_vm9, %v1326_v34  ;;  %818 = vrot.lane.b32.xlu1 %v2557_v51, %s2334_s6  ;;  %v1542_v51 = vld [vmem:[#allocation2 + $0x128] sm:$0xff] }
 0x158   : > { %802 = vrot.lane.b32.xlu0 %v4005_v42, %s2334_s6  ;;  %v1526_v42 = vld [vmem:[#allocation2 + $0xa8] sm:$0xff] }
 0x159   : > { %v944_v16 = vpop.permute.xlu1 %943 }
 0x15a   : > { %1022 = vst.msk [vmem:[#allocation2 + $0x120] sm:$0xff] %vm1003_vm6, %v944_v16  ;;  %v928_v62 = vpop.permute.xlu0 %927 }
 0x15b   : > { %1014 = vst.msk [vmem:[#allocation2 + $0xa0] sm:$0xff] %vm1003_vm6, %v928_v62  ;;  %1351 = vrot.lane.b32.xlu1 %v4007_v37, %s2339_s17  ;;  %v1530_v62 = vld [vmem:[#allocation2 + $0xc8] sm:$0xff] }
 0x15c   : > { %1335 = vrot.lane.b32.xlu0 %v2737_v63, %s2339_s17 }
 0x15d   : > { %v1078_v5 = vpop.permute.xlu1 %1077  ;;  %v1539_v17 = vld [vmem:[#allocation2 + $0x110] sm:$0xff] }
 0x15e   : > { %1156 = vst.msk [vmem:[#allocation2 + $0x120] sm:$0xff] %vm1137_vm7, %v1078_v5  ;;  %v1062_v3 = vpop.permute.xlu0 %1061  ;;  %v1523_v15 = vld [vmem:[#allocation2 + $0x90] sm:$0xff]  ;;  %1833 = vmatmul.mubr.f32.gmra.mrb[2].mxu1 %v1539_v17 }
 0x15f   : > { %1148 = vst.msk [vmem:[#allocation2 + $0xa0] sm:$0xff] %vm1137_vm7, %v1062_v3  ;;  %1793 = vmatmul.mubr.f32.gmra.mrb[18].mxu0 %v1523_v15  ;;  %953 = vrot.lane.b32.xlu1 %v2831_v39, %s2337_s13 }
 0x160   : > { %937 = vrot.lane.b32.xlu0 %v4006_v10, %s2337_s13  ;;  %2245 = vmatprep.mubr.msk.f32.mxu1 %vm269_vm0, %v1542_v51 }
 0x161   : > { %v680_v63 = vpop.permute.xlu1 %679  ;;  %2237 = vmatprep.mubr.msk.f32.mxu0 %vm269_vm0, %v1526_v42  ;;  %v429_v42 = vrot.slane %v3355_v58, 1 }
 0x162   : > { %757 = vst.msk [vmem:[#allocation2 + $0x130] sm:$0xff] %vm737_vm4, %v680_v63  ;;  %v664_v23 = vpop.permute.xlu0 %663 }
 0x163   : > { %749 = vst.msk [vmem:[#allocation2 + $0xb0] sm:$0xff] %vm737_vm4, %v664_v23  ;;  %1087 = vrot.lane.b32.xlu1 %v3166_v44, %s2336_s12 }
 0x164   : > { %1071 = vrot.lane.b32.xlu0 %v2799_v4, %s2336_s12 }
 0x165   : > { %v1209_v39 = vpop.permute.xlu1 %1208 }
 0x166   : > { %1287 = vst.msk [vmem:[#allocation2 + $0x120] sm:$0xff] %vm1268_vm8, %v1209_v39  ;;  %v1193_v32 = vpop.permute.xlu0 %1192 }
 0x167   : > { %1279 = vst.msk [vmem:[#allocation2 + $0xa0] sm:$0xff] %vm1268_vm8, %v1193_v32  ;;  %1202 = vrot.lane.b32.xlu1 %v2515_v41, %s2338_s14  ;;  %v4008_v41 = vld [vmem:[#allocation22_spill] sm:$0xff] }
 0x168   : > { %689 = vrot.lane.b32.xlu0 %v3122_v60, %s2335_s7  ;;  %v1548_v32 = vld [vmem:[#allocation2 + $0x158] sm:$0xff] }
 0x169   : > { %v811_v0 = vpop.permute.xlu1 %810 }
 0x16a   : > { %888 = vst.msk [vmem:[#allocation2 + $0x130] sm:$0xff] %vm868_vm5, %v811_v0  ;;  %v795_v22 = vpop.permute.xlu0 %794 }
 0x16b   : > { %880 = vst.msk [vmem:[#allocation2 + $0xb0] sm:$0xff] %vm868_vm5, %v795_v22  ;;  %820 = vrot.lane.b32.xlu1 %v2578_v56, %s2334_s6  ;;  %v421_v56 = vrot.slane %v3208_v54, 1 }
 0x16c   : > { %1218 = vrot.lane.b32.xlu0 %v2571_v55, %s2338_s14 }
 0x16d   : > { %v1344_v4 = vpop.permute.xlu1 %1343  ;;  %v423_v59 = vsel %vm350_vm1, %v421_v56, %v422_v24 }
 0x16e   : > { %1422 = vst.msk [vmem:[#allocation2 + $0x120] sm:$0xff] %vm1403_vm9, %v1344_v4  ;;  %v1328_v36 = vpop.permute.xlu0 %1327  ;;  %v1532_v4 = vld [vmem:[#allocation2 + $0xd8] sm:$0xff] }
 0x16f   : > { %1414 = vst.msk [vmem:[#allocation2 + $0xa0] sm:$0xff] %vm1403_vm9, %v1328_v36  ;;  %1353 = vrot.lane.b32.xlu1 %v4008_v41, %s2339_s17  ;;  %v902_v36 = vrot.slane %v3377_v46, 1 }
 0x170   : > { %1337 = vrot.lane.b32.xlu0 %v3996_v61, %s2339_s17 }
 0x171   : > { %v946_v60 = vpop.permute.xlu1 %945 }
 0x172   : > { %1023 = vst.msk [vmem:[#allocation2 + $0x130] sm:$0xff] %vm1003_vm6, %v946_v60  ;;  %v930_v10 = vpop.permute.xlu0 %929 }
 0x173   : > { %1015 = vst.msk [vmem:[#allocation2 + $0xb0] sm:$0xff] %vm1003_vm6, %v930_v10  ;;  %1089 = vrot.lane.b32.xlu1 %v3198_v2, %s2336_s12 }
 0x174   : > { %955 = vrot.lane.b32.xlu0 %v4007_v37, %s2337_s13 }
 0x175   : > { %v1080_v9 = vpop.permute.xlu1 %1079  ;;  %v1541_v50 = vld [vmem:[#allocation2 + $0x120] sm:$0xff] }
 0x176   : > { %1157 = vst.msk [vmem:[#allocation2 + $0x130] sm:$0xff] %vm1137_vm7, %v1080_v9  ;;  %v1064_v61 = vpop.permute.xlu0 %1063  ;;  %v1525_v1 = vld [vmem:[#allocation2 + $0xa0] sm:$0xff]  ;;  %1838 = vmatmul.mubr.f32.gmra.mrb[4].mxu1 %v1541_v50 }
 0x177   : > { %1149 = vst.msk [vmem:[#allocation2 + $0xb0] sm:$0xff] %vm1137_vm7, %v1064_v61  ;;  %1798 = vmatmul.mubr.f32.gmra.mrb[20].mxu0 %v1525_v1  ;;  %1220 = vrot.lane.b32.xlu1 %v3208_v54, %s2338_s14 }
 0x178   : > { %691 = vrot.lane.b32.xlu0 %v3166_v44, %s2335_s7  ;;  %2246 = vmatprep.mubr.msk.f32.mxu1 %vm269_vm0, %v1544_v13 }
 0x179   : > { %v682_v33 = vpop.permute.xlu1 %681  ;;  %2238 = vmatprep.mubr.msk.f32.mxu0 %vm269_vm0, %v1528_v7 }
 0x17a   : > { %758 = vst.msk [vmem:[#allocation2 + $0x140] sm:$0xff] %vm737_vm4, %v682_v33  ;;  %v666_v14 = vpop.permute.xlu0 %665 }
 0x17b   : > { %750 = vst.msk [vmem:[#allocation2 + $0xc0] sm:$0xff] %vm737_vm4, %v666_v14  ;;  %1355 = vrot.lane.b32.xlu1 %v423_v59, %s2339_s17 }
 0x17c   : > { %822 = vrot.lane.b32.xlu0 %v2571_v55, %s2334_s6  ;;  %v3531_v55 = vsel %vm350_vm1, %v422_v24, %v424_v38 }
 0x17d   : > { %v1211_v27 = vpop.permute.xlu1 %1210 }
 0x17e   : > { %1288 = vst.msk [vmem:[#allocation2 + $0x130] sm:$0xff] %vm1268_vm8, %v1211_v27  ;;  %v1195_v44 = vpop.permute.xlu0 %1194 }
 0x17f   : > { %1280 = vst.msk [vmem:[#allocation2 + $0xb0] sm:$0xff] %vm1268_vm8, %v1195_v44  ;;  %1091 = vrot.lane.b32.xlu1 %v3233_v11, %s2336_s12 }
 0x180   : > { %957 = vrot.lane.b32.xlu0 %v4008_v41, %s2337_s13  ;;  %v903_v41 = vrot.slane %v3386_v48, 1 }
 0x181   : > { %v813_v6 = vpop.permute.xlu1 %812 }
 0x182   : > { %889 = vst.msk [vmem:[#allocation2 + $0x140] sm:$0xff] %vm868_vm5, %v813_v6  ;;  %v797_v45 = vpop.permute.xlu0 %796  ;;  %v904_v9 = vsel %vm350_vm1, %v902_v36, %v903_v41  ;;  %v1552_v36 = vld [vmem:[#allocation2 + $0x178] sm:$0xff] }
 0x183   : > { %881 = vst.msk [vmem:[#allocation2 + $0xc0] sm:$0xff] %vm868_vm5, %v797_v45  ;;  %1222 = vrot.lane.b32.xlu1 %v3216_v25, %s2338_s14 }
 0x184   : > { %693 = vrot.lane.b32.xlu0 %v3198_v2, %s2335_s7  ;;  %v426_v2 = vrot.slane %v3269_v47, 1 }
 0x185   : > { %v1346_v21 = vpop.permute.xlu1 %1345 }
 0x186   : > { %1423 = vst.msk [vmem:[#allocation2 + $0x130] sm:$0xff] %vm1403_vm9, %v1346_v21  ;;  %v1330_v19 = vpop.permute.xlu0 %1329  ;;  %v3553_v37 = vsel %vm350_vm1, %v426_v2, %v427_v18 }
 0x187   : > { %1415 = vst.msk [vmem:[#allocation2 + $0xb0] sm:$0xff] %vm1403_vm9, %v1330_v19  ;;  %1357 = vrot.lane.b32.xlu1 %v3531_v55, %s2339_s17  ;;  %v905_v19 = vrot.slane %v3425_v12, 1 }
 0x188   : > { %824 = vrot.lane.b32.xlu0 %v3208_v54, %s2334_s6 }
 0x189   : > { %v948_v26 = vpop.permute.xlu1 %947  ;;  %v906_v2 = vsel %vm350_vm1, %v903_v41, %v905_v19 }
 0x18a   : > { %1024 = vst.msk [vmem:[#allocation2 + $0x140] sm:$0xff] %vm1003_vm6, %v948_v26  ;;  %v932_v53 = vpop.permute.xlu0 %931 }
 0x18b   : > { %1016 = vst.msk [vmem:[#allocation2 + $0xc0] sm:$0xff] %vm1003_vm6, %v932_v53  ;;  %1093 = vrot.lane.b32.xlu1 %v3259_v20, %s2336_s12 }
 0x18c   : > { %959 = vrot.lane.b32.xlu0 %v423_v59, %s2337_s13 }
 0x18d   : > { %v1082_v28 = vpop.permute.xlu1 %1081  ;;  %v1543_v34 = vld [vmem:[#allocation2 + $0x130] sm:$0xff] }
 0x18e   : > { %1158 = vst.msk [vmem:[#allocation2 + $0x140] sm:$0xff] %vm1137_vm7, %v1082_v28  ;;  %v1066_v54 = vpop.permute.xlu0 %1065  ;;  %v1527_v16 = vld [vmem:[#allocation2 + $0xb0] sm:$0xff]  ;;  %1843 = vmatmul.mubr.f32.gmra.mrb[6].mxu1 %v1543_v34  ;;  %v1534_v34 = vld [vmem:[#allocation2 + $0xe8] sm:$0xff] }
 0x18f   : > { %1150 = vst.msk [vmem:[#allocation2 + $0xc0] sm:$0xff] %vm1137_vm7, %v1066_v54  ;;  %1803 = vmatmul.mubr.f32.gmra.mrb[22].mxu0 %v1527_v16  ;;  %1224 = vrot.lane.b32.xlu1 %v3269_v47, %s2338_s14 }
 0x190   : > { %695 = vrot.lane.b32.xlu0 %v3233_v11, %s2335_s7  ;;  %2247 = vmatprep.mubr.msk.f32.mxu1 %vm269_vm0, %v1546_v35 }
 0x191   : > { %v684_v5 = vpop.permute.xlu1 %683  ;;  %2239 = vmatprep.mubr.msk.f32.mxu0 %vm269_vm0, %v1530_v62 }
 0x192   : > { %759 = vst.msk [vmem:[#allocation2 + $0x150] sm:$0xff] %vm737_vm4, %v684_v5  ;;  %v668_v17 = vpop.permute.xlu0 %667 }
 0x193   : > { %751 = vst.msk [vmem:[#allocation2 + $0xd0] sm:$0xff] %vm737_vm4, %v668_v17  ;;  %1359 = vrot.lane.b32.xlu1 %v3553_v37, %s2339_s17 }
 0x194   : > { %826 = vrot.lane.b32.xlu0 %v3216_v25, %s2334_s6 }
 0x195   : > { %v1213_v11 = vpop.permute.xlu1 %1212 }
 0x196   : > { %1289 = vst.msk [vmem:[#allocation2 + $0x140] sm:$0xff] %vm1268_vm8, %v1213_v11  ;;  %v1197_v51 = vpop.permute.xlu0 %1196  ;;  %v1302_v11 = vrot.slane %v3405_v43, 1 }
 0x197   : > { %1281 = vst.msk [vmem:[#allocation2 + $0xc0] sm:$0xff] %vm1268_vm8, %v1197_v51  ;;  %487 = vrot.lane.b32.xlu1 %v423_v59, %s2332_s21  ;;  %v1303_v51 = vrot.slane %v3408_v29, 1 }
 0x198   : > { %961 = vrot.lane.b32.xlu0 %v3531_v55, %s2337_s13 }
 0x199   : > { %v815_v3 = vpop.permute.xlu1 %814 }
 0x19a   : > { %890 = vst.msk [vmem:[#allocation2 + $0x150] sm:$0xff] %vm868_vm5, %v815_v3  ;;  %v799_v15 = vpop.permute.xlu0 %798 }
 0x19b   : > { %882 = vst.msk [vmem:[#allocation2 + $0xd0] sm:$0xff] %vm868_vm5, %v799_v15  ;;  %697 = vrot.lane.b32.xlu1 %v3259_v20, %s2335_s7  ;;  %v3582_v20 = vsel %vm350_vm1, %v427_v18, %v429_v42  ;;  %v1550_v18 = vld [vmem:[#allocation2 + $0x168] sm:$0xff] }
 0x19c   : > { %1095 = vrot.lane.b32.xlu0 %v3302_v49, %s2336_s12 }
 0x19d   : > { %v1348_v25 = vpop.permute.xlu1 %1347 }
 0x19e   : > { %1424 = vst.msk [vmem:[#allocation2 + $0x140] sm:$0xff] %vm1403_vm9, %v1348_v25  ;;  %v1332_v63 = vpop.permute.xlu0 %1331 }
 0x19f   : > { %1416 = vst.msk [vmem:[#allocation2 + $0xc0] sm:$0xff] %vm1403_vm9, %v1332_v63  ;;  %828 = vrot.lane.b32.xlu1 %v3269_v47, %s2334_s6 }
 0x1a0   : > { %1226 = vrot.lane.b32.xlu0 %v3277_v57, %s2338_s14 }
 0x1a1   : > { %v950_v23 = vpop.permute.xlu1 %949 }
 0x1a2   : > { %1025 = vst.msk [vmem:[#allocation2 + $0x150] sm:$0xff] %vm1003_vm6, %v950_v23  ;;  %v934_v39 = vpop.permute.xlu0 %933  ;;  %v1305_v23 = vrot.slane %v3444_v31, 1 }
 0x1a3   : > { %1017 = vst.msk [vmem:[#allocation2 + $0xd0] sm:$0xff] %vm1003_vm6, %v934_v39  ;;  %963 = vrot.lane.b32.xlu1 %v3553_v37, %s2337_s13 }
 0x1a4   : > { %1361 = vrot.lane.b32.xlu0 %v3582_v20, %s2339_s17  ;;  %v1306_v31 = vsel %vm350_vm1, %v1303_v51, %v1305_v23 }
 0x1a5   : > { %v1084_v47 = vpop.permute.xlu1 %1083  ;;  %v1545_v58 = vld [vmem:[#allocation2 + $0x140] sm:$0xff] }
 0x1a6   : > { %1159 = vst.msk [vmem:[#allocation2 + $0x150] sm:$0xff] %vm1137_vm7, %v1084_v47  ;;  %v1068_v0 = vpop.permute.xlu0 %1067  ;;  %v1529_v22 = vld [vmem:[#allocation2 + $0xc0] sm:$0xff]  ;;  %1848 = vmatmul.mubr.f32.gmra.mrb[8].mxu1 %v1545_v58 }
 0x1a7   : > { %1151 = vst.msk [vmem:[#allocation2 + $0xd0] sm:$0xff] %vm1137_vm7, %v1068_v0  ;;  %1808 = vmatmul.mubr.f32.gmra.mrb[24].mxu0 %v1529_v22  ;;  %1097 = vrot.lane.b32.xlu1 %v3329_v40, %s2336_s12 }
 0x1a8   : > { %489 = vrot.lane.b32.xlu0 %v3531_v55, %s2332_s21  ;;  %2248 = vmatprep.mubr.msk.f32.mxu1 %vm269_vm0, %v1548_v32 }
 0x1a9   : > { %v686_v60 = vpop.permute.xlu1 %685  ;;  %v1749_v10 = vpop.f32.mrb[0].mxu0  ;;  %2240 = vmatprep.mubr.msk.f32.mxu0 %vm269_vm0, %v1532_v4 }
 0x1aa   : > { %760 = vst.msk [vmem:[#allocation2 + $0x160] sm:$0xff] %vm737_vm4, %v686_v60  ;;  %v670_v56 = vpop.permute.xlu0 %669  ;;  %v1751_v24 = vpop.f32.mrb[1].mxu0  ;;  %v1941_v33 = vsel %vm1908_vm10, %v1749_v10, 0.0  ;;  %v1536_v60 = vld [vmem:[#allocation2 + $0xf8] sm:$0xff] }
 0x1ab   : > { %1909 = vst.msk [vmem:[%s3598_s22] sm:$0xff] %vm1908_vm10, %v1749_v10  ;;  %1228 = vrot.lane.b32.xlu1 %v3377_v46, %s2338_s14 }
 0x1ac   : > { %752 = vst.msk [vmem:[#allocation2 + $0xe0] sm:$0xff] %vm737_vm4, %v670_v56  ;;  %699 = vrot.lane.b32.xlu0 %v3302_v49, %s2335_s7  ;;  %v2012_v49 = vmul.f32 %v1749_v10, %v1749_v10 }
 0x1ad   : > { %v1215_v50 = vpop.permute.xlu1 %1214 }
 0x1ae   : > { %1290 = vst.msk [vmem:[#allocation2 + $0x150] sm:$0xff] %vm1268_vm8, %v1215_v50  ;;  %v1199_v13 = vpop.permute.xlu0 %1198  ;;  %v2044_v6 = vsel %vm1908_vm10, %v2012_v49, 0.0 }
 0x1af   : > { %1282 = vst.msk [vmem:[#allocation2 + $0xd0] sm:$0xff] %vm1268_vm8, %v1199_v13  ;;  %1363 = vrot.lane.b32.xlu1 %v904_v9, %s2339_s17 }
 0x1b0   : > { %830 = vrot.lane.b32.xlu0 %v3277_v57, %s2334_s6 }
 0x1b1   : > { %v817_v61 = vpop.permute.xlu1 %816 }
 0x1b2   : > { %891 = vst.msk [vmem:[#allocation2 + $0x160] sm:$0xff] %vm868_vm5, %v817_v61  ;;  %v801_v1 = vpop.permute.xlu0 %800 }
 0x1b3   : > { %883 = vst.msk [vmem:[#allocation2 + $0xe0] sm:$0xff] %vm868_vm5, %v801_v1  ;;  %491 = vrot.lane.b32.xlu1 %v3553_v37, %s2332_s21 }
 0x1b4   : > { %965 = vrot.lane.b32.xlu0 %v3582_v20, %s2337_s13 }
 0x1b5   : > { %v1350_v7 = vpop.permute.xlu1 %1349  ;;  %v1754_v59 = vpop.f32.mrb[2].mxu0 }
 0x1b6   : > { %1425 = vst.msk [vmem:[#allocation2 + $0x150] sm:$0xff] %vm1403_vm9, %v1350_v7  ;;  %v1334_v57 = vpop.permute.xlu0 %1333  ;;  %v1942_v14 = vsel %vm1908_vm10, %v1754_v59, 0.0  ;;  %v2013_v27 = vmul.f32 %v1754_v59, %v1754_v59  ;;  %v1756_v44 = vpop.f32.mrb[3].mxu0 }
 0x1b7   : > { %1910 = vst.msk [vmem:[%s3598_s22 + $0x8] sm:$0xff] %vm1908_vm10, %v1754_v59  ;;  %v1943_v38 = vadd.f32 %v1942_v14, %v1941_v33  ;;  %701 = vrot.lane.b32.xlu1 %v3329_v40, %s2335_s7 }
 0x1b8   : > { %1417 = vst.msk [vmem:[#allocation2 + $0xd0] sm:$0xff] %vm1403_vm9, %v1334_v57  ;;  %v2045_v45 = vsel %vm1908_vm10, %v2013_v27, 0.0  ;;  %1099 = vrot.lane.b32.xlu0 %v3363_v30, %s2336_s12 }
 0x1b9   : > { %v2046_v55 = vadd.f32 %v2045_v45, %v2044_v6  ;;  %v952_v21 = vpop.permute.xlu1 %951 }
 0x1ba   : > { %1026 = vst.msk [vmem:[#allocation2 + $0x160] sm:$0xff] %vm1003_vm6, %v952_v21  ;;  %v936_v26 = vpop.permute.xlu0 %935 }
 0x1bb   : > { %1018 = vst.msk [vmem:[#allocation2 + $0xe0] sm:$0xff] %vm1003_vm6, %v936_v26  ;;  %832 = vrot.lane.b32.xlu1 %v3377_v46, %s2334_s6  ;;  %v1554_v26 = vld [vmem:[#allocation2 + $0x188] sm:$0xff] }
 0x1bc   : > { %1230 = vrot.lane.b32.xlu0 %v3386_v48, %s2338_s14 }
 0x1bd   : > { %v1086_v40 = vpop.permute.xlu1 %1085  ;;  %v1547_v53 = vld [vmem:[#allocation2 + $0x150] sm:$0xff] }
 0x1be   : > { %1160 = vst.msk [vmem:[#allocation2 + $0x160] sm:$0xff] %vm1137_vm7, %v1086_v40  ;;  %v1070_v12 = vpop.permute.xlu0 %1069  ;;  %1853 = vmatmul.mubr.f32.gmra.mrb[10].mxu1 %v1547_v53 }
 0x1bf   : > { %v1531_v28 = vld [vmem:[#allocation2 + $0xd0] sm:$0xff]  ;;  %1152 = vst.msk [vmem:[#allocation2 + $0xe0] sm:$0xff] %vm1137_vm7, %v1070_v12  ;;  %967 = vrot.lane.b32.xlu1 %v904_v9, %s2337_s13  ;;  %2249 = vmatprep.mubr.msk.f32.mxu1 %vm269_vm0, %v1550_v18 }
 0x1c0   : > { %1813 = vmatmul.mubr.f32.gmra.mrb[26].mxu0 %v1531_v28  ;;  %1365 = vrot.lane.b32.xlu0 %v906_v2, %s2339_s17 }
 0x1c1   : > { %v688_v46 = vpop.permute.xlu1 %687  ;;  %v1759_v35 = vpop.f32.mrb[4].mxu0  ;;  %2241 = vmatprep.mubr.msk.f32.mxu0 %vm269_vm0, %v1534_v34 }
 0x1c2   : > { %761 = vst.msk [vmem:[#allocation2 + $0x170] sm:$0xff] %vm737_vm4, %v688_v46  ;;  %v672_v54 = vpop.permute.xlu0 %671  ;;  %v1944_v16 = vsel %vm1908_vm10, %v1759_v35, 0.0  ;;  %v2014_v62 = vmul.f32 %v1759_v35, %v1759_v35  ;;  %v1761_v37 = vpop.f32.mrb[5].mxu0 }
 0x1c3   : > { %1911 = vst.msk [vmem:[%s3598_s22 + $0x10] sm:$0xff] %vm1908_vm10, %v1759_v35  ;;  %v1945_v5 = vadd.f32 %v1944_v16, %v1943_v38  ;;  %1101 = vrot.lane.b32.xlu1 %v3394_v52, %s2336_s12  ;;  %v1304_v52 = vsel %vm350_vm1, %v1302_v11, %v1303_v51  ;;  %v1556_v11 = vld [vmem:[#allocation2 + $0x198] sm:$0xff] }
 0x1c4   : > { %753 = vst.msk [vmem:[#allocation2 + $0xf0] sm:$0xff] %vm737_vm4, %v672_v54  ;;  %v2047_v17 = vsel %vm1908_vm10, %v2014_v62, 0.0  ;;  %493 = vrot.lane.b32.xlu0 %v3582_v20, %s2332_s21 }
 0x1c5   : > { %v2048_v3 = vadd.f32 %v2047_v17, %v2046_v55  ;;  %v1217_v15 = vpop.permute.xlu1 %1216 }
 0x1c6   : > { %1291 = vst.msk [vmem:[#allocation2 + $0x160] sm:$0xff] %vm1268_vm8, %v1217_v15  ;;  %v1201_v25 = vpop.permute.xlu0 %1200 }
 0x1c7   : > { %1283 = vst.msk [vmem:[#allocation2 + $0xe0] sm:$0xff] %vm1268_vm8, %v1201_v25  ;;  %1232 = vrot.lane.b32.xlu1 %v3405_v43, %s2338_s14 }
 0x1c8   : > { %703 = vrot.lane.b32.xlu0 %v3363_v30, %s2335_s7 }
 0x1c9   : > { %v819_v42 = vpop.permute.xlu1 %818 }
 0x1ca   : > { %892 = vst.msk [vmem:[#allocation2 + $0x170] sm:$0xff] %vm868_vm5, %v819_v42  ;;  %v803_v63 = vpop.permute.xlu0 %802 }
 0x1cb   : > { %884 = vst.msk [vmem:[#allocation2 + $0xf0] sm:$0xff] %vm868_vm5, %v803_v63  ;;  %1367 = vrot.lane.b32.xlu1 %v1304_v52, %s2339_s17 }
 0x1cc   : > { %834 = vrot.lane.b32.xlu0 %v3386_v48, %s2334_s6 }
 0x1cd   : > { %v1352_v20 = vpop.permute.xlu1 %1351  ;;  %v1764_v43 = vpop.f32.mrb[6].mxu0 }
 0x1ce   : > { %1426 = vst.msk [vmem:[#allocation2 + $0x160] sm:$0xff] %vm1403_vm9, %v1352_v20  ;;  %v1336_v30 = vpop.permute.xlu0 %1335  ;;  %v1946_v39 = vsel %vm1908_vm10, %v1764_v43, 0.0  ;;  %v2015_v47 = vmul.f32 %v1764_v43, %v1764_v43  ;;  %v1766_v58 = vpop.f32.mrb[7].mxu0  ;;  %v1558_v20 = vld [vmem:[#allocation2 + $0x1a8] sm:$0xff] }
 0x1cf   : > { %1912 = vst.msk [vmem:[%s3598_s22 + $0x18] sm:$0xff] %vm1908_vm10, %v1764_v43  ;;  %v1947_v32 = vadd.f32 %v1946_v39, %v1945_v5  ;;  %1103 = vrot.lane.b32.xlu1 %v3435_v8, %s2336_s12 }
 0x1d0   : > { %1418 = vst.msk [vmem:[#allocation2 + $0xe0] sm:$0xff] %vm1403_vm9, %v1336_v30  ;;  %v2049_v48 = vsel %vm1908_vm10, %v2015_v47, 0.0  ;;  %969 = vrot.lane.b32.xlu0 %v906_v2, %s2337_s13 }
 0x1d1   : > { %v2050_v0 = vadd.f32 %v2049_v48, %v2048_v3  ;;  %v954_v22 = vpop.permute.xlu1 %953 }
 0x1d2   : > { %1027 = vst.msk [vmem:[#allocation2 + $0x170] sm:$0xff] %vm1003_vm6, %v954_v22  ;;  %v938_v4 = vpop.permute.xlu0 %937 }
 0x1d3   : > { %1019 = vst.msk [vmem:[#allocation2 + $0xf0] sm:$0xff] %vm1003_vm6, %v938_v4  ;;  %1369 = vrot.lane.b32.xlu1 %v1306_v31, %s2339_s17 }
 0x1d4   : > { %1234 = vrot.lane.b32.xlu0 %v3408_v29, %s2338_s14 }
 0x1d5   : > { %v1088_v8 = vpop.permute.xlu1 %1087  ;;  %v1549_v41 = vld [vmem:[#allocation2 + $0x160] sm:$0xff] }
 0x1d6   : > { %1161 = vst.msk [vmem:[#allocation2 + $0x170] sm:$0xff] %vm1137_vm7, %v1088_v8  ;;  %v1072_v10 = vpop.permute.xlu0 %1071  ;;  %1858 = vmatmul.mubr.f32.gmra.mrb[12].mxu1 %v1549_v41 }
 0x1d7   : > { %v1533_v56 = vld [vmem:[#allocation2 + $0xe0] sm:$0xff]  ;;  %1153 = vst.msk [vmem:[#allocation2 + $0xf0] sm:$0xff] %vm1137_vm7, %v1072_v10  ;;  %2250 = vmatprep.mubr.msk.f32.mxu1 %vm269_vm0, %v1552_v36 }
 0x1d8   : > { %1818 = vmatmul.mubr.f32.gmra.mrb[28].mxu0 %v1533_v56 }
 0x1d9   : > { %2242 = vmatprep.mubr.msk.f32.mxu0 %vm269_vm0, %v1536_v60  ;;  %v1203_v24 = vpop.permute.xlu1 %1202  ;;  %v1769_v9 = vpop.f32.mrb[8].mxu0  ;;  %v1560_v60 = vld [vmem:[#allocation2 + $0x1b8] sm:$0xff] }
 0x1da   : > { %1284 = vst.msk [vmem:[#allocation2 + $0xf0] sm:$0xff] %vm1268_vm8, %v1203_v24  ;;  %v690_v29 = vpop.permute.xlu0 %689  ;;  %v1948_v50 = vsel %vm1908_vm10, %v1769_v9, 0.0  ;;  %v2016_v13 = vmul.f32 %v1769_v9, %v1769_v9  ;;  %v1771_v61 = vpop.f32.mrb[9].mxu0 }
 0x1db   : > { %1913 = vst.msk [vmem:[%s3598_s22 + $0x20] sm:$0xff] %vm1908_vm10, %v1769_v9  ;;  %v1949_v1 = vadd.f32 %v1948_v50, %v1947_v32 }
 0x1dc   : > { %762 = vst.msk [vmem:[#allocation2 + $0x180] sm:$0xff] %vm737_vm4, %v690_v29  ;;  %v2051_v49 = vsel %vm1908_vm10, %v2016_v13, 0.0 }
 0x1dd   : > { %v2052_v7 = vadd.f32 %v2051_v49, %v2050_v0  ;;  %v821_v59 = vpop.permute.xlu1 %820 }
 0x1de   : > { %893 = vst.msk [vmem:[#allocation2 + $0x180] sm:$0xff] %vm868_vm5, %v821_v59  ;;  %v1219_v33 = vpop.permute.xlu0 %1218 }
 0x1df   : > { %1292 = vst.msk [vmem:[#allocation2 + $0x170] sm:$0xff] %vm1268_vm8, %v1219_v33 }
 0x1e1   : > { %v1354_v57 = vpop.permute.xlu1 %1353 }
 0x1e2   : > { %1427 = vst.msk [vmem:[#allocation2 + $0x170] sm:$0xff] %vm1403_vm9, %v1354_v57  ;;  %v1338_v14 = vpop.permute.xlu0 %1337 }
 0x1e3   : > { %1419 = vst.msk [vmem:[#allocation2 + $0xf0] sm:$0xff] %vm1403_vm9, %v1338_v14 }
 0x1e5   : > { %v1090_v27 = vpop.permute.xlu1 %1089  ;;  %v1774_v44 = vpop.f32.mrb[10].mxu0 }
 0x1e6   : > { %v956_v38 = vpop.permute.xlu0 %955  ;;  %1914 = vst.msk [vmem:[%s3598_s22 + $0x28] sm:$0xff] %vm1908_vm10, %v1774_v44  ;;  %v1950_v6 = vsel %vm1908_vm10, %v1774_v44, 0.0  ;;  %v2017_v45 = vmul.f32 %v1774_v44, %v1774_v44  ;;  %v1776_v55 = vpop.f32.mrb[11].mxu0 }
 0x1e7   : > { %1028 = vst.msk [vmem:[#allocation2 + $0x180] sm:$0xff] %vm1003_vm6, %v956_v38  ;;  %v1951_v21 = vadd.f32 %v1950_v6, %v1949_v1  ;;  %v1562_v6 = vld [vmem:[#allocation2 + $0x1c8] sm:$0xff] }
 0x1e8   : > { %1162 = vst.msk [vmem:[#allocation2 + $0x180] sm:$0xff] %vm1137_vm7, %v1090_v27  ;;  %v2053_v19 = vsel %vm1908_vm10, %v2017_v45, 0.0 }
 0x1e9   : > { %v2054_v40 = vadd.f32 %v2053_v19, %v2052_v7  ;;  %v1221_v53 = vpop.permute.xlu1 %1220  ;;  %v1551_v2 = vld [vmem:[#allocation2 + $0x170] sm:$0xff] }
 0x1ea   : > { %1293 = vst.msk [vmem:[#allocation2 + $0x180] sm:$0xff] %vm1268_vm8, %v1221_v53  ;;  %v692_v18 = vpop.permute.xlu0 %691  ;;  %v1535_v12 = vld [vmem:[#allocation2 + $0xf0] sm:$0xff]  ;;  %1863 = vmatmul.mubr.f32.gmra.mrb[14].mxu1 %v1551_v2  ;;  %v1564_v2 = vld [vmem:[#allocation2 + $0x1d8] sm:$0xff] }
 0x1eb   : > { %763 = vst.msk [vmem:[#allocation2 + $0x190] sm:$0xff] %vm737_vm4, %v692_v18  ;;  %1823 = vmatmul.mubr.f32.gmra.mrb[30].mxu0 %v1535_v12  ;;  %2251 = vmatprep.mubr.msk.f32.mxu1 %vm269_vm0, %v1554_v26 }
 0x1ed   : > { %v1356_v28 = vpop.permute.xlu1 %1355 }
 0x1ee   : > { %1428 = vst.msk [vmem:[#allocation2 + $0x180] sm:$0xff] %vm1403_vm9, %v1356_v28  ;;  %v823_v34 = vpop.permute.xlu0 %822 }
 0x1ef   : > { %894 = vst.msk [vmem:[#allocation2 + $0x190] sm:$0xff] %vm868_vm5, %v823_v34 }
 0x1f1   : > { %v1092_v46 = vpop.permute.xlu1 %1091  ;;  %v1779_v35 = vpop.f32.mrb[12].mxu0 }
 0x1f2   : > { %v958_v54 = vpop.permute.xlu0 %957  ;;  %1915 = vst.msk [vmem:[%s3598_s22 + $0x30] sm:$0xff] %vm1908_vm10, %v1779_v35  ;;  %v1952_v16 = vsel %vm1908_vm10, %v1779_v35, 0.0  ;;  %v2018_v62 = vmul.f32 %v1779_v35, %v1779_v35  ;;  %v1781_v37 = vpop.f32.mrb[13].mxu0 }
 0x1f3   : > { %1029 = vst.msk [vmem:[#allocation2 + $0x190] sm:$0xff] %vm1003_vm6, %v958_v54  ;;  %v1953_v5 = vadd.f32 %v1952_v16, %v1951_v21 }
 0x1f4   : > { %1163 = vst.msk [vmem:[#allocation2 + $0x190] sm:$0xff] %vm1137_vm7, %v1092_v46  ;;  %v2055_v17 = vsel %vm1908_vm10, %v2018_v62, 0.0 }
 0x1f5   : > { %v2056_v51 = vadd.f32 %v2055_v17, %v2054_v40  ;;  %v1223_v3 = vpop.permute.xlu1 %1222  ;;  %v1553_v15 = vld [vmem:[#allocation2 + $0x180] sm:$0xff] }
 0x1f6   : > { %1294 = vst.msk [vmem:[#allocation2 + $0x190] sm:$0xff] %vm1268_vm8, %v1223_v3  ;;  %v694_v25 = vpop.permute.xlu0 %693  ;;  %1868 = vmatmul.mubr.f32.gmra.mrb[16].mxu1 %v1553_v15 }
 0x1f7   : > { %764 = vst.msk [vmem:[#allocation2 + $0x1a0] sm:$0xff] %vm737_vm4, %v694_v25  ;;  %2252 = vmatprep.mubr.msk.f32.mxu1 %vm269_vm0, %v1556_v11 }
 0x1f9   : > { %v1358_v52 = vpop.permute.xlu1 %1357 }
 0x1fa   : > { %1429 = vst.msk [vmem:[#allocation2 + $0x190] sm:$0xff] %vm1403_vm9, %v1358_v52  ;;  %v825_v42 = vpop.permute.xlu0 %824 }
 0x1fb   : > { %895 = vst.msk [vmem:[#allocation2 + $0x1a0] sm:$0xff] %vm868_vm5, %v825_v42 }
 0x1fd   : > { %v1094_v63 = vpop.permute.xlu1 %1093 }
 0x1fe   : > { %v960_v23 = vpop.permute.xlu0 %959 }
 0x1ff   : > { %1030 = vst.msk [vmem:[#allocation2 + $0x1a0] sm:$0xff] %vm1003_vm6, %v960_v23 }
 0x200   : > { %1164 = vst.msk [vmem:[#allocation2 + $0x1a0] sm:$0xff] %vm1137_vm7, %v1094_v63  ;;  %v1566_v63 = vld [vmem:[#allocation2 + $0x1e8] sm:$0xff] }
 0x201   : > { %v1225_v43 = vpop.permute.xlu1 %1224  ;;  %v1784_v30 = vpop.f32.mrb[14].mxu0  ;;  %v1555_v39 = vld [vmem:[#allocation2 + $0x190] sm:$0xff] }
 0x202   : > { %1295 = vst.msk [vmem:[#allocation2 + $0x1a0] sm:$0xff] %vm1268_vm8, %v1225_v43  ;;  %v696_v47 = vpop.permute.xlu0 %695  ;;  %v1954_v58 = vsel %vm1908_vm10, %v1784_v30, 0.0  ;;  %v2019_v32 = vmul.f32 %v1784_v30, %v1784_v30  ;;  %v1786_v48 = vpop.f32.mrb[15].mxu0  ;;  %1873 = vmatmul.mubr.f32.gmra.mrb[18].mxu1 %v1555_v39 }
 0x203   : > { %1916 = vst.msk [vmem:[%s3598_s22 + $0x38] sm:$0xff] %vm1908_vm10, %v1784_v30  ;;  %v1955_v31 = vadd.f32 %v1954_v58, %v1953_v5  ;;  %2253 = vmatprep.mubr.msk.f32.mxu1 %vm269_vm0, %v1558_v20  ;;  %v1568_v58 = vld [vmem:[#allocation2 + $0x1f8] sm:$0xff] }
 0x204   : > { %765 = vst.msk [vmem:[#allocation2 + $0x1b0] sm:$0xff] %vm737_vm4, %v696_v47  ;;  %v2057_v0 = vsel %vm1908_vm10, %v2019_v32, 0.0 }
 0x205   : > { %v2058_v22 = vadd.f32 %v2057_v0, %v2056_v51  ;;  %v1360_v4 = vpop.permute.xlu1 %1359 }
 0x206   : > { %1430 = vst.msk [vmem:[#allocation2 + $0x1a0] sm:$0xff] %vm1403_vm9, %v1360_v4  ;;  %v827_v36 = vpop.permute.xlu0 %826 }
 0x207   : > { %896 = vst.msk [vmem:[#allocation2 + $0x1b0] sm:$0xff] %vm868_vm5, %v827_v36 }
 0x209   : > { %v488_v8 = vpop.permute.xlu1 %487 }
 0x20a   : > { %556 = vst.msk [vmem:[#allocation2 + $0x1c0] sm:$0xff] %vm527_vm3, %v488_v8  ;;  %v962_v41 = vpop.permute.xlu0 %961 }
 0x20b   : > { %1031 = vst.msk [vmem:[#allocation2 + $0x1b0] sm:$0xff] %vm1003_vm6, %v962_v41 }
 0x20d   : > { %v698_v10 = vpop.permute.xlu1 %697  ;;  %v1557_v56 = vld [vmem:[#allocation2 + $0x1a0] sm:$0xff] }
 0x20e   : > { %766 = vst.msk [vmem:[#allocation2 + $0x1c0] sm:$0xff] %vm737_vm4, %v698_v10  ;;  %v1096_v24 = vpop.permute.xlu0 %1095  ;;  %1878 = vmatmul.mubr.f32.gmra.mrb[20].mxu1 %v1557_v56 }
 0x20f   : > { %1165 = vst.msk [vmem:[#allocation2 + $0x1b0] sm:$0xff] %vm1137_vm7, %v1096_v24  ;;  %2254 = vmatprep.mubr.msk.f32.mxu1 %vm269_vm0, %v1560_v60 }
 0x211   : > { %v829_v9 = vpop.permute.xlu1 %828 }
 0x212   : > { %897 = vst.msk [vmem:[#allocation2 + $0x1c0] sm:$0xff] %vm868_vm5, %v829_v9  ;;  %v1227_v29 = vpop.permute.xlu0 %1226 }
 0x213   : > { %1296 = vst.msk [vmem:[#allocation2 + $0x1b0] sm:$0xff] %vm1268_vm8, %v1227_v29 }
 0x215   : > { %v964_v50 = vpop.permute.xlu1 %963 }
 0x216   : > { %1032 = vst.msk [vmem:[#allocation2 + $0x1c0] sm:$0xff] %vm1003_vm6, %v964_v50  ;;  %v1362_v13 = vpop.permute.xlu0 %1361 }
 0x217   : > { %1431 = vst.msk [vmem:[#allocation2 + $0x1b0] sm:$0xff] %vm1403_vm9, %v1362_v13 }
 0x219   : > { %v1098_v61 = vpop.permute.xlu1 %1097  ;;  %v3748_v1 = vpop.f32.mrb[0].mxu1 }
 0x21a   : > { %1166 = vst.msk [vmem:[#allocation2 + $0x1c0] sm:$0xff] %vm1137_vm7, %v1098_v61  ;;  %v490_v49 = vpop.permute.xlu0 %489  ;;  %v1789_v7 = vpop.f32.mrb[16].mxu0 }
 0x21b   : > { %1925 = vst.msk [vmem:[%s3598_s22 + $0x80] sm:$0xff] %vm1908_vm10, %v3748_v1  ;;  %1917 = vst.msk [vmem:[%s3598_s22 + $0x40] sm:$0xff] %vm1908_vm10, %v1789_v7  ;;  %v1956_v59 = vsel %vm1908_vm10, %v1789_v7, 0.0  ;;  %v2020_v33 = vmul.f32 %v1789_v7, %v1789_v7  ;;  %v1791_v57 = vpop.f32.mrb[17].mxu0  ;;  %v1831_v14 = vpop.f32.mrb[1].mxu1 }
 0x21c   : > { %557 = vst.msk [vmem:[#allocation2 + $0x1d0] sm:$0xff] %vm527_vm3, %v490_v49  ;;  %v1957_v27 = vadd.f32 %v1956_v59, %v1955_v31 }
 0x21d   : > { %v2059_v44 = vsel %vm1908_vm10, %v2020_v33, 0.0  ;;  %v1229_v38 = vpop.permute.xlu1 %1228 }
 0x21e   : > { %v2060_v45 = vadd.f32 %v2059_v44, %v2058_v22  ;;  %1297 = vst.msk [vmem:[#allocation2 + $0x1c0] sm:$0xff] %vm1268_vm8, %v1229_v38  ;;  %v700_v55 = vpop.permute.xlu0 %699  ;;  %v1559_v21 = vld [vmem:[#allocation2 + $0x1b0] sm:$0xff] }
 0x21f   : > { %767 = vst.msk [vmem:[#allocation2 + $0x1d0] sm:$0xff] %vm737_vm4, %v700_v55  ;;  %1883 = vmatmul.mubr.f32.gmra.mrb[22].mxu1 %v1559_v21 }
 0x220   : > { %2255 = vmatprep.mubr.msk.f32.mxu1 %vm269_vm0, %v1562_v6 }
 0x221   : > { %v1364_v19 = vpop.permute.xlu1 %1363 }
 0x222   : > { %1432 = vst.msk [vmem:[#allocation2 + $0x1c0] sm:$0xff] %vm1403_vm9, %v1364_v19  ;;  %v831_v26 = vpop.permute.xlu0 %830 }
 0x223   : > { %898 = vst.msk [vmem:[#allocation2 + $0x1d0] sm:$0xff] %vm868_vm5, %v831_v26 }
 0x225   : > { %v492_v40 = vpop.permute.xlu1 %491 }
 0x226   : > { %558 = vst.msk [vmem:[#allocation2 + $0x1e0] sm:$0xff] %vm527_vm3, %v492_v40  ;;  %v966_v53 = vpop.permute.xlu0 %965 }
 0x227   : > { %1033 = vst.msk [vmem:[#allocation2 + $0x1d0] sm:$0xff] %vm1003_vm6, %v966_v53 }
 0x229   : > { %v702_v18 = vpop.permute.xlu1 %701  ;;  %v1561_v12 = vld [vmem:[#allocation2 + $0x1c0] sm:$0xff] }
 0x22a   : > { %768 = vst.msk [vmem:[#allocation2 + $0x1e0] sm:$0xff] %vm737_vm4, %v702_v18  ;;  %v1100_v28 = vpop.permute.xlu0 %1099  ;;  %1888 = vmatmul.mubr.f32.gmra.mrb[24].mxu1 %v1561_v12 }
 0x22b   : > { %1167 = vst.msk [vmem:[#allocation2 + $0x1d0] sm:$0xff] %vm1137_vm7, %v1100_v28  ;;  %2256 = vmatprep.mubr.msk.f32.mxu1 %vm269_vm0, %v1564_v2 }
 0x22d   : > { %v833_v34 = vpop.permute.xlu1 %832 }
 0x22e   : > { %899 = vst.msk [vmem:[#allocation2 + $0x1e0] sm:$0xff] %vm868_vm5, %v833_v34  ;;  %v1231_v46 = vpop.permute.xlu0 %1230 }
 0x22f   : > { %1298 = vst.msk [vmem:[#allocation2 + $0x1d0] sm:$0xff] %vm1268_vm8, %v1231_v46 }
 0x231   : > { %v968_v35 = vpop.permute.xlu1 %967  ;;  %v3771_v54 = vpop.f32.mrb[2].mxu1 }
 0x232   : > { %1034 = vst.msk [vmem:[#allocation2 + $0x1e0] sm:$0xff] %vm1003_vm6, %v968_v35  ;;  %v1366_v16 = vpop.permute.xlu0 %1365  ;;  %v1794_v62 = vpop.f32.mrb[18].mxu0 }
 0x233   : > { %1926 = vst.msk [vmem:[%s3598_s22 + $0x88] sm:$0xff] %vm1908_vm10, %v3771_v54  ;;  %1918 = vst.msk [vmem:[%s3598_s22 + $0x48] sm:$0xff] %vm1908_vm10, %v1794_v62  ;;  %v1958_v37 = vsel %vm1908_vm10, %v1794_v62, 0.0  ;;  %v2021_v5 = vmul.f32 %v1794_v62, %v1794_v62  ;;  %v1796_v17 = vpop.f32.mrb[19].mxu0  ;;  %v1836_v11 = vpop.f32.mrb[3].mxu1 }
 0x234   : > { %1433 = vst.msk [vmem:[#allocation2 + $0x1d0] sm:$0xff] %vm1403_vm9, %v1366_v16  ;;  %v1959_v51 = vadd.f32 %v1958_v37, %v1957_v27 }
 0x235   : > { %v2061_v3 = vsel %vm1908_vm10, %v2021_v5, 0.0  ;;  %v1102_v15 = vpop.permute.xlu1 %1101 }
 0x236   : > { %v2062_v25 = vadd.f32 %v2061_v3, %v2060_v45  ;;  %1168 = vst.msk [vmem:[#allocation2 + $0x1e0] sm:$0xff] %vm1137_vm7, %v1102_v15  ;;  %v494_v52 = vpop.permute.xlu0 %493 }
 0x237   : > { %559 = vst.msk [vmem:[#allocation2 + $0x1f0] sm:$0xff] %vm527_vm3, %v494_v52  ;;  %v2028_v52 = vmul.f32 %v3748_v1, %v3748_v1 }
 0x239   : > { %v1233_v42 = vpop.permute.xlu1 %1232 }
 0x23a   : > { %1299 = vst.msk [vmem:[#allocation2 + $0x1e0] sm:$0xff] %vm1268_vm8, %v1233_v42  ;;  %v704_v23 = vpop.permute.xlu0 %703 }
 0x23b   : > { %v1563_v20 = vld [vmem:[#allocation2 + $0x1d0] sm:$0xff]  ;;  %769 = vst.msk [vmem:[#allocation2 + $0x1f0] sm:$0xff] %vm737_vm4, %v704_v23 }
 0x23c   : > { %1893 = vmatmul.mubr.f32.gmra.mrb[26].mxu1 %v1563_v20 }
 0x23d   : > { %2257 = vmatprep.mubr.msk.f32.mxu1 %vm269_vm0, %v1566_v63  ;;  %v1368_v43 = vpop.permute.xlu1 %1367 }
 0x23e   : > { %1434 = vst.msk [vmem:[#allocation2 + $0x1e0] sm:$0xff] %vm1403_vm9, %v1368_v43  ;;  %v835_v30 = vpop.permute.xlu0 %834  ;;  %v1972_v43 = vsel %vm1908_vm10, %v3748_v1, 0.0 }
 0x23f   : > { %900 = vst.msk [vmem:[#allocation2 + $0x1f0] sm:$0xff] %vm868_vm5, %v835_v30  ;;  %v2029_v30 = vmul.f32 %v3771_v54, %v3771_v54 }
 0x241   : > { %v1104_v39 = vpop.permute.xlu1 %1103 }
 0x242   : > { %v970_v47 = vpop.permute.xlu0 %969 }
 0x243   : > { %1035 = vst.msk [vmem:[#allocation2 + $0x1f0] sm:$0xff] %vm1003_vm6, %v970_v47 }
 0x244   : > { %1169 = vst.msk [vmem:[#allocation2 + $0x1f0] sm:$0xff] %vm1137_vm7, %v1104_v39 }
 0x245   : > { %v1370_v32 = vpop.permute.xlu1 %1369  ;;  %v1565_v48 = vld [vmem:[#allocation2 + $0x1e0] sm:$0xff] }
 0x246   : > { %v1235_v31 = vpop.permute.xlu0 %1234  ;;  %1898 = vmatmul.mubr.f32.gmra.mrb[28].mxu1 %v1565_v48  ;;  %v1974_v48 = vsel %vm1908_vm10, %v3771_v54, 0.0 }
 0x247   : > { %1300 = vst.msk [vmem:[#allocation2 + $0x1f0] sm:$0xff] %vm1268_vm8, %v1235_v31  ;;  %2258 = vmatprep.mubr.msk.f32.mxu1 %vm269_vm0, %v1568_v58 }
 0x248   : > { %1435 = vst.msk [vmem:[#allocation2 + $0x1f0] sm:$0xff] %vm1403_vm9, %v1370_v32  ;;  %v2075_v32 = vsel %vm1908_vm10, %v2028_v52, 0.0 }
 0x249   : > { %v3794_v0 = vpop.f32.mrb[4].mxu1 }
 0x24a   : > { %v1799_v22 = vpop.f32.mrb[20].mxu0  ;;  %1927 = vst.msk [vmem:[%s3598_s22 + $0x90] sm:$0xff] %vm1908_vm10, %v3794_v0  ;;  %v1841_v4 = vpop.f32.mrb[5].mxu1  ;;  %v2030_v31 = vmul.f32 %v3794_v0, %v3794_v0  ;;  %v1976_v1 = vsel %vm1908_vm10, %v3794_v0, 0.0 }
 0x24b   : > { %1919 = vst.msk [vmem:[%s3598_s22 + $0x50] sm:$0xff] %vm1908_vm10, %v1799_v22  ;;  %v1960_v36 = vsel %vm1908_vm10, %v1799_v22, 0.0  ;;  %v2022_v8 = vmul.f32 %v1799_v22, %v1799_v22  ;;  %v1801_v41 = vpop.f32.mrb[21].mxu0 }
 0x24c   : > { %v1961_v60 = vadd.f32 %v1960_v36, %v1959_v51  ;;  %v2077_v36 = vsel %vm1908_vm10, %v2029_v30, 0.0 }
 0x24d   : > { %v2063_v10 = vsel %vm1908_vm10, %v2022_v8, 0.0 }
 0x24e   : > { %v2064_v56 = vadd.f32 %v2063_v10, %v2062_v25  ;;  %v2079_v10 = vsel %vm1908_vm10, %v2030_v31, 0.0 }
 0x24f   : > { %v1567_v24 = vld [vmem:[#allocation2 + $0x1f0] sm:$0xff] }
 0x250   : > { %1903 = vmatmul.mubr.f32.gmra.mrb[30].mxu1 %v1567_v24 }
 0x261   : > { %v3803_v9 = vpop.f32.mrb[6].mxu1 }
 0x262   : > { %v1804_v29 = vpop.f32.mrb[22].mxu0  ;;  %1928 = vst.msk [vmem:[%s3598_s22 + $0x98] sm:$0xff] %vm1908_vm10, %v3803_v9  ;;  %v1846_v50 = vpop.f32.mrb[7].mxu1  ;;  %v2031_v8 = vmul.f32 %v3803_v9, %v3803_v9  ;;  %v1978_v54 = vsel %vm1908_vm10, %v3803_v9, 0.0 }
 0x263   : > { %1920 = vst.msk [vmem:[%s3598_s22 + $0x58] sm:$0xff] %vm1908_vm10, %v1804_v29  ;;  %v1962_v13 = vsel %vm1908_vm10, %v1804_v29, 0.0  ;;  %v2023_v61 = vmul.f32 %v1804_v29, %v1804_v29  ;;  %v1806_v49 = vpop.f32.mrb[23].mxu0 }
 0x264   : > { %v1963_v7 = vadd.f32 %v1962_v13, %v1961_v60  ;;  %v2081_v50 = vsel %vm1908_vm10, %v2031_v8, 0.0 }
 0x265   : > { %v2065_v59 = vsel %vm1908_vm10, %v2023_v61, 0.0 }
 0x266   : > { %v2066_v33 = vadd.f32 %v2065_v59, %v2064_v56 }
 0x279   : > { %v3812_v57 = vpop.f32.mrb[8].mxu1 }
 0x27a   : > { %v1809_v14 = vpop.f32.mrb[24].mxu0  ;;  %1929 = vst.msk [vmem:[%s3598_s22 + $0xa0] sm:$0xff] %vm1908_vm10, %v3812_v57  ;;  %v1851_v27 = vpop.f32.mrb[9].mxu1  ;;  %v2032_v56 = vmul.f32 %v3812_v57, %v3812_v57  ;;  %v1980_v0 = vsel %vm1908_vm10, %v3812_v57, 0.0 }
 0x27b   : > { %1921 = vst.msk [vmem:[%s3598_s22 + $0x60] sm:$0xff] %vm1908_vm10, %v1809_v14  ;;  %v1964_v44 = vsel %vm1908_vm10, %v1809_v14, 0.0  ;;  %v2024_v38 = vmul.f32 %v1809_v14, %v1809_v14  ;;  %v1811_v6 = vpop.f32.mrb[25].mxu0 }
 0x27c   : > { %v1965_v45 = vadd.f32 %v1964_v44, %v1963_v7 }
 0x27d   : > { %v2067_v55 = vsel %vm1908_vm10, %v2024_v38, 0.0 }
 0x27e   : > { %v2068_v21 = vadd.f32 %v2067_v55, %v2066_v33  ;;  %v2083_v33 = vsel %vm1908_vm10, %v2032_v56, 0.0 }
 0x291   : > { %v1854_v19 = vpop.f32.mrb[10].mxu1 }
 0x292   : > { %1930 = vst.msk [vmem:[%s3598_s22 + $0xa8] sm:$0xff] %vm1908_vm10, %v1854_v19  ;;  %v1856_v40 = vpop.f32.mrb[11].mxu1  ;;  %v2033_v13 = vmul.f32 %v1854_v19, %v1854_v19  ;;  %v1982_v9 = vsel %vm1908_vm10, %v1854_v19, 0.0 }
 0x293   : > { %v1814_v26 = vpop.f32.mrb[26].mxu0 }
 0x294   : > { %1922 = vst.msk [vmem:[%s3598_s22 + $0x68] sm:$0xff] %vm1908_vm10, %v1814_v26  ;;  %v1966_v53 = vsel %vm1908_vm10, %v1814_v26, 0.0  ;;  %v2025_v2 = vmul.f32 %v1814_v26, %v1814_v26  ;;  %v1816_v18 = vpop.f32.mrb[27].mxu0  ;;  %v2085_v38 = vsel %vm1908_vm10, %v2033_v13, 0.0 }
 0x295   : > { %v1967_v12 = vadd.f32 %v1966_v53, %v1965_v45 }
 0x296   : > { %v2069_v28 = vsel %vm1908_vm10, %v2025_v2, 0.0 }
 0x297   : > { %v2070_v34 = vadd.f32 %v2069_v28, %v2068_v21 }
 0x2a9   : > { %v1859_v46 = vpop.f32.mrb[12].mxu1 }
 0x2aa   : > { %1931 = vst.msk [vmem:[%s3598_s22 + $0xb0] sm:$0xff] %vm1908_vm10, %v1859_v46  ;;  %v1861_v16 = vpop.f32.mrb[13].mxu1  ;;  %v2034_v14 = vmul.f32 %v1859_v46, %v1859_v46  ;;  %v1984_v6 = vsel %vm1908_vm10, %v1859_v46, 0.0 }
 0x2ab   : > { %v1819_v35 = vpop.f32.mrb[28].mxu0 }
 0x2ac   : > { %1923 = vst.msk [vmem:[%s3598_s22 + $0x70] sm:$0xff] %vm1908_vm10, %v1819_v35  ;;  %v1968_v62 = vsel %vm1908_vm10, %v1819_v35, 0.0  ;;  %v2026_v37 = vmul.f32 %v1819_v35, %v1819_v35  ;;  %v1821_v5 = vpop.f32.mrb[29].mxu0  ;;  %v2087_v21 = vsel %vm1908_vm10, %v2034_v14, 0.0 }
 0x2ad   : > { %v1969_v17 = vadd.f32 %v1968_v62, %v1967_v12 }
 0x2ae   : > { %v2071_v11 = vsel %vm1908_vm10, %v2026_v37, 0.0 }
 0x2af   : > { %v2072_v51 = vadd.f32 %v2071_v11, %v2070_v34 }
 0x2bd   : > { %v1864_v3 = vpop.f32.mrb[14].mxu1 }
 0x2be   : > { %v1824_v15 = vpop.f32.mrb[30].mxu0  ;;  %1932 = vst.msk [vmem:[%s3598_s22 + $0xb8] sm:$0xff] %vm1908_vm10, %v1864_v3  ;;  %v1866_v25 = vpop.f32.mrb[15].mxu1  ;;  %v2035_v57 = vmul.f32 %v1864_v3, %v1864_v3  ;;  %v1986_v26 = vsel %vm1908_vm10, %v1864_v3, 0.0 }
 0x2bf   : > { %1924 = vst.msk [vmem:[%s3598_s22 + $0x78] sm:$0xff] %vm1908_vm10, %v1824_v15  ;;  %v1970_v42 = vsel %vm1908_vm10, %v1824_v15, 0.0  ;;  %v2027_v63 = vmul.f32 %v1824_v15, %v1824_v15  ;;  %v1826_v23 = vpop.f32.mrb[31].mxu0 }
 0x2c0   : > { %v1971_v20 = vadd.f32 %v1970_v42, %v1969_v17  ;;  %v2089_v19 = vsel %vm1908_vm10, %v2035_v57, 0.0 }
 0x2c1   : > { %v2073_v39 = vsel %vm1908_vm10, %v2027_v63, 0.0 }
 0x2c2   : > { %v1973_v47 = vadd.f32 %v1972_v43, %v1971_v20  ;;  %v2074_v58 = vadd.f32 %v2073_v39, %v2072_v51 }
 0x2c4   : > { %v1975_v22 = vadd.f32 %v1974_v48, %v1973_v47  ;;  %v2076_v4 = vadd.f32 %v2075_v32, %v2074_v58 }
 0x2c6   : > { %v1977_v41 = vadd.f32 %v1976_v1, %v1975_v22  ;;  %v2078_v60 = vadd.f32 %v2077_v36, %v2076_v4 }
 0x2c8   : > { %v2080_v24 = vadd.f32 %v2079_v10, %v2078_v60  ;;  %v1979_v29 = vadd.f32 %v1978_v54, %v1977_v41 }
 0x2c9   : > { %v1869_v61 = vpop.f32.mrb[16].mxu1 }
 0x2ca   : > { %v1981_v49 = vadd.f32 %v1980_v0, %v1979_v29  ;;  %v2082_v7 = vadd.f32 %v2081_v50, %v2080_v24  ;;  %1933 = vst.msk [vmem:[%s3598_s22 + $0xc0] sm:$0xff] %vm1908_vm10, %v1869_v61  ;;  %v1871_v59 = vpop.f32.mrb[17].mxu1  ;;  %v2036_v40 = vmul.f32 %v1869_v61, %v1869_v61  ;;  %v1988_v18 = vsel %vm1908_vm10, %v1869_v61, 0.0 }
 0x2cc   : > { %v1983_v27 = vadd.f32 %v1982_v9, %v1981_v49  ;;  %v2084_v44 = vadd.f32 %v2083_v33, %v2082_v7  ;;  %v2091_v34 = vsel %vm1908_vm10, %v2036_v40, 0.0 }
 0x2ce   : > { %v1985_v45 = vadd.f32 %v1984_v6, %v1983_v27  ;;  %v2086_v55 = vadd.f32 %v2085_v38, %v2084_v44 }
 0x2d0   : > { %v1987_v53 = vadd.f32 %v1986_v26, %v1985_v45  ;;  %v2088_v2 = vadd.f32 %v2087_v21, %v2086_v55 }
 0x2d2   : > { %v2090_v12 = vadd.f32 %v2089_v19, %v2088_v2  ;;  %v1989_v28 = vadd.f32 %v1988_v18, %v1987_v53 }
 0x2d4   : > { %v2092_v46 = vadd.f32 %v2091_v34, %v2090_v12 }
 0x2d5   : > { %v1874_v35 = vpop.f32.mrb[18].mxu1 }
 0x2d6   : > { %1934 = vst.msk [vmem:[%s3598_s22 + $0xc8] sm:$0xff] %vm1908_vm10, %v1874_v35  ;;  %v1990_v16 = vsel %vm1908_vm10, %v1874_v35, 0.0  ;;  %v2037_v62 = vmul.f32 %v1874_v35, %v1874_v35  ;;  %v1876_v37 = vpop.f32.mrb[19].mxu1 }
 0x2d7   : > { %v1991_v5 = vadd.f32 %v1990_v16, %v1989_v28 }
 0x2d8   : > { %v2093_v17 = vsel %vm1908_vm10, %v2037_v62, 0.0 }
 0x2d9   : > { %v2094_v11 = vadd.f32 %v2093_v17, %v2092_v46 }
 0x2e1   : > { %v1879_v51 = vpop.f32.mrb[20].mxu1 }
 0x2e2   : > { %1935 = vst.msk [vmem:[%s3598_s22 + $0xd0] sm:$0xff] %vm1908_vm10, %v1879_v51  ;;  %v1992_v3 = vsel %vm1908_vm10, %v1879_v51, 0.0  ;;  %v2038_v15 = vmul.f32 %v1879_v51, %v1879_v51  ;;  %v1881_v25 = vpop.f32.mrb[21].mxu1 }
 0x2e3   : > { %v1993_v52 = vadd.f32 %v1992_v3, %v1991_v5 }
 0x2e4   : > { %v2095_v42 = vsel %vm1908_vm10, %v2038_v15, 0.0 }
 0x2e5   : > { %v2096_v63 = vadd.f32 %v2095_v42, %v2094_v11 }
 0x2f2   : > { %v1884_v23 = vpop.f32.mrb[22].mxu1 }
 0x2f3   : > { %1936 = vst.msk [vmem:[%s3598_s22 + $0xd8] sm:$0xff] %vm1908_vm10, %v1884_v23  ;;  %v1994_v20 = vsel %vm1908_vm10, %v1884_v23, 0.0  ;;  %v2039_v43 = vmul.f32 %v1884_v23, %v1884_v23  ;;  %v1886_v30 = vpop.f32.mrb[23].mxu1 }
 0x2f4   : > { %v1995_v39 = vadd.f32 %v1994_v20, %v1993_v52 }
 0x2f5   : > { %v2097_v47 = vsel %vm1908_vm10, %v2039_v43, 0.0 }
 0x2f6   : > { %v2098_v58 = vadd.f32 %v2097_v47, %v2096_v63 }
 0x2fd   : > { %v1889_v32 = vpop.f32.mrb[24].mxu1 }
 0x2fe   : > { %1937 = vst.msk [vmem:[%s3598_s22 + $0xe0] sm:$0xff] %vm1908_vm10, %v1889_v32  ;;  %v1996_v48 = vsel %vm1908_vm10, %v1889_v32, 0.0  ;;  %v2040_v31 = vmul.f32 %v1889_v32, %v1889_v32  ;;  %v1891_v22 = vpop.f32.mrb[25].mxu1 }
 0x2ff   : > { %v1997_v4 = vadd.f32 %v1996_v48, %v1995_v39 }
 0x300   : > { %v2099_v36 = vsel %vm1908_vm10, %v2040_v31, 0.0 }
 0x301   : > { %v2100_v1 = vadd.f32 %v2099_v36, %v2098_v58 }
 0x30f   : > { %v1894_v8 = vpop.f32.mrb[26].mxu1 }
 0x310   : > { %1938 = vst.msk [vmem:[%s3598_s22 + $0xe8] sm:$0xff] %vm1908_vm10, %v1894_v8  ;;  %v1998_v41 = vsel %vm1908_vm10, %v1894_v8, 0.0  ;;  %v2041_v60 = vmul.f32 %v1894_v8, %v1894_v8  ;;  %v1896_v10 = vpop.f32.mrb[27].mxu1 }
 0x311   : > { %v1999_v54 = vadd.f32 %v1998_v41, %v1997_v4 }
 0x312   : > { %v2101_v56 = vsel %vm1908_vm10, %v2041_v60, 0.0 }
 0x313   : > { %v2102_v24 = vadd.f32 %v2101_v56, %v2100_v1 }
 0x319   : > { %v1899_v29 = vpop.f32.mrb[28].mxu1 }
 0x31a   : > { %1939 = vst.msk [vmem:[%s3598_s22 + $0xf0] sm:$0xff] %vm1908_vm10, %v1899_v29  ;;  %v2000_v50 = vsel %vm1908_vm10, %v1899_v29, 0.0  ;;  %v2042_v0 = vmul.f32 %v1899_v29, %v1899_v29  ;;  %v1901_v13 = vpop.f32.mrb[29].mxu1 }
 0x31b   : > { %v2001_v61 = vadd.f32 %v2000_v50, %v1999_v54 }
 0x31c   : > { %v2103_v49 = vsel %vm1908_vm10, %v2042_v0, 0.0 }
 0x31d   : > { %v2104_v7 = vadd.f32 %v2103_v49, %v2102_v24 }
 0x323   : > { %v1904_v59 = vpop.f32.mrb[30].mxu1 }
 0x324   : > { %1940 = vst.msk [vmem:[%s3598_s22 + $0xf8] sm:$0xff] %vm1908_vm10, %v1904_v59  ;;  %v2002_v33 = vsel %vm1908_vm10, %v1904_v59, 0.0  ;;  %v2043_v9 = vmul.f32 %v1904_v59, %v1904_v59  ;;  %v1906_v14 = vpop.f32.mrb[31].mxu1 }
 0x325   : > { %v2003_v27 = vadd.f32 %v2002_v33, %v2001_v61 }
 0x326   : > { %v2105_v44 = vsel %vm1908_vm10, %v2043_v9, 0.0 }
 0x327   : > { %v2004_v38 = vrot.slane %v2003_v27, 4  ;;  %v2106_v6 = vadd.f32 %v2105_v44, %v2104_v7 }
 0x329   : > { %v2005_v57 = vadd.f32 %v2004_v38, %v2003_v27  ;;  %v2107_v45 = vrot.slane %v2106_v6, 4 }
 0x32b   : > { %v2006_v55 = vrot.slane %v2005_v57, 2  ;;  %v2108_v21 = vadd.f32 %v2107_v45, %v2106_v6 }
 0x32d   : > { %v2007_v26 = vadd.f32 %v2006_v55, %v2005_v57  ;;  %v2109_v40 = vrot.slane %v2108_v21, 2 }
 0x32f   : > { %v2008_v53 = vrot.slane %v2007_v26, 1  ;;  %v2110_v2 = vadd.f32 %v2109_v40, %v2108_v21 }
 0x331   : > { %v2009_v19 = vadd.f32 %v2008_v53, %v2007_v26  ;;  %v2111_v18 = vrot.slane %v2110_v2, 1 }
 0x333   : > { %2011 = vst.msk [vmem:[%s211_s24] sm:$0x1] %vm2010_vm11, %v2009_v19  ;;  %v2112_v12 = vadd.f32 %v2111_v18, %v2110_v2 }
 0x335   : > { %2113 = vst.msk [vmem:[%s214_s27] sm:$0x1] %vm2010_vm11, %v2112_v12 }
 0x336 PF: > { %s15_s15 = sadd.s32 1, %s2330_s15  }
 0x337   : > { %p12_p4 = scmp.ge.s32.totalorder %s15_s15, 4  }
 0x339   :  { %14 = sbr.rel (!%p12_p4) target bundleno = 1 (0x1), region = 82 }

// kernel: upscale_forward.10
= control target key start
LH: loop header
LB: loop body
LE: loop exit
PB: predicated region body
PF: predicated region fallthrough
CT: control target
= control target key end

     0   :  { %s2478_s15 = smov 0   ;;  %s3946_s0 = inlined_call_operand.vmem [shape: f32[2,18,18,8], index: 0, kind: input, shape index: {}]   ;;  %s3947_s1 = inlined_call_operand.vmem [shape: f32[72,16], index: 1, kind: input, shape index: {}]   ;;  %s3948_s2 = inlined_call_operand.vmem [shape: f32[2,256,16], index: 2, kind: output, shape index: {0}]   ;;  %s3949_s3 = inlined_call_operand.vmem [shape: f32[2,1,16], index: 3, kind: output, shape index: {1}]   ;;  %s3950_s4 = inlined_call_operand.vmem [shape: f32[2,1,16], index: 4, kind: output, shape index: {2}]  }
   0x1 LB: > { %s2244_s16 = sadd.s32 4294967295, %s2443_s15   ;;  %p2248_p0 = scmp.ge.s32.totalorder %s2443_s15, 1  ;;  %s2443_s15 = sphi %s2478_s15, %s15_s15  }
   0x2   : > { %p167_p1 = scmp.lt.s32.totalorder %s2443_s15, 3 }
   0x4   : > { %p168_p2 = pnand %p2248_p0, %p167_p1 }
   0x6   : > { %171 = sbr.rel (%p168_p2) target bundleno = 889 (0x379), region = 28 }
   0xd   : > { %p199_p3 = scmp.lt.s32.totalorder %s2244_s16, 1  ;;  %vm269_vm0 = vcmask 64512   ;;  %vm350_vm1 = vcmask 1046528   ;;  %s2445_s21 = smov 8   ;;  %vm560_vm2 = vcmask 1045504   ;;  %vm527_vm3 = vcmask 130112  }
   0xe   : > { %s2446_s22 = smov 16   ;;  %s2447_s23 = smov 24   ;;  %vm737_vm4 = vcmask 195712   ;;  %vm868_vm5 = vcmask 261312   ;;  %vm1003_vm6 = vcmask 326912   ;;  %vm1137_vm7 = vcmask 392512  }
   0xf   : > { %s4084_s16 = smov (!%p199_p3, %s2244_s16), 1  ;;  %s2448_s28 = smov 32   ;;  %vm1268_vm8 = vcmask 458112   ;;  %vm1403_vm9 = vcmask 523712   ;;  %vm1537_vm10 = vcmask 589312   ;;  %vm1611_vm11 = vcmask 588800  }
  0x10   : > { %s2420_s17 = smul.u32 432, %s4084_s16  ;;  %s2449_s7 = smov 40   ;;  %vm1933_vm12 = vcmask 130048   ;;  %vm2035_vm13 = vcmask 122880  }
  0x11   : > { %s2450_s12 = smov 48   ;;  %s2451_s19 = smov 56  }
  0x12   : > { %s2492_s20 = scalar_lea.vmem %s3946_s0, %s2420_s17  ;;  %s2452_s24 = smov 64  }
  0x13   : > { %v2495_v0 = vld [vmem:[%s2492_s20 + $0x18] sm:$0xff]  ;;  %v2498_v1 = vld [vmem:[%s2492_s20 + $0x20] sm:$0xff]  ;;  %v2506_v5 = vld [vmem:[%s2492_s20 + $0x8] sm:$0xff]  ;;  %s211_s29 = scalar_lea.vmem %s3949_s3, %s4084_s16  ;;  %s214_s6 = scalar_lea.vmem %s3950_s4, %s4084_s16 }
  0x14   : > { %v2501_v2 = vld [vmem:[%s2492_s20] sm:$0xff]  ;;  %v356_v3 = vrot.slane %v2495_v0, 1  ;;  %v357_v4 = vrot.slane %v2498_v1, 1  ;;  %v2510_v7 = vld [vmem:[%s2492_s20 + $0x28] sm:$0x3]  ;;  %272 = vst.msk [vmem:[#allocation2 + $0x10] sm:$0xff] %vm269_vm0, %v2495_v0 }
  0x15   : > { %v351_v6 = vrot.slane %v2501_v2, 1  ;;  %270 = vst.msk [vmem:[#allocation2] sm:$0xff] %vm269_vm0, %v2501_v2  ;;  %273 = vst.msk [vmem:[#allocation2 + $0x18] sm:$0xff] %vm269_vm0, %v2498_v1  ;;  %v352_v8 = vrot.slane %v2506_v5, 1  ;;  %v359_v9 = vrot.slane %v2510_v7, 1  ;;  %v2524_v11 = vld [vmem:[%s2492_s20 + $0x38] sm:$0xff] }
  0x16   : > { %v2521_v10 = vld [vmem:[%s2492_s20 + $0x10] sm:$0x3]  ;;  %271 = vst.msk [vmem:[#allocation2 + $0x8] sm:$0xff] %vm269_vm0, %v2506_v5  ;;  %v2532_v13 = vsel %vm350_vm1, %v356_v3, %v357_v4  ;;  %v2536_v15 = vld [vmem:[%s2492_s20 + $0x40] sm:$0x3]  ;;  %275 = vst.msk [vmem:[#allocation2 + $0x28] sm:$0xff] %vm269_vm0, %v2524_v11 }
  0x17   : > { %v2527_v12 = vld [vmem:[%s2492_s20 + $0x30] sm:$0xff]  ;;  %v354_v14 = vrot.slane %v2521_v10, 1  ;;  %435 = vrot.lane.b32.xlu1 %v2532_v13, %s2445_s21  ;;  %v353_v17 = vsel %vm350_vm1, %v351_v6, %v352_v8  ;;  %v2549_v18 = vld [vmem:[%s2492_s20 + $0x48] sm:$0xff]  ;;  %v2558_v20 = vsel %vm350_vm1, %v357_v4, %v359_v9  ;;  %v362_v21 = vrot.slane %v2524_v11, 1  ;;  %v2563_v23 = vld [vmem:[%s2492_s20 + $0x60] sm:$0xff] }
  0x18   : > { %v2539_v16 = vld [vmem:[%s2492_s20 + $0x50] sm:$0xff]  ;;  %274 = vst.msk [vmem:[#allocation2 + $0x20] sm:$0xff] %vm269_vm0, %v2527_v12  ;;  %v2552_v19 = vld [vmem:[%s2492_s20 + $0x68] sm:$0xff]  ;;  %431 = vrot.lane.b32.xlu0 %v353_v17, %s2445_s21  ;;  %v364_v22 = vrot.slane %v2536_v15, 1  ;;  %v2566_v24 = vld [vmem:[%s2492_s20 + $0x80] sm:$0xff]  ;;  %v361_v26 = vrot.slane %v2527_v12, 1 }
  0x19   : > { %277 = vst.msk [vmem:[#allocation2 + $0x38] sm:$0xff] %vm269_vm0, %v2539_v16  ;;  %276 = vst.msk [vmem:[#allocation2 + $0x30] sm:$0xff] %vm269_vm0, %v2549_v18  ;;  %v355_v25 = vsel %vm350_vm1, %v352_v8, %v354_v14  ;;  %v2575_v27 = vld [vmem:[%s2492_s20 + $0x58] sm:$0x3]  ;;  %v2588_v30 = vld [vmem:[%s2492_s20 + $0x90] sm:$0xff]  ;;  %v367_v34 = vrot.slane %v2539_v16, 1 }
  0x1a   : > { %279 = vst.msk [vmem:[#allocation2 + $0x48] sm:$0xff] %vm269_vm0, %v2552_v19  ;;  %v2578_v28 = vld [vmem:[%s2492_s20 + $0x78] sm:$0xff]  ;;  %278 = vst.msk [vmem:[#allocation2 + $0x40] sm:$0xff] %vm269_vm0, %v2563_v23  ;;  %v2595_v31 = vld [vmem:[%s2492_s20 + $0xb0] sm:$0xff]  ;;  %v2606_v33 = vsel %vm350_vm1, %v362_v21, %v364_v22  ;;  %v369_v35 = vrot.slane %v2575_v27, 1  ;;  %v2621_v38 = vsel %vm350_vm1, %v361_v26, %v362_v21  ;;  %v366_v39 = vrot.slane %v2549_v18, 1 }
  0x1b   : > { %281 = vst.msk [vmem:[#allocation2 + $0x58] sm:$0xff] %vm269_vm0, %v2566_v24  ;;  %v2585_v29 = vld [vmem:[%s2492_s20 + $0x98] sm:$0xff]  ;;  %280 = vst.msk [vmem:[#allocation2 + $0x50] sm:$0xff] %vm269_vm0, %v2578_v28  ;;  %437 = vrot.lane.b32.xlu1 %v2558_v20, %s2445_s21  ;;  %v2598_v32 = vld [vmem:[%s2492_s20 + $0xa8] sm:$0xff]  ;;  %v372_v48 = vrot.slane %v2552_v19, 1  ;;  %v371_v53 = vrot.slane %v2563_v23, 1 }
  0x1c   : > { %282 = vst.msk [vmem:[#allocation2 + $0x60] sm:$0xff] %vm269_vm0, %v2588_v30  ;;  %283 = vst.msk [vmem:[#allocation2 + $0x68] sm:$0xff] %vm269_vm0, %v2585_v29  ;;  %433 = vrot.lane.b32.xlu0 %v355_v25, %s2445_s21  ;;  %v2611_v36 = vld [vmem:[%s2492_s20 + $0x70] sm:$0x3]  ;;  %v2614_v37 = vld [vmem:[%s2492_s20 + $0xc8] sm:$0xff]  ;;  %v2662_v47 = vsel %vm350_vm1, %v367_v34, %v369_v35  ;;  %v2677_v52 = vsel %vm350_vm1, %v366_v39, %v367_v34  ;;  %v377_v60 = vrot.slane %v2566_v24, 1 }
  0x1d   : > { %4017 = vst [vmem:[#allocation3_spill] sm:$0xff] %v2614_v37  ;;  %284 = vst.msk [vmem:[#allocation2 + $0x70] sm:$0xff] %vm269_vm0, %v2598_v32  ;;  %v2625_v40 = vld [vmem:[%s2492_s20 + $0xc0] sm:$0xff]  ;;  %v2631_v42 = vld [vmem:[%s2492_s20 + $0xd8] sm:$0xff]  ;;  %v374_v49 = vrot.slane %v2611_v36, 1  ;;  %v2723_v3 = vsel %vm350_vm1, %v371_v53, %v372_v48  ;;  %v376_v4 = vrot.slane %v2578_v28, 1 }
  0x1e   : > { %285 = vst.msk [vmem:[#allocation2 + $0x78] sm:$0xff] %vm269_vm0, %v2595_v31  ;;  %v2628_v41 = vld [vmem:[%s2492_s20 + $0xe0] sm:$0xff]  ;;  %287 = vst.msk [vmem:[#allocation2 + $0x88] sm:$0xff] %vm269_vm0, %v2614_v37  ;;  %v2636_v43 = vld [vmem:[%s2492_s20 + $0xf8] sm:$0xff]  ;;  %v382_v9 = vrot.slane %v2585_v29, 1  ;;  %v381_v21 = vrot.slane %v2588_v30, 1 }
  0x1f   : > { %4018 = vst [vmem:[#allocation4_spill] sm:$0xff] %v2628_v41  ;;  %4019 = vst [vmem:[#allocation5_spill] sm:$0xff] %v2636_v43  ;;  %v2639_v44 = vld [vmem:[%s2492_s20 + $0xf0] sm:$0xff]  ;;  %441 = vrot.lane.b32.xlu1 %v2606_v33, %s2445_s21  ;;  %v2653_v46 = vld [vmem:[%s2492_s20 + $0x108] sm:$0xff]  ;;  %v2708_v59 = vsel %vm350_vm1, %v372_v48, %v374_v49  ;;  %v2743_v17 = vsel %vm350_vm1, %v376_v4, %v377_v60  ;;  %v387_v26 = vrot.slane %v2595_v31, 1  ;;  %v386_v39 = vrot.slane %v2598_v32, 1 }
  0x20   : > { %286 = vst.msk [vmem:[#allocation2 + $0x80] sm:$0xff] %vm269_vm0, %v2625_v40  ;;  %288 = vst.msk [vmem:[#allocation2 + $0x90] sm:$0xff] %vm269_vm0, %v2631_v42  ;;  %v2650_v45 = vld [vmem:[%s2492_s20 + $0x110] sm:$0xff]  ;;  %439 = vrot.lane.b32.xlu0 %v2621_v38, %s2445_s21  ;;  %v2667_v50 = vld [vmem:[%s2492_s20 + $0x128] sm:$0xff]  ;;  %v2759_v35 = vsel %vm350_vm1, %v381_v21, %v382_v9  ;;  %v392_v53 = vrot.slane %v2614_v37, 1  ;;  %v391_v4 = vrot.slane %v2625_v40, 1 }
  0x21   : > { %289 = vst.msk [vmem:[#allocation2 + $0x98] sm:$0xff] %vm269_vm0, %v2628_v41  ;;  %4020 = vst [vmem:[#allocation6_spill] sm:$0xff] %v2650_v45  ;;  %v2670_v51 = vld [vmem:[%s2492_s20 + $0x120] sm:$0xff]  ;;  %v2681_v54 = vld [vmem:[%s2492_s20 + $0x88] sm:$0x3]  ;;  %v397_v21 = vrot.slane %v2628_v41, 1 }
  0x22   : > { %290 = vst.msk [vmem:[#allocation2 + $0xa0] sm:$0xff] %vm269_vm0, %v2639_v44  ;;  %291 = vst.msk [vmem:[#allocation2 + $0xa8] sm:$0xff] %vm269_vm0, %v2636_v43  ;;  %v2684_v55 = vld [vmem:[%s2492_s20 + $0x140] sm:$0xff]  ;;  %v2691_v56 = vld [vmem:[%s2492_s20 + $0x138] sm:$0xff]  ;;  %v379_v61 = vrot.slane %v2681_v54, 1 }
  0x23   : > { %4021 = vst [vmem:[#allocation7_spill] sm:$0xff] %v2662_v47  ;;  %4022 = vst [vmem:[#allocation8_spill] sm:$0xff] %v2667_v50  ;;  %445 = vrot.lane.b32.xlu1 %v2662_v47, %s2445_s21  ;;  %v2698_v57 = vld [vmem:[%s2492_s20 + $0x158] sm:$0xff]  ;;  %v2701_v58 = vld [vmem:[%s2492_s20 + $0x150] sm:$0xff] }
  0x24   : > { %292 = vst.msk [vmem:[#allocation2 + $0xb0] sm:$0xff] %vm269_vm0, %v2653_v46  ;;  %293 = vst.msk [vmem:[#allocation2 + $0xb8] sm:$0xff] %vm269_vm0, %v2650_v45  ;;  %443 = vrot.lane.b32.xlu0 %v2677_v52, %s2445_s21  ;;  %v2713_v62 = vld [vmem:[%s2492_s20 + $0x170] sm:$0xff]  ;;  %v2716_v63 = vld [vmem:[%s2492_s20 + $0x168] sm:$0xff]  ;;  %v2738_v8 = vsel %vm350_vm1, %v377_v60, %v379_v61  ;;  %v2775_v61 = vsel %vm350_vm1, %v386_v39, %v387_v26  ;;  %v396_v39 = vrot.slane %v2631_v42, 1 }
  0x25   : > { %4023 = vst [vmem:[#allocation9_spill] sm:$0xff] %v2684_v55  ;;  %294 = vst.msk [vmem:[#allocation2 + $0xc0] sm:$0xff] %vm269_vm0, %v2670_v51  ;;  %v2727_v6 = vld [vmem:[%s2492_s20 + $0xa0] sm:$0x3]  ;;  %v2747_v22 = vld [vmem:[%s2492_s20 + $0xb8] sm:$0x3] }
  0x26   : > { %295 = vst.msk [vmem:[#allocation2 + $0xc8] sm:$0xff] %vm269_vm0, %v2667_v50  ;;  %4024 = vst [vmem:[#allocation10_spill] sm:$0xff] %v2691_v56  ;;  %v384_v14 = vrot.slane %v2727_v6, 1  ;;  %v389_v34 = vrot.slane %v2747_v22, 1  ;;  %v2763_v48 = vld [vmem:[%s2492_s20 + $0xd0] sm:$0x3] }
  0x27   : > { %297 = vst.msk [vmem:[#allocation2 + $0xd8] sm:$0xff] %vm269_vm0, %v2684_v55  ;;  %4025 = vst [vmem:[#allocation11_spill] sm:$0xff] %v2698_v57  ;;  %449 = vrot.lane.b32.xlu1 %v2708_v59, %s2445_s21  ;;  %v394_v60 = vrot.slane %v2763_v48, 1 }
  0x28   : > { %296 = vst.msk [vmem:[#allocation2 + $0xd0] sm:$0xff] %vm269_vm0, %v2691_v56  ;;  %4026 = vst [vmem:[#allocation12_spill] sm:$0xff] %v2708_v59  ;;  %447 = vrot.lane.b32.xlu0 %v2723_v3, %s2445_s21  ;;  %v2754_v25 = vsel %vm350_vm1, %v382_v9, %v384_v14  ;;  %v2770_v49 = vsel %vm350_vm1, %v387_v26, %v389_v34  ;;  %v2779_v9 = vld [vmem:[%s2492_s20 + $0xe8] sm:$0x3]  ;;  %v2791_v26 = vsel %vm350_vm1, %v391_v4, %v392_v53  ;;  %v2859_v59 = vld [vmem:[%s2492_s20 + $0x160] sm:$0x3] }
  0x29   : > { %298 = vst.msk [vmem:[#allocation2 + $0xe0] sm:$0xff] %vm269_vm0, %v2701_v58  ;;  %299 = vst.msk [vmem:[#allocation2 + $0xe8] sm:$0xff] %vm269_vm0, %v2698_v57  ;;  %v2786_v14 = vsel %vm350_vm1, %v392_v53, %v394_v60  ;;  %v399_v34 = vrot.slane %v2779_v9, 1  ;;  %v2807_v53 = vsel %vm350_vm1, %v396_v39, %v397_v21  ;;  %v401_v4 = vrot.slane %v2639_v44, 1 }
  0x2a   : > { %4027 = vst [vmem:[#allocation13_spill] sm:$0xff] %v2723_v3  ;;  %300 = vst.msk [vmem:[#allocation2 + $0xf0] sm:$0xff] %vm269_vm0, %v2716_v63  ;;  %v406_v39 = vrot.slane %v2653_v46, 1  ;;  %v2875_v3 = vld [vmem:[%s2492_s20 + $0x178] sm:$0x3] }
  0x2b   : > { %301 = vst.msk [vmem:[#allocation2 + $0xf8] sm:$0xff] %vm269_vm0, %v2713_v62  ;;  %4028 = vst [vmem:[#allocation14_spill] sm:$0xff] %v2738_v8  ;;  %453 = vrot.lane.b32.xlu1 %v2738_v8, %s2445_s21  ;;  %v2802_v60 = vsel %vm350_vm1, %v397_v21, %v399_v34  ;;  %v2827_v8 = vld [vmem:[%s2492_s20 + $0x130] sm:$0x3] }
  0x2c   : > { %4029 = vst [vmem:[#allocation15_spill] sm:$0xff] %v2743_v17  ;;  %451 = vrot.lane.b32.xlu0 %v2743_v17, %s2445_s21  ;;  %4030 = vst [vmem:[#allocation16_spill] sm:$0xff] %v2754_v25  ;;  %v2843_v17 = vld [vmem:[%s2492_s20 + $0x148] sm:$0x3] }
  0x2d   : > { %4031 = vst [vmem:[#allocation17_spill] sm:$0xff] %v2759_v35  ;;  %4032 = vst [vmem:[#allocation18_spill] sm:$0xff] %v2770_v49 }
  0x2e   : > { %4033 = vst [vmem:[#allocation19_spill] sm:$0xff] %v2775_v61  ;;  %4034 = vst [vmem:[#allocation20_spill] sm:$0xff] %v2786_v14 }
  0x2f   : > { %457 = vrot.lane.b32.xlu1 %v2754_v25, %s2445_s21  ;;  %4035 = vst [vmem:[#allocation21_spill] sm:$0xff] %v2791_v26  ;;  %v2795_v25 = vld [vmem:[%s2492_s20 + $0x100] sm:$0x3]  ;;  %4036 = vst [vmem:[#allocation22_spill] sm:$0xff] %v2802_v60 }
  0x30   : > { %455 = vrot.lane.b32.xlu0 %v2759_v35, %s2445_s21  ;;  %4037 = vst [vmem:[#allocation23_spill] sm:$0xff] %v2807_v53  ;;  %v2811_v35 = vld [vmem:[%s2492_s20 + $0x118] sm:$0x3] }
  0x33   : > { %461 = vrot.lane.b32.xlu1 %v2770_v49, %s2445_s21  ;;  %v402_v49 = vrot.slane %v2636_v43, 1 }
  0x34   : > { %459 = vrot.lane.b32.xlu0 %v2775_v61, %s2445_s21  ;;  %v404_v61 = vrot.slane %v2795_v25, 1 }
  0x35   : > { %v2823_v21 = vsel %vm350_vm1, %v401_v4, %v402_v49  ;;  %v411_v4 = vrot.slane %v2670_v51, 1 }
  0x36   : > { %v2818_v34 = vsel %vm350_vm1, %v402_v49, %v404_v61  ;;  %4039 = vst [vmem:[#allocation25_spill] sm:$0xff] %v2823_v21 }
  0x37   : > { %465 = vrot.lane.b32.xlu1 %v2786_v14, %s2445_s21  ;;  %4038 = vst [vmem:[#allocation24_spill] sm:$0xff] %v2818_v34  ;;  %v407_v14 = vrot.slane %v2650_v45, 1 }
  0x38   : > { %463 = vrot.lane.b32.xlu0 %v2791_v26, %s2445_s21  ;;  %v409_v26 = vrot.slane %v2811_v35, 1 }
  0x39   : > { %v2839_v49 = vsel %vm350_vm1, %v406_v39, %v407_v14  ;;  %v416_v39 = vrot.slane %v2691_v56, 1 }
  0x3a   : > { %v2834_v61 = vsel %vm350_vm1, %v407_v14, %v409_v26  ;;  %4041 = vst [vmem:[#allocation27_spill] sm:$0xff] %v2839_v49 }
  0x3b   : > { %469 = vrot.lane.b32.xlu1 %v2802_v60, %s2445_s21  ;;  %4040 = vst [vmem:[#allocation26_spill] sm:$0xff] %v2834_v61  ;;  %v412_v60 = vrot.slane %v2667_v50, 1 }
  0x3c   : > { %467 = vrot.lane.b32.xlu0 %v2807_v53, %s2445_s21  ;;  %v414_v53 = vrot.slane %v2827_v8, 1 }
  0x3d   : > { %v2855_v14 = vsel %vm350_vm1, %v411_v4, %v412_v60  ;;  %v421_v4 = vrot.slane %v2701_v58, 1 }
  0x3e   : > { %v2850_v26 = vsel %vm350_vm1, %v412_v60, %v414_v53  ;;  %4043 = vst [vmem:[#allocation29_spill] sm:$0xff] %v2855_v14 }
  0x3f   : > { %473 = vrot.lane.b32.xlu1 %v2818_v34, %s2445_s21  ;;  %4042 = vst [vmem:[#allocation28_spill] sm:$0xff] %v2850_v26  ;;  %v417_v34 = vrot.slane %v2684_v55, 1 }
  0x40   : > { %471 = vrot.lane.b32.xlu0 %v2823_v21, %s2445_s21  ;;  %v419_v21 = vrot.slane %v2843_v17, 1 }
  0x41   : > { %v2871_v60 = vsel %vm350_vm1, %v416_v39, %v417_v34  ;;  %v426_v39 = vrot.slane %v2716_v63, 1 }
  0x42   : > { %v2866_v53 = vsel %vm350_vm1, %v417_v34, %v419_v21  ;;  %4045 = vst [vmem:[#allocation31_spill] sm:$0xff] %v2871_v60 }
  0x43   : > { %477 = vrot.lane.b32.xlu1 %v2834_v61, %s2445_s21  ;;  %4044 = vst [vmem:[#allocation30_spill] sm:$0xff] %v2866_v53  ;;  %v422_v61 = vrot.slane %v2698_v57, 1 }
  0x44   : > { %475 = vrot.lane.b32.xlu0 %v2839_v49, %s2445_s21  ;;  %v424_v49 = vrot.slane %v2859_v59, 1 }
  0x45   : > { %v2887_v34 = vsel %vm350_vm1, %v421_v4, %v422_v61 }
  0x46   : > { %v2882_v21 = vsel %vm350_vm1, %v422_v61, %v424_v49  ;;  %4047 = vst [vmem:[#allocation33_spill] sm:$0xff] %v2887_v34  ;;  %v562_v49 = vrot.slane %v2506_v5, 2  ;;  %v561_v61 = vrot.slane %v2501_v2, 2  ;;  %v569_v5 = vrot.slane %v2510_v7, 2 }
  0x47   : > { %481 = vrot.lane.b32.xlu1 %v2850_v26, %s2445_s21  ;;  %4046 = vst [vmem:[#allocation32_spill] sm:$0xff] %v2882_v21  ;;  %v427_v26 = vrot.slane %v2713_v62, 1  ;;  %v571_v7 = vrot.slane %v2527_v12, 2 }
  0x48   : > { %479 = vrot.lane.b32.xlu0 %v2855_v14, %s2445_s21  ;;  %v429_v14 = vrot.slane %v2875_v3, 1 }
  0x49   : > { %v2900_v47 = vsel %vm350_vm1, %v426_v39, %v427_v26  ;;  %v572_v39 = vrot.slane %v2524_v11, 2 }
  0x4a   : > { %4049 = vst [vmem:[#allocation35_spill] sm:$0xff] %v2900_v47 }
  0x4b   : > { %485 = vrot.lane.b32.xlu1 %v2866_v53, %s2445_s21  ;;  %v2895_v53 = vsel %vm350_vm1, %v427_v26, %v429_v14  ;;  %v567_v14 = vrot.slane %v2498_v1, 2  ;;  %v566_v26 = vrot.slane %v2495_v0, 2 }
  0x4c   : > { %483 = vrot.lane.b32.xlu0 %v2871_v60, %s2445_s21  ;;  %4048 = vst [vmem:[#allocation34_spill] sm:$0xff] %v2895_v53  ;;  %v564_v60 = vrot.slane %v2521_v10, 2  ;;  %v563_v10 = vsel %vm560_vm2, %v561_v61, %v562_v49  ;;  %v577_v61 = vrot.slane %v2539_v16, 2 }
  0x4d   : > { %v2915_v2 = vsel %vm560_vm2, %v567_v14, %v569_v5 }
  0x4e   : > { %v565_v4 = vsel %vm560_vm2, %v562_v49, %v564_v60  ;;  %v574_v60 = vrot.slane %v2536_v15, 2  ;;  %v2933_v15 = vsel %vm560_vm2, %v571_v7, %v572_v39  ;;  %v587_v7 = vrot.slane %v2566_v24, 2 }
  0x4f   : > { %489 = vrot.lane.b32.xlu1 %v2882_v21, %s2445_s21  ;;  %v599_v21 = vrot.slane %v2747_v22, 2 }
  0x50   : > { %487 = vrot.lane.b32.xlu0 %v2887_v34, %s2445_s21  ;;  %v2928_v49 = vsel %vm560_vm2, %v572_v39, %v574_v60  ;;  %v581_v39 = vrot.slane %v2563_v23, 2  ;;  %v604_v34 = vrot.slane %v2763_v48, 2 }
  0x53   : > { %493 = vrot.lane.b32.xlu1 %v2895_v53, %s2445_s21  ;;  %v2920_v53 = vsel %vm560_vm2, %v566_v26, %v567_v14  ;;  %v576_v14 = vrot.slane %v2549_v18, 2  ;;  %v584_v26 = vrot.slane %v2611_v36, 2 }
  0x54   : > { %491 = vrot.lane.b32.xlu0 %v2900_v47, %s2445_s21  ;;  %v594_v47 = vrot.slane %v2727_v6, 2 }
  0x57   : > { %643 = vrot.lane.b32.xlu1 %v565_v4, %s2446_s22  ;;  %v579_v4 = vrot.slane %v2575_v27, 2  ;;  %v2946_v27 = vsel %vm560_vm2, %v576_v14, %v577_v61 }
  0x58   : > { %641 = vrot.lane.b32.xlu0 %v563_v10, %s2446_s22  ;;  %v582_v10 = vrot.slane %v2552_v19, 2 }
  0x59   : > { %v2941_v5 = vsel %vm560_vm2, %v577_v61, %v579_v4  ;;  %v589_v4 = vrot.slane %v2681_v54, 2  ;;  %v586_v61 = vrot.slane %v2578_v28, 2 }
  0x5a   : > { %v2954_v60 = vsel %vm560_vm2, %v582_v10, %v584_v26  ;;  %v2959_v36 = vsel %vm560_vm2, %v581_v39, %v582_v10  ;;  %v592_v26 = vrot.slane %v2585_v29, 2  ;;  %v591_v10 = vrot.slane %v2588_v30, 2 }
  0x5b   : > { %647 = vrot.lane.b32.xlu1 %v2915_v2, %s2446_s22  ;;  %v2967_v14 = vsel %vm560_vm2, %v587_v7, %v589_v4  ;;  %v2972_v54 = vsel %vm560_vm2, %v586_v61, %v587_v7  ;;  %v597_v4 = vrot.slane %v2595_v31, 2  ;;  %v596_v7 = vrot.slane %v2598_v32, 2 }
  0x5c   : > { %645 = vrot.lane.b32.xlu0 %v2920_v53, %s2446_s22  ;;  %v2980_v39 = vsel %vm560_vm2, %v592_v26, %v594_v47  ;;  %v2985_v6 = vsel %vm560_vm2, %v591_v10, %v592_v26  ;;  %v602_v47 = vrot.slane %v2614_v37, 2  ;;  %v601_v26 = vrot.slane %v2625_v40, 2 }
  0x5d   : > { %v2993_v61 = vsel %vm560_vm2, %v597_v4, %v599_v21  ;;  %v2998_v22 = vsel %vm560_vm2, %v596_v7, %v597_v4  ;;  %v607_v21 = vrot.slane %v2628_v41, 2  ;;  %v609_v37 = vrot.slane %v2779_v9, 2 }
  0x5e   : > { %v3006_v10 = vsel %vm560_vm2, %v602_v47, %v604_v34  ;;  %v3011_v48 = vsel %vm560_vm2, %v601_v26, %v602_v47  ;;  %v606_v4 = vrot.slane %v2631_v42, 2  ;;  %v612_v34 = vrot.slane %v2636_v43, 2 }
  0x5f   : > { %651 = vrot.lane.b32.xlu1 %v2928_v49, %s2446_s22  ;;  %v3019_v7 = vsel %vm560_vm2, %v607_v21, %v609_v37  ;;  %v614_v41 = vrot.slane %v2795_v25, 2  ;;  %v611_v47 = vrot.slane %v2639_v44, 2  ;;  %v617_v37 = vrot.slane %v2650_v45, 2 }
  0x60   : > { %649 = vrot.lane.b32.xlu0 %v2933_v15, %s2446_s22  ;;  %v3024_v9 = vsel %vm560_vm2, %v606_v4, %v607_v21  ;;  %v619_v43 = vrot.slane %v2811_v35, 2  ;;  %v616_v21 = vrot.slane %v2653_v46, 2  ;;  %v624_v45 = vrot.slane %v2827_v8, 2 }
  0x61   : > { %v3032_v26 = vsel %vm560_vm2, %v612_v34, %v614_v41  ;;  %v3037_v25 = vsel %vm560_vm2, %v611_v47, %v612_v34  ;;  %v622_v41 = vrot.slane %v2667_v50, 2  ;;  %v621_v34 = vrot.slane %v2670_v51, 2 }
  0x62   : > { %v3045_v4 = vsel %vm560_vm2, %v617_v37, %v619_v43  ;;  %v3050_v35 = vsel %vm560_vm2, %v616_v21, %v617_v37  ;;  %v627_v43 = vrot.slane %v2684_v55, 2  ;;  %v629_v50 = vrot.slane %v2843_v17, 2 }
  0x63   : > { %655 = vrot.lane.b32.xlu1 %v2941_v5, %s2446_s22  ;;  %v3058_v47 = vsel %vm560_vm2, %v622_v41, %v624_v45  ;;  %v3063_v8 = vsel %vm560_vm2, %v621_v34, %v622_v41  ;;  %v626_v37 = vrot.slane %v2691_v56, 2  ;;  %v632_v45 = vrot.slane %v2698_v57, 2 }
  0x64   : > { %653 = vrot.lane.b32.xlu0 %v2946_v27, %s2446_s22  ;;  %v3071_v21 = vsel %vm560_vm2, %v627_v43, %v629_v50  ;;  %v634_v55 = vrot.slane %v2859_v59, 2  ;;  %v631_v34 = vrot.slane %v2701_v58, 2  ;;  %v637_v59 = vrot.slane %v2713_v62, 2 }
  0x65   : > { %v3076_v41 = vsel %vm560_vm2, %v626_v37, %v627_v43  ;;  %v639_v43 = vrot.slane %v2875_v3, 2 }
  0x66   : > { %v3086_v50 = vsel %vm560_vm2, %v632_v45, %v634_v55  ;;  %v3091_v57 = vsel %vm560_vm2, %v631_v34, %v632_v45 }
  0x67   : > { %659 = vrot.lane.b32.xlu1 %v2954_v60, %s2446_s22  ;;  %v3101_v55 = vsel %vm560_vm2, %v637_v59, %v639_v43 }
  0x68   : > { %657 = vrot.lane.b32.xlu0 %v2959_v36, %s2446_s22 }
  0x6b   : > { %663 = vrot.lane.b32.xlu1 %v2967_v14, %s2446_s22 }
  0x6c   : > { %661 = vrot.lane.b32.xlu0 %v2972_v54, %s2446_s22 }
  0x6f   : > { %667 = vrot.lane.b32.xlu1 %v2980_v39, %s2446_s22 }
  0x70   : > { %665 = vrot.lane.b32.xlu0 %v2985_v6, %s2446_s22 }
  0x73   : > { %671 = vrot.lane.b32.xlu1 %v2993_v61, %s2446_s22 }
  0x74   : > { %669 = vrot.lane.b32.xlu0 %v2998_v22, %s2446_s22 }
  0x77   : > { %675 = vrot.lane.b32.xlu1 %v3006_v10, %s2446_s22 }
  0x78   : > { %673 = vrot.lane.b32.xlu0 %v3011_v48, %s2446_s22 }
  0x7b   : > { %679 = vrot.lane.b32.xlu1 %v3019_v7, %s2446_s22 }
  0x7c   : > { %677 = vrot.lane.b32.xlu0 %v3024_v9, %s2446_s22 }
  0x7f   : > { %683 = vrot.lane.b32.xlu1 %v3032_v26, %s2446_s22 }
  0x80   : > { %681 = vrot.lane.b32.xlu0 %v3037_v25, %s2446_s22 }
  0x83   : > { %687 = vrot.lane.b32.xlu1 %v3045_v4, %s2446_s22 }
  0x84   : > { %685 = vrot.lane.b32.xlu0 %v3050_v35, %s2446_s22 }
  0x87   : > { %691 = vrot.lane.b32.xlu1 %v3058_v47, %s2446_s22 }
  0x88   : > { %689 = vrot.lane.b32.xlu0 %v3063_v8, %s2446_s22 }
  0x89   : > { %v436_v17 = vpop.permute.xlu1 %435 }
  0x8a   : > { %530 = vst.msk [vmem:[#allocation2 + $0x10] sm:$0xff] %vm527_vm3, %v436_v17  ;;  %v432_v56 = vpop.permute.xlu0 %431  ;;  %v636_v17 = vrot.slane %v2716_v63, 2 }
  0x8b   : > { %528 = vst.msk [vmem:[#allocation2] sm:$0xff] %vm527_vm3, %v432_v56  ;;  %695 = vrot.lane.b32.xlu1 %v3071_v21, %s2446_s22 }
  0x8c   : > { %693 = vrot.lane.b32.xlu0 %v3076_v41, %s2446_s22  ;;  %v3104_v45 = vsel %vm560_vm2, %v636_v17, %v637_v59 }
  0x8d   : > { %v438_v37 = vpop.permute.xlu1 %437 }
  0x8e   : > { %531 = vst.msk [vmem:[#allocation2 + $0x18] sm:$0xff] %vm527_vm3, %v438_v37  ;;  %v434_v56 = vpop.permute.xlu0 %433 }
  0x8f   : > { %529 = vst.msk [vmem:[#allocation2 + $0x8] sm:$0xff] %vm527_vm3, %v434_v56  ;;  %699 = vrot.lane.b32.xlu1 %v3086_v50, %s2446_s22 }
  0x90   : > { %697 = vrot.lane.b32.xlu0 %v3091_v57, %s2446_s22 }
  0x91   : > { %v442_v3 = vpop.permute.xlu1 %441 }
  0x92   : > { %533 = vst.msk [vmem:[#allocation2 + $0x28] sm:$0xff] %vm527_vm3, %v442_v3  ;;  %v440_v34 = vpop.permute.xlu0 %439 }
  0x93   : > { %532 = vst.msk [vmem:[#allocation2 + $0x20] sm:$0xff] %vm527_vm3, %v440_v34  ;;  %703 = vrot.lane.b32.xlu1 %v3101_v55, %s2446_s22 }
  0x94   : > { %701 = vrot.lane.b32.xlu0 %v3104_v45, %s2446_s22 }
  0x95   : > { %v446_v37 = vpop.permute.xlu1 %445 }
  0x96   : > { %535 = vst.msk [vmem:[#allocation2 + $0x38] sm:$0xff] %vm527_vm3, %v446_v37  ;;  %v444_v43 = vpop.permute.xlu0 %443 }
  0x97   : > { %534 = vst.msk [vmem:[#allocation2 + $0x30] sm:$0xff] %vm527_vm3, %v444_v43  ;;  %774 = vrot.lane.b32.xlu1 %v2498_v1, %s2447_s23 }
  0x98   : > { %772 = vrot.lane.b32.xlu0 %v2495_v0, %s2447_s23 }
  0x99   : > { %v450_v59 = vpop.permute.xlu1 %449 }
  0x9a   : > { %537 = vst.msk [vmem:[#allocation2 + $0x48] sm:$0xff] %vm527_vm3, %v450_v59  ;;  %v448_v17 = vpop.permute.xlu0 %447 }
  0x9b   : > { %536 = vst.msk [vmem:[#allocation2 + $0x40] sm:$0xff] %vm527_vm3, %v448_v17  ;;  %778 = vrot.lane.b32.xlu1 %v2524_v11, %s2447_s23  ;;  %v1602_v17 = vld [vmem:[%s3947_s1] sm:$0xff] }
  0x9c   : > { %776 = vrot.lane.b32.xlu0 %v2527_v12, %s2447_s23 }
  0x9d   : > { %v454_v56 = vpop.permute.xlu1 %453 }
  0x9e   : > { %539 = vst.msk [vmem:[#allocation2 + $0x58] sm:$0xff] %vm527_vm3, %v454_v56  ;;  %v452_v3 = vpop.permute.xlu0 %451  ;;  %v1603_v56 = vld [vmem:[%s3947_s1 + $0x8] sm:$0xff] }
  0x9f   : > { %538 = vst.msk [vmem:[#allocation2 + $0x50] sm:$0xff] %vm527_vm3, %v452_v3  ;;  %782 = vrot.lane.b32.xlu1 %v2539_v16, %s2447_s23  ;;  %v2394_v3 = vpack.c.bf16 %v1603_v56, %v1602_v17  ;;  %v1606_v17 = vld [vmem:[%s3947_s1 + $0x20] sm:$0xff]  ;;  %v1607_v56 = vld [vmem:[%s3947_s1 + $0x28] sm:$0xff] }
  0xa0   : > { %780 = vrot.lane.b32.xlu0 %v2549_v18, %s2447_s23 }
  0xa1   : > { %v458_v0 = vpop.permute.xlu1 %457  ;;  %2395 = vmatprep.subr.bf16.mxu0 %v2394_v3  ;;  %2410 = vmatprep.subr.bf16.mxu1 %v2394_v3 }
  0xa2   : > { %541 = vst.msk [vmem:[#allocation2 + $0x68] sm:$0xff] %vm527_vm3, %v458_v0  ;;  %v456_v1 = vpop.permute.xlu0 %455  ;;  %2397 = vmatpush3.bf16.msra.mxu0 %v2394_v3  ;;  %2415 = vmatpush3.bf16.msra.mxu1 %v2394_v3 }
  0xa3   : > { %540 = vst.msk [vmem:[#allocation2 + $0x60] sm:$0xff] %vm527_vm3, %v456_v1  ;;  %786 = vrot.lane.b32.xlu1 %v2552_v19, %s2447_s23 }
  0xa4   : > { %784 = vrot.lane.b32.xlu0 %v2563_v23, %s2447_s23 }
  0xa5   : > { %v462_v34 = vpop.permute.xlu1 %461 }
  0xa6   : > { %543 = vst.msk [vmem:[#allocation2 + $0x78] sm:$0xff] %vm527_vm3, %v462_v34  ;;  %v460_v37 = vpop.permute.xlu0 %459  ;;  %v1604_v34 = vld [vmem:[%s3947_s1 + $0x10] sm:$0xff] }
  0xa7   : > { %542 = vst.msk [vmem:[#allocation2 + $0x70] sm:$0xff] %vm527_vm3, %v460_v37  ;;  %790 = vrot.lane.b32.xlu1 %v2566_v24, %s2447_s23  ;;  %v1605_v37 = vld [vmem:[%s3947_s1 + $0x18] sm:$0xff] }
  0xa8   : > { %788 = vrot.lane.b32.xlu0 %v2578_v28, %s2447_s23 }
  0xa9   : > { %v466_v43 = vpop.permute.xlu1 %465 }
  0xaa   : > { %545 = vst.msk [vmem:[#allocation2 + $0x88] sm:$0xff] %vm527_vm3, %v466_v43  ;;  %v464_v59 = vpop.permute.xlu0 %463 }
  0xab   : > { %544 = vst.msk [vmem:[#allocation2 + $0x80] sm:$0xff] %vm527_vm3, %v464_v59  ;;  %907 = vrot.lane.b32.xlu1 %v2532_v13, %s2448_s28  ;;  %v2398_v13 = vpack.c.bf16 %v1605_v37, %v1604_v34 }
  0xac   : > { %792 = vrot.lane.b32.xlu0 %v2588_v30, %s2447_s23 }
  0xad   : > { %v470_v0 = vpop.permute.xlu1 %469  ;;  %2399 = vmatprep.subr.bf16.mxu0 %v2398_v13  ;;  %2411 = vmatprep.subr.bf16.mxu1 %v2398_v13 }
  0xae   : > { %547 = vst.msk [vmem:[#allocation2 + $0x98] sm:$0xff] %vm527_vm3, %v470_v0  ;;  %v468_v1 = vpop.permute.xlu0 %467  ;;  %2401 = vmatpush3.bf16.msra.mxu0 %v2398_v13  ;;  %2416 = vmatpush3.bf16.msra.mxu1 %v2398_v13  ;;  %v1608_v0 = vld [vmem:[%s3947_s1 + $0x30] sm:$0xff] }
  0xaf   : > { %546 = vst.msk [vmem:[#allocation2 + $0x90] sm:$0xff] %vm527_vm3, %v468_v1  ;;  %1041 = vrot.lane.b32.xlu1 %v2920_v53, %s2449_s7  ;;  %v1609_v1 = vld [vmem:[%s3947_s1 + $0x38] sm:$0xff] }
  0xb0   : > { %909 = vrot.lane.b32.xlu0 %v2558_v20, %s2448_s28  ;;  %v2402_v20 = vpack.c.bf16 %v1607_v56, %v1606_v17 }
  0xb1   : > { %v474_v43 = vpop.permute.xlu1 %473 }
  0xb2   : > { %549 = vst.msk [vmem:[#allocation2 + $0xa8] sm:$0xff] %vm527_vm3, %v474_v43  ;;  %v472_v59 = vpop.permute.xlu0 %471  ;;  %2403 = vmatprep.subr.bf16.mxu0 %v2402_v20  ;;  %2412 = vmatprep.subr.bf16.mxu1 %v2402_v20 }
  0xb3   : > { %548 = vst.msk [vmem:[#allocation2 + $0xa0] sm:$0xff] %vm527_vm3, %v472_v59  ;;  %1172 = vrot.lane.b32.xlu1 %v2527_v12, %s2450_s12  ;;  %2405 = vmatpush3.bf16.msra.mxu0 %v2402_v20  ;;  %v2406_v12 = vpack.c.bf16 %v1609_v1, %v1608_v0 }
  0xb4   : > { %1043 = vrot.lane.b32.xlu0 %v2915_v2, %s2449_s7  ;;  %2417 = vmatpush3.bf16.msra.mxu1 %v2402_v20 }
  0xb5   : > { %v478_v53 = vpop.permute.xlu1 %477  ;;  %2407 = vmatprep.subr.bf16.mxu0 %v2406_v12  ;;  %2413 = vmatprep.subr.bf16.mxu1 %v2406_v12 }
  0xb6   : > { %551 = vst.msk [vmem:[#allocation2 + $0xb8] sm:$0xff] %vm527_vm3, %v478_v53  ;;  %v476_v3 = vpop.permute.xlu0 %475 }
  0xb7   : > { %550 = vst.msk [vmem:[#allocation2 + $0xb0] sm:$0xff] %vm527_vm3, %v476_v3  ;;  %1307 = vrot.lane.b32.xlu1 %v2621_v38, %s2451_s19  ;;  %2409 = vmatpush3.bf16.msra.mxu0 %v2406_v12 }
  0xb8   : > { %1174 = vrot.lane.b32.xlu0 %v2524_v11, %s2450_s12  ;;  %2418 = vmatpush3.bf16.msra.mxu1 %v2406_v12  ;;  %v1610_v11 = vld [vmem:[%s3947_s1 + $0x40] sm:$0xff] }
  0xb9   : > { %v482_v2 = vpop.permute.xlu1 %481  ;;  %2344 = vmatprep.subr.mxu0 %v1610_v11  ;;  %2414 = vmatprep.subr.mxu1 %v1610_v11 }
  0xba   : > { %553 = vst.msk [vmem:[#allocation2 + $0xc8] sm:$0xff] %vm527_vm3, %v482_v2  ;;  %v480_v34 = vpop.permute.xlu0 %479 }
  0xbb   : > { %552 = vst.msk [vmem:[#allocation2 + $0xc0] sm:$0xff] %vm527_vm3, %v480_v34  ;;  %1309 = vrot.lane.b32.xlu1 %v2606_v33, %s2451_s19  ;;  %2345 = vmatpush3.msra.mxu0 %v1610_v11 }
  0xbc   : > { %911 = vrot.lane.b32.xlu0 %v2621_v38, %s2448_s28  ;;  %2419 = vmatpush3.msra.mxu1 %v1610_v11 }
  0xbd   : > { %v486_v37 = vpop.permute.xlu1 %485 }
  0xbe   : > { %555 = vst.msk [vmem:[#allocation2 + $0xd8] sm:$0xff] %vm527_vm3, %v486_v37  ;;  %v484_v13 = vpop.permute.xlu0 %483 }
  0xbf   : > { %554 = vst.msk [vmem:[#allocation2 + $0xd0] sm:$0xff] %vm527_vm3, %v484_v13  ;;  %913 = vrot.lane.b32.xlu1 %v2606_v33, %s2448_s28 }
  0xc0   : > { %1441 = vrot.lane.b32.xlu0 %v2933_v15, %s2452_s24 }
  0xc1   : > { %v490_v38 = vpop.permute.xlu1 %489 }
  0xc2   : > { %557 = vst.msk [vmem:[#allocation2 + $0xe8] sm:$0xff] %vm527_vm3, %v490_v38  ;;  %v488_v43 = vpop.permute.xlu0 %487 }
  0xc3   : > { %556 = vst.msk [vmem:[#allocation2 + $0xe0] sm:$0xff] %vm527_vm3, %v488_v43  ;;  %1443 = vrot.lane.b32.xlu1 %v2928_v49, %s2452_s24 }
  0xc4   : > { %1045 = vrot.lane.b32.xlu0 %v2933_v15, %s2449_s7 }
  0xc5   : > { %v494_v59 = vpop.permute.xlu1 %493 }
  0xc6   : > { %559 = vst.msk [vmem:[#allocation2 + $0xf8] sm:$0xff] %vm527_vm3, %v494_v59  ;;  %v492_v33 = vpop.permute.xlu0 %491 }
  0xc7   : > { %558 = vst.msk [vmem:[#allocation2 + $0xf0] sm:$0xff] %vm527_vm3, %v492_v33  ;;  %1176 = vrot.lane.b32.xlu1 %v2549_v18, %s2450_s12 }
  0xc8   : > { %1047 = vrot.lane.b32.xlu0 %v2928_v49, %s2449_s7  ;;  %v4050_v49 = vld [vmem:[#allocation7_spill] sm:$0xff] }
  0xc9   : > { %v644_v17 = vpop.permute.xlu1 %643 }
  0xca   : > { %739 = vst.msk [vmem:[#allocation2 + $0x8] sm:$0xff] %vm737_vm4, %v644_v17  ;;  %v642_v56 = vpop.permute.xlu0 %641 }
  0xcb   : > { %738 = vst.msk [vmem:[#allocation2] sm:$0xff] %vm737_vm4, %v642_v56  ;;  %1311 = vrot.lane.b32.xlu1 %v2677_v52, %s2451_s19 }
  0xcc   : > { %1178 = vrot.lane.b32.xlu0 %v2539_v16, %s2450_s12 }
  0xcd   : > { %v648_v15 = vpop.permute.xlu1 %647 }
  0xce   : > { %741 = vst.msk [vmem:[#allocation2 + $0x18] sm:$0xff] %vm737_vm4, %v648_v15  ;;  %v646_v18 = vpop.permute.xlu0 %645 }
  0xcf   : > { %740 = vst.msk [vmem:[#allocation2 + $0x10] sm:$0xff] %vm737_vm4, %v646_v18  ;;  %1313 = vrot.lane.b32.xlu1 %v4050_v49, %s2451_s19 }
  0xd0   : > { %915 = vrot.lane.b32.xlu0 %v2677_v52, %s2448_s28 }
  0xd1   : > { %v652_v20 = vpop.permute.xlu1 %651 }
  0xd2   : > { %743 = vst.msk [vmem:[#allocation2 + $0x28] sm:$0xff] %vm737_vm4, %v652_v20  ;;  %v650_v53 = vpop.permute.xlu0 %649 }
  0xd3   : > { %742 = vst.msk [vmem:[#allocation2 + $0x20] sm:$0xff] %vm737_vm4, %v650_v53  ;;  %917 = vrot.lane.b32.xlu1 %v4050_v49, %s2448_s28 }
  0xd4   : > { %1445 = vrot.lane.b32.xlu0 %v2946_v27, %s2452_s24 }
  0xd5   : > { %v656_v16 = vpop.permute.xlu1 %655 }
  0xd6   : > { %745 = vst.msk [vmem:[#allocation2 + $0x38] sm:$0xff] %vm737_vm4, %v656_v16  ;;  %v654_v3 = vpop.permute.xlu0 %653 }
  0xd7   : > { %744 = vst.msk [vmem:[#allocation2 + $0x30] sm:$0xff] %vm737_vm4, %v654_v3  ;;  %1447 = vrot.lane.b32.xlu1 %v2941_v5, %s2452_s24 }
  0xd8   : > { %1049 = vrot.lane.b32.xlu0 %v2946_v27, %s2449_s7  ;;  %v4051_v27 = vld [vmem:[#allocation13_spill] sm:$0xff] }
  0xd9   : > { %v660_v52 = vpop.permute.xlu1 %659 }
  0xda   : > { %747 = vst.msk [vmem:[#allocation2 + $0x48] sm:$0xff] %vm737_vm4, %v660_v52  ;;  %v658_v0 = vpop.permute.xlu0 %657  ;;  %v4056_v52 = vld [vmem:[#allocation16_spill] sm:$0xff] }
  0xdb   : > { %746 = vst.msk [vmem:[#allocation2 + $0x40] sm:$0xff] %vm737_vm4, %v658_v0  ;;  %1180 = vrot.lane.b32.xlu1 %v2563_v23, %s2450_s12  ;;  %v4052_v23 = vld [vmem:[#allocation12_spill] sm:$0xff] }
  0xdc   : > { %1051 = vrot.lane.b32.xlu0 %v2941_v5, %s2449_s7 }
  0xdd   : > { %v664_v1 = vpop.permute.xlu1 %663 }
  0xde   : > { %749 = vst.msk [vmem:[#allocation2 + $0x58] sm:$0xff] %vm737_vm4, %v664_v1  ;;  %v662_v12 = vpop.permute.xlu0 %661 }
  0xdf   : > { %748 = vst.msk [vmem:[#allocation2 + $0x50] sm:$0xff] %vm737_vm4, %v662_v12  ;;  %1315 = vrot.lane.b32.xlu1 %v4051_v27, %s2451_s19 }
  0xe0   : > { %1182 = vrot.lane.b32.xlu0 %v2552_v19, %s2450_s12 }
  0xe1   : > { %v668_v2 = vpop.permute.xlu1 %667 }
  0xe2   : > { %751 = vst.msk [vmem:[#allocation2 + $0x68] sm:$0xff] %vm737_vm4, %v668_v2  ;;  %v666_v34 = vpop.permute.xlu0 %665 }
  0xe3   : > { %750 = vst.msk [vmem:[#allocation2 + $0x60] sm:$0xff] %vm737_vm4, %v666_v34  ;;  %1317 = vrot.lane.b32.xlu1 %v4052_v23, %s2451_s19 }
  0xe4   : > { %919 = vrot.lane.b32.xlu0 %v4051_v27, %s2448_s28 }
  0xe5   : > { %v672_v5 = vpop.permute.xlu1 %671 }
  0xe6   : > { %753 = vst.msk [vmem:[#allocation2 + $0x78] sm:$0xff] %vm737_vm4, %v672_v5  ;;  %v670_v11 = vpop.permute.xlu0 %669 }
  0xe7   : > { %752 = vst.msk [vmem:[#allocation2 + $0x70] sm:$0xff] %vm737_vm4, %v670_v11  ;;  %921 = vrot.lane.b32.xlu1 %v4052_v23, %s2448_s28 }
  0xe8   : > { %1449 = vrot.lane.b32.xlu0 %v2959_v36, %s2452_s24 }
  0xe9   : > { %v676_v19 = vpop.permute.xlu1 %675 }
  0xea   : > { %755 = vst.msk [vmem:[#allocation2 + $0x88] sm:$0xff] %vm737_vm4, %v676_v19  ;;  %v674_v37 = vpop.permute.xlu0 %673  ;;  %v4058_v19 = vld [vmem:[#allocation18_spill] sm:$0xff] }
  0xeb   : > { %754 = vst.msk [vmem:[#allocation2 + $0x80] sm:$0xff] %vm737_vm4, %v674_v37  ;;  %1451 = vrot.lane.b32.xlu1 %v2954_v60, %s2452_s24 }
  0xec   : > { %1053 = vrot.lane.b32.xlu0 %v2959_v36, %s2449_s7  ;;  %v4053_v36 = vld [vmem:[#allocation15_spill] sm:$0xff] }
  0xed   : > { %v680_v13 = vpop.permute.xlu1 %679 }
  0xee   : > { %757 = vst.msk [vmem:[#allocation2 + $0x98] sm:$0xff] %vm737_vm4, %v680_v13  ;;  %v678_v38 = vpop.permute.xlu0 %677 }
  0xef   : > { %756 = vst.msk [vmem:[#allocation2 + $0x90] sm:$0xff] %vm737_vm4, %v678_v38  ;;  %1184 = vrot.lane.b32.xlu1 %v2578_v28, %s2450_s12  ;;  %v4054_v28 = vld [vmem:[#allocation14_spill] sm:$0xff] }
  0xf0   : > { %1055 = vrot.lane.b32.xlu0 %v2954_v60, %s2449_s7 }
  0xf1   : > { %v684_v43 = vpop.permute.xlu1 %683 }
  0xf2   : > { %759 = vst.msk [vmem:[#allocation2 + $0xa8] sm:$0xff] %vm737_vm4, %v684_v43  ;;  %v682_v59 = vpop.permute.xlu0 %681 }
  0xf3   : > { %758 = vst.msk [vmem:[#allocation2 + $0xa0] sm:$0xff] %vm737_vm4, %v682_v59  ;;  %1319 = vrot.lane.b32.xlu1 %v4053_v36, %s2451_s19 }
  0xf4   : > { %1186 = vrot.lane.b32.xlu0 %v2566_v24, %s2450_s12 }
  0xf5   : > { %v688_v33 = vpop.permute.xlu1 %687 }
  0xf6   : > { %761 = vst.msk [vmem:[#allocation2 + $0xb8] sm:$0xff] %vm737_vm4, %v688_v33  ;;  %v686_v17 = vpop.permute.xlu0 %685  ;;  %v4060_v33 = vld [vmem:[#allocation3_spill] sm:$0xff] }
  0xf7   : > { %760 = vst.msk [vmem:[#allocation2 + $0xb0] sm:$0xff] %vm737_vm4, %v686_v17  ;;  %1321 = vrot.lane.b32.xlu1 %v4054_v28, %s2451_s19 }
  0xf8   : > { %923 = vrot.lane.b32.xlu0 %v4053_v36, %s2448_s28 }
  0xf9   : > { %v692_v60 = vpop.permute.xlu1 %691 }
  0xfa   : > { %763 = vst.msk [vmem:[#allocation2 + $0xc8] sm:$0xff] %vm737_vm4, %v692_v60  ;;  %v690_v56 = vpop.permute.xlu0 %689 }
  0xfb   : > { %762 = vst.msk [vmem:[#allocation2 + $0xc0] sm:$0xff] %vm737_vm4, %v690_v56  ;;  %925 = vrot.lane.b32.xlu1 %v4054_v28, %s2448_s28 }
  0xfc   : > { %1453 = vrot.lane.b32.xlu0 %v2972_v54, %s2452_s24 }
  0xfd   : > { %v696_v24 = vpop.permute.xlu1 %695 }
  0xfe   : > { %765 = vst.msk [vmem:[#allocation2 + $0xd8] sm:$0xff] %vm737_vm4, %v696_v24  ;;  %v694_v15 = vpop.permute.xlu0 %693 }
  0xff   : > { %764 = vst.msk [vmem:[#allocation2 + $0xd0] sm:$0xff] %vm737_vm4, %v694_v15  ;;  %1455 = vrot.lane.b32.xlu1 %v2967_v14, %s2452_s24  ;;  %v4061_v15 = vld [vmem:[#allocation20_spill] sm:$0xff] }
 0x100   : > { %1057 = vrot.lane.b32.xlu0 %v2972_v54, %s2449_s7  ;;  %v4055_v54 = vld [vmem:[#allocation17_spill] sm:$0xff] }
 0x101   : > { %v700_v18 = vpop.permute.xlu1 %699 }
 0x102   : > { %767 = vst.msk [vmem:[#allocation2 + $0xe8] sm:$0xff] %vm737_vm4, %v700_v18  ;;  %v698_v49 = vpop.permute.xlu0 %697 }
 0x103   : > { %766 = vst.msk [vmem:[#allocation2 + $0xe0] sm:$0xff] %vm737_vm4, %v698_v49  ;;  %1188 = vrot.lane.b32.xlu1 %v2588_v30, %s2450_s12 }
 0x104   : > { %1059 = vrot.lane.b32.xlu0 %v2967_v14, %s2449_s7 }
 0x105   : > { %v704_v20 = vpop.permute.xlu1 %703 }
 0x106   : > { %769 = vst.msk [vmem:[#allocation2 + $0xf8] sm:$0xff] %vm737_vm4, %v704_v20  ;;  %v702_v53 = vpop.permute.xlu0 %701 }
 0x107   : > { %768 = vst.msk [vmem:[#allocation2 + $0xf0] sm:$0xff] %vm737_vm4, %v702_v53  ;;  %1323 = vrot.lane.b32.xlu1 %v4055_v54, %s2451_s19 }
 0x108   : > { %1190 = vrot.lane.b32.xlu0 %v2585_v29, %s2450_s12 }
 0x109   : > { %v775_v16 = vpop.permute.xlu1 %774 }
 0x10a   : > { %870 = vst.msk [vmem:[#allocation2 + $0x8] sm:$0xff] %vm868_vm5, %v775_v16  ;;  %v773_v30 = vpop.permute.xlu0 %772 }
 0x10b   : > { %869 = vst.msk [vmem:[#allocation2] sm:$0xff] %vm868_vm5, %v773_v30  ;;  %927 = vrot.lane.b32.xlu1 %v4055_v54, %s2448_s28 }
 0x10c   : > { %794 = vrot.lane.b32.xlu0 %v2585_v29, %s2447_s23 }
 0x10d   : > { %v779_v14 = vpop.permute.xlu1 %778 }
 0x10e   : > { %872 = vst.msk [vmem:[#allocation2 + $0x18] sm:$0xff] %vm868_vm5, %v779_v14  ;;  %v777_v3 = vpop.permute.xlu0 %776 }
 0x10f   : > { %871 = vst.msk [vmem:[#allocation2 + $0x10] sm:$0xff] %vm868_vm5, %v777_v3  ;;  %1457 = vrot.lane.b32.xlu1 %v2985_v6, %s2452_s24  ;;  %v4063_v3 = vld [vmem:[#allocation4_spill] sm:$0xff] }
 0x110   : > { %1325 = vrot.lane.b32.xlu0 %v4056_v52, %s2451_s19 }
 0x111   : > { %v783_v0 = vpop.permute.xlu1 %782 }
 0x112   : > { %874 = vst.msk [vmem:[#allocation2 + $0x28] sm:$0xff] %vm868_vm5, %v783_v0  ;;  %v781_v1 = vpop.permute.xlu0 %780 }
 0x113   : > { %873 = vst.msk [vmem:[#allocation2 + $0x20] sm:$0xff] %vm868_vm5, %v781_v1  ;;  %1061 = vrot.lane.b32.xlu1 %v2985_v6, %s2449_s7 }
 0x114   : > { %929 = vrot.lane.b32.xlu0 %v4056_v52, %s2448_s28 }
 0x115   : > { %v787_v29 = vpop.permute.xlu1 %786 }
 0x116   : > { %876 = vst.msk [vmem:[#allocation2 + $0x38] sm:$0xff] %vm868_vm5, %v787_v29  ;;  %v785_v12 = vpop.permute.xlu0 %784 }
 0x117   : > { %875 = vst.msk [vmem:[#allocation2 + $0x30] sm:$0xff] %vm868_vm5, %v785_v12  ;;  %1063 = vrot.lane.b32.xlu1 %v2980_v39, %s2449_s7  ;;  %v4064_v12 = vld [vmem:[#allocation22_spill] sm:$0xff] }
 0x118   : > { %1459 = vrot.lane.b32.xlu0 %v2980_v39, %s2452_s24  ;;  %v4057_v39 = vld [vmem:[#allocation19_spill] sm:$0xff] }
 0x119   : > { %v791_v27 = vpop.permute.xlu1 %790 }
 0x11a   : > { %878 = vst.msk [vmem:[#allocation2 + $0x48] sm:$0xff] %vm868_vm5, %v791_v27  ;;  %v789_v2 = vpop.permute.xlu0 %788 }
 0x11b   : > { %877 = vst.msk [vmem:[#allocation2 + $0x40] sm:$0xff] %vm868_vm5, %v789_v2  ;;  %796 = vrot.lane.b32.xlu1 %v2598_v32, %s2447_s23 }
 0x11c   : > { %1192 = vrot.lane.b32.xlu0 %v2598_v32, %s2450_s12 }
 0x11d   : > { %v908_v6 = vpop.permute.xlu1 %907 }
 0x11e   : > { %1004 = vst.msk [vmem:[#allocation2] sm:$0xff] %vm1003_vm6, %v908_v6  ;;  %v793_v34 = vpop.permute.xlu0 %792 }
 0x11f   : > { %879 = vst.msk [vmem:[#allocation2 + $0x50] sm:$0xff] %vm868_vm5, %v793_v34  ;;  %1327 = vrot.lane.b32.xlu1 %v4057_v39, %s2451_s19 }
 0x120   : > { %1194 = vrot.lane.b32.xlu0 %v2595_v31, %s2450_s12 }
 0x121   : > { %v1042_v23 = vpop.permute.xlu1 %1041 }
 0x122   : > { %1138 = vst.msk [vmem:[#allocation2] sm:$0xff] %vm1137_vm7, %v1042_v23  ;;  %v910_v5 = vpop.permute.xlu0 %909 }
 0x123   : > { %1005 = vst.msk [vmem:[#allocation2 + $0x8] sm:$0xff] %vm1003_vm6, %v910_v5  ;;  %931 = vrot.lane.b32.xlu1 %v4057_v39, %s2448_s28 }
 0x124   : > { %798 = vrot.lane.b32.xlu0 %v2595_v31, %s2447_s23 }
 0x125   : > { %v1173_v32 = vpop.permute.xlu1 %1172 }
 0x126   : > { %1269 = vst.msk [vmem:[#allocation2] sm:$0xff] %vm1268_vm8, %v1173_v32  ;;  %v1044_v11 = vpop.permute.xlu0 %1043 }
 0x127   : > { %1139 = vst.msk [vmem:[#allocation2 + $0x8] sm:$0xff] %vm1137_vm7, %v1044_v11  ;;  %1461 = vrot.lane.b32.xlu1 %v2998_v22, %s2452_s24  ;;  %v4065_v11 = vld [vmem:[#allocation25_spill] sm:$0xff] }
 0x128   : > { %1329 = vrot.lane.b32.xlu0 %v4058_v19, %s2451_s19 }
 0x129   : > { %v1308_v37 = vpop.permute.xlu1 %1307 }
 0x12a   : > { %1404 = vst.msk [vmem:[#allocation2] sm:$0xff] %vm1403_vm9, %v1308_v37  ;;  %v1175_v13 = vpop.permute.xlu0 %1174 }
 0x12b   : > { %1270 = vst.msk [vmem:[#allocation2 + $0x8] sm:$0xff] %vm1268_vm8, %v1175_v13  ;;  %1065 = vrot.lane.b32.xlu1 %v2998_v22, %s2449_s7 }
 0x12c   : > { %933 = vrot.lane.b32.xlu0 %v4058_v19, %s2448_s28  ;;  %v4066_v19 = vld [vmem:[#allocation5_spill] sm:$0xff] }
 0x12d   : > { %v1310_v31 = vpop.permute.xlu1 %1309 }
 0x12e   : > { %1405 = vst.msk [vmem:[#allocation2 + $0x8] sm:$0xff] %vm1403_vm9, %v1310_v31  ;;  %v912_v38 = vpop.permute.xlu0 %911 }
 0x12f   : > { %1006 = vst.msk [vmem:[#allocation2 + $0x10] sm:$0xff] %vm1003_vm6, %v912_v38  ;;  %1067 = vrot.lane.b32.xlu1 %v2993_v61, %s2449_s7  ;;  %v4067_v38 = vld [vmem:[#allocation24_spill] sm:$0xff] }
 0x130   : > { %1463 = vrot.lane.b32.xlu0 %v2993_v61, %s2452_s24  ;;  %v4059_v61 = vld [vmem:[#allocation21_spill] sm:$0xff] }
 0x131   : > { %v914_v43 = vpop.permute.xlu1 %913 }
 0x132   : > { %1007 = vst.msk [vmem:[#allocation2 + $0x18] sm:$0xff] %vm1003_vm6, %v914_v43  ;;  %v1442_v22 = vpop.permute.xlu0 %1441 }
 0x133   : > { %1538 = vst.msk [vmem:[#allocation2] sm:$0xff] %vm1537_vm10, %v1442_v22  ;;  %800 = vrot.lane.b32.xlu1 %v2625_v40, %s2447_s23 }
 0x134   : > { %1196 = vrot.lane.b32.xlu0 %v2625_v40, %s2450_s12 }
 0x135   : > { %v1444_v59 = vpop.permute.xlu1 %1443 }
 0x136   : > { %1539 = vst.msk [vmem:[#allocation2 + $0x8] sm:$0xff] %vm1537_vm10, %v1444_v59  ;;  %v1046_v36 = vpop.permute.xlu0 %1045 }
 0x137   : > { %1140 = vst.msk [vmem:[#allocation2 + $0x10] sm:$0xff] %vm1137_vm7, %v1046_v36  ;;  %1331 = vrot.lane.b32.xlu1 %v4059_v61, %s2451_s19 }
 0x138   : > { %1198 = vrot.lane.b32.xlu0 %v4060_v33, %s2450_s12 }
 0x139   : > { %v1177_v17 = vpop.permute.xlu1 %1176 }
 0x13a   : > { %1271 = vst.msk [vmem:[#allocation2 + $0x10] sm:$0xff] %vm1268_vm8, %v1177_v17  ;;  %v1048_v28 = vpop.permute.xlu0 %1047  ;;  %v1570_v60 = vld [vmem:[#allocation2] sm:$0xff] }
 0x13b   : > { %1141 = vst.msk [vmem:[#allocation2 + $0x18] sm:$0xff] %vm1137_vm7, %v1048_v28  ;;  %2346 = vmatprep.mubr.msk.f32.mxu0 %vm1611_vm11, %v1570_v60  ;;  %935 = vrot.lane.b32.xlu1 %v4059_v61, %s2448_s28 }
 0x13c   : > { %802 = vrot.lane.b32.xlu0 %v4060_v33, %s2447_s23 }
 0x13d   : > { %v1312_v40 = vpop.permute.xlu1 %1311  ;;  %v1571_v56 = vld [vmem:[#allocation2 + $0x8] sm:$0xff] }
 0x13e   : > { %1406 = vst.msk [vmem:[#allocation2 + $0x10] sm:$0xff] %vm1403_vm9, %v1312_v40  ;;  %v1179_v24 = vpop.permute.xlu0 %1178  ;;  %2347 = vmatmul.mubr.msk.f32.vlgmr.msra.gmra.mrb[0].mxu0 %vm1611_vm11, %v1571_v56  ;;  %v4069_v40 = vld [vmem:[#allocation6_spill] sm:$0xff] }
 0x13f   : > { %1272 = vst.msk [vmem:[#allocation2 + $0x18] sm:$0xff] %vm1268_vm8, %v1179_v24  ;;  %1465 = vrot.lane.b32.xlu1 %v3011_v48, %s2452_s24 }
 0x140   : > { %1333 = vrot.lane.b32.xlu0 %v4061_v15, %s2451_s19 }
 0x141   : > { %v1314_v18 = vpop.permute.xlu1 %1313 }
 0x142   : > { %1407 = vst.msk [vmem:[#allocation2 + $0x18] sm:$0xff] %vm1403_vm9, %v1314_v18  ;;  %v916_v49 = vpop.permute.xlu0 %915  ;;  %v4070_v18 = vld [vmem:[#allocation26_spill] sm:$0xff] }
 0x143   : > { %1008 = vst.msk [vmem:[#allocation2 + $0x20] sm:$0xff] %vm1003_vm6, %v916_v49  ;;  %1069 = vrot.lane.b32.xlu1 %v3011_v48, %s2449_s7 }
 0x144   : > { %937 = vrot.lane.b32.xlu0 %v4061_v15, %s2448_s28 }
 0x145   : > { %v918_v20 = vpop.permute.xlu1 %917 }
 0x146   : > { %1009 = vst.msk [vmem:[#allocation2 + $0x28] sm:$0xff] %vm1003_vm6, %v918_v20  ;;  %v1446_v53 = vpop.permute.xlu0 %1445 }
 0x147   : > { %1540 = vst.msk [vmem:[#allocation2 + $0x10] sm:$0xff] %vm1537_vm10, %v1446_v53  ;;  %1071 = vrot.lane.b32.xlu1 %v3006_v10, %s2449_s7 }
 0x148   : > { %1467 = vrot.lane.b32.xlu0 %v3006_v10, %s2452_s24  ;;  %v4062_v10 = vld [vmem:[#allocation23_spill] sm:$0xff] }
 0x149   : > { %v1448_v54 = vpop.permute.xlu1 %1447 }
 0x14a   : > { %1541 = vst.msk [vmem:[#allocation2 + $0x18] sm:$0xff] %vm1537_vm10, %v1448_v54  ;;  %v1050_v16 = vpop.permute.xlu0 %1049 }
 0x14b   : > { %1142 = vst.msk [vmem:[#allocation2 + $0x20] sm:$0xff] %vm1137_vm7, %v1050_v16  ;;  %804 = vrot.lane.b32.xlu1 %v2631_v42, %s2447_s23 }
 0x14c   : > { %1200 = vrot.lane.b32.xlu0 %v2631_v42, %s2450_s12 }
 0x14d   : > { %v1181_v48 = vpop.permute.xlu1 %1180 }
 0x14e   : > { %1273 = vst.msk [vmem:[#allocation2 + $0x20] sm:$0xff] %vm1268_vm8, %v1181_v48  ;;  %v1052_v30 = vpop.permute.xlu0 %1051  ;;  %v1572_v14 = vld [vmem:[#allocation2 + $0x10] sm:$0xff] }
 0x14f   : > { %1143 = vst.msk [vmem:[#allocation2 + $0x28] sm:$0xff] %vm1137_vm7, %v1052_v30  ;;  %2349 = vmatprep.mubr.msk.f32.mxu0 %vm1611_vm11, %v1572_v14  ;;  %1335 = vrot.lane.b32.xlu1 %v4062_v10, %s2451_s19 }
 0x150   : > { %1202 = vrot.lane.b32.xlu0 %v4063_v3, %s2450_s12 }
 0x151   : > { %v1316_v52 = vpop.permute.xlu1 %1315  ;;  %v1573_v0 = vld [vmem:[#allocation2 + $0x18] sm:$0xff] }
 0x152   : > { %1408 = vst.msk [vmem:[#allocation2 + $0x20] sm:$0xff] %vm1403_vm9, %v1316_v52  ;;  %v1183_v42 = vpop.permute.xlu0 %1182  ;;  %2350 = vmatmul.mubr.msk.f32.gmra.mrb[2].mxu0 %vm1611_vm11, %v1573_v0 }
 0x153   : > { %1274 = vst.msk [vmem:[#allocation2 + $0x28] sm:$0xff] %vm1268_vm8, %v1183_v42  ;;  %939 = vrot.lane.b32.xlu1 %v4062_v10, %s2448_s28 }
 0x154   : > { %806 = vrot.lane.b32.xlu0 %v4063_v3, %s2447_s23  ;;  %v4072_v3 = vld [vmem:[#allocation8_spill] sm:$0xff] }
 0x155   : > { %v1318_v1 = vpop.permute.xlu1 %1317 }
 0x156   : > { %1409 = vst.msk [vmem:[#allocation2 + $0x28] sm:$0xff] %vm1403_vm9, %v1318_v1  ;;  %v920_v29 = vpop.permute.xlu0 %919  ;;  %v4073_v1 = vld [vmem:[#allocation28_spill] sm:$0xff] }
 0x157   : > { %1010 = vst.msk [vmem:[#allocation2 + $0x30] sm:$0xff] %vm1003_vm6, %v920_v29  ;;  %1469 = vrot.lane.b32.xlu1 %v3024_v9, %s2452_s24 }
 0x158   : > { %1337 = vrot.lane.b32.xlu0 %v4064_v12, %s2451_s19 }
 0x159   : > { %v922_v27 = vpop.permute.xlu1 %921 }
 0x15a   : > { %1011 = vst.msk [vmem:[#allocation2 + $0x38] sm:$0xff] %vm1003_vm6, %v922_v27  ;;  %v1450_v2 = vpop.permute.xlu0 %1449 }
 0x15b   : > { %1542 = vst.msk [vmem:[#allocation2 + $0x20] sm:$0xff] %vm1537_vm10, %v1450_v2  ;;  %1073 = vrot.lane.b32.xlu1 %v3024_v9, %s2449_s7 }
 0x15c   : > { %941 = vrot.lane.b32.xlu0 %v4064_v12, %s2448_s28 }
 0x15d   : > { %v1452_v6 = vpop.permute.xlu1 %1451 }
 0x15e   : > { %1543 = vst.msk [vmem:[#allocation2 + $0x28] sm:$0xff] %vm1537_vm10, %v1452_v6  ;;  %v1054_v34 = vpop.permute.xlu0 %1053 }
 0x15f   : > { %1144 = vst.msk [vmem:[#allocation2 + $0x30] sm:$0xff] %vm1137_vm7, %v1054_v34  ;;  %1075 = vrot.lane.b32.xlu1 %v3019_v7, %s2449_s7 }
 0x160   : > { %1471 = vrot.lane.b32.xlu0 %v3019_v7, %s2452_s24 }
 0x161   : > { %v1185_v39 = vpop.permute.xlu1 %1184 }
 0x162   : > { %1275 = vst.msk [vmem:[#allocation2 + $0x30] sm:$0xff] %vm1268_vm8, %v1185_v39  ;;  %v1056_v23 = vpop.permute.xlu0 %1055  ;;  %v1574_v9 = vld [vmem:[#allocation2 + $0x20] sm:$0xff] }
 0x163   : > { %1145 = vst.msk [vmem:[#allocation2 + $0x38] sm:$0xff] %vm1137_vm7, %v1056_v23  ;;  %2352 = vmatprep.mubr.msk.f32.mxu0 %vm1611_vm11, %v1574_v9  ;;  %808 = vrot.lane.b32.xlu1 %v2639_v44, %s2447_s23  ;;  %v4074_v23 = vld [vmem:[#allocation10_spill] sm:$0xff] }
 0x164   : > { %1204 = vrot.lane.b32.xlu0 %v2639_v44, %s2450_s12 }
 0x165   : > { %v1320_v5 = vpop.permute.xlu1 %1319  ;;  %v1575_v32 = vld [vmem:[#allocation2 + $0x28] sm:$0xff] }
 0x166   : > { %1410 = vst.msk [vmem:[#allocation2 + $0x30] sm:$0xff] %vm1403_vm9, %v1320_v5  ;;  %v1187_v7 = vpop.permute.xlu0 %1186  ;;  %2353 = vmatmul.mubr.msk.f32.gmra.mrb[4].mxu0 %vm1611_vm11, %v1575_v32  ;;  %v4076_v32 = vld [vmem:[#allocation9_spill] sm:$0xff] }
 0x167   : > { %1276 = vst.msk [vmem:[#allocation2 + $0x38] sm:$0xff] %vm1268_vm8, %v1187_v7  ;;  %1339 = vrot.lane.b32.xlu1 %v4065_v11, %s2451_s19 }
 0x168   : > { %1206 = vrot.lane.b32.xlu0 %v4066_v19, %s2450_s12 }
 0x169   : > { %v1322_v37 = vpop.permute.xlu1 %1321 }
 0x16a   : > { %1411 = vst.msk [vmem:[#allocation2 + $0x38] sm:$0xff] %vm1403_vm9, %v1322_v37  ;;  %v924_v13 = vpop.permute.xlu0 %923 }
 0x16b   : > { %1012 = vst.msk [vmem:[#allocation2 + $0x40] sm:$0xff] %vm1003_vm6, %v924_v13  ;;  %943 = vrot.lane.b32.xlu1 %v4065_v11, %s2448_s28  ;;  %v4077_v13 = vld [vmem:[#allocation30_spill] sm:$0xff] }
 0x16c   : > { %810 = vrot.lane.b32.xlu0 %v4066_v19, %s2447_s23 }
 0x16d   : > { %v926_v44 = vpop.permute.xlu1 %925 }
 0x16e   : > { %1013 = vst.msk [vmem:[#allocation2 + $0x48] sm:$0xff] %vm1003_vm6, %v926_v44  ;;  %v1454_v31 = vpop.permute.xlu0 %1453 }
 0x16f   : > { %1544 = vst.msk [vmem:[#allocation2 + $0x30] sm:$0xff] %vm1537_vm10, %v1454_v31  ;;  %1473 = vrot.lane.b32.xlu1 %v3037_v25, %s2452_s24 }
 0x170   : > { %1341 = vrot.lane.b32.xlu0 %v4067_v38, %s2451_s19 }
 0x171   : > { %v1456_v43 = vpop.permute.xlu1 %1455 }
 0x172   : > { %1545 = vst.msk [vmem:[#allocation2 + $0x38] sm:$0xff] %vm1537_vm10, %v1456_v43  ;;  %v1058_v22 = vpop.permute.xlu0 %1057 }
 0x173   : > { %1146 = vst.msk [vmem:[#allocation2 + $0x40] sm:$0xff] %vm1137_vm7, %v1058_v22  ;;  %1077 = vrot.lane.b32.xlu1 %v3037_v25, %s2449_s7 }
 0x174   : > { %945 = vrot.lane.b32.xlu0 %v4067_v38, %s2448_s28 }
 0x175   : > { %v1189_v59 = vpop.permute.xlu1 %1188 }
 0x176   : > { %v1060_v36 = vpop.permute.xlu0 %1059  ;;  %1277 = vst.msk [vmem:[#allocation2 + $0x40] sm:$0xff] %vm1268_vm8, %v1189_v59  ;;  %v1576_v61 = vld [vmem:[#allocation2 + $0x30] sm:$0xff] }
 0x177   : > { %1147 = vst.msk [vmem:[#allocation2 + $0x48] sm:$0xff] %vm1137_vm7, %v1060_v36  ;;  %2355 = vmatprep.mubr.msk.f32.mxu0 %vm1611_vm11, %v1576_v61  ;;  %1079 = vrot.lane.b32.xlu1 %v3032_v26, %s2449_s7 }
 0x178   : > { %1475 = vrot.lane.b32.xlu0 %v3032_v26, %s2452_s24  ;;  %v4068_v26 = vld [vmem:[#allocation27_spill] sm:$0xff] }
 0x179   : > { %v1324_v33 = vpop.permute.xlu1 %1323  ;;  %v1577_v25 = vld [vmem:[#allocation2 + $0x38] sm:$0xff] }
 0x17a   : > { %v1191_v17 = vpop.permute.xlu0 %1190  ;;  %1412 = vst.msk [vmem:[#allocation2 + $0x40] sm:$0xff] %vm1403_vm9, %v1324_v33  ;;  %2356 = vmatmul.mubr.msk.f32.gmra.mrb[6].mxu0 %vm1611_vm11, %v1577_v25  ;;  %v4079_v25 = vld [vmem:[#allocation11_spill] sm:$0xff] }
 0x17b   : > { %1278 = vst.msk [vmem:[#allocation2 + $0x48] sm:$0xff] %vm1268_vm8, %v1191_v17  ;;  %812 = vrot.lane.b32.xlu1 %v2653_v46, %s2447_s23 }
 0x17c   : > { %1208 = vrot.lane.b32.xlu0 %v2653_v46, %s2450_s12 }
 0x17d   : > { %v928_v28 = vpop.permute.xlu1 %927 }
 0x17e   : > { %v795_v60 = vpop.permute.xlu0 %794  ;;  %1014 = vst.msk [vmem:[#allocation2 + $0x50] sm:$0xff] %vm1003_vm6, %v928_v28 }
 0x17f   : > { %880 = vst.msk [vmem:[#allocation2 + $0x58] sm:$0xff] %vm868_vm5, %v795_v60  ;;  %1343 = vrot.lane.b32.xlu1 %v4068_v26, %s2451_s19 }
 0x180   : > { %1210 = vrot.lane.b32.xlu0 %v4069_v40, %s2450_s12 }
 0x181   : > { %v1458_v56 = vpop.permute.xlu1 %1457 }
 0x182   : > { %v1326_v24 = vpop.permute.xlu0 %1325  ;;  %1546 = vst.msk [vmem:[#allocation2 + $0x40] sm:$0xff] %vm1537_vm10, %v1458_v56 }
 0x183   : > { %1413 = vst.msk [vmem:[#allocation2 + $0x48] sm:$0xff] %vm1403_vm9, %v1326_v24  ;;  %947 = vrot.lane.b32.xlu1 %v4068_v26, %s2448_s28  ;;  %v4080_v26 = vld [vmem:[#allocation32_spill] sm:$0xff] }
 0x184   : > { %814 = vrot.lane.b32.xlu0 %v4069_v40, %s2447_s23 }
 0x185   : > { %v1062_v46 = vpop.permute.xlu1 %1061 }
 0x186   : > { %v930_v15 = vpop.permute.xlu0 %929  ;;  %1148 = vst.msk [vmem:[#allocation2 + $0x50] sm:$0xff] %vm1137_vm7, %v1062_v46 }
 0x187   : > { %1015 = vst.msk [vmem:[#allocation2 + $0x58] sm:$0xff] %vm1003_vm6, %v930_v15  ;;  %1477 = vrot.lane.b32.xlu1 %v3050_v35, %s2452_s24 }
 0x188   : > { %1345 = vrot.lane.b32.xlu0 %v4070_v18, %s2451_s19 }
 0x189   : > { %v1064_v49 = vpop.permute.xlu1 %1063  ;;  %v1578_v20 = vld [vmem:[#allocation2 + $0x40] sm:$0xff] }
 0x18a   : > { %v1460_v53 = vpop.permute.xlu0 %1459  ;;  %1149 = vst.msk [vmem:[#allocation2 + $0x58] sm:$0xff] %vm1137_vm7, %v1064_v49  ;;  %2358 = vmatprep.mubr.msk.f32.mxu0 %vm1611_vm11, %v1578_v20 }
 0x18b   : > { %1547 = vst.msk [vmem:[#allocation2 + $0x48] sm:$0xff] %vm1537_vm10, %v1460_v53  ;;  %1081 = vrot.lane.b32.xlu1 %v3050_v35, %s2449_s7 }
 0x18c   : > { %949 = vrot.lane.b32.xlu0 %v4070_v18, %s2448_s28 }
 0x18d   : > { %v797_v54 = vpop.permute.xlu1 %796 }
 0x18e   : > { %v1193_v16 = vpop.permute.xlu0 %1192  ;;  %881 = vst.msk [vmem:[#allocation2 + $0x60] sm:$0xff] %vm868_vm5, %v797_v54 }
 0x18f   : > { %1279 = vst.msk [vmem:[#allocation2 + $0x50] sm:$0xff] %vm1268_vm8, %v1193_v16  ;;  %1083 = vrot.lane.b32.xlu1 %v3045_v4, %s2449_s7 }
 0x190   : > { %1479 = vrot.lane.b32.xlu0 %v3045_v4, %s2452_s24  ;;  %v4071_v4 = vld [vmem:[#allocation29_spill] sm:$0xff] }
 0x191   : > { %v1328_v48 = vpop.permute.xlu1 %1327 }
 0x192   : > { %v1195_v30 = vpop.permute.xlu0 %1194  ;;  %1414 = vst.msk [vmem:[#allocation2 + $0x50] sm:$0xff] %vm1403_vm9, %v1328_v48  ;;  %v1579_v35 = vld [vmem:[#allocation2 + $0x48] sm:$0xff] }
 0x193   : > { %1280 = vst.msk [vmem:[#allocation2 + $0x58] sm:$0xff] %vm1268_vm8, %v1195_v30  ;;  %2359 = vmatmul.mubr.msk.f32.gmra.mrb[8].mxu0 %vm1611_vm11, %v1579_v35  ;;  %816 = vrot.lane.b32.xlu1 %v2670_v51, %s2447_s23  ;;  %v4082_v30 = vld [vmem:[#allocation34_spill] sm:$0xff] }
 0x194   : > { %1212 = vrot.lane.b32.xlu0 %v2670_v51, %s2450_s12 }
 0x195   : > { %v932_v14 = vpop.permute.xlu1 %931 }
 0x196   : > { %v799_v10 = vpop.permute.xlu0 %798  ;;  %1016 = vst.msk [vmem:[#allocation2 + $0x60] sm:$0xff] %vm1003_vm6, %v932_v14 }
 0x197   : > { %882 = vst.msk [vmem:[#allocation2 + $0x68] sm:$0xff] %vm868_vm5, %v799_v10  ;;  %1347 = vrot.lane.b32.xlu1 %v4071_v4, %s2451_s19 }
 0x198   : > { %1214 = vrot.lane.b32.xlu0 %v4072_v3, %s2450_s12 }
 0x199   : > { %v1462_v52 = vpop.permute.xlu1 %1461 }
 0x19a   : > { %v1330_v0 = vpop.permute.xlu0 %1329  ;;  %1548 = vst.msk [vmem:[#allocation2 + $0x50] sm:$0xff] %vm1537_vm10, %v1462_v52  ;;  %v263_v52 = vld [vmem:[%s2492_s20 + $0x180] sm:$0xff] }
 0x19b   : > { %1415 = vst.msk [vmem:[#allocation2 + $0x58] sm:$0xff] %vm1403_vm9, %v1330_v0  ;;  %951 = vrot.lane.b32.xlu1 %v4071_v4, %s2448_s28  ;;  %v264_v4 = vld [vmem:[%s2492_s20 + $0x188] sm:$0xff]  ;;  %v902_v0 = vrot.slane %v263_v52, 1 }
 0x19c   : > { %818 = vrot.lane.b32.xlu0 %v4072_v3, %s2447_s23 }
 0x19d   : > { %v1066_v51 = vpop.permute.xlu1 %1065 }
 0x19e   : > { %v934_v42 = vpop.permute.xlu0 %933  ;;  %1150 = vst.msk [vmem:[#allocation2 + $0x60] sm:$0xff] %vm1137_vm7, %v1066_v51 }
 0x19f   : > { %1017 = vst.msk [vmem:[#allocation2 + $0x68] sm:$0xff] %vm1003_vm6, %v934_v42  ;;  %1481 = vrot.lane.b32.xlu1 %v3063_v8, %s2452_s24 }
 0x1a0   : > { %1349 = vrot.lane.b32.xlu0 %v4073_v1, %s2451_s19 }
 0x1a1   : > { %v1068_v29 = vpop.permute.xlu1 %1067  ;;  %v1580_v12 = vld [vmem:[#allocation2 + $0x50] sm:$0xff] }
 0x1a2   : > { %v1464_v27 = vpop.permute.xlu0 %1463  ;;  %1151 = vst.msk [vmem:[#allocation2 + $0x68] sm:$0xff] %vm1137_vm7, %v1068_v29  ;;  %2361 = vmatprep.mubr.msk.f32.mxu0 %vm1611_vm11, %v1580_v12 }
 0x1a3   : > { %1549 = vst.msk [vmem:[#allocation2 + $0x58] sm:$0xff] %vm1537_vm10, %v1464_v27  ;;  %1085 = vrot.lane.b32.xlu1 %v3063_v8, %s2449_s7 }
 0x1a4   : > { %953 = vrot.lane.b32.xlu0 %v4073_v1, %s2448_s28 }
 0x1a5   : > { %v801_v2 = vpop.permute.xlu1 %800 }
 0x1a6   : > { %v1197_v6 = vpop.permute.xlu0 %1196  ;;  %883 = vst.msk [vmem:[#allocation2 + $0x70] sm:$0xff] %vm868_vm5, %v801_v2  ;;  %v1036_v2 = vrot.slane %v263_v52, 2 }
 0x1a7   : > { %1281 = vst.msk [vmem:[#allocation2 + $0x60] sm:$0xff] %vm1268_vm8, %v1197_v6  ;;  %1087 = vrot.lane.b32.xlu1 %v3058_v47, %s2449_s7  ;;  %v1037_v6 = vrot.slane %v264_v4, 2 }
 0x1a8   : > { %1483 = vrot.lane.b32.xlu0 %v3058_v47, %s2452_s24  ;;  %v4075_v47 = vld [vmem:[#allocation31_spill] sm:$0xff] }
 0x1a9   : > { %v1332_v34 = vpop.permute.xlu1 %1331 }
 0x1aa   : > { %v1199_v39 = vpop.permute.xlu0 %1198  ;;  %1416 = vst.msk [vmem:[#allocation2 + $0x60] sm:$0xff] %vm1403_vm9, %v1332_v34  ;;  %v1581_v8 = vld [vmem:[#allocation2 + $0x58] sm:$0xff] }
 0x1ab   : > { %1282 = vst.msk [vmem:[#allocation2 + $0x68] sm:$0xff] %vm1268_vm8, %v1199_v39  ;;  %2362 = vmatmul.mubr.msk.f32.gmra.mrb[10].mxu0 %vm1611_vm11, %v1581_v8  ;;  %820 = vrot.lane.b32.xlu1 %v4074_v23, %s2447_s23 }
 0x1ac   : > { %1216 = vrot.lane.b32.xlu0 %v4074_v23, %s2450_s12  ;;  %v1038_v23 = vsel %vm560_vm2, %v1036_v2, %v1037_v6 }
 0x1ad   : > { %v936_v9 = vpop.permute.xlu1 %935 }
 0x1ae   : > { %v803_v5 = vpop.permute.xlu0 %802  ;;  %1018 = vst.msk [vmem:[#allocation2 + $0x70] sm:$0xff] %vm1003_vm6, %v936_v9 }
 0x1af   : > { %884 = vst.msk [vmem:[#allocation2 + $0x78] sm:$0xff] %vm868_vm5, %v803_v5  ;;  %1351 = vrot.lane.b32.xlu1 %v4075_v47, %s2451_s19 }
 0x1b0   : > { %1218 = vrot.lane.b32.xlu0 %v4076_v32, %s2450_s12 }
 0x1b1   : > { %v1466_v7 = vpop.permute.xlu1 %1465 }
 0x1b2   : > { %v1334_v11 = vpop.permute.xlu0 %1333  ;;  %1550 = vst.msk [vmem:[#allocation2 + $0x60] sm:$0xff] %vm1537_vm10, %v1466_v7 }
 0x1b3   : > { %1417 = vst.msk [vmem:[#allocation2 + $0x68] sm:$0xff] %vm1403_vm9, %v1334_v11  ;;  %955 = vrot.lane.b32.xlu1 %v4075_v47, %s2448_s28 }
 0x1b4   : > { %822 = vrot.lane.b32.xlu0 %v4076_v32, %s2447_s23 }
 0x1b5   : > { %v1070_v19 = vpop.permute.xlu1 %1069 }
 0x1b6   : > { %v938_v37 = vpop.permute.xlu0 %937  ;;  %1152 = vst.msk [vmem:[#allocation2 + $0x70] sm:$0xff] %vm1137_vm7, %v1070_v19 }
 0x1b7   : > { %1019 = vst.msk [vmem:[#allocation2 + $0x78] sm:$0xff] %vm1003_vm6, %v938_v37  ;;  %1485 = vrot.lane.b32.xlu1 %v3076_v41, %s2452_s24 }
 0x1b8   : > { %1353 = vrot.lane.b32.xlu0 %v4077_v13, %s2451_s19 }
 0x1b9   : > { %v1072_v44 = vpop.permute.xlu1 %1071  ;;  %v1582_v31 = vld [vmem:[#allocation2 + $0x60] sm:$0xff] }
 0x1ba   : > { %v1468_v38 = vpop.permute.xlu0 %1467  ;;  %1153 = vst.msk [vmem:[#allocation2 + $0x78] sm:$0xff] %vm1137_vm7, %v1072_v44  ;;  %2364 = vmatprep.mubr.msk.f32.mxu0 %vm1611_vm11, %v1582_v31  ;;  %v267_v44 = vld [vmem:[%s2492_s20 + $0x1a0] sm:$0xff]  ;;  %v268_v31 = vld [vmem:[%s2492_s20 + $0x1a8] sm:$0x3] }
 0x1bb   : > { %1551 = vst.msk [vmem:[#allocation2 + $0x68] sm:$0xff] %vm1537_vm10, %v1468_v38  ;;  %1089 = vrot.lane.b32.xlu1 %v3076_v41, %s2449_s7 }
 0x1bc   : > { %957 = vrot.lane.b32.xlu0 %v4077_v13, %s2448_s28 }
 0x1bd   : > { %v805_v43 = vpop.permute.xlu1 %804 }
 0x1be   : > { %v1201_v22 = vpop.permute.xlu0 %1200  ;;  %885 = vst.msk [vmem:[#allocation2 + $0x80] sm:$0xff] %vm868_vm5, %v805_v43  ;;  %v266_v43 = vld [vmem:[%s2492_s20 + $0x198] sm:$0xff] }
 0x1bf   : > { %1283 = vst.msk [vmem:[#allocation2 + $0x70] sm:$0xff] %vm1268_vm8, %v1201_v22  ;;  %1091 = vrot.lane.b32.xlu1 %v3071_v21, %s2449_s7  ;;  %v1303_v22 = vrot.slane %v267_v44, 1 }
 0x1c0   : > { %1487 = vrot.lane.b32.xlu0 %v3071_v21, %s2452_s24  ;;  %v4078_v21 = vld [vmem:[#allocation33_spill] sm:$0xff] }
 0x1c1   : > { %v1336_v59 = vpop.permute.xlu1 %1335 }
 0x1c2   : > { %v1203_v36 = vpop.permute.xlu0 %1202  ;;  %1418 = vst.msk [vmem:[#allocation2 + $0x70] sm:$0xff] %vm1403_vm9, %v1336_v59  ;;  %v1583_v41 = vld [vmem:[#allocation2 + $0x68] sm:$0xff]  ;;  %v1305_v59 = vrot.slane %v268_v31, 1 }
 0x1c3   : > { %1284 = vst.msk [vmem:[#allocation2 + $0x78] sm:$0xff] %vm1268_vm8, %v1203_v36  ;;  %2365 = vmatmul.mubr.msk.f32.gmra.mrb[12].mxu0 %vm1611_vm11, %v1583_v41  ;;  %824 = vrot.lane.b32.xlu1 %v2701_v58, %s2447_s23  ;;  %v1302_v41 = vrot.slane %v266_v43, 1 }
 0x1c4   : > { %1220 = vrot.lane.b32.xlu0 %v2701_v58, %s2450_s12 }
 0x1c5   : > { %v940_v61 = vpop.permute.xlu1 %939 }
 0x1c6   : > { %v807_v33 = vpop.permute.xlu0 %806  ;;  %1020 = vst.msk [vmem:[#allocation2 + $0x80] sm:$0xff] %vm1003_vm6, %v940_v61 }
 0x1c7   : > { %886 = vst.msk [vmem:[#allocation2 + $0x88] sm:$0xff] %vm868_vm5, %v807_v33  ;;  %1355 = vrot.lane.b32.xlu1 %v4078_v21, %s2451_s19 }
 0x1c8   : > { %1222 = vrot.lane.b32.xlu0 %v4079_v25, %s2450_s12 }
 0x1c9   : > { %v1470_v17 = vpop.permute.xlu1 %1469 }
 0x1ca   : > { %v1338_v28 = vpop.permute.xlu0 %1337  ;;  %1552 = vst.msk [vmem:[#allocation2 + $0x70] sm:$0xff] %vm1537_vm10, %v1470_v17  ;;  %v1439_v17 = vrot.slane %v268_v31, 2 }
 0x1cb   : > { %1419 = vst.msk [vmem:[#allocation2 + $0x78] sm:$0xff] %vm1403_vm9, %v1338_v28  ;;  %959 = vrot.lane.b32.xlu1 %v4078_v21, %s2448_s28  ;;  %v1437_v21 = vrot.slane %v267_v44, 2  ;;  %v1436_v28 = vrot.slane %v266_v43, 2 }
 0x1cc   : > { %826 = vrot.lane.b32.xlu0 %v4079_v25, %s2447_s23  ;;  %v1306_v25 = vsel %vm350_vm1, %v1303_v22, %v1305_v59 }
 0x1cd   : > { %v1074_v58 = vpop.permute.xlu1 %1073 }
 0x1ce   : > { %v942_v60 = vpop.permute.xlu0 %941  ;;  %1154 = vst.msk [vmem:[#allocation2 + $0x80] sm:$0xff] %vm1137_vm7, %v1074_v58 }
 0x1cf   : > { %1021 = vst.msk [vmem:[#allocation2 + $0x88] sm:$0xff] %vm1003_vm6, %v942_v60  ;;  %1489 = vrot.lane.b32.xlu1 %v3091_v57, %s2452_s24  ;;  %v1304_v60 = vsel %vm350_vm1, %v1302_v41, %v1303_v22 }
 0x1d0   : > { %1357 = vrot.lane.b32.xlu0 %v4080_v26, %s2451_s19 }
 0x1d1   : > { %v1076_v40 = vpop.permute.xlu1 %1075  ;;  %v1584_v56 = vld [vmem:[#allocation2 + $0x70] sm:$0xff] }
 0x1d2   : > { %v1472_v24 = vpop.permute.xlu0 %1471  ;;  %1155 = vst.msk [vmem:[#allocation2 + $0x88] sm:$0xff] %vm1137_vm7, %v1076_v40  ;;  %2367 = vmatprep.mubr.msk.f32.mxu0 %vm1611_vm11, %v1584_v56  ;;  %v1440_v40 = vsel %vm560_vm2, %v1437_v21, %v1439_v17 }
 0x1d3   : > { %1553 = vst.msk [vmem:[#allocation2 + $0x78] sm:$0xff] %vm1537_vm10, %v1472_v24  ;;  %1093 = vrot.lane.b32.xlu1 %v3091_v57, %s2449_s7 }
 0x1d4   : > { %961 = vrot.lane.b32.xlu0 %v4080_v26, %s2448_s28 }
 0x1d5   : > { %v809_v46 = vpop.permute.xlu1 %808 }
 0x1d6   : > { %v1205_v15 = vpop.permute.xlu0 %1204  ;;  %887 = vst.msk [vmem:[#allocation2 + $0x90] sm:$0xff] %vm868_vm5, %v809_v46  ;;  %v1438_v46 = vsel %vm560_vm2, %v1436_v28, %v1437_v21 }
 0x1d7   : > { %1285 = vst.msk [vmem:[#allocation2 + $0x80] sm:$0xff] %vm1268_vm8, %v1205_v15  ;;  %1095 = vrot.lane.b32.xlu1 %v3086_v50, %s2449_s7 }
 0x1d8   : > { %1491 = vrot.lane.b32.xlu0 %v3086_v50, %s2452_s24  ;;  %v4081_v50 = vld [vmem:[#allocation35_spill] sm:$0xff] }
 0x1d9   : > { %v1340_v18 = vpop.permute.xlu1 %1339 }
 0x1da   : > { %v1207_v49 = vpop.permute.xlu0 %1206  ;;  %1420 = vst.msk [vmem:[#allocation2 + $0x80] sm:$0xff] %vm1403_vm9, %v1340_v18  ;;  %v1585_v57 = vld [vmem:[#allocation2 + $0x78] sm:$0xff] }
 0x1db   : > { %1286 = vst.msk [vmem:[#allocation2 + $0x88] sm:$0xff] %vm1268_vm8, %v1207_v49  ;;  %2368 = vmatmul.mubr.msk.f32.gmra.mrb[14].mxu0 %vm1611_vm11, %v1585_v57  ;;  %828 = vrot.lane.b32.xlu1 %v2716_v63, %s2447_s23 }
 0x1dc   : > { %1224 = vrot.lane.b32.xlu0 %v2716_v63, %s2450_s12 }
 0x1dd   : > { %v944_v20 = vpop.permute.xlu1 %943 }
 0x1de   : > { %v811_v53 = vpop.permute.xlu0 %810  ;;  %1022 = vst.msk [vmem:[#allocation2 + $0x90] sm:$0xff] %vm1003_vm6, %v944_v20 }
 0x1df   : > { %888 = vst.msk [vmem:[#allocation2 + $0x98] sm:$0xff] %vm868_vm5, %v811_v53  ;;  %1359 = vrot.lane.b32.xlu1 %v4081_v50, %s2451_s19 }
 0x1e0   : > { %1226 = vrot.lane.b32.xlu0 %v2713_v62, %s2450_s12 }
 0x1e1   : > { %v1474_v54 = vpop.permute.xlu1 %1473 }
 0x1e2   : > { %v1342_v16 = vpop.permute.xlu0 %1341  ;;  %1554 = vst.msk [vmem:[#allocation2 + $0x80] sm:$0xff] %vm1537_vm10, %v1474_v54 }
 0x1e3   : > { %1421 = vst.msk [vmem:[#allocation2 + $0x88] sm:$0xff] %vm1403_vm9, %v1342_v16  ;;  %963 = vrot.lane.b32.xlu1 %v4081_v50, %s2448_s28 }
 0x1e4   : > { %830 = vrot.lane.b32.xlu0 %v2713_v62, %s2447_s23 }
 0x1e5   : > { %v1078_v63 = vpop.permute.xlu1 %1077 }
 0x1e6   : > { %v946_v48 = vpop.permute.xlu0 %945  ;;  %1156 = vst.msk [vmem:[#allocation2 + $0x90] sm:$0xff] %vm1137_vm7, %v1078_v63 }
 0x1e7   : > { %1023 = vst.msk [vmem:[#allocation2 + $0x98] sm:$0xff] %vm1003_vm6, %v946_v48  ;;  %1493 = vrot.lane.b32.xlu1 %v3104_v45, %s2452_s24 }
 0x1e8   : > { %1361 = vrot.lane.b32.xlu0 %v4082_v30, %s2451_s19 }
 0x1e9   : > { %v1080_v35 = vpop.permute.xlu1 %1079  ;;  %v1586_v14 = vld [vmem:[#allocation2 + $0x80] sm:$0xff] }
 0x1ea   : > { %v1476_v10 = vpop.permute.xlu0 %1475  ;;  %1157 = vst.msk [vmem:[#allocation2 + $0x98] sm:$0xff] %vm1137_vm7, %v1080_v35  ;;  %2370 = vmatprep.mubr.msk.f32.mxu1 %vm1611_vm11, %v1586_v14 }
 0x1eb   : > { %1555 = vst.msk [vmem:[#allocation2 + $0x88] sm:$0xff] %vm1537_vm10, %v1476_v10  ;;  %1097 = vrot.lane.b32.xlu1 %v3104_v45, %s2449_s7  ;;  %v903_v45 = vrot.slane %v264_v4, 1 }
 0x1ec   : > { %965 = vrot.lane.b32.xlu0 %v4082_v30, %s2448_s28 }
 0x1ed   : > { %v813_v62 = vpop.permute.xlu1 %812  ;;  %v904_v29 = vsel %vm350_vm1, %v902_v0, %v903_v45 }
 0x1ee   : > { %v1209_v3 = vpop.permute.xlu0 %1208  ;;  %889 = vst.msk [vmem:[#allocation2 + $0xa0] sm:$0xff] %vm868_vm5, %v813_v62 }
 0x1ef   : > { %1287 = vst.msk [vmem:[#allocation2 + $0x90] sm:$0xff] %vm1268_vm8, %v1209_v3  ;;  %1099 = vrot.lane.b32.xlu1 %v3101_v55, %s2449_s7 }
 0x1f0   : > { %1495 = vrot.lane.b32.xlu0 %v3101_v55, %s2452_s24  ;;  %v265_v55 = vld [vmem:[%s2492_s20 + $0x190] sm:$0x3]  ;;  %s2286_s20 = sshll.u32 %s4084_s16, 8 }
 0x1f1   : > { %v1344_v51 = vpop.permute.xlu1 %1343  ;;  %v905_v39 = vrot.slane %v265_v55, 1  ;;  %v1039_v32 = vrot.slane %v265_v55, 2  ;;  %s3728_s26 = scalar_lea.vmem %s3948_s2, %s2286_s20 }
 0x1f2   : > { %v1211_v42 = vpop.permute.xlu0 %1210  ;;  %1422 = vst.msk [vmem:[#allocation2 + $0x90] sm:$0xff] %vm1403_vm9, %v1344_v51  ;;  %v1587_v1 = vld [vmem:[#allocation2 + $0x88] sm:$0xff] }
 0x1f3   : > { %1288 = vst.msk [vmem:[#allocation2 + $0x98] sm:$0xff] %vm1268_vm8, %v1211_v42  ;;  %2371 = vmatmul.mubr.msk.f32.vlgmr.msra.gmra.mrb[0].mxu1 %vm1611_vm11, %v1587_v1  ;;  %832 = vrot.lane.b32.xlu1 %v263_v52, %s2447_s23  ;;  %v906_v5 = vsel %vm350_vm1, %v903_v45, %v905_v39  ;;  %v1040_v37 = vsel %vm560_vm2, %v1037_v6, %v1039_v32 }
 0x1f4   : > { %1228 = vrot.lane.b32.xlu0 %v263_v52, %s2450_s12 }
 0x1f5   : > { %v948_v12 = vpop.permute.xlu1 %947 }
 0x1f6   : > { %v815_v27 = vpop.permute.xlu0 %814  ;;  %1024 = vst.msk [vmem:[#allocation2 + $0xa0] sm:$0xff] %vm1003_vm6, %v948_v12 }
 0x1f7   : > { %890 = vst.msk [vmem:[#allocation2 + $0xa8] sm:$0xff] %vm868_vm5, %v815_v27  ;;  %1363 = vrot.lane.b32.xlu1 %v904_v29, %s2451_s19 }
 0x1f8   : > { %1230 = vrot.lane.b32.xlu0 %v264_v4, %s2450_s12 }
 0x1f9   : > { %v1478_v34 = vpop.permute.xlu1 %1477 }
 0x1fa   : > { %v1346_v8 = vpop.permute.xlu0 %1345  ;;  %1556 = vst.msk [vmem:[#allocation2 + $0x90] sm:$0xff] %vm1537_vm10, %v1478_v34 }
 0x1fb   : > { %1423 = vst.msk [vmem:[#allocation2 + $0x98] sm:$0xff] %vm1403_vm9, %v1346_v8  ;;  %967 = vrot.lane.b32.xlu1 %v904_v29, %s2448_s28 }
 0x1fc   : > { %834 = vrot.lane.b32.xlu0 %v264_v4, %s2447_s23 }
 0x1fd   : > { %v1082_v9 = vpop.permute.xlu1 %1081 }
 0x1fe   : > { %v950_v47 = vpop.permute.xlu0 %949  ;;  %1158 = vst.msk [vmem:[#allocation2 + $0xa0] sm:$0xff] %vm1137_vm7, %v1082_v9 }
 0x1ff   : > { %1025 = vst.msk [vmem:[#allocation2 + $0xa8] sm:$0xff] %vm1003_vm6, %v950_v47  ;;  %1497 = vrot.lane.b32.xlu1 %v1038_v23, %s2452_s24 }
 0x200   : > { %1365 = vrot.lane.b32.xlu0 %v906_v5, %s2451_s19 }
 0x201   : > { %v1084_v7 = vpop.permute.xlu1 %1083  ;;  %v1588_v11 = vld [vmem:[#allocation2 + $0x90] sm:$0xff] }
 0x202   : > { %v1480_v19 = vpop.permute.xlu0 %1479  ;;  %1159 = vst.msk [vmem:[#allocation2 + $0xa8] sm:$0xff] %vm1137_vm7, %v1084_v7  ;;  %2373 = vmatprep.mubr.msk.f32.mxu1 %vm1611_vm11, %v1588_v11 }
 0x203   : > { %1557 = vst.msk [vmem:[#allocation2 + $0x98] sm:$0xff] %vm1537_vm10, %v1480_v19  ;;  %1101 = vrot.lane.b32.xlu1 %v1038_v23, %s2449_s7 }
 0x204   : > { %969 = vrot.lane.b32.xlu0 %v906_v5, %s2448_s28 }
 0x205   : > { %v817_v13 = vpop.permute.xlu1 %816 }
 0x206   : > { %v1213_v38 = vpop.permute.xlu0 %1212  ;;  %891 = vst.msk [vmem:[#allocation2 + $0xb0] sm:$0xff] %vm868_vm5, %v817_v13 }
 0x207   : > { %1289 = vst.msk [vmem:[#allocation2 + $0xa0] sm:$0xff] %vm1268_vm8, %v1213_v38  ;;  %1103 = vrot.lane.b32.xlu1 %v1040_v37, %s2449_s7 }
 0x208   : > { %1499 = vrot.lane.b32.xlu0 %v1040_v37, %s2452_s24 }
 0x209   : > { %v1348_v36 = vpop.permute.xlu1 %1347 }
 0x20a   : > { %v1215_v61 = vpop.permute.xlu0 %1214  ;;  %1424 = vst.msk [vmem:[#allocation2 + $0xa0] sm:$0xff] %vm1403_vm9, %v1348_v36  ;;  %v1589_v33 = vld [vmem:[#allocation2 + $0x98] sm:$0xff] }
 0x20b   : > { %1290 = vst.msk [vmem:[#allocation2 + $0xa8] sm:$0xff] %vm1268_vm8, %v1215_v61  ;;  %2374 = vmatmul.mubr.msk.f32.gmra.mrb[2].mxu1 %vm1611_vm11, %v1589_v33  ;;  %1234 = vrot.lane.b32.xlu1 %v267_v44, %s2450_s12 }
 0x20c   : > { %1232 = vrot.lane.b32.xlu0 %v266_v43, %s2450_s12 }
 0x20d   : > { %v952_v58 = vpop.permute.xlu1 %951 }
 0x20e   : > { %v819_v26 = vpop.permute.xlu0 %818  ;;  %1026 = vst.msk [vmem:[#allocation2 + $0xb0] sm:$0xff] %vm1003_vm6, %v952_v58 }
 0x20f   : > { %892 = vst.msk [vmem:[#allocation2 + $0xb8] sm:$0xff] %vm868_vm5, %v819_v26  ;;  %1369 = vrot.lane.b32.xlu1 %v1306_v25, %s2451_s19 }
 0x210   : > { %1367 = vrot.lane.b32.xlu0 %v1304_v60, %s2451_s19 }
 0x211   : > { %v2348_v56 = vpop.f32.mrb[0].mxu0  ;;  %v1482_v24 = vpop.permute.xlu1 %1481 }
 0x212   : > { %v1350_v15 = vpop.permute.xlu0 %1349  ;;  %1935 = vst.msk [vmem:[%s3728_s26 + $0x8] sm:$0xff] %vm1933_vm12, %v2348_v56  ;;  %v1967_v18 = vsel %vm1933_vm12, %v2348_v56, 0.0  ;;  %v2038_v49 = vmul.f32 %v2348_v56, %v2348_v56  ;;  %v1774_v57 = vpop.f32.mrb[1].mxu0 }
 0x213   : > { %1558 = vst.msk [vmem:[#allocation2 + $0xa0] sm:$0xff] %vm1537_vm10, %v1482_v24  ;;  %v1966_v20 = vsel %vm1933_vm12, %v1774_v57, 0.0  ;;  %v2037_v53 = vmul.f32 %v1774_v57, %v1774_v57  ;;  %1503 = vrot.lane.b32.xlu1 %v1440_v40, %s2452_s24 }
 0x214   : > { %1425 = vst.msk [vmem:[#allocation2 + $0xa8] sm:$0xff] %vm1403_vm9, %v1350_v15  ;;  %v2070_v50 = vsel %vm1933_vm12, %v2038_v49, 0.0  ;;  %v1968_v54 = vadd.f32 %v1967_v18, %v1966_v20  ;;  %1501 = vrot.lane.b32.xlu0 %v1438_v46, %s2452_s24 }
 0x215   : > { %1934 = vst.msk [vmem:[%s3728_s26] sm:$0xff] %vm1933_vm12, %v1774_v57  ;;  %v2069_v16 = vsel %vm1933_vm12, %v2037_v53, 0.0  ;;  %v1086_v63 = vpop.permute.xlu1 %1085 }
 0x216   : > { %v2071_v48 = vadd.f32 %v2070_v50, %v2069_v16  ;;  %v954_v30 = vpop.permute.xlu0 %953  ;;  %1160 = vst.msk [vmem:[#allocation2 + $0xb0] sm:$0xff] %vm1137_vm7, %v1086_v63 }
 0x217   : > { %1027 = vst.msk [vmem:[#allocation2 + $0xb8] sm:$0xff] %vm1003_vm6, %v954_v30 }
 0x219   : > { %v1088_v35 = vpop.permute.xlu1 %1087 }
 0x21a   : > { %v1590_v14 = vld [vmem:[#allocation2 + $0xa0] sm:$0xff]  ;;  %v1484_v10 = vpop.permute.xlu0 %1483  ;;  %1161 = vst.msk [vmem:[#allocation2 + $0xb8] sm:$0xff] %vm1137_vm7, %v1088_v35 }
 0x21b   : > { %2376 = vmatprep.mubr.msk.f32.mxu1 %vm1611_vm11, %v1590_v14  ;;  %1559 = vst.msk [vmem:[#allocation2 + $0xa8] sm:$0xff] %vm1537_vm10, %v1484_v10 }
 0x21d   : > { %v821_v62 = vpop.permute.xlu1 %820 }
 0x21e   : > { %v1217_v4 = vpop.permute.xlu0 %1216  ;;  %893 = vst.msk [vmem:[#allocation2 + $0xc0] sm:$0xff] %vm868_vm5, %v821_v62 }
 0x21f   : > { %1291 = vst.msk [vmem:[#allocation2 + $0xb0] sm:$0xff] %vm1268_vm8, %v1217_v4 }
 0x221   : > { %v1352_v3 = vpop.permute.xlu1 %1351 }
 0x222   : > { %v1219_v52 = vpop.permute.xlu0 %1218  ;;  %1426 = vst.msk [vmem:[#allocation2 + $0xb0] sm:$0xff] %vm1403_vm9, %v1352_v3  ;;  %v1591_v0 = vld [vmem:[#allocation2 + $0xa8] sm:$0xff] }
 0x223   : > { %1292 = vst.msk [vmem:[#allocation2 + $0xb8] sm:$0xff] %vm1268_vm8, %v1219_v52  ;;  %2377 = vmatmul.mubr.msk.f32.gmra.mrb[4].mxu1 %vm1611_vm11, %v1591_v0 }
 0x225   : > { %v2351_v45 = vpop.f32.mrb[2].mxu0  ;;  %v956_v51 = vpop.permute.xlu1 %955 }
 0x226   : > { %v823_v42 = vpop.permute.xlu0 %822  ;;  %1937 = vst.msk [vmem:[%s3728_s26 + $0x18] sm:$0xff] %vm1933_vm12, %v2351_v45  ;;  %v1784_v1 = vpop.f32.mrb[3].mxu0  ;;  %v2040_v29 = vmul.f32 %v2351_v45, %v2351_v45  ;;  %v1971_v2 = vsel %vm1933_vm12, %v2351_v45, 0.0 }
 0x227   : > { %1028 = vst.msk [vmem:[#allocation2 + $0xc0] sm:$0xff] %vm1003_vm6, %v956_v51  ;;  %v1969_v12 = vsel %vm1933_vm12, %v1784_v1, 0.0  ;;  %v2039_v27 = vmul.f32 %v1784_v1, %v1784_v1 }
 0x228   : > { %894 = vst.msk [vmem:[#allocation2 + $0xc8] sm:$0xff] %vm868_vm5, %v823_v42  ;;  %v1970_v55 = vadd.f32 %v1969_v12, %v1968_v54  ;;  %v2074_v9 = vsel %vm1933_vm12, %v2040_v29, 0.0 }
 0x229   : > { %1936 = vst.msk [vmem:[%s3728_s26 + $0x10] sm:$0xff] %vm1933_vm12, %v1784_v1  ;;  %v2072_v6 = vsel %vm1933_vm12, %v2039_v27, 0.0  ;;  %v1486_v34 = vpop.permute.xlu1 %1485 }
 0x22a   : > { %v2073_v39 = vadd.f32 %v2072_v6, %v2071_v48  ;;  %v1354_v8 = vpop.permute.xlu0 %1353  ;;  %1560 = vst.msk [vmem:[#allocation2 + $0xb0] sm:$0xff] %vm1537_vm10, %v1486_v34  ;;  %v1972_v23 = vadd.f32 %v1971_v2, %v1970_v55 }
 0x22b   : > { %1427 = vst.msk [vmem:[#allocation2 + $0xb8] sm:$0xff] %vm1403_vm9, %v1354_v8 }
 0x22c   : > { %v2075_v5 = vadd.f32 %v2074_v9, %v2073_v39 }
 0x22d   : > { %v1090_v47 = vpop.permute.xlu1 %1089 }
 0x22e   : > { %v958_v32 = vpop.permute.xlu0 %957  ;;  %1162 = vst.msk [vmem:[#allocation2 + $0xc0] sm:$0xff] %vm1137_vm7, %v1090_v47 }
 0x22f   : > { %1029 = vst.msk [vmem:[#allocation2 + $0xc8] sm:$0xff] %vm1003_vm6, %v958_v32 }
 0x231   : > { %v1092_v7 = vpop.permute.xlu1 %1091  ;;  %v1592_v11 = vld [vmem:[#allocation2 + $0xb0] sm:$0xff] }
 0x232   : > { %v1488_v19 = vpop.permute.xlu0 %1487  ;;  %1163 = vst.msk [vmem:[#allocation2 + $0xc8] sm:$0xff] %vm1137_vm7, %v1092_v7  ;;  %2379 = vmatprep.mubr.msk.f32.mxu1 %vm1611_vm11, %v1592_v11 }
 0x233   : > { %1561 = vst.msk [vmem:[#allocation2 + $0xb8] sm:$0xff] %vm1537_vm10, %v1488_v19 }
 0x235   : > { %v825_v37 = vpop.permute.xlu1 %824 }
 0x236   : > { %v1221_v13 = vpop.permute.xlu0 %1220  ;;  %895 = vst.msk [vmem:[#allocation2 + $0xd0] sm:$0xff] %vm868_vm5, %v825_v37 }
 0x237   : > { %1293 = vst.msk [vmem:[#allocation2 + $0xc0] sm:$0xff] %vm1268_vm8, %v1221_v13 }
 0x239   : > { %v2354_v44 = vpop.f32.mrb[4].mxu0  ;;  %v1356_v31 = vpop.permute.xlu1 %1355 }
 0x23a   : > { %v1223_v38 = vpop.permute.xlu0 %1222  ;;  %1939 = vst.msk [vmem:[%s3728_s26 + $0x28] sm:$0xff] %vm1933_vm12, %v2354_v44  ;;  %v1794_v43 = vpop.f32.mrb[5].mxu0  ;;  %v1593_v22 = vld [vmem:[#allocation2 + $0xb8] sm:$0xff]  ;;  %v2042_v59 = vmul.f32 %v2354_v44, %v2354_v44  ;;  %v1975_v33 = vsel %vm1933_vm12, %v2354_v44, 0.0 }
 0x23b   : > { %1428 = vst.msk [vmem:[#allocation2 + $0xc0] sm:$0xff] %vm1403_vm9, %v1356_v31  ;;  %v1973_v36 = vsel %vm1933_vm12, %v1794_v43, 0.0  ;;  %v2041_v41 = vmul.f32 %v1794_v43, %v1794_v43  ;;  %2380 = vmatmul.mubr.msk.f32.gmra.mrb[6].mxu1 %vm1611_vm11, %v1593_v22 }
 0x23c   : > { %1294 = vst.msk [vmem:[#allocation2 + $0xc8] sm:$0xff] %vm1268_vm8, %v1223_v38  ;;  %v1974_v61 = vadd.f32 %v1973_v36, %v1972_v23  ;;  %v2078_v60 = vsel %vm1933_vm12, %v2042_v59, 0.0 }
 0x23d   : > { %1938 = vst.msk [vmem:[%s3728_s26 + $0x20] sm:$0xff] %vm1933_vm12, %v1794_v43  ;;  %v2076_v21 = vsel %vm1933_vm12, %v2041_v41, 0.0  ;;  %v960_v25 = vpop.permute.xlu1 %959 }
 0x23e   : > { %v2077_v17 = vadd.f32 %v2076_v21, %v2075_v5  ;;  %v827_v28 = vpop.permute.xlu0 %826  ;;  %1030 = vst.msk [vmem:[#allocation2 + $0xd0] sm:$0xff] %vm1003_vm6, %v960_v25  ;;  %v1976_v58 = vadd.f32 %v1975_v33, %v1974_v61 }
 0x23f   : > { %896 = vst.msk [vmem:[#allocation2 + $0xd8] sm:$0xff] %vm868_vm5, %v827_v28 }
 0x240   : > { %v2079_v26 = vadd.f32 %v2078_v60, %v2077_v17 }
 0x241   : > { %v1490_v40 = vpop.permute.xlu1 %1489 }
 0x242   : > { %v1358_v56 = vpop.permute.xlu0 %1357  ;;  %1562 = vst.msk [vmem:[#allocation2 + $0xc0] sm:$0xff] %vm1537_vm10, %v1490_v40 }
 0x243   : > { %1429 = vst.msk [vmem:[#allocation2 + $0xc8] sm:$0xff] %vm1403_vm9, %v1358_v56 }
 0x245   : > { %v1094_v24 = vpop.permute.xlu1 %1093 }
 0x246   : > { %v962_v46 = vpop.permute.xlu0 %961  ;;  %1164 = vst.msk [vmem:[#allocation2 + $0xd0] sm:$0xff] %vm1137_vm7, %v1094_v24 }
 0x247   : > { %1031 = vst.msk [vmem:[#allocation2 + $0xd8] sm:$0xff] %vm1003_vm6, %v962_v46 }
 0x249   : > { %v1096_v15 = vpop.permute.xlu1 %1095  ;;  %v1594_v18 = vld [vmem:[#allocation2 + $0xc0] sm:$0xff] }
 0x24a   : > { %v1492_v49 = vpop.permute.xlu0 %1491  ;;  %1165 = vst.msk [vmem:[#allocation2 + $0xd8] sm:$0xff] %vm1137_vm7, %v1096_v15  ;;  %2382 = vmatprep.mubr.msk.f32.mxu1 %vm1611_vm11, %v1594_v18 }
 0x24b   : > { %1563 = vst.msk [vmem:[#allocation2 + $0xc8] sm:$0xff] %vm1537_vm10, %v1492_v49 }
 0x24d   : > { %v2357_v57 = vpop.f32.mrb[6].mxu0  ;;  %v829_v20 = vpop.permute.xlu1 %828 }
 0x24e   : > { %v1225_v53 = vpop.permute.xlu0 %1224  ;;  %1941 = vst.msk [vmem:[%s3728_s26 + $0x38] sm:$0xff] %vm1933_vm12, %v2357_v57  ;;  %v1804_v50 = vpop.f32.mrb[7].mxu0  ;;  %v2044_v54 = vmul.f32 %v2357_v57, %v2357_v57  ;;  %v1979_v30 = vsel %vm1933_vm12, %v2357_v57, 0.0 }
 0x24f   : > { %897 = vst.msk [vmem:[#allocation2 + $0xe0] sm:$0xff] %vm868_vm5, %v829_v20  ;;  %v1977_v16 = vsel %vm1933_vm12, %v1804_v50, 0.0  ;;  %v2043_v63 = vmul.f32 %v1804_v50, %v1804_v50 }
 0x250   : > { %1295 = vst.msk [vmem:[#allocation2 + $0xd0] sm:$0xff] %vm1268_vm8, %v1225_v53  ;;  %v1978_v48 = vadd.f32 %v1977_v16, %v1976_v58  ;;  %v2082_v52 = vsel %vm1933_vm12, %v2044_v54, 0.0 }
 0x251   : > { %1940 = vst.msk [vmem:[%s3728_s26 + $0x30] sm:$0xff] %vm1933_vm12, %v1804_v50  ;;  %v2080_v35 = vsel %vm1933_vm12, %v2043_v63, 0.0  ;;  %v1360_v14 = vpop.permute.xlu1 %1359 }
 0x252   : > { %v2081_v10 = vadd.f32 %v2080_v35, %v2079_v26  ;;  %v1227_v62 = vpop.permute.xlu0 %1226  ;;  %1430 = vst.msk [vmem:[#allocation2 + $0xd0] sm:$0xff] %vm1403_vm9, %v1360_v14  ;;  %v1595_v4 = vld [vmem:[#allocation2 + $0xc8] sm:$0xff]  ;;  %v1980_v3 = vadd.f32 %v1979_v30, %v1978_v48 }
 0x253   : > { %1296 = vst.msk [vmem:[#allocation2 + $0xd8] sm:$0xff] %vm1268_vm8, %v1227_v62  ;;  %2383 = vmatmul.mubr.msk.f32.gmra.mrb[8].mxu1 %vm1611_vm11, %v1595_v4 }
 0x254   : > { %v2083_v0 = vadd.f32 %v2082_v52, %v2081_v10 }
 0x255   : > { %v964_v45 = vpop.permute.xlu1 %963 }
 0x256   : > { %v831_v51 = vpop.permute.xlu0 %830  ;;  %1032 = vst.msk [vmem:[#allocation2 + $0xe0] sm:$0xff] %vm1003_vm6, %v964_v45 }
 0x257   : > { %898 = vst.msk [vmem:[#allocation2 + $0xe8] sm:$0xff] %vm868_vm5, %v831_v51 }
 0x259   : > { %v1494_v42 = vpop.permute.xlu1 %1493 }
 0x25a   : > { %v1362_v1 = vpop.permute.xlu0 %1361  ;;  %1564 = vst.msk [vmem:[#allocation2 + $0xd0] sm:$0xff] %vm1537_vm10, %v1494_v42 }
 0x25b   : > { %1431 = vst.msk [vmem:[#allocation2 + $0xd8] sm:$0xff] %vm1403_vm9, %v1362_v1 }
 0x25d   : > { %v1098_v29 = vpop.permute.xlu1 %1097 }
 0x25e   : > { %v966_v12 = vpop.permute.xlu0 %965  ;;  %1166 = vst.msk [vmem:[#allocation2 + $0xe0] sm:$0xff] %vm1137_vm7, %v1098_v29 }
 0x25f   : > { %1033 = vst.msk [vmem:[#allocation2 + $0xe8] sm:$0xff] %vm1003_vm6, %v966_v12 }
 0x261   : > { %v1100_v27 = vpop.permute.xlu1 %1099  ;;  %v1596_v55 = vld [vmem:[#allocation2 + $0xd0] sm:$0xff] }
 0x262   : > { %v1496_v2 = vpop.permute.xlu0 %1495  ;;  %1167 = vst.msk [vmem:[#allocation2 + $0xe8] sm:$0xff] %vm1137_vm7, %v1100_v27  ;;  %2385 = vmatprep.mubr.msk.f32.mxu1 %vm1611_vm11, %v1596_v55 }
 0x263   : > { %1565 = vst.msk [vmem:[#allocation2 + $0xd8] sm:$0xff] %vm1537_vm10, %v1496_v2 }
 0x265   : > { %v833_v6 = vpop.permute.xlu1 %832 }
 0x266   : > { %v1229_v34 = vpop.permute.xlu0 %1228  ;;  %v2360_v39 = vpop.f32.mrb[8].mxu0  ;;  %899 = vst.msk [vmem:[#allocation2 + $0xf0] sm:$0xff] %vm868_vm5, %v833_v6 }
 0x267   : > { %1297 = vst.msk [vmem:[#allocation2 + $0xe0] sm:$0xff] %vm1268_vm8, %v1229_v34  ;;  %v1814_v8 = vpop.f32.mrb[9].mxu0  ;;  %v2046_v23 = vmul.f32 %v2360_v39, %v2360_v39  ;;  %v1983_v7 = vsel %vm1933_vm12, %v2360_v39, 0.0 }
 0x268   : > { %1943 = vst.msk [vmem:[%s3728_s26 + $0x48] sm:$0xff] %vm1933_vm12, %v2360_v39  ;;  %1942 = vst.msk [vmem:[%s3728_s26 + $0x40] sm:$0xff] %vm1933_vm12, %v1814_v8  ;;  %v1981_v9 = vsel %vm1933_vm12, %v1814_v8, 0.0  ;;  %v2045_v5 = vmul.f32 %v1814_v8, %v1814_v8 }
 0x269   : > { %v1982_v47 = vadd.f32 %v1981_v9, %v1980_v3  ;;  %v1364_v32 = vpop.permute.xlu1 %1363  ;;  %v2086_v31 = vsel %vm1933_vm12, %v2046_v23, 0.0 }
 0x26a   : > { %v2084_v11 = vsel %vm1933_vm12, %v2045_v5, 0.0  ;;  %v1231_v19 = vpop.permute.xlu0 %1230  ;;  %1432 = vst.msk [vmem:[#allocation2 + $0xe0] sm:$0xff] %vm1403_vm9, %v1364_v32  ;;  %v1597_v37 = vld [vmem:[#allocation2 + $0xd8] sm:$0xff] }
 0x26b   : > { %v2085_v13 = vadd.f32 %v2084_v11, %v2083_v0  ;;  %1298 = vst.msk [vmem:[#allocation2 + $0xe8] sm:$0xff] %vm1268_vm8, %v1231_v19  ;;  %2386 = vmatmul.mubr.msk.f32.gmra.mrb[10].mxu1 %vm1611_vm11, %v1597_v37  ;;  %v1984_v44 = vadd.f32 %v1983_v7, %v1982_v47 }
 0x26d   : > { %v968_v38 = vpop.permute.xlu1 %967  ;;  %v2087_v43 = vadd.f32 %v2086_v31, %v2085_v13 }
 0x26e   : > { %v835_v22 = vpop.permute.xlu0 %834  ;;  %1034 = vst.msk [vmem:[#allocation2 + $0xf0] sm:$0xff] %vm1003_vm6, %v968_v38 }
 0x26f   : > { %900 = vst.msk [vmem:[#allocation2 + $0xf8] sm:$0xff] %vm868_vm5, %v835_v22 }
 0x271   : > { %v1498_v59 = vpop.permute.xlu1 %1497 }
 0x272   : > { %v1366_v36 = vpop.permute.xlu0 %1365  ;;  %1566 = vst.msk [vmem:[#allocation2 + $0xe0] sm:$0xff] %vm1537_vm10, %v1498_v59 }
 0x273   : > { %1433 = vst.msk [vmem:[#allocation2 + $0xe8] sm:$0xff] %vm1403_vm9, %v1366_v36 }
 0x275   : > { %v1102_v41 = vpop.permute.xlu1 %1101 }
 0x276   : > { %v970_v61 = vpop.permute.xlu0 %969  ;;  %1168 = vst.msk [vmem:[#allocation2 + $0xf0] sm:$0xff] %vm1137_vm7, %v1102_v41 }
 0x277   : > { %1035 = vst.msk [vmem:[#allocation2 + $0xf8] sm:$0xff] %vm1003_vm6, %v970_v61 }
 0x279   : > { %v1104_v33 = vpop.permute.xlu1 %1103  ;;  %v1598_v21 = vld [vmem:[#allocation2 + $0xe0] sm:$0xff] }
 0x27a   : > { %v1500_v25 = vpop.permute.xlu0 %1499  ;;  %1169 = vst.msk [vmem:[#allocation2 + $0xf8] sm:$0xff] %vm1137_vm7, %v1104_v33  ;;  %2388 = vmatprep.mubr.msk.f32.mxu1 %vm1611_vm11, %v1598_v21 }
 0x27b   : > { %1567 = vst.msk [vmem:[#allocation2 + $0xe8] sm:$0xff] %vm1537_vm10, %v1500_v25 }
 0x27d   : > { %v1235_v17 = vpop.permute.xlu1 %1234 }
 0x27e   : > { %v1233_v28 = vpop.permute.xlu0 %1232  ;;  %v2363_v58 = vpop.f32.mrb[10].mxu0  ;;  %1300 = vst.msk [vmem:[#allocation2 + $0xf8] sm:$0xff] %vm1268_vm8, %v1235_v17 }
 0x27f   : > { %1299 = vst.msk [vmem:[#allocation2 + $0xf0] sm:$0xff] %vm1268_vm8, %v1233_v28  ;;  %v1824_v60 = vpop.f32.mrb[11].mxu0  ;;  %v2048_v26 = vmul.f32 %v2363_v58, %v2363_v58  ;;  %v1987_v15 = vsel %vm1933_vm12, %v2363_v58, 0.0 }
 0x280   : > { %1945 = vst.msk [vmem:[%s3728_s26 + $0x58] sm:$0xff] %vm1933_vm12, %v2363_v58  ;;  %1944 = vst.msk [vmem:[%s3728_s26 + $0x50] sm:$0xff] %vm1933_vm12, %v1824_v60  ;;  %v1985_v40 = vsel %vm1933_vm12, %v1824_v60, 0.0  ;;  %v2047_v56 = vmul.f32 %v1824_v60, %v1824_v60 }
 0x281   : > { %v1986_v24 = vadd.f32 %v1985_v40, %v1984_v44  ;;  %v1370_v46 = vpop.permute.xlu1 %1369  ;;  %v2090_v50 = vsel %vm1933_vm12, %v2048_v26, 0.0 }
 0x282   : > { %v2088_v18 = vsel %vm1933_vm12, %v2047_v56, 0.0  ;;  %v1368_v49 = vpop.permute.xlu0 %1367  ;;  %1435 = vst.msk [vmem:[#allocation2 + $0xf8] sm:$0xff] %vm1403_vm9, %v1370_v46  ;;  %v1599_v57 = vld [vmem:[#allocation2 + $0xe8] sm:$0xff] }
 0x283   : > { %v2089_v20 = vadd.f32 %v2088_v18, %v2087_v43  ;;  %1434 = vst.msk [vmem:[#allocation2 + $0xf0] sm:$0xff] %vm1403_vm9, %v1368_v49  ;;  %2389 = vmatmul.mubr.msk.f32.gmra.mrb[12].mxu1 %vm1611_vm11, %v1599_v57  ;;  %v1988_v53 = vadd.f32 %v1987_v15, %v1986_v24 }
 0x285   : > { %v1504_v54 = vpop.permute.xlu1 %1503  ;;  %v2091_v16 = vadd.f32 %v2090_v50, %v2089_v20 }
 0x286   : > { %v1502_v63 = vpop.permute.xlu0 %1501  ;;  %1569 = vst.msk [vmem:[#allocation2 + $0xf8] sm:$0xff] %vm1537_vm10, %v1504_v54 }
 0x287   : > { %1568 = vst.msk [vmem:[#allocation2 + $0xf0] sm:$0xff] %vm1537_vm10, %v1502_v63 }
 0x28d   : > { %v1601_v48 = vld [vmem:[#allocation2 + $0xf8] sm:$0xff] }
 0x28e   : > { %v1600_v30 = vld [vmem:[#allocation2 + $0xf0] sm:$0xff] }
 0x28f   : > { %2391 = vmatprep.mubr.msk.f32.mxu1 %vm1611_vm11, %v1600_v30 }
 0x290   : > { %2392 = vmatmul.mubr.msk.f32.gmra.mrb[14].mxu1 %vm1611_vm11, %v1601_v48 }
 0x296   : > { %v2366_v35 = vpop.f32.mrb[12].mxu0 }
 0x297   : > { %1947 = vst.msk [vmem:[%s3728_s26 + $0x68] sm:$0xff] %vm1933_vm12, %v2366_v35  ;;  %v1834_v14 = vpop.f32.mrb[13].mxu0  ;;  %v2050_v10 = vmul.f32 %v2366_v35, %v2366_v35  ;;  %v1991_v52 = vsel %vm1933_vm12, %v2366_v35, 0.0 }
 0x298   : > { %1946 = vst.msk [vmem:[%s3728_s26 + $0x60] sm:$0xff] %vm1933_vm12, %v1834_v14  ;;  %v1989_v62 = vsel %vm1933_vm12, %v1834_v14, 0.0  ;;  %v2049_v4 = vmul.f32 %v1834_v14, %v1834_v14 }
 0x299   : > { %v1990_v3 = vadd.f32 %v1989_v62, %v1988_v53  ;;  %v2094_v42 = vsel %vm1933_vm12, %v2050_v10, 0.0 }
 0x29a   : > { %v2092_v0 = vsel %vm1933_vm12, %v2049_v4, 0.0 }
 0x29b   : > { %v2093_v45 = vadd.f32 %v2092_v0, %v2091_v16  ;;  %v1992_v51 = vadd.f32 %v1991_v52, %v1990_v3 }
 0x29d   : > { %v2095_v1 = vadd.f32 %v2094_v42, %v2093_v45 }
 0x2ae   : > { %v2369_v29 = vpop.f32.mrb[14].mxu0 }
 0x2af   : > { %1949 = vst.msk [vmem:[%s3728_s26 + $0x78] sm:$0xff] %vm1933_vm12, %v2369_v29  ;;  %v1844_v12 = vpop.f32.mrb[15].mxu0  ;;  %v2052_v27 = vmul.f32 %v2369_v29, %v2369_v29  ;;  %v1995_v34 = vsel %vm1933_vm12, %v2369_v29, 0.0 }
 0x2b0   : > { %1948 = vst.msk [vmem:[%s3728_s26 + $0x70] sm:$0xff] %vm1933_vm12, %v1844_v12  ;;  %v1993_v55 = vsel %vm1933_vm12, %v1844_v12, 0.0  ;;  %v2051_v2 = vmul.f32 %v1844_v12, %v1844_v12 }
 0x2b1   : > { %v1994_v6 = vadd.f32 %v1993_v55, %v1992_v51  ;;  %v2098_v9 = vsel %vm1933_vm12, %v2052_v27, 0.0 }
 0x2b2   : > { %v2096_v39 = vsel %vm1933_vm12, %v2051_v2, 0.0 }
 0x2b3   : > { %v1996_v8 = vadd.f32 %v1995_v34, %v1994_v6  ;;  %v2097_v23 = vadd.f32 %v2096_v39, %v2095_v1 }
 0x2b5   : > { %v2099_v5 = vadd.f32 %v2098_v9, %v2097_v23 }
 0x2c6   : > { %v2372_v47 = vpop.f32.mrb[0].mxu1 }
 0x2c7   : > { %1951 = vst.msk [vmem:[%s3728_s26 + $0x88] sm:$0xff] %vm1933_vm12, %v2372_v47  ;;  %v1854_v32 = vpop.f32.mrb[1].mxu1  ;;  %v2054_v7 = vmul.f32 %v2372_v47, %v2372_v47  ;;  %v1999_v13 = vsel %vm1933_vm12, %v2372_v47, 0.0 }
 0x2c8   : > { %1950 = vst.msk [vmem:[%s3728_s26 + $0x80] sm:$0xff] %vm1933_vm12, %v1854_v32  ;;  %v1997_v11 = vsel %vm1933_vm12, %v1854_v32, 0.0  ;;  %v2053_v19 = vmul.f32 %v1854_v32, %v1854_v32 }
 0x2c9   : > { %v1998_v37 = vadd.f32 %v1997_v11, %v1996_v8  ;;  %v2102_v43 = vsel %vm1933_vm12, %v2054_v7, 0.0 }
 0x2ca   : > { %v2100_v44 = vsel %vm1933_vm12, %v2053_v19, 0.0 }
 0x2cb   : > { %v2101_v31 = vadd.f32 %v2100_v44, %v2099_v5  ;;  %v2000_v38 = vadd.f32 %v1999_v13, %v1998_v37 }
 0x2cd   : > { %v2103_v22 = vadd.f32 %v2102_v43, %v2101_v31 }
 0x2de   : > { %v2375_v59 = vpop.f32.mrb[2].mxu1 }
 0x2df   : > { %1953 = vst.msk [vmem:[%s3728_s26 + $0x98] sm:$0xff] %vm1933_vm12, %v2375_v59  ;;  %v1864_v36 = vpop.f32.mrb[3].mxu1  ;;  %v2056_v41 = vmul.f32 %v2375_v59, %v2375_v59  ;;  %v2003_v25 = vsel %vm1933_vm12, %v2375_v59, 0.0 }
 0x2e0   : > { %1952 = vst.msk [vmem:[%s3728_s26 + $0x90] sm:$0xff] %vm1933_vm12, %v1864_v36  ;;  %v2001_v61 = vsel %vm1933_vm12, %v1864_v36, 0.0  ;;  %v2055_v33 = vmul.f32 %v1864_v36, %v1864_v36 }
 0x2e1   : > { %v2002_v21 = vadd.f32 %v2001_v61, %v2000_v38  ;;  %v2106_v60 = vsel %vm1933_vm12, %v2056_v41, 0.0 }
 0x2e2   : > { %v2104_v17 = vsel %vm1933_vm12, %v2055_v33, 0.0 }
 0x2e3   : > { %v2105_v28 = vadd.f32 %v2104_v17, %v2103_v22  ;;  %v2004_v58 = vadd.f32 %v2003_v25, %v2002_v21 }
 0x2e5   : > { %v2107_v26 = vadd.f32 %v2106_v60, %v2105_v28 }
 0x2f6   : > { %v2378_v40 = vpop.f32.mrb[4].mxu1 }
 0x2f7   : > { %1955 = vst.msk [vmem:[%s3728_s26 + $0xa8] sm:$0xff] %vm1933_vm12, %v2378_v40  ;;  %v1874_v56 = vpop.f32.mrb[5].mxu1  ;;  %v2058_v24 = vmul.f32 %v2378_v40, %v2378_v40  ;;  %v2007_v49 = vsel %vm1933_vm12, %v2378_v40, 0.0 }
 0x2f8   : > { %1954 = vst.msk [vmem:[%s3728_s26 + $0xa0] sm:$0xff] %vm1933_vm12, %v1874_v56  ;;  %v2005_v46 = vsel %vm1933_vm12, %v1874_v56, 0.0  ;;  %v2057_v15 = vmul.f32 %v1874_v56, %v1874_v56 }
 0x2f9   : > { %v2006_v18 = vadd.f32 %v2005_v46, %v2004_v58  ;;  %v2110_v50 = vsel %vm1933_vm12, %v2058_v24, 0.0 }
 0x2fa   : > { %v2108_v57 = vsel %vm1933_vm12, %v2057_v15, 0.0 }
 0x2fb   : > { %v2109_v20 = vadd.f32 %v2108_v57, %v2107_v26  ;;  %v2008_v53 = vadd.f32 %v2007_v49, %v2006_v18 }
 0x2fd   : > { %v2111_v54 = vadd.f32 %v2110_v50, %v2109_v20 }
 0x30e   : > { %v2381_v16 = vpop.f32.mrb[6].mxu1 }
 0x30f   : > { %1957 = vst.msk [vmem:[%s3728_s26 + $0xb8] sm:$0xff] %vm1933_vm12, %v2381_v16  ;;  %v1884_v63 = vpop.f32.mrb[7].mxu1  ;;  %v2060_v48 = vmul.f32 %v2381_v16, %v2381_v16  ;;  %v2011_v10 = vsel %vm1933_vm12, %v2381_v16, 0.0 }
 0x310   : > { %1956 = vst.msk [vmem:[%s3728_s26 + $0xb0] sm:$0xff] %vm1933_vm12, %v1884_v63  ;;  %v2009_v30 = vsel %vm1933_vm12, %v1884_v63, 0.0  ;;  %v2059_v35 = vmul.f32 %v1884_v63, %v1884_v63 }
 0x311   : > { %v2010_v14 = vadd.f32 %v2009_v30, %v2008_v53  ;;  %v2114_v52 = vsel %vm1933_vm12, %v2060_v48, 0.0 }
 0x312   : > { %v2112_v62 = vsel %vm1933_vm12, %v2059_v35, 0.0 }
 0x313   : > { %v2113_v4 = vadd.f32 %v2112_v62, %v2111_v54  ;;  %v2012_v3 = vadd.f32 %v2011_v10, %v2010_v14 }
 0x315   : > { %v2115_v0 = vadd.f32 %v2114_v52, %v2113_v4 }
 0x326   : > { %v2384_v45 = vpop.f32.mrb[8].mxu1 }
 0x327   : > { %1959 = vst.msk [vmem:[%s3728_s26 + $0xc8] sm:$0xff] %vm1933_vm12, %v2384_v45  ;;  %v1894_v51 = vpop.f32.mrb[9].mxu1  ;;  %v2062_v42 = vmul.f32 %v2384_v45, %v2384_v45  ;;  %v2015_v27 = vsel %vm1933_vm12, %v2384_v45, 0.0 }
 0x328   : > { %1958 = vst.msk [vmem:[%s3728_s26 + $0xc0] sm:$0xff] %vm1933_vm12, %v1894_v51  ;;  %v2013_v1 = vsel %vm1933_vm12, %v1894_v51, 0.0  ;;  %v2061_v29 = vmul.f32 %v1894_v51, %v1894_v51 }
 0x329   : > { %v2014_v12 = vadd.f32 %v2013_v1, %v2012_v3  ;;  %v2118_v34 = vsel %vm1933_vm12, %v2062_v42, 0.0 }
 0x32a   : > { %v2116_v55 = vsel %vm1933_vm12, %v2061_v29, 0.0 }
 0x32b   : > { %v2117_v2 = vadd.f32 %v2116_v55, %v2115_v0  ;;  %v2016_v6 = vadd.f32 %v2015_v27, %v2014_v12 }
 0x32d   : > { %v2119_v39 = vadd.f32 %v2118_v34, %v2117_v2 }
 0x33e   : > { %v2387_v8 = vpop.f32.mrb[10].mxu1 }
 0x33f   : > { %1961 = vst.msk [vmem:[%s3728_s26 + $0xd8] sm:$0xff] %vm1933_vm12, %v2387_v8  ;;  %v1904_v23 = vpop.f32.mrb[11].mxu1  ;;  %v2064_v9 = vmul.f32 %v2387_v8, %v2387_v8  ;;  %v2019_v7 = vsel %vm1933_vm12, %v2387_v8, 0.0 }
 0x340   : > { %1960 = vst.msk [vmem:[%s3728_s26 + $0xd0] sm:$0xff] %vm1933_vm12, %v1904_v23  ;;  %v2017_v5 = vsel %vm1933_vm12, %v1904_v23, 0.0  ;;  %v2063_v47 = vmul.f32 %v1904_v23, %v1904_v23 }
 0x341   : > { %v2018_v32 = vadd.f32 %v2017_v5, %v2016_v6  ;;  %v2122_v13 = vsel %vm1933_vm12, %v2064_v9, 0.0 }
 0x342   : > { %v2120_v11 = vsel %vm1933_vm12, %v2063_v47, 0.0 }
 0x343   : > { %v2121_v19 = vadd.f32 %v2120_v11, %v2119_v39  ;;  %v2020_v37 = vadd.f32 %v2019_v7, %v2018_v32 }
 0x345   : > { %v2123_v44 = vadd.f32 %v2122_v13, %v2121_v19 }
 0x356   : > { %v2390_v31 = vpop.f32.mrb[12].mxu1 }
 0x357   : > { %1963 = vst.msk [vmem:[%s3728_s26 + $0xe8] sm:$0xff] %vm1933_vm12, %v2390_v31  ;;  %v1914_v38 = vpop.f32.mrb[13].mxu1  ;;  %v2066_v43 = vmul.f32 %v2390_v31, %v2390_v31  ;;  %v2023_v41 = vsel %vm1933_vm12, %v2390_v31, 0.0 }
 0x358   : > { %1962 = vst.msk [vmem:[%s3728_s26 + $0xe0] sm:$0xff] %vm1933_vm12, %v1914_v38  ;;  %v2021_v22 = vsel %vm1933_vm12, %v1914_v38, 0.0  ;;  %v2065_v59 = vmul.f32 %v1914_v38, %v1914_v38 }
 0x359   : > { %v2022_v36 = vadd.f32 %v2021_v22, %v2020_v37  ;;  %v2126_v25 = vsel %vm1933_vm12, %v2066_v43, 0.0 }
 0x35a   : > { %v2124_v61 = vsel %vm1933_vm12, %v2065_v59, 0.0 }
 0x35b   : > { %v2125_v33 = vadd.f32 %v2124_v61, %v2123_v44  ;;  %v2024_v21 = vadd.f32 %v2023_v41, %v2022_v36 }
 0x35d   : > { %v2127_v17 = vadd.f32 %v2126_v25, %v2125_v33 }
 0x363   : > { %v2393_v28 = vpop.f32.mrb[14].mxu1 }
 0x364   : > { %1965 = vst.msk [vmem:[%s3728_s26 + $0xf8] sm:$0xff] %vm1933_vm12, %v2393_v28  ;;  %v1924_v58 = vpop.f32.mrb[15].mxu1  ;;  %v2068_v60 = vmul.f32 %v2393_v28, %v2393_v28  ;;  %v2027_v24 = vsel %vm1933_vm12, %v2393_v28, 0.0 }
 0x365   : > { %1964 = vst.msk [vmem:[%s3728_s26 + $0xf0] sm:$0xff] %vm1933_vm12, %v1924_v58  ;;  %v2025_v26 = vsel %vm1933_vm12, %v1924_v58, 0.0  ;;  %v2067_v40 = vmul.f32 %v1924_v58, %v1924_v58 }
 0x366   : > { %v2026_v56 = vadd.f32 %v2025_v26, %v2024_v21  ;;  %v2130_v49 = vsel %vm1933_vm12, %v2068_v60, 0.0 }
 0x367   : > { %v2128_v46 = vsel %vm1933_vm12, %v2067_v40, 0.0 }
 0x368   : > { %v2028_v15 = vadd.f32 %v2027_v24, %v2026_v56  ;;  %v2129_v18 = vadd.f32 %v2128_v46, %v2127_v17 }
 0x36a   : > { %v2029_v57 = vrot.slane %v2028_v15, 4  ;;  %v2131_v20 = vadd.f32 %v2130_v49, %v2129_v18 }
 0x36c   : > { %v2030_v53 = vadd.f32 %v2029_v57, %v2028_v15  ;;  %v2132_v50 = vrot.slane %v2131_v20, 4 }
 0x36e   : > { %v2031_v54 = vrot.slane %v2030_v53, 2  ;;  %v2133_v16 = vadd.f32 %v2132_v50, %v2131_v20 }
 0x370   : > { %v2032_v63 = vadd.f32 %v2031_v54, %v2030_v53  ;;  %v2134_v48 = vrot.slane %v2133_v16, 2 }
 0x372   : > { %v2033_v30 = vrot.slane %v2032_v63, 1  ;;  %v2135_v35 = vadd.f32 %v2134_v48, %v2133_v16 }
 0x374   : > { %v2034_v14 = vadd.f32 %v2033_v30, %v2032_v63  ;;  %v2136_v10 = vrot.slane %v2135_v35, 1 }
 0x376   : > { %2036 = vst.msk [vmem:[%s211_s29] sm:$0x1] %vm2035_vm13, %v2034_v14  ;;  %v2137_v62 = vadd.f32 %v2136_v10, %v2135_v35 }
 0x378   : > { %2138 = vst.msk [vmem:[%s214_s6] sm:$0x1] %vm2035_vm13, %v2137_v62 }
 0x379 PF: > { %s15_s15 = sadd.s32 1, %s2443_s15  }
 0x37a   : > { %p12_p4 = scmp.ge.s32.totalorder %s15_s15, 4  }
 0x37c   :  { %14 = sbr.rel (!%p12_p4) target bundleno = 1 (0x1), region = 82 }

</bundles_post_ra>
